<compile_context>
chip_gen: v6e
topology: v6e:2x2x1
jax: 0.10.0
libtpu: 0.0.40
codegen_flags: <defaults>
</compile_context>

<pallas_src>
import functools
import math

import jax
import jax.numpy as jnp
import numpy as np
from jax.experimental import pallas as pl
from jax.experimental.pallas import tpu as pltpu

EPS = 1e-5          # PyTorch LayerNorm default eps
NUM_LAYERS = 6
_LANE = 128


def _round_up(x, m):
    return ((x + m - 1) // m) * m


def _layer_norm(x, w, b):
    mu = jnp.mean(x, axis=-1, keepdims=True)
    d = x - mu
    var = jnp.mean(d * d, axis=-1, keepdims=True)
    return d * jax.lax.rsqrt(var + EPS) * w + b


def _bf16_dot(a, b):
    # bf16 operands on the MXU, f32 accumulation.
    return jnp.dot(a.astype(jnp.bfloat16), b.astype(jnp.bfloat16),
                   preferred_element_type=jnp.float32)


# ---------------------------------------------------------------------------
# Single fused kernel: 6 post-norm encoder layers (single head, dropout=0.0)
# + final Linear.  All weights (stacked over the layer axis) live in VMEM for
# the whole call; the activation block is (S*N, E) = (16, 32).
# ---------------------------------------------------------------------------
def fused_forward_kernel(x_ref, wqkv_ref, bqkv_ref, wo_ref, bo_ref,
                         ln1w_ref, ln1b_ref, w1_ref, b1_ref,
                         w2_ref, b2_ref, ln2w_ref, ln2b_ref,
                         lin_w_ref, lin_b_ref,
                         o_ref, act_ref, qkv_ref, *, seq, batch):
    S, N = seq, batch
    R, E = x_ref.shape                       # R == S * N
    EP = qkv_ref.shape[1] // 3               # lane-aligned q/k/v block stride
    num_layers = wqkv_ref.shape[0]
    scale = 1.0 / math.sqrt(E)               # single head -> head_dim == E

    x2 = x_ref[...]                          # (R, E) f32, row index = s*N + n

    for i in range(num_layers):              # all layer weights resident in VMEM
        # ---- fused QKV projection over all S*N rows in one MXU matmul ----
        qkv_ref[...] = _bf16_dot(x2, wqkv_ref[i]) + bqkv_ref[i]   # (R, 3*EP) f32

        # q/k/v blocks: sublane offsets are multiples of N=8, lane offsets are
        # multiples of 128 (weights were zero-padded per block), so all loads
        # are tile-aligned.
        q_blk = [qkv_ref[pl.ds(s * N, N), pl.ds(0 * EP, E)] for s in range(S)]
        k_blk = [qkv_ref[pl.ds(s * N, N), pl.ds(1 * EP, E)] for s in range(S)]
        v_blk = [qkv_ref[pl.ds(s * N, N), pl.ds(2 * EP, E)] for s in range(S)]

        # ---- single-head attention, softmax over the S key positions ----
        # S == 2 here, so the S*S score terms stay as vectorized (N, E)
        # VPU/XLU ops; this avoids in-kernel batched dot_general / transposes
        # while the heavy matmuls below already run on the collapsed S*N rows.
        for s in range(S):
            sc = [jnp.sum(q_blk[s] * k_blk[t], axis=-1, keepdims=True) * scale
                  for t in range(S)]                               # (N, 1) each
            m = functools.reduce(jnp.maximum, sc)
            p = [jnp.exp(c - m) for c in sc]
            inv = pl.reciprocal(functools.reduce(jnp.add, p), approx=True)
            ctx = (p[0] * inv) * v_blk[0]
            for t in range(1, S):
                ctx = ctx + (p[t] * inv) * v_blk[t]                # (N, E)
            act_ref[pl.ds(s * N, N), :] = ctx                      # stage rows

        ctx2 = act_ref[...]                                        # (R, E)
        attn_out = _bf16_dot(ctx2, wo_ref[i]) + bo_ref[i]
        h = _layer_norm(x2 + attn_out, ln1w_ref[i], ln1b_ref[i])

        # ---- feed-forward (dim_feedforward = 2048, ReLU) ----
        ff = _bf16_dot(h, w1_ref[i]) + b1_ref[i]
        ff = jnp.maximum(ff, 0.0)
        ff = _bf16_dot(ff, w2_ref[i]) + b2_ref[i]
        x2 = _layer_norm(h + ff, ln2w_ref[i], ln2b_ref[i])

    # ---- final Linear(dim*max_length -> output_size), fused in-kernel ----
    #   x.view(-1) @ W + b  ==  sum_r  x2[r, :] @ W.reshape(R, E, O)[r]  + b
    # (avoids an in-kernel (R, E) -> (1, R*E) lane relayout; R tiny dots only
    #  run once as the epilogue)
    act_ref[...] = x2
    out = lin_b_ref[...]                                           # (1, O) f32
    for r in range(R):
        row = act_ref[pl.ds(r, 1), :]                              # (1, E)
        out = out + _bf16_dot(row, lin_w_ref[r])
    o_ref[...] = out


@jax.jit
def dialect_nn_forward(token_ids, params):
    B, L = token_ids.shape                   # interpreted as (S=B, N=L)
    E = params['embedding'].shape[1]
    O = params['lin_b'].shape[-1]

    x = jnp.take(params['embedding'], token_ids, axis=0)          # (B, L, E)
    # `positions` is computed but never used in the reference forward().
    _ = jnp.broadcast_to(jnp.arange(L), (B, L))
    # TODO(synk): positional_encoding / ReLU / LayerNorm(output_size) / Dropout
    # are dead submodules in the reference forward(); intentionally not applied.

    x2 = x.reshape(B * L, E).astype(jnp.float32)                  # row = s*N + n
    lin_w3 = params['lin_w'].reshape(B * L, E, O)                 # needs B*L == max_length
    qkv_width = params['wqkv'].shape[-1]                          # 3 * 128

    vmem = pl.BlockSpec(memory_space=pltpu.MemorySpace.VMEM)
    kernel = functools.partial(fused_forward_kernel, seq=B, batch=L)
    return pl.pallas_call(
        kernel,
        out_shape=jax.ShapeDtypeStruct((1, O), jnp.float32),
        in_specs=[vmem] * 15,
        out_specs=vmem,
        scratch_shapes=[pltpu.VMEM((B * L, E), jnp.float32),       # ctx / final acts
                        pltpu.VMEM((B * L, qkv_width), jnp.float32)],
    )(x2,
      params['wqkv'], params['bqkv'], params['wo'], params['bo'],
      params['ln1w'], params['ln1b'], params['w1'], params['b1'],
      params['w2'], params['b2'], params['ln2w'], params['ln2b'],
      lin_w3, params['lin_b'])


# ---------------------------------------------------------------------------
# Parameter init (deterministic, synthetic).  Matmul weights are stored in
# bf16; biases / LayerNorm params stay f32.  Q/K/V weights are fused along the
# output axis with each block zero-padded to a 128-lane boundary.
# ---------------------------------------------------------------------------
def init_params(key, vocab_size, dim, max_length, dff=2048, output_size=12,
                num_layers=NUM_LAYERS):
    assert max(dim // 128, 1) == 1, "kernel implements the single-head case"
    ep = _round_up(dim, _LANE)
    keys = jax.random.split(key, 4 + num_layers)
    params = {
        'embedding': jax.random.normal(keys[0], (vocab_size, dim)) * 0.1,
        # created for shape fidelity; never used in the reference forward()
        'pos_embedding': jax.random.normal(keys[1], (max_length, dim)) * 0.1,
        'lin_w': (jax.random.normal(keys[2], (dim * max_length, output_size))
                  * 0.05).astype(jnp.bfloat16),
        'lin_b': jax.random.normal(keys[3], (1, output_size)) * 0.05,
    }
    std = 1.0 / math.sqrt(dim)

    def pad_cols(w):                         # (r, dim) -> (r, ep), zero pad
        return jnp.pad(w, ((0, 0), (0, ep - dim)))

    wqkv_l, bqkv_l, wo_l, bo_l = [], [], [], []
    w1_l, b1_l, w2_l, b2_l = [], [], [], []
    ln1w_l, ln1b_l, ln2w_l, ln2b_l = [], [], [], []
    for i in range(num_layers):
        lk = jax.random.split(keys[4 + i], 10)
        wq, wk, wv, wo = (jax.random.normal(lk[j], (dim, dim)) * std
                          for j in range(4))
        bq, bk, bv, bo = (jax.random.normal(lk[4 + j], (1, dim)) * 0.02
                          for j in range(4))
        wqkv_l.append(jnp.concatenate(
            [pad_cols(wq), pad_cols(wk), pad_cols(wv)], axis=1))
        bqkv_l.append(jnp.concatenate(
            [pad_cols(bq), pad_cols(bk), pad_cols(bv)], axis=1))
        wo_l.append(wo); bo_l.append(bo)
        w1_l.append(jax.random.normal(lk[8], (dim, dff)) * std)
        b1_l.append(jnp.zeros((1, dff)))
        w2_l.append(jax.random.normal(lk[9], (dff, dim)) * (1.0 / math.sqrt(dff)))
        b2_l.append(jnp.zeros((1, dim)))
        ln1w_l.append(jnp.ones((1, dim))); ln1b_l.append(jnp.zeros((1, dim)))
        ln2w_l.append(jnp.ones((1, dim))); ln2b_l.append(jnp.zeros((1, dim)))

    params.update(
        wqkv=jnp.stack(wqkv_l).astype(jnp.bfloat16), bqkv=jnp.stack(bqkv_l),
        wo=jnp.stack(wo_l).astype(jnp.bfloat16), bo=jnp.stack(bo_l),
        ln1w=jnp.stack(ln1w_l), ln1b=jnp.stack(ln1b_l),
        w1=jnp.stack(w1_l).astype(jnp.bfloat16), b1=jnp.stack(b1_l),
        w2=jnp.stack(w2_l).astype(jnp.bfloat16), b2=jnp.stack(b2_l),
        ln2w=jnp.stack(ln2w_l), ln2b=jnp.stack(ln2b_l),
    )
    return params


# ---------------------------------------------------------------------------
# Pure-jnp reference with the same dtype strategy as the kernel (bf16 matmul
# operands, f32 accumulation; f32 LayerNorm / softmax / residuals).
# ---------------------------------------------------------------------------
def _ref_forward(token_ids, params):
    x = jnp.take(params['embedding'], token_ids, axis=0)          # (S, N, E)
    S, N, E = x.shape
    EP = params['wqkv'].shape[-1] // 3

    def mm(a, b):
        return jnp.dot(a.astype(jnp.bfloat16), b.astype(jnp.bfloat16),
                       preferred_element_type=jnp.float32)

    x2 = x.reshape(S * N, E).astype(jnp.float32)
    for i in range(params['wqkv'].shape[0]):
        qkv = mm(x2, params['wqkv'][i]) + params['bqkv'][i]
        q = qkv[:, 0:E].reshape(S, N, E)
        k = qkv[:, EP:EP + E].reshape(S, N, E)
        v = qkv[:, 2 * EP:2 * EP + E].reshape(S, N, E)
        scores = jnp.einsum('sne,tne->nst', q, k,
                            precision=jax.lax.Precision.HIGHEST) / math.sqrt(E)
        attn = jax.nn.softmax(scores, axis=-1)
        ctx = jnp.einsum('nst,tne->sne', attn, v,
                         precision=jax.lax.Precision.HIGHEST).reshape(S * N, E)
        a = mm(ctx, params['wo'][i]) + params['bo'][i]
        h = _layer_norm(x2 + a, params['ln1w'][i], params['ln1b'][i])
        ff = jnp.maximum(mm(h, params['w1'][i]) + params['b1'][i], 0.0)
        ff = mm(ff, params['w2'][i]) + params['b2'][i]
        x2 = _layer_norm(h + ff, params['ln2w'][i], params['ln2b'][i])
    flat = x2.reshape(1, -1)                                       # == x.view(-1)
    return mm(flat, params['lin_w']) + params['lin_b']


if __name__ == "__main__":
    vocab_size, dim, max_length, output_size = 100, 32, 16, 12
    B, L = 2, 8  # B * L == max_length, required by x.view(-1) -> Linear

    key = jax.random.PRNGKey(0)
    pkey, dkey = jax.random.split(key)
    params = init_params(pkey, vocab_size, dim, max_length,
                         output_size=output_size)
    token_ids = jax.random.randint(dkey, (B, L), 0, vocab_size)

    out = jax.block_until_ready(dialect_nn_forward(token_ids, params))
    assert out.shape == (1, output_size)

    ref = jax.block_until_ready(_ref_forward(token_ids, params))
    np.testing.assert_allclose(np.asarray(out), np.asarray(ref),
                               rtol=2e-2, atol=2e-2)
    print("KERNEL_OK")
</pallas_src>

<mosaic_0001>
module attributes {stable_mosaic.version = 11 : i64} {
  func.func @fused_forward_kernel(%arg0: memref<16x32xf32, #tpu.memory_space<vmem>>, %arg1: memref<6x32x384xbf16, #tpu.memory_space<vmem>>, %arg2: memref<6x1x384xf32, #tpu.memory_space<vmem>>, %arg3: memref<6x32x32xbf16, #tpu.memory_space<vmem>>, %arg4: memref<6x1x32xf32, #tpu.memory_space<vmem>>, %arg5: memref<6x1x32xf32, #tpu.memory_space<vmem>>, %arg6: memref<6x1x32xf32, #tpu.memory_space<vmem>>, %arg7: memref<6x32x2048xbf16, #tpu.memory_space<vmem>>, %arg8: memref<6x1x2048xf32, #tpu.memory_space<vmem>>, %arg9: memref<6x2048x32xbf16, #tpu.memory_space<vmem>>, %arg10: memref<6x1x32xf32, #tpu.memory_space<vmem>>, %arg11: memref<6x1x32xf32, #tpu.memory_space<vmem>>, %arg12: memref<6x1x32xf32, #tpu.memory_space<vmem>>, %arg13: memref<16x32x12xbf16, #tpu.memory_space<vmem>>, %arg14: memref<1x12xf32, #tpu.memory_space<vmem>>, %arg15: memref<1x12xf32, #tpu.memory_space<vmem>>, %arg16: memref<16x32xf32, #tpu.memory_space<vmem>>, %arg17: memref<16x384xf32, #tpu.memory_space<vmem>>) attributes {dimension_semantics = [], scalar_prefetch = 0 : i64, scratch_operands = 2 : i64, tpu.core_type = #tpu.core_type<tc>} {
    %c0 = arith.constant 0 : index
    %c0_0 = arith.constant 0 : index
    %0 = vector.load %arg0[%c0, %c0_0] : memref<16x32xf32, #tpu.memory_space<vmem>>, vector<16x32xf32>
    %c0_1 = arith.constant 0 : index
    %c0_2 = arith.constant 0 : index
    %c0_3 = arith.constant 0 : index
    %1 = vector.load %arg1[%c0_1, %c0_2, %c0_3] : memref<6x32x384xbf16, #tpu.memory_space<vmem>>, vector<1x32x384xbf16>
    %2 = vector.shape_cast %1 : vector<1x32x384xbf16> to vector<32x384xbf16>
    %3 = arith.truncf %0 : vector<16x32xf32> to vector<16x32xbf16>
    %cst = arith.constant dense<0.000000e+00> : vector<16x384xf32>
    %4 = tpu.matmul %3, %2, %cst {dimension_numbers = #tpu.dot_dimension_numbers<[1], [0], [0], [1], [0, 0, 1, 1], [], []>} : vector<16x32xbf16>, vector<32x384xbf16>, vector<16x384xf32> -> vector<16x384xf32>
    %c0_4 = arith.constant 0 : index
    %c0_5 = arith.constant 0 : index
    %c0_6 = arith.constant 0 : index
    %5 = vector.load %arg2[%c0_4, %c0_5, %c0_6] : memref<6x1x384xf32, #tpu.memory_space<vmem>>, vector<1x1x384xf32>
    %6 = vector.shape_cast %5 : vector<1x1x384xf32> to vector<1x384xf32>
    %7 = vector.broadcast %6 : vector<1x384xf32> to vector<16x384xf32>
    %8 = arith.addf %4, %7 : vector<16x384xf32>
    %c0_7 = arith.constant 0 : index
    %c0_8 = arith.constant 0 : index
    %9 = vector.load %arg17[%c0_7, %c0_8] : memref<16x384xf32, #tpu.memory_space<vmem>>, vector<16x384xf32>
    tpu.vector_store %arg17[%c0_7, %c0_8], %8 {strides = array<i32>} : memref<16x384xf32, #tpu.memory_space<vmem>>, vector<16x384xf32>,
    %c0_9 = arith.constant 0 : index
    %c0_10 = arith.constant 0 : index
    %10 = vector.load %arg17[%c0_9, %c0_10] : memref<16x384xf32, #tpu.memory_space<vmem>>, vector<8x32xf32>
    %c8 = arith.constant 8 : index
    %c0_11 = arith.constant 0 : index
    %11 = vector.load %arg17[%c8, %c0_11] : memref<16x384xf32, #tpu.memory_space<vmem>>, vector<8x32xf32>
    %c0_12 = arith.constant 0 : index
    %c128 = arith.constant 128 : index
    %12 = vector.load %arg17[%c0_12, %c128] : memref<16x384xf32, #tpu.memory_space<vmem>>, vector<8x32xf32>
    %c8_13 = arith.constant 8 : index
    %c128_14 = arith.constant 128 : index
    %13 = vector.load %arg17[%c8_13, %c128_14] : memref<16x384xf32, #tpu.memory_space<vmem>>, vector<8x32xf32>
    %c0_15 = arith.constant 0 : index
    %c256 = arith.constant 256 : index
    %14 = vector.load %arg17[%c0_15, %c256] : memref<16x384xf32, #tpu.memory_space<vmem>>, vector<8x32xf32>
    %c8_16 = arith.constant 8 : index
    %c256_17 = arith.constant 256 : index
    %15 = vector.load %arg17[%c8_16, %c256_17] : memref<16x384xf32, #tpu.memory_space<vmem>>, vector<8x32xf32>
    %16 = arith.mulf %10, %12 : vector<8x32xf32>
    %cst_18 = arith.constant dense<0.000000e+00> : vector<8xf32>
    %17 = vector.multi_reduction <add>, %16, %cst_18 [1] : vector<8x32xf32> to vector<8xf32>
    %18 = vector.shape_cast %17 : vector<8xf32> to vector<8x1xf32>
    %cst_19 = arith.constant 0.176776692 : f32
    %19 = vector.broadcast %cst_19 : f32 to vector<8x1xf32>
    %20 = arith.mulf %18, %19 : vector<8x1xf32>
    %21 = arith.mulf %10, %13 : vector<8x32xf32>
    %cst_20 = arith.constant dense<0.000000e+00> : vector<8xf32>
    %22 = vector.multi_reduction <add>, %21, %cst_20 [1] : vector<8x32xf32> to vector<8xf32>
    %23 = vector.shape_cast %22 : vector<8xf32> to vector<8x1xf32>
    %cst_21 = arith.constant 0.176776692 : f32
    %24 = vector.broadcast %cst_21 : f32 to vector<8x1xf32>
    %25 = arith.mulf %23, %24 : vector<8x1xf32>
    %26 = arith.maximumf %20, %25 : vector<8x1xf32>
    %27 = arith.subf %20, %26 : vector<8x1xf32>
    %28 = math.exp %27 : vector<8x1xf32>
    %29 = arith.subf %25, %26 : vector<8x1xf32>
    %30 = math.exp %29 : vector<8x1xf32>
    %31 = arith.addf %28, %30 : vector<8x1xf32>
    %32 = tpu.reciprocal %31 {approx = true} : vector<8x1xf32> -> vector<8x1xf32>
    %33 = arith.mulf %28, %32 : vector<8x1xf32>
    %34 = vector.broadcast %33 : vector<8x1xf32> to vector<8x32xf32>
    %35 = arith.mulf %34, %14 : vector<8x32xf32>
    %36 = arith.mulf %30, %32 : vector<8x1xf32>
    %37 = vector.broadcast %36 : vector<8x1xf32> to vector<8x32xf32>
    %38 = arith.mulf %37, %15 : vector<8x32xf32>
    %39 = arith.addf %35, %38 : vector<8x32xf32>
    %c0_22 = arith.constant 0 : index
    %c0_23 = arith.constant 0 : index
    %40 = vector.load %arg16[%c0_22, %c0_23] : memref<16x32xf32, #tpu.memory_space<vmem>>, vector<8x32xf32>
    tpu.vector_store %arg16[%c0_22, %c0_23], %39 {strides = array<i32>} : memref<16x32xf32, #tpu.memory_space<vmem>>, vector<8x32xf32>,
    %41 = arith.mulf %11, %12 : vector<8x32xf32>
    %cst_24 = arith.constant dense<0.000000e+00> : vector<8xf32>
    %42 = vector.multi_reduction <add>, %41, %cst_24 [1] : vector<8x32xf32> to vector<8xf32>
    %43 = vector.shape_cast %42 : vector<8xf32> to vector<8x1xf32>
    %cst_25 = arith.constant 0.176776692 : f32
    %44 = vector.broadcast %cst_25 : f32 to vector<8x1xf32>
    %45 = arith.mulf %43, %44 : vector<8x1xf32>
    %46 = arith.mulf %11, %13 : vector<8x32xf32>
    %cst_26 = arith.constant dense<0.000000e+00> : vector<8xf32>
    %47 = vector.multi_reduction <add>, %46, %cst_26 [1] : vector<8x32xf32> to vector<8xf32>
    %48 = vector.shape_cast %47 : vector<8xf32> to vector<8x1xf32>
    %cst_27 = arith.constant 0.176776692 : f32
    %49 = vector.broadcast %cst_27 : f32 to vector<8x1xf32>
    %50 = arith.mulf %48, %49 : vector<8x1xf32>
    %51 = arith.maximumf %45, %50 : vector<8x1xf32>
    %52 = arith.subf %45, %51 : vector<8x1xf32>
    %53 = math.exp %52 : vector<8x1xf32>
    %54 = arith.subf %50, %51 : vector<8x1xf32>
    %55 = math.exp %54 : vector<8x1xf32>
    %56 = arith.addf %53, %55 : vector<8x1xf32>
    %57 = tpu.reciprocal %56 {approx = true} : vector<8x1xf32> -> vector<8x1xf32>
    %58 = arith.mulf %53, %57 : vector<8x1xf32>
    %59 = vector.broadcast %58 : vector<8x1xf32> to vector<8x32xf32>
    %60 = arith.mulf %59, %14 : vector<8x32xf32>
    %61 = arith.mulf %55, %57 : vector<8x1xf32>
    %62 = vector.broadcast %61 : vector<8x1xf32> to vector<8x32xf32>
    %63 = arith.mulf %62, %15 : vector<8x32xf32>
    %64 = arith.addf %60, %63 : vector<8x32xf32>
    %c8_28 = arith.constant 8 : index
    %c0_29 = arith.constant 0 : index
    %65 = vector.load %arg16[%c8_28, %c0_29] : memref<16x32xf32, #tpu.memory_space<vmem>>, vector<8x32xf32>
    tpu.vector_store %arg16[%c8_28, %c0_29], %64 {strides = array<i32>} : memref<16x32xf32, #tpu.memory_space<vmem>>, vector<8x32xf32>,
    %c0_30 = arith.constant 0 : index
    %c0_31 = arith.constant 0 : index
    %66 = vector.load %arg16[%c0_30, %c0_31] : memref<16x32xf32, #tpu.memory_space<vmem>>, vector<16x32xf32>
    %c0_32 = arith.constant 0 : index
    %c0_33 = arith.constant 0 : index
    %c0_34 = arith.constant 0 : index
    %67 = vector.load %arg3[%c0_32, %c0_33, %c0_34] : memref<6x32x32xbf16, #tpu.memory_space<vmem>>, vector<1x32x32xbf16>
    %68 = vector.shape_cast %67 : vector<1x32x32xbf16> to vector<32x32xbf16>
    %69 = arith.truncf %66 : vector<16x32xf32> to vector<16x32xbf16>
    %cst_35 = arith.constant dense<0.000000e+00> : vector<16x32xf32>
    %70 = tpu.matmul %69, %68, %cst_35 {dimension_numbers = #tpu.dot_dimension_numbers<[1], [0], [0], [1], [0, 0, 1, 1], [], []>} : vector<16x32xbf16>, vector<32x32xbf16>, vector<16x32xf32> -> vector<16x32xf32>
    %c0_36 = arith.constant 0 : index
    %c0_37 = arith.constant 0 : index
    %c0_38 = arith.constant 0 : index
    %71 = vector.load %arg4[%c0_36, %c0_37, %c0_38] : memref<6x1x32xf32, #tpu.memory_space<vmem>>, vector<1x1x32xf32>
    %72 = vector.shape_cast %71 : vector<1x1x32xf32> to vector<1x32xf32>
    %73 = vector.broadcast %72 : vector<1x32xf32> to vector<16x32xf32>
    %74 = arith.addf %70, %73 : vector<16x32xf32>
    %75 = arith.addf %0, %74 : vector<16x32xf32>
    %c0_39 = arith.constant 0 : index
    %c0_40 = arith.constant 0 : index
    %c0_41 = arith.constant 0 : index
    %76 = vector.load %arg5[%c0_39, %c0_40, %c0_41] : memref<6x1x32xf32, #tpu.memory_space<vmem>>, vector<1x1x32xf32>
    %77 = vector.shape_cast %76 : vector<1x1x32xf32> to vector<1x32xf32>
    %c0_42 = arith.constant 0 : index
    %c0_43 = arith.constant 0 : index
    %c0_44 = arith.constant 0 : index
    %78 = vector.load %arg6[%c0_42, %c0_43, %c0_44] : memref<6x1x32xf32, #tpu.memory_space<vmem>>, vector<1x1x32xf32>
    %79 = vector.shape_cast %78 : vector<1x1x32xf32> to vector<1x32xf32>
    %cst_45 = arith.constant dense<0.000000e+00> : vector<16xf32>
    %80 = vector.multi_reduction <add>, %75, %cst_45 [1] : vector<16x32xf32> to vector<16xf32>
    %81 = vector.shape_cast %80 : vector<16xf32> to vector<16x1xf32>
    %cst_46 = arith.constant 3.200000e+01 : f32
    %82 = vector.broadcast %cst_46 : f32 to vector<16x1xf32>
    %83 = arith.divf %81, %82 : vector<16x1xf32>
    %84 = vector.broadcast %83 : vector<16x1xf32> to vector<16x32xf32>
    %85 = arith.subf %75, %84 : vector<16x32xf32>
    %86 = arith.mulf %85, %85 : vector<16x32xf32>
    %cst_47 = arith.constant dense<0.000000e+00> : vector<16xf32>
    %87 = vector.multi_reduction <add>, %86, %cst_47 [1] : vector<16x32xf32> to vector<16xf32>
    %88 = vector.shape_cast %87 : vector<16xf32> to vector<16x1xf32>
    %cst_48 = arith.constant 3.200000e+01 : f32
    %89 = vector.broadcast %cst_48 : f32 to vector<16x1xf32>
    %90 = arith.divf %88, %89 : vector<16x1xf32>
    %cst_49 = arith.constant 9.99999974E-6 : f32
    %91 = vector.broadcast %cst_49 : f32 to vector<16x1xf32>
    %92 = arith.addf %90, %91 : vector<16x1xf32>
    %93 = math.rsqrt %92 : vector<16x1xf32>
    %94 = vector.broadcast %93 : vector<16x1xf32> to vector<16x32xf32>
    %95 = arith.mulf %85, %94 : vector<16x32xf32>
    %96 = vector.broadcast %77 : vector<1x32xf32> to vector<16x32xf32>
    %97 = arith.mulf %95, %96 : vector<16x32xf32>
    %98 = vector.broadcast %79 : vector<1x32xf32> to vector<16x32xf32>
    %99 = arith.addf %97, %98 : vector<16x32xf32>
    %c0_50 = arith.constant 0 : index
    %c0_51 = arith.constant 0 : index
    %c0_52 = arith.constant 0 : index
    %100 = vector.load %arg7[%c0_50, %c0_51, %c0_52] : memref<6x32x2048xbf16, #tpu.memory_space<vmem>>, vector<1x32x2048xbf16>
    %101 = vector.shape_cast %100 : vector<1x32x2048xbf16> to vector<32x2048xbf16>
    %102 = arith.truncf %99 : vector<16x32xf32> to vector<16x32xbf16>
    %cst_53 = arith.constant dense<0.000000e+00> : vector<16x2048xf32>
    %103 = tpu.matmul %102, %101, %cst_53 {dimension_numbers = #tpu.dot_dimension_numbers<[1], [0], [0], [1], [0, 0, 1, 1], [], []>} : vector<16x32xbf16>, vector<32x2048xbf16>, vector<16x2048xf32> -> vector<16x2048xf32>
    %c0_54 = arith.constant 0 : index
    %c0_55 = arith.constant 0 : index
    %c0_56 = arith.constant 0 : index
    %104 = vector.load %arg8[%c0_54, %c0_55, %c0_56] : memref<6x1x2048xf32, #tpu.memory_space<vmem>>, vector<1x1x2048xf32>
    %105 = vector.shape_cast %104 : vector<1x1x2048xf32> to vector<1x2048xf32>
    %106 = vector.broadcast %105 : vector<1x2048xf32> to vector<16x2048xf32>
    %107 = arith.addf %103, %106 : vector<16x2048xf32>
    %cst_57 = arith.constant 0.000000e+00 : f32
    %108 = vector.broadcast %cst_57 : f32 to vector<16x2048xf32>
    %109 = arith.maximumf %107, %108 : vector<16x2048xf32>
    %c0_58 = arith.constant 0 : index
    %c0_59 = arith.constant 0 : index
    %c0_60 = arith.constant 0 : index
    %110 = vector.load %arg9[%c0_58, %c0_59, %c0_60] : memref<6x2048x32xbf16, #tpu.memory_space<vmem>>, vector<1x2048x32xbf16>
    %111 = vector.shape_cast %110 : vector<1x2048x32xbf16> to vector<2048x32xbf16>
    %112 = arith.truncf %109 : vector<16x2048xf32> to vector<16x2048xbf16>
    %cst_61 = arith.constant dense<0.000000e+00> : vector<16x32xf32>
    %113 = tpu.matmul %112, %111, %cst_61 {dimension_numbers = #tpu.dot_dimension_numbers<[1], [0], [0], [1], [0, 0, 1, 1], [], []>} : vector<16x2048xbf16>, vector<2048x32xbf16>, vector<16x32xf32> -> vector<16x32xf32>
    %c0_62 = arith.constant 0 : index
    %c0_63 = arith.constant 0 : index
    %c0_64 = arith.constant 0 : index
    %114 = vector.load %arg10[%c0_62, %c0_63, %c0_64] : memref<6x1x32xf32, #tpu.memory_space<vmem>>, vector<1x1x32xf32>
    %115 = vector.shape_cast %114 : vector<1x1x32xf32> to vector<1x32xf32>
    %116 = vector.broadcast %115 : vector<1x32xf32> to vector<16x32xf32>
    %117 = arith.addf %113, %116 : vector<16x32xf32>
    %118 = arith.addf %99, %117 : vector<16x32xf32>
    %c0_65 = arith.constant 0 : index
    %c0_66 = arith.constant 0 : index
    %c0_67 = arith.constant 0 : index
    %119 = vector.load %arg11[%c0_65, %c0_66, %c0_67] : memref<6x1x32xf32, #tpu.memory_space<vmem>>, vector<1x1x32xf32>
    %120 = vector.shape_cast %119 : vector<1x1x32xf32> to vector<1x32xf32>
    %c0_68 = arith.constant 0 : index
    %c0_69 = arith.constant 0 : index
    %c0_70 = arith.constant 0 : index
    %121 = vector.load %arg12[%c0_68, %c0_69, %c0_70] : memref<6x1x32xf32, #tpu.memory_space<vmem>>, vector<1x1x32xf32>
    %122 = vector.shape_cast %121 : vector<1x1x32xf32> to vector<1x32xf32>
    %cst_71 = arith.constant dense<0.000000e+00> : vector<16xf32>
    %123 = vector.multi_reduction <add>, %118, %cst_71 [1] : vector<16x32xf32> to vector<16xf32>
    %124 = vector.shape_cast %123 : vector<16xf32> to vector<16x1xf32>
    %cst_72 = arith.constant 3.200000e+01 : f32
    %125 = vector.broadcast %cst_72 : f32 to vector<16x1xf32>
    %126 = arith.divf %124, %125 : vector<16x1xf32>
    %127 = vector.broadcast %126 : vector<16x1xf32> to vector<16x32xf32>
    %128 = arith.subf %118, %127 : vector<16x32xf32>
    %129 = arith.mulf %128, %128 : vector<16x32xf32>
    %cst_73 = arith.constant dense<0.000000e+00> : vector<16xf32>
    %130 = vector.multi_reduction <add>, %129, %cst_73 [1] : vector<16x32xf32> to vector<16xf32>
    %131 = vector.shape_cast %130 : vector<16xf32> to vector<16x1xf32>
    %cst_74 = arith.constant 3.200000e+01 : f32
    %132 = vector.broadcast %cst_74 : f32 to vector<16x1xf32>
    %133 = arith.divf %131, %132 : vector<16x1xf32>
    %cst_75 = arith.constant 9.99999974E-6 : f32
    %134 = vector.broadcast %cst_75 : f32 to vector<16x1xf32>
    %135 = arith.addf %133, %134 : vector<16x1xf32>
    %136 = math.rsqrt %135 : vector<16x1xf32>
    %137 = vector.broadcast %136 : vector<16x1xf32> to vector<16x32xf32>
    %138 = arith.mulf %128, %137 : vector<16x32xf32>
    %139 = vector.broadcast %120 : vector<1x32xf32> to vector<16x32xf32>
    %140 = arith.mulf %138, %139 : vector<16x32xf32>
    %141 = vector.broadcast %122 : vector<1x32xf32> to vector<16x32xf32>
    %142 = arith.addf %140, %141 : vector<16x32xf32>
    %c1 = arith.constant 1 : index
    %c0_76 = arith.constant 0 : index
    %c0_77 = arith.constant 0 : index
    %143 = vector.load %arg1[%c1, %c0_76, %c0_77] : memref<6x32x384xbf16, #tpu.memory_space<vmem>>, vector<1x32x384xbf16>
    %144 = vector.shape_cast %143 : vector<1x32x384xbf16> to vector<32x384xbf16>
    %145 = arith.truncf %142 : vector<16x32xf32> to vector<16x32xbf16>
    %cst_78 = arith.constant dense<0.000000e+00> : vector<16x384xf32>
    %146 = tpu.matmul %145, %144, %cst_78 {dimension_numbers = #tpu.dot_dimension_numbers<[1], [0], [0], [1], [0, 0, 1, 1], [], []>} : vector<16x32xbf16>, vector<32x384xbf16>, vector<16x384xf32> -> vector<16x384xf32>
    %c1_79 = arith.constant 1 : index
    %c0_80 = arith.constant 0 : index
    %c0_81 = arith.constant 0 : index
    %147 = vector.load %arg2[%c1_79, %c0_80, %c0_81] : memref<6x1x384xf32, #tpu.memory_space<vmem>>, vector<1x1x384xf32>
    %148 = vector.shape_cast %147 : vector<1x1x384xf32> to vector<1x384xf32>
    %149 = vector.broadcast %148 : vector<1x384xf32> to vector<16x384xf32>
    %150 = arith.addf %146, %149 : vector<16x384xf32>
    %c0_82 = arith.constant 0 : index
    %c0_83 = arith.constant 0 : index
    %151 = vector.load %arg17[%c0_82, %c0_83] : memref<16x384xf32, #tpu.memory_space<vmem>>, vector<16x384xf32>
    tpu.vector_store %arg17[%c0_82, %c0_83], %150 {strides = array<i32>} : memref<16x384xf32, #tpu.memory_space<vmem>>, vector<16x384xf32>,
    %c0_84 = arith.constant 0 : index
    %c0_85 = arith.constant 0 : index
    %152 = vector.load %arg17[%c0_84, %c0_85] : memref<16x384xf32, #tpu.memory_space<vmem>>, vector<8x32xf32>
    %c8_86 = arith.constant 8 : index
    %c0_87 = arith.constant 0 : index
    %153 = vector.load %arg17[%c8_86, %c0_87] : memref<16x384xf32, #tpu.memory_space<vmem>>, vector<8x32xf32>
    %c0_88 = arith.constant 0 : index
    %c128_89 = arith.constant 128 : index
    %154 = vector.load %arg17[%c0_88, %c128_89] : memref<16x384xf32, #tpu.memory_space<vmem>>, vector<8x32xf32>
    %c8_90 = arith.constant 8 : index
    %c128_91 = arith.constant 128 : index
    %155 = vector.load %arg17[%c8_90, %c128_91] : memref<16x384xf32, #tpu.memory_space<vmem>>, vector<8x32xf32>
    %c0_92 = arith.constant 0 : index
    %c256_93 = arith.constant 256 : index
    %156 = vector.load %arg17[%c0_92, %c256_93] : memref<16x384xf32, #tpu.memory_space<vmem>>, vector<8x32xf32>
    %c8_94 = arith.constant 8 : index
    %c256_95 = arith.constant 256 : index
    %157 = vector.load %arg17[%c8_94, %c256_95] : memref<16x384xf32, #tpu.memory_space<vmem>>, vector<8x32xf32>
    %158 = arith.mulf %152, %154 : vector<8x32xf32>
    %cst_96 = arith.constant dense<0.000000e+00> : vector<8xf32>
    %159 = vector.multi_reduction <add>, %158, %cst_96 [1] : vector<8x32xf32> to vector<8xf32>
    %160 = vector.shape_cast %159 : vector<8xf32> to vector<8x1xf32>
    %cst_97 = arith.constant 0.176776692 : f32
    %161 = vector.broadcast %cst_97 : f32 to vector<8x1xf32>
    %162 = arith.mulf %160, %161 : vector<8x1xf32>
    %163 = arith.mulf %152, %155 : vector<8x32xf32>
    %cst_98 = arith.constant dense<0.000000e+00> : vector<8xf32>
    %164 = vector.multi_reduction <add>, %163, %cst_98 [1] : vector<8x32xf32> to vector<8xf32>
    %165 = vector.shape_cast %164 : vector<8xf32> to vector<8x1xf32>
    %cst_99 = arith.constant 0.176776692 : f32
    %166 = vector.broadcast %cst_99 : f32 to vector<8x1xf32>
    %167 = arith.mulf %165, %166 : vector<8x1xf32>
    %168 = arith.maximumf %162, %167 : vector<8x1xf32>
    %169 = arith.subf %162, %168 : vector<8x1xf32>
    %170 = math.exp %169 : vector<8x1xf32>
    %171 = arith.subf %167, %168 : vector<8x1xf32>
    %172 = math.exp %171 : vector<8x1xf32>
    %173 = arith.addf %170, %172 : vector<8x1xf32>
    %174 = tpu.reciprocal %173 {approx = true} : vector<8x1xf32> -> vector<8x1xf32>
    %175 = arith.mulf %170, %174 : vector<8x1xf32>
    %176 = vector.broadcast %175 : vector<8x1xf32> to vector<8x32xf32>
    %177 = arith.mulf %176, %156 : vector<8x32xf32>
    %178 = arith.mulf %172, %174 : vector<8x1xf32>
    %179 = vector.broadcast %178 : vector<8x1xf32> to vector<8x32xf32>
    %180 = arith.mulf %179, %157 : vector<8x32xf32>
    %181 = arith.addf %177, %180 : vector<8x32xf32>
    %c0_100 = arith.constant 0 : index
    %c0_101 = arith.constant 0 : index
    %182 = vector.load %arg16[%c0_100, %c0_101] : memref<16x32xf32, #tpu.memory_space<vmem>>, vector<8x32xf32>
    tpu.vector_store %arg16[%c0_100, %c0_101], %181 {strides = array<i32>} : memref<16x32xf32, #tpu.memory_space<vmem>>, vector<8x32xf32>,
    %183 = arith.mulf %153, %154 : vector<8x32xf32>
    %cst_102 = arith.constant dense<0.000000e+00> : vector<8xf32>
    %184 = vector.multi_reduction <add>, %183, %cst_102 [1] : vector<8x32xf32> to vector<8xf32>
    %185 = vector.shape_cast %184 : vector<8xf32> to vector<8x1xf32>
    %cst_103 = arith.constant 0.176776692 : f32
    %186 = vector.broadcast %cst_103 : f32 to vector<8x1xf32>
    %187 = arith.mulf %185, %186 : vector<8x1xf32>
    %188 = arith.mulf %153, %155 : vector<8x32xf32>
    %cst_104 = arith.constant dense<0.000000e+00> : vector<8xf32>
    %189 = vector.multi_reduction <add>, %188, %cst_104 [1] : vector<8x32xf32> to vector<8xf32>
    %190 = vector.shape_cast %189 : vector<8xf32> to vector<8x1xf32>
    %cst_105 = arith.constant 0.176776692 : f32
    %191 = vector.broadcast %cst_105 : f32 to vector<8x1xf32>
    %192 = arith.mulf %190, %191 : vector<8x1xf32>
    %193 = arith.maximumf %187, %192 : vector<8x1xf32>
    %194 = arith.subf %187, %193 : vector<8x1xf32>
    %195 = math.exp %194 : vector<8x1xf32>
    %196 = arith.subf %192, %193 : vector<8x1xf32>
    %197 = math.exp %196 : vector<8x1xf32>
    %198 = arith.addf %195, %197 : vector<8x1xf32>
    %199 = tpu.reciprocal %198 {approx = true} : vector<8x1xf32> -> vector<8x1xf32>
    %200 = arith.mulf %195, %199 : vector<8x1xf32>
    %201 = vector.broadcast %200 : vector<8x1xf32> to vector<8x32xf32>
    %202 = arith.mulf %201, %156 : vector<8x32xf32>
    %203 = arith.mulf %197, %199 : vector<8x1xf32>
    %204 = vector.broadcast %203 : vector<8x1xf32> to vector<8x32xf32>
    %205 = arith.mulf %204, %157 : vector<8x32xf32>
    %206 = arith.addf %202, %205 : vector<8x32xf32>
    %c8_106 = arith.constant 8 : index
    %c0_107 = arith.constant 0 : index
    %207 = vector.load %arg16[%c8_106, %c0_107] : memref<16x32xf32, #tpu.memory_space<vmem>>, vector<8x32xf32>
    tpu.vector_store %arg16[%c8_106, %c0_107], %206 {strides = array<i32>} : memref<16x32xf32, #tpu.memory_space<vmem>>, vector<8x32xf32>,
    %c0_108 = arith.constant 0 : index
    %c0_109 = arith.constant 0 : index
    %208 = vector.load %arg16[%c0_108, %c0_109] : memref<16x32xf32, #tpu.memory_space<vmem>>, vector<16x32xf32>
    %c1_110 = arith.constant 1 : index
    %c0_111 = arith.constant 0 : index
    %c0_112 = arith.constant 0 : index
    %209 = vector.load %arg3[%c1_110, %c0_111, %c0_112] : memref<6x32x32xbf16, #tpu.memory_space<vmem>>, vector<1x32x32xbf16>
    %210 = vector.shape_cast %209 : vector<1x32x32xbf16> to vector<32x32xbf16>
    %211 = arith.truncf %208 : vector<16x32xf32> to vector<16x32xbf16>
    %cst_113 = arith.constant dense<0.000000e+00> : vector<16x32xf32>
    %212 = tpu.matmul %211, %210, %cst_113 {dimension_numbers = #tpu.dot_dimension_numbers<[1], [0], [0], [1], [0, 0, 1, 1], [], []>} : vector<16x32xbf16>, vector<32x32xbf16>, vector<16x32xf32> -> vector<16x32xf32>
    %c1_114 = arith.constant 1 : index
    %c0_115 = arith.constant 0 : index
    %c0_116 = arith.constant 0 : index
    %213 = vector.load %arg4[%c1_114, %c0_115, %c0_116] : memref<6x1x32xf32, #tpu.memory_space<vmem>>, vector<1x1x32xf32>
    %214 = vector.shape_cast %213 : vector<1x1x32xf32> to vector<1x32xf32>
    %215 = vector.broadcast %214 : vector<1x32xf32> to vector<16x32xf32>
    %216 = arith.addf %212, %215 : vector<16x32xf32>
    %217 = arith.addf %142, %216 : vector<16x32xf32>
    %c1_117 = arith.constant 1 : index
    %c0_118 = arith.constant 0 : index
    %c0_119 = arith.constant 0 : index
    %218 = vector.load %arg5[%c1_117, %c0_118, %c0_119] : memref<6x1x32xf32, #tpu.memory_space<vmem>>, vector<1x1x32xf32>
    %219 = vector.shape_cast %218 : vector<1x1x32xf32> to vector<1x32xf32>
    %c1_120 = arith.constant 1 : index
    %c0_121 = arith.constant 0 : index
    %c0_122 = arith.constant 0 : index
    %220 = vector.load %arg6[%c1_120, %c0_121, %c0_122] : memref<6x1x32xf32, #tpu.memory_space<vmem>>, vector<1x1x32xf32>
    %221 = vector.shape_cast %220 : vector<1x1x32xf32> to vector<1x32xf32>
    %cst_123 = arith.constant dense<0.000000e+00> : vector<16xf32>
    %222 = vector.multi_reduction <add>, %217, %cst_123 [1] : vector<16x32xf32> to vector<16xf32>
    %223 = vector.shape_cast %222 : vector<16xf32> to vector<16x1xf32>
    %cst_124 = arith.constant 3.200000e+01 : f32
    %224 = vector.broadcast %cst_124 : f32 to vector<16x1xf32>
    %225 = arith.divf %223, %224 : vector<16x1xf32>
    %226 = vector.broadcast %225 : vector<16x1xf32> to vector<16x32xf32>
    %227 = arith.subf %217, %226 : vector<16x32xf32>
    %228 = arith.mulf %227, %227 : vector<16x32xf32>
    %cst_125 = arith.constant dense<0.000000e+00> : vector<16xf32>
    %229 = vector.multi_reduction <add>, %228, %cst_125 [1] : vector<16x32xf32> to vector<16xf32>
    %230 = vector.shape_cast %229 : vector<16xf32> to vector<16x1xf32>
    %cst_126 = arith.constant 3.200000e+01 : f32
    %231 = vector.broadcast %cst_126 : f32 to vector<16x1xf32>
    %232 = arith.divf %230, %231 : vector<16x1xf32>
    %cst_127 = arith.constant 9.99999974E-6 : f32
    %233 = vector.broadcast %cst_127 : f32 to vector<16x1xf32>
    %234 = arith.addf %232, %233 : vector<16x1xf32>
    %235 = math.rsqrt %234 : vector<16x1xf32>
    %236 = vector.broadcast %235 : vector<16x1xf32> to vector<16x32xf32>
    %237 = arith.mulf %227, %236 : vector<16x32xf32>
    %238 = vector.broadcast %219 : vector<1x32xf32> to vector<16x32xf32>
    %239 = arith.mulf %237, %238 : vector<16x32xf32>
    %240 = vector.broadcast %221 : vector<1x32xf32> to vector<16x32xf32>
    %241 = arith.addf %239, %240 : vector<16x32xf32>
    %c1_128 = arith.constant 1 : index
    %c0_129 = arith.constant 0 : index
    %c0_130 = arith.constant 0 : index
    %242 = vector.load %arg7[%c1_128, %c0_129, %c0_130] : memref<6x32x2048xbf16, #tpu.memory_space<vmem>>, vector<1x32x2048xbf16>
    %243 = vector.shape_cast %242 : vector<1x32x2048xbf16> to vector<32x2048xbf16>
    %244 = arith.truncf %241 : vector<16x32xf32> to vector<16x32xbf16>
    %cst_131 = arith.constant dense<0.000000e+00> : vector<16x2048xf32>
    %245 = tpu.matmul %244, %243, %cst_131 {dimension_numbers = #tpu.dot_dimension_numbers<[1], [0], [0], [1], [0, 0, 1, 1], [], []>} : vector<16x32xbf16>, vector<32x2048xbf16>, vector<16x2048xf32> -> vector<16x2048xf32>
    %c1_132 = arith.constant 1 : index
    %c0_133 = arith.constant 0 : index
    %c0_134 = arith.constant 0 : index
    %246 = vector.load %arg8[%c1_132, %c0_133, %c0_134] : memref<6x1x2048xf32, #tpu.memory_space<vmem>>, vector<1x1x2048xf32>
    %247 = vector.shape_cast %246 : vector<1x1x2048xf32> to vector<1x2048xf32>
    %248 = vector.broadcast %247 : vector<1x2048xf32> to vector<16x2048xf32>
    %249 = arith.addf %245, %248 : vector<16x2048xf32>
    %cst_135 = arith.constant 0.000000e+00 : f32
    %250 = vector.broadcast %cst_135 : f32 to vector<16x2048xf32>
    %251 = arith.maximumf %249, %250 : vector<16x2048xf32>
    %c1_136 = arith.constant 1 : index
    %c0_137 = arith.constant 0 : index
    %c0_138 = arith.constant 0 : index
    %252 = vector.load %arg9[%c1_136, %c0_137, %c0_138] : memref<6x2048x32xbf16, #tpu.memory_space<vmem>>, vector<1x2048x32xbf16>
    %253 = vector.shape_cast %252 : vector<1x2048x32xbf16> to vector<2048x32xbf16>
    %254 = arith.truncf %251 : vector<16x2048xf32> to vector<16x2048xbf16>
    %cst_139 = arith.constant dense<0.000000e+00> : vector<16x32xf32>
    %255 = tpu.matmul %254, %253, %cst_139 {dimension_numbers = #tpu.dot_dimension_numbers<[1], [0], [0], [1], [0, 0, 1, 1], [], []>} : vector<16x2048xbf16>, vector<2048x32xbf16>, vector<16x32xf32> -> vector<16x32xf32>
    %c1_140 = arith.constant 1 : index
    %c0_141 = arith.constant 0 : index
    %c0_142 = arith.constant 0 : index
    %256 = vector.load %arg10[%c1_140, %c0_141, %c0_142] : memref<6x1x32xf32, #tpu.memory_space<vmem>>, vector<1x1x32xf32>
    %257 = vector.shape_cast %256 : vector<1x1x32xf32> to vector<1x32xf32>
    %258 = vector.broadcast %257 : vector<1x32xf32> to vector<16x32xf32>
    %259 = arith.addf %255, %258 : vector<16x32xf32>
    %260 = arith.addf %241, %259 : vector<16x32xf32>
    %c1_143 = arith.constant 1 : index
    %c0_144 = arith.constant 0 : index
    %c0_145 = arith.constant 0 : index
    %261 = vector.load %arg11[%c1_143, %c0_144, %c0_145] : memref<6x1x32xf32, #tpu.memory_space<vmem>>, vector<1x1x32xf32>
    %262 = vector.shape_cast %261 : vector<1x1x32xf32> to vector<1x32xf32>
    %c1_146 = arith.constant 1 : index
    %c0_147 = arith.constant 0 : index
    %c0_148 = arith.constant 0 : index
    %263 = vector.load %arg12[%c1_146, %c0_147, %c0_148] : memref<6x1x32xf32, #tpu.memory_space<vmem>>, vector<1x1x32xf32>
    %264 = vector.shape_cast %263 : vector<1x1x32xf32> to vector<1x32xf32>
    %cst_149 = arith.constant dense<0.000000e+00> : vector<16xf32>
    %265 = vector.multi_reduction <add>, %260, %cst_149 [1] : vector<16x32xf32> to vector<16xf32>
    %266 = vector.shape_cast %265 : vector<16xf32> to vector<16x1xf32>
    %cst_150 = arith.constant 3.200000e+01 : f32
    %267 = vector.broadcast %cst_150 : f32 to vector<16x1xf32>
    %268 = arith.divf %266, %267 : vector<16x1xf32>
    %269 = vector.broadcast %268 : vector<16x1xf32> to vector<16x32xf32>
    %270 = arith.subf %260, %269 : vector<16x32xf32>
    %271 = arith.mulf %270, %270 : vector<16x32xf32>
    %cst_151 = arith.constant dense<0.000000e+00> : vector<16xf32>
    %272 = vector.multi_reduction <add>, %271, %cst_151 [1] : vector<16x32xf32> to vector<16xf32>
    %273 = vector.shape_cast %272 : vector<16xf32> to vector<16x1xf32>
    %cst_152 = arith.constant 3.200000e+01 : f32
    %274 = vector.broadcast %cst_152 : f32 to vector<16x1xf32>
    %275 = arith.divf %273, %274 : vector<16x1xf32>
    %cst_153 = arith.constant 9.99999974E-6 : f32
    %276 = vector.broadcast %cst_153 : f32 to vector<16x1xf32>
    %277 = arith.addf %275, %276 : vector<16x1xf32>
    %278 = math.rsqrt %277 : vector<16x1xf32>
    %279 = vector.broadcast %278 : vector<16x1xf32> to vector<16x32xf32>
    %280 = arith.mulf %270, %279 : vector<16x32xf32>
    %281 = vector.broadcast %262 : vector<1x32xf32> to vector<16x32xf32>
    %282 = arith.mulf %280, %281 : vector<16x32xf32>
    %283 = vector.broadcast %264 : vector<1x32xf32> to vector<16x32xf32>
    %284 = arith.addf %282, %283 : vector<16x32xf32>
    %c2 = arith.constant 2 : index
    %c0_154 = arith.constant 0 : index
    %c0_155 = arith.constant 0 : index
    %285 = vector.load %arg1[%c2, %c0_154, %c0_155] : memref<6x32x384xbf16, #tpu.memory_space<vmem>>, vector<1x32x384xbf16>
    %286 = vector.shape_cast %285 : vector<1x32x384xbf16> to vector<32x384xbf16>
    %287 = arith.truncf %284 : vector<16x32xf32> to vector<16x32xbf16>
    %cst_156 = arith.constant dense<0.000000e+00> : vector<16x384xf32>
    %288 = tpu.matmul %287, %286, %cst_156 {dimension_numbers = #tpu.dot_dimension_numbers<[1], [0], [0], [1], [0, 0, 1, 1], [], []>} : vector<16x32xbf16>, vector<32x384xbf16>, vector<16x384xf32> -> vector<16x384xf32>
    %c2_157 = arith.constant 2 : index
    %c0_158 = arith.constant 0 : index
    %c0_159 = arith.constant 0 : index
    %289 = vector.load %arg2[%c2_157, %c0_158, %c0_159] : memref<6x1x384xf32, #tpu.memory_space<vmem>>, vector<1x1x384xf32>
    %290 = vector.shape_cast %289 : vector<1x1x384xf32> to vector<1x384xf32>
    %291 = vector.broadcast %290 : vector<1x384xf32> to vector<16x384xf32>
    %292 = arith.addf %288, %291 : vector<16x384xf32>
    %c0_160 = arith.constant 0 : index
    %c0_161 = arith.constant 0 : index
    %293 = vector.load %arg17[%c0_160, %c0_161] : memref<16x384xf32, #tpu.memory_space<vmem>>, vector<16x384xf32>
    tpu.vector_store %arg17[%c0_160, %c0_161], %292 {strides = array<i32>} : memref<16x384xf32, #tpu.memory_space<vmem>>, vector<16x384xf32>,
    %c0_162 = arith.constant 0 : index
    %c0_163 = arith.constant 0 : index
    %294 = vector.load %arg17[%c0_162, %c0_163] : memref<16x384xf32, #tpu.memory_space<vmem>>, vector<8x32xf32>
    %c8_164 = arith.constant 8 : index
    %c0_165 = arith.constant 0 : index
    %295 = vector.load %arg17[%c8_164, %c0_165] : memref<16x384xf32, #tpu.memory_space<vmem>>, vector<8x32xf32>
    %c0_166 = arith.constant 0 : index
    %c128_167 = arith.constant 128 : index
    %296 = vector.load %arg17[%c0_166, %c128_167] : memref<16x384xf32, #tpu.memory_space<vmem>>, vector<8x32xf32>
    %c8_168 = arith.constant 8 : index
    %c128_169 = arith.constant 128 : index
    %297 = vector.load %arg17[%c8_168, %c128_169] : memref<16x384xf32, #tpu.memory_space<vmem>>, vector<8x32xf32>
    %c0_170 = arith.constant 0 : index
    %c256_171 = arith.constant 256 : index
    %298 = vector.load %arg17[%c0_170, %c256_171] : memref<16x384xf32, #tpu.memory_space<vmem>>, vector<8x32xf32>
    %c8_172 = arith.constant 8 : index
    %c256_173 = arith.constant 256 : index
    %299 = vector.load %arg17[%c8_172, %c256_173] : memref<16x384xf32, #tpu.memory_space<vmem>>, vector<8x32xf32>
    %300 = arith.mulf %294, %296 : vector<8x32xf32>
    %cst_174 = arith.constant dense<0.000000e+00> : vector<8xf32>
    %301 = vector.multi_reduction <add>, %300, %cst_174 [1] : vector<8x32xf32> to vector<8xf32>
    %302 = vector.shape_cast %301 : vector<8xf32> to vector<8x1xf32>
    %cst_175 = arith.constant 0.176776692 : f32
    %303 = vector.broadcast %cst_175 : f32 to vector<8x1xf32>
    %304 = arith.mulf %302, %303 : vector<8x1xf32>
    %305 = arith.mulf %294, %297 : vector<8x32xf32>
    %cst_176 = arith.constant dense<0.000000e+00> : vector<8xf32>
    %306 = vector.multi_reduction <add>, %305, %cst_176 [1] : vector<8x32xf32> to vector<8xf32>
    %307 = vector.shape_cast %306 : vector<8xf32> to vector<8x1xf32>
    %cst_177 = arith.constant 0.176776692 : f32
    %308 = vector.broadcast %cst_177 : f32 to vector<8x1xf32>
    %309 = arith.mulf %307, %308 : vector<8x1xf32>
    %310 = arith.maximumf %304, %309 : vector<8x1xf32>
    %311 = arith.subf %304, %310 : vector<8x1xf32>
    %312 = math.exp %311 : vector<8x1xf32>
    %313 = arith.subf %309, %310 : vector<8x1xf32>
    %314 = math.exp %313 : vector<8x1xf32>
    %315 = arith.addf %312, %314 : vector<8x1xf32>
    %316 = tpu.reciprocal %315 {approx = true} : vector<8x1xf32> -> vector<8x1xf32>
    %317 = arith.mulf %312, %316 : vector<8x1xf32>
    %318 = vector.broadcast %317 : vector<8x1xf32> to vector<8x32xf32>
    %319 = arith.mulf %318, %298 : vector<8x32xf32>
    %320 = arith.mulf %314, %316 : vector<8x1xf32>
    %321 = vector.broadcast %320 : vector<8x1xf32> to vector<8x32xf32>
    %322 = arith.mulf %321, %299 : vector<8x32xf32>
    %323 = arith.addf %319, %322 : vector<8x32xf32>
    %c0_178 = arith.constant 0 : index
    %c0_179 = arith.constant 0 : index
    %324 = vector.load %arg16[%c0_178, %c0_179] : memref<16x32xf32, #tpu.memory_space<vmem>>, vector<8x32xf32>
    tpu.vector_store %arg16[%c0_178, %c0_179], %323 {strides = array<i32>} : memref<16x32xf32, #tpu.memory_space<vmem>>, vector<8x32xf32>,
    %325 = arith.mulf %295, %296 : vector<8x32xf32>
    %cst_180 = arith.constant dense<0.000000e+00> : vector<8xf32>
    %326 = vector.multi_reduction <add>, %325, %cst_180 [1] : vector<8x32xf32> to vector<8xf32>
    %327 = vector.shape_cast %326 : vector<8xf32> to vector<8x1xf32>
    %cst_181 = arith.constant 0.176776692 : f32
    %328 = vector.broadcast %cst_181 : f32 to vector<8x1xf32>
    %329 = arith.mulf %327, %328 : vector<8x1xf32>
    %330 = arith.mulf %295, %297 : vector<8x32xf32>
    %cst_182 = arith.constant dense<0.000000e+00> : vector<8xf32>
    %331 = vector.multi_reduction <add>, %330, %cst_182 [1] : vector<8x32xf32> to vector<8xf32>
    %332 = vector.shape_cast %331 : vector<8xf32> to vector<8x1xf32>
    %cst_183 = arith.constant 0.176776692 : f32
    %333 = vector.broadcast %cst_183 : f32 to vector<8x1xf32>
    %334 = arith.mulf %332, %333 : vector<8x1xf32>
    %335 = arith.maximumf %329, %334 : vector<8x1xf32>
    %336 = arith.subf %329, %335 : vector<8x1xf32>
    %337 = math.exp %336 : vector<8x1xf32>
    %338 = arith.subf %334, %335 : vector<8x1xf32>
    %339 = math.exp %338 : vector<8x1xf32>
    %340 = arith.addf %337, %339 : vector<8x1xf32>
    %341 = tpu.reciprocal %340 {approx = true} : vector<8x1xf32> -> vector<8x1xf32>
    %342 = arith.mulf %337, %341 : vector<8x1xf32>
    %343 = vector.broadcast %342 : vector<8x1xf32> to vector<8x32xf32>
    %344 = arith.mulf %343, %298 : vector<8x32xf32>
    %345 = arith.mulf %339, %341 : vector<8x1xf32>
    %346 = vector.broadcast %345 : vector<8x1xf32> to vector<8x32xf32>
    %347 = arith.mulf %346, %299 : vector<8x32xf32>
    %348 = arith.addf %344, %347 : vector<8x32xf32>
    %c8_184 = arith.constant 8 : index
    %c0_185 = arith.constant 0 : index
    %349 = vector.load %arg16[%c8_184, %c0_185] : memref<16x32xf32, #tpu.memory_space<vmem>>, vector<8x32xf32>
    tpu.vector_store %arg16[%c8_184, %c0_185], %348 {strides = array<i32>} : memref<16x32xf32, #tpu.memory_space<vmem>>, vector<8x32xf32>,
    %c0_186 = arith.constant 0 : index
    %c0_187 = arith.constant 0 : index
    %350 = vector.load %arg16[%c0_186, %c0_187] : memref<16x32xf32, #tpu.memory_space<vmem>>, vector<16x32xf32>
    %c2_188 = arith.constant 2 : index
    %c0_189 = arith.constant 0 : index
    %c0_190 = arith.constant 0 : index
    %351 = vector.load %arg3[%c2_188, %c0_189, %c0_190] : memref<6x32x32xbf16, #tpu.memory_space<vmem>>, vector<1x32x32xbf16>
    %352 = vector.shape_cast %351 : vector<1x32x32xbf16> to vector<32x32xbf16>
    %353 = arith.truncf %350 : vector<16x32xf32> to vector<16x32xbf16>
    %cst_191 = arith.constant dense<0.000000e+00> : vector<16x32xf32>
    %354 = tpu.matmul %353, %352, %cst_191 {dimension_numbers = #tpu.dot_dimension_numbers<[1], [0], [0], [1], [0, 0, 1, 1], [], []>} : vector<16x32xbf16>, vector<32x32xbf16>, vector<16x32xf32> -> vector<16x32xf32>
    %c2_192 = arith.constant 2 : index
    %c0_193 = arith.constant 0 : index
    %c0_194 = arith.constant 0 : index
    %355 = vector.load %arg4[%c2_192, %c0_193, %c0_194] : memref<6x1x32xf32, #tpu.memory_space<vmem>>, vector<1x1x32xf32>
    %356 = vector.shape_cast %355 : vector<1x1x32xf32> to vector<1x32xf32>
    %357 = vector.broadcast %356 : vector<1x32xf32> to vector<16x32xf32>
    %358 = arith.addf %354, %357 : vector<16x32xf32>
    %359 = arith.addf %284, %358 : vector<16x32xf32>
    %c2_195 = arith.constant 2 : index
    %c0_196 = arith.constant 0 : index
    %c0_197 = arith.constant 0 : index
    %360 = vector.load %arg5[%c2_195, %c0_196, %c0_197] : memref<6x1x32xf32, #tpu.memory_space<vmem>>, vector<1x1x32xf32>
    %361 = vector.shape_cast %360 : vector<1x1x32xf32> to vector<1x32xf32>
    %c2_198 = arith.constant 2 : index
    %c0_199 = arith.constant 0 : index
    %c0_200 = arith.constant 0 : index
    %362 = vector.load %arg6[%c2_198, %c0_199, %c0_200] : memref<6x1x32xf32, #tpu.memory_space<vmem>>, vector<1x1x32xf32>
    %363 = vector.shape_cast %362 : vector<1x1x32xf32> to vector<1x32xf32>
    %cst_201 = arith.constant dense<0.000000e+00> : vector<16xf32>
    %364 = vector.multi_reduction <add>, %359, %cst_201 [1] : vector<16x32xf32> to vector<16xf32>
    %365 = vector.shape_cast %364 : vector<16xf32> to vector<16x1xf32>
    %cst_202 = arith.constant 3.200000e+01 : f32
    %366 = vector.broadcast %cst_202 : f32 to vector<16x1xf32>
    %367 = arith.divf %365, %366 : vector<16x1xf32>
    %368 = vector.broadcast %367 : vector<16x1xf32> to vector<16x32xf32>
    %369 = arith.subf %359, %368 : vector<16x32xf32>
    %370 = arith.mulf %369, %369 : vector<16x32xf32>
    %cst_203 = arith.constant dense<0.000000e+00> : vector<16xf32>
    %371 = vector.multi_reduction <add>, %370, %cst_203 [1] : vector<16x32xf32> to vector<16xf32>
    %372 = vector.shape_cast %371 : vector<16xf32> to vector<16x1xf32>
    %cst_204 = arith.constant 3.200000e+01 : f32
    %373 = vector.broadcast %cst_204 : f32 to vector<16x1xf32>
    %374 = arith.divf %372, %373 : vector<16x1xf32>
    %cst_205 = arith.constant 9.99999974E-6 : f32
    %375 = vector.broadcast %cst_205 : f32 to vector<16x1xf32>
    %376 = arith.addf %374, %375 : vector<16x1xf32>
    %377 = math.rsqrt %376 : vector<16x1xf32>
    %378 = vector.broadcast %377 : vector<16x1xf32> to vector<16x32xf32>
    %379 = arith.mulf %369, %378 : vector<16x32xf32>
    %380 = vector.broadcast %361 : vector<1x32xf32> to vector<16x32xf32>
    %381 = arith.mulf %379, %380 : vector<16x32xf32>
    %382 = vector.broadcast %363 : vector<1x32xf32> to vector<16x32xf32>
    %383 = arith.addf %381, %382 : vector<16x32xf32>
    %c2_206 = arith.constant 2 : index
    %c0_207 = arith.constant 0 : index
    %c0_208 = arith.constant 0 : index
    %384 = vector.load %arg7[%c2_206, %c0_207, %c0_208] : memref<6x32x2048xbf16, #tpu.memory_space<vmem>>, vector<1x32x2048xbf16>
    %385 = vector.shape_cast %384 : vector<1x32x2048xbf16> to vector<32x2048xbf16>
    %386 = arith.truncf %383 : vector<16x32xf32> to vector<16x32xbf16>
    %cst_209 = arith.constant dense<0.000000e+00> : vector<16x2048xf32>
    %387 = tpu.matmul %386, %385, %cst_209 {dimension_numbers = #tpu.dot_dimension_numbers<[1], [0], [0], [1], [0, 0, 1, 1], [], []>} : vector<16x32xbf16>, vector<32x2048xbf16>, vector<16x2048xf32> -> vector<16x2048xf32>
    %c2_210 = arith.constant 2 : index
    %c0_211 = arith.constant 0 : index
    %c0_212 = arith.constant 0 : index
    %388 = vector.load %arg8[%c2_210, %c0_211, %c0_212] : memref<6x1x2048xf32, #tpu.memory_space<vmem>>, vector<1x1x2048xf32>
    %389 = vector.shape_cast %388 : vector<1x1x2048xf32> to vector<1x2048xf32>
    %390 = vector.broadcast %389 : vector<1x2048xf32> to vector<16x2048xf32>
    %391 = arith.addf %387, %390 : vector<16x2048xf32>
    %cst_213 = arith.constant 0.000000e+00 : f32
    %392 = vector.broadcast %cst_213 : f32 to vector<16x2048xf32>
    %393 = arith.maximumf %391, %392 : vector<16x2048xf32>
    %c2_214 = arith.constant 2 : index
    %c0_215 = arith.constant 0 : index
    %c0_216 = arith.constant 0 : index
    %394 = vector.load %arg9[%c2_214, %c0_215, %c0_216] : memref<6x2048x32xbf16, #tpu.memory_space<vmem>>, vector<1x2048x32xbf16>
    %395 = vector.shape_cast %394 : vector<1x2048x32xbf16> to vector<2048x32xbf16>
    %396 = arith.truncf %393 : vector<16x2048xf32> to vector<16x2048xbf16>
    %cst_217 = arith.constant dense<0.000000e+00> : vector<16x32xf32>
    %397 = tpu.matmul %396, %395, %cst_217 {dimension_numbers = #tpu.dot_dimension_numbers<[1], [0], [0], [1], [0, 0, 1, 1], [], []>} : vector<16x2048xbf16>, vector<2048x32xbf16>, vector<16x32xf32> -> vector<16x32xf32>
    %c2_218 = arith.constant 2 : index
    %c0_219 = arith.constant 0 : index
    %c0_220 = arith.constant 0 : index
    %398 = vector.load %arg10[%c2_218, %c0_219, %c0_220] : memref<6x1x32xf32, #tpu.memory_space<vmem>>, vector<1x1x32xf32>
    %399 = vector.shape_cast %398 : vector<1x1x32xf32> to vector<1x32xf32>
    %400 = vector.broadcast %399 : vector<1x32xf32> to vector<16x32xf32>
    %401 = arith.addf %397, %400 : vector<16x32xf32>
    %402 = arith.addf %383, %401 : vector<16x32xf32>
    %c2_221 = arith.constant 2 : index
    %c0_222 = arith.constant 0 : index
    %c0_223 = arith.constant 0 : index
    %403 = vector.load %arg11[%c2_221, %c0_222, %c0_223] : memref<6x1x32xf32, #tpu.memory_space<vmem>>, vector<1x1x32xf32>
    %404 = vector.shape_cast %403 : vector<1x1x32xf32> to vector<1x32xf32>
    %c2_224 = arith.constant 2 : index
    %c0_225 = arith.constant 0 : index
    %c0_226 = arith.constant 0 : index
    %405 = vector.load %arg12[%c2_224, %c0_225, %c0_226] : memref<6x1x32xf32, #tpu.memory_space<vmem>>, vector<1x1x32xf32>
    %406 = vector.shape_cast %405 : vector<1x1x32xf32> to vector<1x32xf32>
    %cst_227 = arith.constant dense<0.000000e+00> : vector<16xf32>
    %407 = vector.multi_reduction <add>, %402, %cst_227 [1] : vector<16x32xf32> to vector<16xf32>
    %408 = vector.shape_cast %407 : vector<16xf32> to vector<16x1xf32>
    %cst_228 = arith.constant 3.200000e+01 : f32
    %409 = vector.broadcast %cst_228 : f32 to vector<16x1xf32>
    %410 = arith.divf %408, %409 : vector<16x1xf32>
    %411 = vector.broadcast %410 : vector<16x1xf32> to vector<16x32xf32>
    %412 = arith.subf %402, %411 : vector<16x32xf32>
    %413 = arith.mulf %412, %412 : vector<16x32xf32>
    %cst_229 = arith.constant dense<0.000000e+00> : vector<16xf32>
    %414 = vector.multi_reduction <add>, %413, %cst_229 [1] : vector<16x32xf32> to vector<16xf32>
    %415 = vector.shape_cast %414 : vector<16xf32> to vector<16x1xf32>
    %cst_230 = arith.constant 3.200000e+01 : f32
    %416 = vector.broadcast %cst_230 : f32 to vector<16x1xf32>
    %417 = arith.divf %415, %416 : vector<16x1xf32>
    %cst_231 = arith.constant 9.99999974E-6 : f32
    %418 = vector.broadcast %cst_231 : f32 to vector<16x1xf32>
    %419 = arith.addf %417, %418 : vector<16x1xf32>
    %420 = math.rsqrt %419 : vector<16x1xf32>
    %421 = vector.broadcast %420 : vector<16x1xf32> to vector<16x32xf32>
    %422 = arith.mulf %412, %421 : vector<16x32xf32>
    %423 = vector.broadcast %404 : vector<1x32xf32> to vector<16x32xf32>
    %424 = arith.mulf %422, %423 : vector<16x32xf32>
    %425 = vector.broadcast %406 : vector<1x32xf32> to vector<16x32xf32>
    %426 = arith.addf %424, %425 : vector<16x32xf32>
    %c3 = arith.constant 3 : index
    %c0_232 = arith.constant 0 : index
    %c0_233 = arith.constant 0 : index
    %427 = vector.load %arg1[%c3, %c0_232, %c0_233] : memref<6x32x384xbf16, #tpu.memory_space<vmem>>, vector<1x32x384xbf16>
    %428 = vector.shape_cast %427 : vector<1x32x384xbf16> to vector<32x384xbf16>
    %429 = arith.truncf %426 : vector<16x32xf32> to vector<16x32xbf16>
    %cst_234 = arith.constant dense<0.000000e+00> : vector<16x384xf32>
    %430 = tpu.matmul %429, %428, %cst_234 {dimension_numbers = #tpu.dot_dimension_numbers<[1], [0], [0], [1], [0, 0, 1, 1], [], []>} : vector<16x32xbf16>, vector<32x384xbf16>, vector<16x384xf32> -> vector<16x384xf32>
    %c3_235 = arith.constant 3 : index
    %c0_236 = arith.constant 0 : index
    %c0_237 = arith.constant 0 : index
    %431 = vector.load %arg2[%c3_235, %c0_236, %c0_237] : memref<6x1x384xf32, #tpu.memory_space<vmem>>, vector<1x1x384xf32>
    %432 = vector.shape_cast %431 : vector<1x1x384xf32> to vector<1x384xf32>
    %433 = vector.broadcast %432 : vector<1x384xf32> to vector<16x384xf32>
    %434 = arith.addf %430, %433 : vector<16x384xf32>
    %c0_238 = arith.constant 0 : index
    %c0_239 = arith.constant 0 : index
    %435 = vector.load %arg17[%c0_238, %c0_239] : memref<16x384xf32, #tpu.memory_space<vmem>>, vector<16x384xf32>
    tpu.vector_store %arg17[%c0_238, %c0_239], %434 {strides = array<i32>} : memref<16x384xf32, #tpu.memory_space<vmem>>, vector<16x384xf32>,
    %c0_240 = arith.constant 0 : index
    %c0_241 = arith.constant 0 : index
    %436 = vector.load %arg17[%c0_240, %c0_241] : memref<16x384xf32, #tpu.memory_space<vmem>>, vector<8x32xf32>
    %c8_242 = arith.constant 8 : index
    %c0_243 = arith.constant 0 : index
    %437 = vector.load %arg17[%c8_242, %c0_243] : memref<16x384xf32, #tpu.memory_space<vmem>>, vector<8x32xf32>
    %c0_244 = arith.constant 0 : index
    %c128_245 = arith.constant 128 : index
    %438 = vector.load %arg17[%c0_244, %c128_245] : memref<16x384xf32, #tpu.memory_space<vmem>>, vector<8x32xf32>
    %c8_246 = arith.constant 8 : index
    %c128_247 = arith.constant 128 : index
    %439 = vector.load %arg17[%c8_246, %c128_247] : memref<16x384xf32, #tpu.memory_space<vmem>>, vector<8x32xf32>
    %c0_248 = arith.constant 0 : index
    %c256_249 = arith.constant 256 : index
    %440 = vector.load %arg17[%c0_248, %c256_249] : memref<16x384xf32, #tpu.memory_space<vmem>>, vector<8x32xf32>
    %c8_250 = arith.constant 8 : index
    %c256_251 = arith.constant 256 : index
    %441 = vector.load %arg17[%c8_250, %c256_251] : memref<16x384xf32, #tpu.memory_space<vmem>>, vector<8x32xf32>
    %442 = arith.mulf %436, %438 : vector<8x32xf32>
    %cst_252 = arith.constant dense<0.000000e+00> : vector<8xf32>
    %443 = vector.multi_reduction <add>, %442, %cst_252 [1] : vector<8x32xf32> to vector<8xf32>
    %444 = vector.shape_cast %443 : vector<8xf32> to vector<8x1xf32>
    %cst_253 = arith.constant 0.176776692 : f32
    %445 = vector.broadcast %cst_253 : f32 to vector<8x1xf32>
    %446 = arith.mulf %444, %445 : vector<8x1xf32>
    %447 = arith.mulf %436, %439 : vector<8x32xf32>
    %cst_254 = arith.constant dense<0.000000e+00> : vector<8xf32>
    %448 = vector.multi_reduction <add>, %447, %cst_254 [1] : vector<8x32xf32> to vector<8xf32>
    %449 = vector.shape_cast %448 : vector<8xf32> to vector<8x1xf32>
    %cst_255 = arith.constant 0.176776692 : f32
    %450 = vector.broadcast %cst_255 : f32 to vector<8x1xf32>
    %451 = arith.mulf %449, %450 : vector<8x1xf32>
    %452 = arith.maximumf %446, %451 : vector<8x1xf32>
    %453 = arith.subf %446, %452 : vector<8x1xf32>
    %454 = math.exp %453 : vector<8x1xf32>
    %455 = arith.subf %451, %452 : vector<8x1xf32>
    %456 = math.exp %455 : vector<8x1xf32>
    %457 = arith.addf %454, %456 : vector<8x1xf32>
    %458 = tpu.reciprocal %457 {approx = true} : vector<8x1xf32> -> vector<8x1xf32>
    %459 = arith.mulf %454, %458 : vector<8x1xf32>
    %460 = vector.broadcast %459 : vector<8x1xf32> to vector<8x32xf32>
    %461 = arith.mulf %460, %440 : vector<8x32xf32>
    %462 = arith.mulf %456, %458 : vector<8x1xf32>
    %463 = vector.broadcast %462 : vector<8x1xf32> to vector<8x32xf32>
    %464 = arith.mulf %463, %441 : vector<8x32xf32>
    %465 = arith.addf %461, %464 : vector<8x32xf32>
    %c0_256 = arith.constant 0 : index
    %c0_257 = arith.constant 0 : index
    %466 = vector.load %arg16[%c0_256, %c0_257] : memref<16x32xf32, #tpu.memory_space<vmem>>, vector<8x32xf32>
    tpu.vector_store %arg16[%c0_256, %c0_257], %465 {strides = array<i32>} : memref<16x32xf32, #tpu.memory_space<vmem>>, vector<8x32xf32>,
    %467 = arith.mulf %437, %438 : vector<8x32xf32>
    %cst_258 = arith.constant dense<0.000000e+00> : vector<8xf32>
    %468 = vector.multi_reduction <add>, %467, %cst_258 [1] : vector<8x32xf32> to vector<8xf32>
    %469 = vector.shape_cast %468 : vector<8xf32> to vector<8x1xf32>
    %cst_259 = arith.constant 0.176776692 : f32
    %470 = vector.broadcast %cst_259 : f32 to vector<8x1xf32>
    %471 = arith.mulf %469, %470 : vector<8x1xf32>
    %472 = arith.mulf %437, %439 : vector<8x32xf32>
    %cst_260 = arith.constant dense<0.000000e+00> : vector<8xf32>
    %473 = vector.multi_reduction <add>, %472, %cst_260 [1] : vector<8x32xf32> to vector<8xf32>
    %474 = vector.shape_cast %473 : vector<8xf32> to vector<8x1xf32>
    %cst_261 = arith.constant 0.176776692 : f32
    %475 = vector.broadcast %cst_261 : f32 to vector<8x1xf32>
    %476 = arith.mulf %474, %475 : vector<8x1xf32>
    %477 = arith.maximumf %471, %476 : vector<8x1xf32>
    %478 = arith.subf %471, %477 : vector<8x1xf32>
    %479 = math.exp %478 : vector<8x1xf32>
    %480 = arith.subf %476, %477 : vector<8x1xf32>
    %481 = math.exp %480 : vector<8x1xf32>
    %482 = arith.addf %479, %481 : vector<8x1xf32>
    %483 = tpu.reciprocal %482 {approx = true} : vector<8x1xf32> -> vector<8x1xf32>
    %484 = arith.mulf %479, %483 : vector<8x1xf32>
    %485 = vector.broadcast %484 : vector<8x1xf32> to vector<8x32xf32>
    %486 = arith.mulf %485, %440 : vector<8x32xf32>
    %487 = arith.mulf %481, %483 : vector<8x1xf32>
    %488 = vector.broadcast %487 : vector<8x1xf32> to vector<8x32xf32>
    %489 = arith.mulf %488, %441 : vector<8x32xf32>
    %490 = arith.addf %486, %489 : vector<8x32xf32>
    %c8_262 = arith.constant 8 : index
    %c0_263 = arith.constant 0 : index
    %491 = vector.load %arg16[%c8_262, %c0_263] : memref<16x32xf32, #tpu.memory_space<vmem>>, vector<8x32xf32>
    tpu.vector_store %arg16[%c8_262, %c0_263], %490 {strides = array<i32>} : memref<16x32xf32, #tpu.memory_space<vmem>>, vector<8x32xf32>,
    %c0_264 = arith.constant 0 : index
    %c0_265 = arith.constant 0 : index
    %492 = vector.load %arg16[%c0_264, %c0_265] : memref<16x32xf32, #tpu.memory_space<vmem>>, vector<16x32xf32>
    %c3_266 = arith.constant 3 : index
    %c0_267 = arith.constant 0 : index
    %c0_268 = arith.constant 0 : index
    %493 = vector.load %arg3[%c3_266, %c0_267, %c0_268] : memref<6x32x32xbf16, #tpu.memory_space<vmem>>, vector<1x32x32xbf16>
    %494 = vector.shape_cast %493 : vector<1x32x32xbf16> to vector<32x32xbf16>
    %495 = arith.truncf %492 : vector<16x32xf32> to vector<16x32xbf16>
    %cst_269 = arith.constant dense<0.000000e+00> : vector<16x32xf32>
    %496 = tpu.matmul %495, %494, %cst_269 {dimension_numbers = #tpu.dot_dimension_numbers<[1], [0], [0], [1], [0, 0, 1, 1], [], []>} : vector<16x32xbf16>, vector<32x32xbf16>, vector<16x32xf32> -> vector<16x32xf32>
    %c3_270 = arith.constant 3 : index
    %c0_271 = arith.constant 0 : index
    %c0_272 = arith.constant 0 : index
    %497 = vector.load %arg4[%c3_270, %c0_271, %c0_272] : memref<6x1x32xf32, #tpu.memory_space<vmem>>, vector<1x1x32xf32>
    %498 = vector.shape_cast %497 : vector<1x1x32xf32> to vector<1x32xf32>
    %499 = vector.broadcast %498 : vector<1x32xf32> to vector<16x32xf32>
    %500 = arith.addf %496, %499 : vector<16x32xf32>
    %501 = arith.addf %426, %500 : vector<16x32xf32>
    %c3_273 = arith.constant 3 : index
    %c0_274 = arith.constant 0 : index
    %c0_275 = arith.constant 0 : index
    %502 = vector.load %arg5[%c3_273, %c0_274, %c0_275] : memref<6x1x32xf32, #tpu.memory_space<vmem>>, vector<1x1x32xf32>
    %503 = vector.shape_cast %502 : vector<1x1x32xf32> to vector<1x32xf32>
    %c3_276 = arith.constant 3 : index
    %c0_277 = arith.constant 0 : index
    %c0_278 = arith.constant 0 : index
    %504 = vector.load %arg6[%c3_276, %c0_277, %c0_278] : memref<6x1x32xf32, #tpu.memory_space<vmem>>, vector<1x1x32xf32>
    %505 = vector.shape_cast %504 : vector<1x1x32xf32> to vector<1x32xf32>
    %cst_279 = arith.constant dense<0.000000e+00> : vector<16xf32>
    %506 = vector.multi_reduction <add>, %501, %cst_279 [1] : vector<16x32xf32> to vector<16xf32>
    %507 = vector.shape_cast %506 : vector<16xf32> to vector<16x1xf32>
    %cst_280 = arith.constant 3.200000e+01 : f32
    %508 = vector.broadcast %cst_280 : f32 to vector<16x1xf32>
    %509 = arith.divf %507, %508 : vector<16x1xf32>
    %510 = vector.broadcast %509 : vector<16x1xf32> to vector<16x32xf32>
    %511 = arith.subf %501, %510 : vector<16x32xf32>
    %512 = arith.mulf %511, %511 : vector<16x32xf32>
    %cst_281 = arith.constant dense<0.000000e+00> : vector<16xf32>
    %513 = vector.multi_reduction <add>, %512, %cst_281 [1] : vector<16x32xf32> to vector<16xf32>
    %514 = vector.shape_cast %513 : vector<16xf32> to vector<16x1xf32>
    %cst_282 = arith.constant 3.200000e+01 : f32
    %515 = vector.broadcast %cst_282 : f32 to vector<16x1xf32>
    %516 = arith.divf %514, %515 : vector<16x1xf32>
    %cst_283 = arith.constant 9.99999974E-6 : f32
    %517 = vector.broadcast %cst_283 : f32 to vector<16x1xf32>
    %518 = arith.addf %516, %517 : vector<16x1xf32>
    %519 = math.rsqrt %518 : vector<16x1xf32>
    %520 = vector.broadcast %519 : vector<16x1xf32> to vector<16x32xf32>
    %521 = arith.mulf %511, %520 : vector<16x32xf32>
    %522 = vector.broadcast %503 : vector<1x32xf32> to vector<16x32xf32>
    %523 = arith.mulf %521, %522 : vector<16x32xf32>
    %524 = vector.broadcast %505 : vector<1x32xf32> to vector<16x32xf32>
    %525 = arith.addf %523, %524 : vector<16x32xf32>
    %c3_284 = arith.constant 3 : index
    %c0_285 = arith.constant 0 : index
    %c0_286 = arith.constant 0 : index
    %526 = vector.load %arg7[%c3_284, %c0_285, %c0_286] : memref<6x32x2048xbf16, #tpu.memory_space<vmem>>, vector<1x32x2048xbf16>
    %527 = vector.shape_cast %526 : vector<1x32x2048xbf16> to vector<32x2048xbf16>
    %528 = arith.truncf %525 : vector<16x32xf32> to vector<16x32xbf16>
    %cst_287 = arith.constant dense<0.000000e+00> : vector<16x2048xf32>
    %529 = tpu.matmul %528, %527, %cst_287 {dimension_numbers = #tpu.dot_dimension_numbers<[1], [0], [0], [1], [0, 0, 1, 1], [], []>} : vector<16x32xbf16>, vector<32x2048xbf16>, vector<16x2048xf32> -> vector<16x2048xf32>
    %c3_288 = arith.constant 3 : index
    %c0_289 = arith.constant 0 : index
    %c0_290 = arith.constant 0 : index
    %530 = vector.load %arg8[%c3_288, %c0_289, %c0_290] : memref<6x1x2048xf32, #tpu.memory_space<vmem>>, vector<1x1x2048xf32>
    %531 = vector.shape_cast %530 : vector<1x1x2048xf32> to vector<1x2048xf32>
    %532 = vector.broadcast %531 : vector<1x2048xf32> to vector<16x2048xf32>
    %533 = arith.addf %529, %532 : vector<16x2048xf32>
    %cst_291 = arith.constant 0.000000e+00 : f32
    %534 = vector.broadcast %cst_291 : f32 to vector<16x2048xf32>
    %535 = arith.maximumf %533, %534 : vector<16x2048xf32>
    %c3_292 = arith.constant 3 : index
    %c0_293 = arith.constant 0 : index
    %c0_294 = arith.constant 0 : index
    %536 = vector.load %arg9[%c3_292, %c0_293, %c0_294] : memref<6x2048x32xbf16, #tpu.memory_space<vmem>>, vector<1x2048x32xbf16>
    %537 = vector.shape_cast %536 : vector<1x2048x32xbf16> to vector<2048x32xbf16>
    %538 = arith.truncf %535 : vector<16x2048xf32> to vector<16x2048xbf16>
    %cst_295 = arith.constant dense<0.000000e+00> : vector<16x32xf32>
    %539 = tpu.matmul %538, %537, %cst_295 {dimension_numbers = #tpu.dot_dimension_numbers<[1], [0], [0], [1], [0, 0, 1, 1], [], []>} : vector<16x2048xbf16>, vector<2048x32xbf16>, vector<16x32xf32> -> vector<16x32xf32>
    %c3_296 = arith.constant 3 : index
    %c0_297 = arith.constant 0 : index
    %c0_298 = arith.constant 0 : index
    %540 = vector.load %arg10[%c3_296, %c0_297, %c0_298] : memref<6x1x32xf32, #tpu.memory_space<vmem>>, vector<1x1x32xf32>
    %541 = vector.shape_cast %540 : vector<1x1x32xf32> to vector<1x32xf32>
    %542 = vector.broadcast %541 : vector<1x32xf32> to vector<16x32xf32>
    %543 = arith.addf %539, %542 : vector<16x32xf32>
    %544 = arith.addf %525, %543 : vector<16x32xf32>
    %c3_299 = arith.constant 3 : index
    %c0_300 = arith.constant 0 : index
    %c0_301 = arith.constant 0 : index
    %545 = vector.load %arg11[%c3_299, %c0_300, %c0_301] : memref<6x1x32xf32, #tpu.memory_space<vmem>>, vector<1x1x32xf32>
    %546 = vector.shape_cast %545 : vector<1x1x32xf32> to vector<1x32xf32>
    %c3_302 = arith.constant 3 : index
    %c0_303 = arith.constant 0 : index
    %c0_304 = arith.constant 0 : index
    %547 = vector.load %arg12[%c3_302, %c0_303, %c0_304] : memref<6x1x32xf32, #tpu.memory_space<vmem>>, vector<1x1x32xf32>
    %548 = vector.shape_cast %547 : vector<1x1x32xf32> to vector<1x32xf32>
    %cst_305 = arith.constant dense<0.000000e+00> : vector<16xf32>
    %549 = vector.multi_reduction <add>, %544, %cst_305 [1] : vector<16x32xf32> to vector<16xf32>
    %550 = vector.shape_cast %549 : vector<16xf32> to vector<16x1xf32>
    %cst_306 = arith.constant 3.200000e+01 : f32
    %551 = vector.broadcast %cst_306 : f32 to vector<16x1xf32>
    %552 = arith.divf %550, %551 : vector<16x1xf32>
    %553 = vector.broadcast %552 : vector<16x1xf32> to vector<16x32xf32>
    %554 = arith.subf %544, %553 : vector<16x32xf32>
    %555 = arith.mulf %554, %554 : vector<16x32xf32>
    %cst_307 = arith.constant dense<0.000000e+00> : vector<16xf32>
    %556 = vector.multi_reduction <add>, %555, %cst_307 [1] : vector<16x32xf32> to vector<16xf32>
    %557 = vector.shape_cast %556 : vector<16xf32> to vector<16x1xf32>
    %cst_308 = arith.constant 3.200000e+01 : f32
    %558 = vector.broadcast %cst_308 : f32 to vector<16x1xf32>
    %559 = arith.divf %557, %558 : vector<16x1xf32>
    %cst_309 = arith.constant 9.99999974E-6 : f32
    %560 = vector.broadcast %cst_309 : f32 to vector<16x1xf32>
    %561 = arith.addf %559, %560 : vector<16x1xf32>
    %562 = math.rsqrt %561 : vector<16x1xf32>
    %563 = vector.broadcast %562 : vector<16x1xf32> to vector<16x32xf32>
    %564 = arith.mulf %554, %563 : vector<16x32xf32>
    %565 = vector.broadcast %546 : vector<1x32xf32> to vector<16x32xf32>
    %566 = arith.mulf %564, %565 : vector<16x32xf32>
    %567 = vector.broadcast %548 : vector<1x32xf32> to vector<16x32xf32>
    %568 = arith.addf %566, %567 : vector<16x32xf32>
    %c4 = arith.constant 4 : index
    %c0_310 = arith.constant 0 : index
    %c0_311 = arith.constant 0 : index
    %569 = vector.load %arg1[%c4, %c0_310, %c0_311] : memref<6x32x384xbf16, #tpu.memory_space<vmem>>, vector<1x32x384xbf16>
    %570 = vector.shape_cast %569 : vector<1x32x384xbf16> to vector<32x384xbf16>
    %571 = arith.truncf %568 : vector<16x32xf32> to vector<16x32xbf16>
    %cst_312 = arith.constant dense<0.000000e+00> : vector<16x384xf32>
    %572 = tpu.matmul %571, %570, %cst_312 {dimension_numbers = #tpu.dot_dimension_numbers<[1], [0], [0], [1], [0, 0, 1, 1], [], []>} : vector<16x32xbf16>, vector<32x384xbf16>, vector<16x384xf32> -> vector<16x384xf32>
    %c4_313 = arith.constant 4 : index
    %c0_314 = arith.constant 0 : index
    %c0_315 = arith.constant 0 : index
    %573 = vector.load %arg2[%c4_313, %c0_314, %c0_315] : memref<6x1x384xf32, #tpu.memory_space<vmem>>, vector<1x1x384xf32>
    %574 = vector.shape_cast %573 : vector<1x1x384xf32> to vector<1x384xf32>
    %575 = vector.broadcast %574 : vector<1x384xf32> to vector<16x384xf32>
    %576 = arith.addf %572, %575 : vector<16x384xf32>
    %c0_316 = arith.constant 0 : index
    %c0_317 = arith.constant 0 : index
    %577 = vector.load %arg17[%c0_316, %c0_317] : memref<16x384xf32, #tpu.memory_space<vmem>>, vector<16x384xf32>
    tpu.vector_store %arg17[%c0_316, %c0_317], %576 {strides = array<i32>} : memref<16x384xf32, #tpu.memory_space<vmem>>, vector<16x384xf32>,
    %c0_318 = arith.constant 0 : index
    %c0_319 = arith.constant 0 : index
    %578 = vector.load %arg17[%c0_318, %c0_319] : memref<16x384xf32, #tpu.memory_space<vmem>>, vector<8x32xf32>
    %c8_320 = arith.constant 8 : index
    %c0_321 = arith.constant 0 : index
    %579 = vector.load %arg17[%c8_320, %c0_321] : memref<16x384xf32, #tpu.memory_space<vmem>>, vector<8x32xf32>
    %c0_322 = arith.constant 0 : index
    %c128_323 = arith.constant 128 : index
    %580 = vector.load %arg17[%c0_322, %c128_323] : memref<16x384xf32, #tpu.memory_space<vmem>>, vector<8x32xf32>
    %c8_324 = arith.constant 8 : index
    %c128_325 = arith.constant 128 : index
    %581 = vector.load %arg17[%c8_324, %c128_325] : memref<16x384xf32, #tpu.memory_space<vmem>>, vector<8x32xf32>
    %c0_326 = arith.constant 0 : index
    %c256_327 = arith.constant 256 : index
    %582 = vector.load %arg17[%c0_326, %c256_327] : memref<16x384xf32, #tpu.memory_space<vmem>>, vector<8x32xf32>
    %c8_328 = arith.constant 8 : index
    %c256_329 = arith.constant 256 : index
    %583 = vector.load %arg17[%c8_328, %c256_329] : memref<16x384xf32, #tpu.memory_space<vmem>>, vector<8x32xf32>
    %584 = arith.mulf %578, %580 : vector<8x32xf32>
    %cst_330 = arith.constant dense<0.000000e+00> : vector<8xf32>
    %585 = vector.multi_reduction <add>, %584, %cst_330 [1] : vector<8x32xf32> to vector<8xf32>
    %586 = vector.shape_cast %585 : vector<8xf32> to vector<8x1xf32>
    %cst_331 = arith.constant 0.176776692 : f32
    %587 = vector.broadcast %cst_331 : f32 to vector<8x1xf32>
    %588 = arith.mulf %586, %587 : vector<8x1xf32>
    %589 = arith.mulf %578, %581 : vector<8x32xf32>
    %cst_332 = arith.constant dense<0.000000e+00> : vector<8xf32>
    %590 = vector.multi_reduction <add>, %589, %cst_332 [1] : vector<8x32xf32> to vector<8xf32>
    %591 = vector.shape_cast %590 : vector<8xf32> to vector<8x1xf32>
    %cst_333 = arith.constant 0.176776692 : f32
    %592 = vector.broadcast %cst_333 : f32 to vector<8x1xf32>
    %593 = arith.mulf %591, %592 : vector<8x1xf32>
    %594 = arith.maximumf %588, %593 : vector<8x1xf32>
    %595 = arith.subf %588, %594 : vector<8x1xf32>
    %596 = math.exp %595 : vector<8x1xf32>
    %597 = arith.subf %593, %594 : vector<8x1xf32>
    %598 = math.exp %597 : vector<8x1xf32>
    %599 = arith.addf %596, %598 : vector<8x1xf32>
    %600 = tpu.reciprocal %599 {approx = true} : vector<8x1xf32> -> vector<8x1xf32>
    %601 = arith.mulf %596, %600 : vector<8x1xf32>
    %602 = vector.broadcast %601 : vector<8x1xf32> to vector<8x32xf32>
    %603 = arith.mulf %602, %582 : vector<8x32xf32>
    %604 = arith.mulf %598, %600 : vector<8x1xf32>
    %605 = vector.broadcast %604 : vector<8x1xf32> to vector<8x32xf32>
    %606 = arith.mulf %605, %583 : vector<8x32xf32>
    %607 = arith.addf %603, %606 : vector<8x32xf32>
    %c0_334 = arith.constant 0 : index
    %c0_335 = arith.constant 0 : index
    %608 = vector.load %arg16[%c0_334, %c0_335] : memref<16x32xf32, #tpu.memory_space<vmem>>, vector<8x32xf32>
    tpu.vector_store %arg16[%c0_334, %c0_335], %607 {strides = array<i32>} : memref<16x32xf32, #tpu.memory_space<vmem>>, vector<8x32xf32>,
    %609 = arith.mulf %579, %580 : vector<8x32xf32>
    %cst_336 = arith.constant dense<0.000000e+00> : vector<8xf32>
    %610 = vector.multi_reduction <add>, %609, %cst_336 [1] : vector<8x32xf32> to vector<8xf32>
    %611 = vector.shape_cast %610 : vector<8xf32> to vector<8x1xf32>
    %cst_337 = arith.constant 0.176776692 : f32
    %612 = vector.broadcast %cst_337 : f32 to vector<8x1xf32>
    %613 = arith.mulf %611, %612 : vector<8x1xf32>
    %614 = arith.mulf %579, %581 : vector<8x32xf32>
    %cst_338 = arith.constant dense<0.000000e+00> : vector<8xf32>
    %615 = vector.multi_reduction <add>, %614, %cst_338 [1] : vector<8x32xf32> to vector<8xf32>
    %616 = vector.shape_cast %615 : vector<8xf32> to vector<8x1xf32>
    %cst_339 = arith.constant 0.176776692 : f32
    %617 = vector.broadcast %cst_339 : f32 to vector<8x1xf32>
    %618 = arith.mulf %616, %617 : vector<8x1xf32>
    %619 = arith.maximumf %613, %618 : vector<8x1xf32>
    %620 = arith.subf %613, %619 : vector<8x1xf32>
    %621 = math.exp %620 : vector<8x1xf32>
    %622 = arith.subf %618, %619 : vector<8x1xf32>
    %623 = math.exp %622 : vector<8x1xf32>
    %624 = arith.addf %621, %623 : vector<8x1xf32>
    %625 = tpu.reciprocal %624 {approx = true} : vector<8x1xf32> -> vector<8x1xf32>
    %626 = arith.mulf %621, %625 : vector<8x1xf32>
    %627 = vector.broadcast %626 : vector<8x1xf32> to vector<8x32xf32>
    %628 = arith.mulf %627, %582 : vector<8x32xf32>
    %629 = arith.mulf %623, %625 : vector<8x1xf32>
    %630 = vector.broadcast %629 : vector<8x1xf32> to vector<8x32xf32>
    %631 = arith.mulf %630, %583 : vector<8x32xf32>
    %632 = arith.addf %628, %631 : vector<8x32xf32>
    %c8_340 = arith.constant 8 : index
    %c0_341 = arith.constant 0 : index
    %633 = vector.load %arg16[%c8_340, %c0_341] : memref<16x32xf32, #tpu.memory_space<vmem>>, vector<8x32xf32>
    tpu.vector_store %arg16[%c8_340, %c0_341], %632 {strides = array<i32>} : memref<16x32xf32, #tpu.memory_space<vmem>>, vector<8x32xf32>,
    %c0_342 = arith.constant 0 : index
    %c0_343 = arith.constant 0 : index
    %634 = vector.load %arg16[%c0_342, %c0_343] : memref<16x32xf32, #tpu.memory_space<vmem>>, vector<16x32xf32>
    %c4_344 = arith.constant 4 : index
    %c0_345 = arith.constant 0 : index
    %c0_346 = arith.constant 0 : index
    %635 = vector.load %arg3[%c4_344, %c0_345, %c0_346] : memref<6x32x32xbf16, #tpu.memory_space<vmem>>, vector<1x32x32xbf16>
    %636 = vector.shape_cast %635 : vector<1x32x32xbf16> to vector<32x32xbf16>
    %637 = arith.truncf %634 : vector<16x32xf32> to vector<16x32xbf16>
    %cst_347 = arith.constant dense<0.000000e+00> : vector<16x32xf32>
    %638 = tpu.matmul %637, %636, %cst_347 {dimension_numbers = #tpu.dot_dimension_numbers<[1], [0], [0], [1], [0, 0, 1, 1], [], []>} : vector<16x32xbf16>, vector<32x32xbf16>, vector<16x32xf32> -> vector<16x32xf32>
    %c4_348 = arith.constant 4 : index
    %c0_349 = arith.constant 0 : index
    %c0_350 = arith.constant 0 : index
    %639 = vector.load %arg4[%c4_348, %c0_349, %c0_350] : memref<6x1x32xf32, #tpu.memory_space<vmem>>, vector<1x1x32xf32>
    %640 = vector.shape_cast %639 : vector<1x1x32xf32> to vector<1x32xf32>
    %641 = vector.broadcast %640 : vector<1x32xf32> to vector<16x32xf32>
    %642 = arith.addf %638, %641 : vector<16x32xf32>
    %643 = arith.addf %568, %642 : vector<16x32xf32>
    %c4_351 = arith.constant 4 : index
    %c0_352 = arith.constant 0 : index
    %c0_353 = arith.constant 0 : index
    %644 = vector.load %arg5[%c4_351, %c0_352, %c0_353] : memref<6x1x32xf32, #tpu.memory_space<vmem>>, vector<1x1x32xf32>
    %645 = vector.shape_cast %644 : vector<1x1x32xf32> to vector<1x32xf32>
    %c4_354 = arith.constant 4 : index
    %c0_355 = arith.constant 0 : index
    %c0_356 = arith.constant 0 : index
    %646 = vector.load %arg6[%c4_354, %c0_355, %c0_356] : memref<6x1x32xf32, #tpu.memory_space<vmem>>, vector<1x1x32xf32>
    %647 = vector.shape_cast %646 : vector<1x1x32xf32> to vector<1x32xf32>
    %cst_357 = arith.constant dense<0.000000e+00> : vector<16xf32>
    %648 = vector.multi_reduction <add>, %643, %cst_357 [1] : vector<16x32xf32> to vector<16xf32>
    %649 = vector.shape_cast %648 : vector<16xf32> to vector<16x1xf32>
    %cst_358 = arith.constant 3.200000e+01 : f32
    %650 = vector.broadcast %cst_358 : f32 to vector<16x1xf32>
    %651 = arith.divf %649, %650 : vector<16x1xf32>
    %652 = vector.broadcast %651 : vector<16x1xf32> to vector<16x32xf32>
    %653 = arith.subf %643, %652 : vector<16x32xf32>
    %654 = arith.mulf %653, %653 : vector<16x32xf32>
    %cst_359 = arith.constant dense<0.000000e+00> : vector<16xf32>
    %655 = vector.multi_reduction <add>, %654, %cst_359 [1] : vector<16x32xf32> to vector<16xf32>
    %656 = vector.shape_cast %655 : vector<16xf32> to vector<16x1xf32>
    %cst_360 = arith.constant 3.200000e+01 : f32
    %657 = vector.broadcast %cst_360 : f32 to vector<16x1xf32>
    %658 = arith.divf %656, %657 : vector<16x1xf32>
    %cst_361 = arith.constant 9.99999974E-6 : f32
    %659 = vector.broadcast %cst_361 : f32 to vector<16x1xf32>
    %660 = arith.addf %658, %659 : vector<16x1xf32>
    %661 = math.rsqrt %660 : vector<16x1xf32>
    %662 = vector.broadcast %661 : vector<16x1xf32> to vector<16x32xf32>
    %663 = arith.mulf %653, %662 : vector<16x32xf32>
    %664 = vector.broadcast %645 : vector<1x32xf32> to vector<16x32xf32>
    %665 = arith.mulf %663, %664 : vector<16x32xf32>
    %666 = vector.broadcast %647 : vector<1x32xf32> to vector<16x32xf32>
    %667 = arith.addf %665, %666 : vector<16x32xf32>
    %c4_362 = arith.constant 4 : index
    %c0_363 = arith.constant 0 : index
    %c0_364 = arith.constant 0 : index
    %668 = vector.load %arg7[%c4_362, %c0_363, %c0_364] : memref<6x32x2048xbf16, #tpu.memory_space<vmem>>, vector<1x32x2048xbf16>
    %669 = vector.shape_cast %668 : vector<1x32x2048xbf16> to vector<32x2048xbf16>
    %670 = arith.truncf %667 : vector<16x32xf32> to vector<16x32xbf16>
    %cst_365 = arith.constant dense<0.000000e+00> : vector<16x2048xf32>
    %671 = tpu.matmul %670, %669, %cst_365 {dimension_numbers = #tpu.dot_dimension_numbers<[1], [0], [0], [1], [0, 0, 1, 1], [], []>} : vector<16x32xbf16>, vector<32x2048xbf16>, vector<16x2048xf32> -> vector<16x2048xf32>
    %c4_366 = arith.constant 4 : index
    %c0_367 = arith.constant 0 : index
    %c0_368 = arith.constant 0 : index
    %672 = vector.load %arg8[%c4_366, %c0_367, %c0_368] : memref<6x1x2048xf32, #tpu.memory_space<vmem>>, vector<1x1x2048xf32>
    %673 = vector.shape_cast %672 : vector<1x1x2048xf32> to vector<1x2048xf32>
    %674 = vector.broadcast %673 : vector<1x2048xf32> to vector<16x2048xf32>
    %675 = arith.addf %671, %674 : vector<16x2048xf32>
    %cst_369 = arith.constant 0.000000e+00 : f32
    %676 = vector.broadcast %cst_369 : f32 to vector<16x2048xf32>
    %677 = arith.maximumf %675, %676 : vector<16x2048xf32>
    %c4_370 = arith.constant 4 : index
    %c0_371 = arith.constant 0 : index
    %c0_372 = arith.constant 0 : index
    %678 = vector.load %arg9[%c4_370, %c0_371, %c0_372] : memref<6x2048x32xbf16, #tpu.memory_space<vmem>>, vector<1x2048x32xbf16>
    %679 = vector.shape_cast %678 : vector<1x2048x32xbf16> to vector<2048x32xbf16>
    %680 = arith.truncf %677 : vector<16x2048xf32> to vector<16x2048xbf16>
    %cst_373 = arith.constant dense<0.000000e+00> : vector<16x32xf32>
    %681 = tpu.matmul %680, %679, %cst_373 {dimension_numbers = #tpu.dot_dimension_numbers<[1], [0], [0], [1], [0, 0, 1, 1], [], []>} : vector<16x2048xbf16>, vector<2048x32xbf16>, vector<16x32xf32> -> vector<16x32xf32>
    %c4_374 = arith.constant 4 : index
    %c0_375 = arith.constant 0 : index
    %c0_376 = arith.constant 0 : index
    %682 = vector.load %arg10[%c4_374, %c0_375, %c0_376] : memref<6x1x32xf32, #tpu.memory_space<vmem>>, vector<1x1x32xf32>
    %683 = vector.shape_cast %682 : vector<1x1x32xf32> to vector<1x32xf32>
    %684 = vector.broadcast %683 : vector<1x32xf32> to vector<16x32xf32>
    %685 = arith.addf %681, %684 : vector<16x32xf32>
    %686 = arith.addf %667, %685 : vector<16x32xf32>
    %c4_377 = arith.constant 4 : index
    %c0_378 = arith.constant 0 : index
    %c0_379 = arith.constant 0 : index
    %687 = vector.load %arg11[%c4_377, %c0_378, %c0_379] : memref<6x1x32xf32, #tpu.memory_space<vmem>>, vector<1x1x32xf32>
    %688 = vector.shape_cast %687 : vector<1x1x32xf32> to vector<1x32xf32>
    %c4_380 = arith.constant 4 : index
    %c0_381 = arith.constant 0 : index
    %c0_382 = arith.constant 0 : index
    %689 = vector.load %arg12[%c4_380, %c0_381, %c0_382] : memref<6x1x32xf32, #tpu.memory_space<vmem>>, vector<1x1x32xf32>
    %690 = vector.shape_cast %689 : vector<1x1x32xf32> to vector<1x32xf32>
    %cst_383 = arith.constant dense<0.000000e+00> : vector<16xf32>
    %691 = vector.multi_reduction <add>, %686, %cst_383 [1] : vector<16x32xf32> to vector<16xf32>
    %692 = vector.shape_cast %691 : vector<16xf32> to vector<16x1xf32>
    %cst_384 = arith.constant 3.200000e+01 : f32
    %693 = vector.broadcast %cst_384 : f32 to vector<16x1xf32>
    %694 = arith.divf %692, %693 : vector<16x1xf32>
    %695 = vector.broadcast %694 : vector<16x1xf32> to vector<16x32xf32>
    %696 = arith.subf %686, %695 : vector<16x32xf32>
    %697 = arith.mulf %696, %696 : vector<16x32xf32>
    %cst_385 = arith.constant dense<0.000000e+00> : vector<16xf32>
    %698 = vector.multi_reduction <add>, %697, %cst_385 [1] : vector<16x32xf32> to vector<16xf32>
    %699 = vector.shape_cast %698 : vector<16xf32> to vector<16x1xf32>
    %cst_386 = arith.constant 3.200000e+01 : f32
    %700 = vector.broadcast %cst_386 : f32 to vector<16x1xf32>
    %701 = arith.divf %699, %700 : vector<16x1xf32>
    %cst_387 = arith.constant 9.99999974E-6 : f32
    %702 = vector.broadcast %cst_387 : f32 to vector<16x1xf32>
    %703 = arith.addf %701, %702 : vector<16x1xf32>
    %704 = math.rsqrt %703 : vector<16x1xf32>
    %705 = vector.broadcast %704 : vector<16x1xf32> to vector<16x32xf32>
    %706 = arith.mulf %696, %705 : vector<16x32xf32>
    %707 = vector.broadcast %688 : vector<1x32xf32> to vector<16x32xf32>
    %708 = arith.mulf %706, %707 : vector<16x32xf32>
    %709 = vector.broadcast %690 : vector<1x32xf32> to vector<16x32xf32>
    %710 = arith.addf %708, %709 : vector<16x32xf32>
    %c5 = arith.constant 5 : index
    %c0_388 = arith.constant 0 : index
    %c0_389 = arith.constant 0 : index
    %711 = vector.load %arg1[%c5, %c0_388, %c0_389] : memref<6x32x384xbf16, #tpu.memory_space<vmem>>, vector<1x32x384xbf16>
    %712 = vector.shape_cast %711 : vector<1x32x384xbf16> to vector<32x384xbf16>
    %713 = arith.truncf %710 : vector<16x32xf32> to vector<16x32xbf16>
    %cst_390 = arith.constant dense<0.000000e+00> : vector<16x384xf32>
    %714 = tpu.matmul %713, %712, %cst_390 {dimension_numbers = #tpu.dot_dimension_numbers<[1], [0], [0], [1], [0, 0, 1, 1], [], []>} : vector<16x32xbf16>, vector<32x384xbf16>, vector<16x384xf32> -> vector<16x384xf32>
    %c5_391 = arith.constant 5 : index
    %c0_392 = arith.constant 0 : index
    %c0_393 = arith.constant 0 : index
    %715 = vector.load %arg2[%c5_391, %c0_392, %c0_393] : memref<6x1x384xf32, #tpu.memory_space<vmem>>, vector<1x1x384xf32>
    %716 = vector.shape_cast %715 : vector<1x1x384xf32> to vector<1x384xf32>
    %717 = vector.broadcast %716 : vector<1x384xf32> to vector<16x384xf32>
    %718 = arith.addf %714, %717 : vector<16x384xf32>
    %c0_394 = arith.constant 0 : index
    %c0_395 = arith.constant 0 : index
    %719 = vector.load %arg17[%c0_394, %c0_395] : memref<16x384xf32, #tpu.memory_space<vmem>>, vector<16x384xf32>
    tpu.vector_store %arg17[%c0_394, %c0_395], %718 {strides = array<i32>} : memref<16x384xf32, #tpu.memory_space<vmem>>, vector<16x384xf32>,
    %c0_396 = arith.constant 0 : index
    %c0_397 = arith.constant 0 : index
    %720 = vector.load %arg17[%c0_396, %c0_397] : memref<16x384xf32, #tpu.memory_space<vmem>>, vector<8x32xf32>
    %c8_398 = arith.constant 8 : index
    %c0_399 = arith.constant 0 : index
    %721 = vector.load %arg17[%c8_398, %c0_399] : memref<16x384xf32, #tpu.memory_space<vmem>>, vector<8x32xf32>
    %c0_400 = arith.constant 0 : index
    %c128_401 = arith.constant 128 : index
    %722 = vector.load %arg17[%c0_400, %c128_401] : memref<16x384xf32, #tpu.memory_space<vmem>>, vector<8x32xf32>
    %c8_402 = arith.constant 8 : index
    %c128_403 = arith.constant 128 : index
    %723 = vector.load %arg17[%c8_402, %c128_403] : memref<16x384xf32, #tpu.memory_space<vmem>>, vector<8x32xf32>
    %c0_404 = arith.constant 0 : index
    %c256_405 = arith.constant 256 : index
    %724 = vector.load %arg17[%c0_404, %c256_405] : memref<16x384xf32, #tpu.memory_space<vmem>>, vector<8x32xf32>
    %c8_406 = arith.constant 8 : index
    %c256_407 = arith.constant 256 : index
    %725 = vector.load %arg17[%c8_406, %c256_407] : memref<16x384xf32, #tpu.memory_space<vmem>>, vector<8x32xf32>
    %726 = arith.mulf %720, %722 : vector<8x32xf32>
    %cst_408 = arith.constant dense<0.000000e+00> : vector<8xf32>
    %727 = vector.multi_reduction <add>, %726, %cst_408 [1] : vector<8x32xf32> to vector<8xf32>
    %728 = vector.shape_cast %727 : vector<8xf32> to vector<8x1xf32>
    %cst_409 = arith.constant 0.176776692 : f32
    %729 = vector.broadcast %cst_409 : f32 to vector<8x1xf32>
    %730 = arith.mulf %728, %729 : vector<8x1xf32>
    %731 = arith.mulf %720, %723 : vector<8x32xf32>
    %cst_410 = arith.constant dense<0.000000e+00> : vector<8xf32>
    %732 = vector.multi_reduction <add>, %731, %cst_410 [1] : vector<8x32xf32> to vector<8xf32>
    %733 = vector.shape_cast %732 : vector<8xf32> to vector<8x1xf32>
    %cst_411 = arith.constant 0.176776692 : f32
    %734 = vector.broadcast %cst_411 : f32 to vector<8x1xf32>
    %735 = arith.mulf %733, %734 : vector<8x1xf32>
    %736 = arith.maximumf %730, %735 : vector<8x1xf32>
    %737 = arith.subf %730, %736 : vector<8x1xf32>
    %738 = math.exp %737 : vector<8x1xf32>
    %739 = arith.subf %735, %736 : vector<8x1xf32>
    %740 = math.exp %739 : vector<8x1xf32>
    %741 = arith.addf %738, %740 : vector<8x1xf32>
    %742 = tpu.reciprocal %741 {approx = true} : vector<8x1xf32> -> vector<8x1xf32>
    %743 = arith.mulf %738, %742 : vector<8x1xf32>
    %744 = vector.broadcast %743 : vector<8x1xf32> to vector<8x32xf32>
    %745 = arith.mulf %744, %724 : vector<8x32xf32>
    %746 = arith.mulf %740, %742 : vector<8x1xf32>
    %747 = vector.broadcast %746 : vector<8x1xf32> to vector<8x32xf32>
    %748 = arith.mulf %747, %725 : vector<8x32xf32>
    %749 = arith.addf %745, %748 : vector<8x32xf32>
    %c0_412 = arith.constant 0 : index
    %c0_413 = arith.constant 0 : index
    %750 = vector.load %arg16[%c0_412, %c0_413] : memref<16x32xf32, #tpu.memory_space<vmem>>, vector<8x32xf32>
    tpu.vector_store %arg16[%c0_412, %c0_413], %749 {strides = array<i32>} : memref<16x32xf32, #tpu.memory_space<vmem>>, vector<8x32xf32>,
    %751 = arith.mulf %721, %722 : vector<8x32xf32>
    %cst_414 = arith.constant dense<0.000000e+00> : vector<8xf32>
    %752 = vector.multi_reduction <add>, %751, %cst_414 [1] : vector<8x32xf32> to vector<8xf32>
    %753 = vector.shape_cast %752 : vector<8xf32> to vector<8x1xf32>
    %cst_415 = arith.constant 0.176776692 : f32
    %754 = vector.broadcast %cst_415 : f32 to vector<8x1xf32>
    %755 = arith.mulf %753, %754 : vector<8x1xf32>
    %756 = arith.mulf %721, %723 : vector<8x32xf32>
    %cst_416 = arith.constant dense<0.000000e+00> : vector<8xf32>
    %757 = vector.multi_reduction <add>, %756, %cst_416 [1] : vector<8x32xf32> to vector<8xf32>
    %758 = vector.shape_cast %757 : vector<8xf32> to vector<8x1xf32>
    %cst_417 = arith.constant 0.176776692 : f32
    %759 = vector.broadcast %cst_417 : f32 to vector<8x1xf32>
    %760 = arith.mulf %758, %759 : vector<8x1xf32>
    %761 = arith.maximumf %755, %760 : vector<8x1xf32>
    %762 = arith.subf %755, %761 : vector<8x1xf32>
    %763 = math.exp %762 : vector<8x1xf32>
    %764 = arith.subf %760, %761 : vector<8x1xf32>
    %765 = math.exp %764 : vector<8x1xf32>
    %766 = arith.addf %763, %765 : vector<8x1xf32>
    %767 = tpu.reciprocal %766 {approx = true} : vector<8x1xf32> -> vector<8x1xf32>
    %768 = arith.mulf %763, %767 : vector<8x1xf32>
    %769 = vector.broadcast %768 : vector<8x1xf32> to vector<8x32xf32>
    %770 = arith.mulf %769, %724 : vector<8x32xf32>
    %771 = arith.mulf %765, %767 : vector<8x1xf32>
    %772 = vector.broadcast %771 : vector<8x1xf32> to vector<8x32xf32>
    %773 = arith.mulf %772, %725 : vector<8x32xf32>
    %774 = arith.addf %770, %773 : vector<8x32xf32>
    %c8_418 = arith.constant 8 : index
    %c0_419 = arith.constant 0 : index
    %775 = vector.load %arg16[%c8_418, %c0_419] : memref<16x32xf32, #tpu.memory_space<vmem>>, vector<8x32xf32>
    tpu.vector_store %arg16[%c8_418, %c0_419], %774 {strides = array<i32>} : memref<16x32xf32, #tpu.memory_space<vmem>>, vector<8x32xf32>,
    %c0_420 = arith.constant 0 : index
    %c0_421 = arith.constant 0 : index
    %776 = vector.load %arg16[%c0_420, %c0_421] : memref<16x32xf32, #tpu.memory_space<vmem>>, vector<16x32xf32>
    %c5_422 = arith.constant 5 : index
    %c0_423 = arith.constant 0 : index
    %c0_424 = arith.constant 0 : index
    %777 = vector.load %arg3[%c5_422, %c0_423, %c0_424] : memref<6x32x32xbf16, #tpu.memory_space<vmem>>, vector<1x32x32xbf16>
    %778 = vector.shape_cast %777 : vector<1x32x32xbf16> to vector<32x32xbf16>
    %779 = arith.truncf %776 : vector<16x32xf32> to vector<16x32xbf16>
    %cst_425 = arith.constant dense<0.000000e+00> : vector<16x32xf32>
    %780 = tpu.matmul %779, %778, %cst_425 {dimension_numbers = #tpu.dot_dimension_numbers<[1], [0], [0], [1], [0, 0, 1, 1], [], []>} : vector<16x32xbf16>, vector<32x32xbf16>, vector<16x32xf32> -> vector<16x32xf32>
    %c5_426 = arith.constant 5 : index
    %c0_427 = arith.constant 0 : index
    %c0_428 = arith.constant 0 : index
    %781 = vector.load %arg4[%c5_426, %c0_427, %c0_428] : memref<6x1x32xf32, #tpu.memory_space<vmem>>, vector<1x1x32xf32>
    %782 = vector.shape_cast %781 : vector<1x1x32xf32> to vector<1x32xf32>
    %783 = vector.broadcast %782 : vector<1x32xf32> to vector<16x32xf32>
    %784 = arith.addf %780, %783 : vector<16x32xf32>
    %785 = arith.addf %710, %784 : vector<16x32xf32>
    %c5_429 = arith.constant 5 : index
    %c0_430 = arith.constant 0 : index
    %c0_431 = arith.constant 0 : index
    %786 = vector.load %arg5[%c5_429, %c0_430, %c0_431] : memref<6x1x32xf32, #tpu.memory_space<vmem>>, vector<1x1x32xf32>
    %787 = vector.shape_cast %786 : vector<1x1x32xf32> to vector<1x32xf32>
    %c5_432 = arith.constant 5 : index
    %c0_433 = arith.constant 0 : index
    %c0_434 = arith.constant 0 : index
    %788 = vector.load %arg6[%c5_432, %c0_433, %c0_434] : memref<6x1x32xf32, #tpu.memory_space<vmem>>, vector<1x1x32xf32>
    %789 = vector.shape_cast %788 : vector<1x1x32xf32> to vector<1x32xf32>
    %cst_435 = arith.constant dense<0.000000e+00> : vector<16xf32>
    %790 = vector.multi_reduction <add>, %785, %cst_435 [1] : vector<16x32xf32> to vector<16xf32>
    %791 = vector.shape_cast %790 : vector<16xf32> to vector<16x1xf32>
    %cst_436 = arith.constant 3.200000e+01 : f32
    %792 = vector.broadcast %cst_436 : f32 to vector<16x1xf32>
    %793 = arith.divf %791, %792 : vector<16x1xf32>
    %794 = vector.broadcast %793 : vector<16x1xf32> to vector<16x32xf32>
    %795 = arith.subf %785, %794 : vector<16x32xf32>
    %796 = arith.mulf %795, %795 : vector<16x32xf32>
    %cst_437 = arith.constant dense<0.000000e+00> : vector<16xf32>
    %797 = vector.multi_reduction <add>, %796, %cst_437 [1] : vector<16x32xf32> to vector<16xf32>
    %798 = vector.shape_cast %797 : vector<16xf32> to vector<16x1xf32>
    %cst_438 = arith.constant 3.200000e+01 : f32
    %799 = vector.broadcast %cst_438 : f32 to vector<16x1xf32>
    %800 = arith.divf %798, %799 : vector<16x1xf32>
    %cst_439 = arith.constant 9.99999974E-6 : f32
    %801 = vector.broadcast %cst_439 : f32 to vector<16x1xf32>
    %802 = arith.addf %800, %801 : vector<16x1xf32>
    %803 = math.rsqrt %802 : vector<16x1xf32>
    %804 = vector.broadcast %803 : vector<16x1xf32> to vector<16x32xf32>
    %805 = arith.mulf %795, %804 : vector<16x32xf32>
    %806 = vector.broadcast %787 : vector<1x32xf32> to vector<16x32xf32>
    %807 = arith.mulf %805, %806 : vector<16x32xf32>
    %808 = vector.broadcast %789 : vector<1x32xf32> to vector<16x32xf32>
    %809 = arith.addf %807, %808 : vector<16x32xf32>
    %c5_440 = arith.constant 5 : index
    %c0_441 = arith.constant 0 : index
    %c0_442 = arith.constant 0 : index
    %810 = vector.load %arg7[%c5_440, %c0_441, %c0_442] : memref<6x32x2048xbf16, #tpu.memory_space<vmem>>, vector<1x32x2048xbf16>
    %811 = vector.shape_cast %810 : vector<1x32x2048xbf16> to vector<32x2048xbf16>
    %812 = arith.truncf %809 : vector<16x32xf32> to vector<16x32xbf16>
    %cst_443 = arith.constant dense<0.000000e+00> : vector<16x2048xf32>
    %813 = tpu.matmul %812, %811, %cst_443 {dimension_numbers = #tpu.dot_dimension_numbers<[1], [0], [0], [1], [0, 0, 1, 1], [], []>} : vector<16x32xbf16>, vector<32x2048xbf16>, vector<16x2048xf32> -> vector<16x2048xf32>
    %c5_444 = arith.constant 5 : index
    %c0_445 = arith.constant 0 : index
    %c0_446 = arith.constant 0 : index
    %814 = vector.load %arg8[%c5_444, %c0_445, %c0_446] : memref<6x1x2048xf32, #tpu.memory_space<vmem>>, vector<1x1x2048xf32>
    %815 = vector.shape_cast %814 : vector<1x1x2048xf32> to vector<1x2048xf32>
    %816 = vector.broadcast %815 : vector<1x2048xf32> to vector<16x2048xf32>
    %817 = arith.addf %813, %816 : vector<16x2048xf32>
    %cst_447 = arith.constant 0.000000e+00 : f32
    %818 = vector.broadcast %cst_447 : f32 to vector<16x2048xf32>
    %819 = arith.maximumf %817, %818 : vector<16x2048xf32>
    %c5_448 = arith.constant 5 : index
    %c0_449 = arith.constant 0 : index
    %c0_450 = arith.constant 0 : index
    %820 = vector.load %arg9[%c5_448, %c0_449, %c0_450] : memref<6x2048x32xbf16, #tpu.memory_space<vmem>>, vector<1x2048x32xbf16>
    %821 = vector.shape_cast %820 : vector<1x2048x32xbf16> to vector<2048x32xbf16>
    %822 = arith.truncf %819 : vector<16x2048xf32> to vector<16x2048xbf16>
    %cst_451 = arith.constant dense<0.000000e+00> : vector<16x32xf32>
    %823 = tpu.matmul %822, %821, %cst_451 {dimension_numbers = #tpu.dot_dimension_numbers<[1], [0], [0], [1], [0, 0, 1, 1], [], []>} : vector<16x2048xbf16>, vector<2048x32xbf16>, vector<16x32xf32> -> vector<16x32xf32>
    %c5_452 = arith.constant 5 : index
    %c0_453 = arith.constant 0 : index
    %c0_454 = arith.constant 0 : index
    %824 = vector.load %arg10[%c5_452, %c0_453, %c0_454] : memref<6x1x32xf32, #tpu.memory_space<vmem>>, vector<1x1x32xf32>
    %825 = vector.shape_cast %824 : vector<1x1x32xf32> to vector<1x32xf32>
    %826 = vector.broadcast %825 : vector<1x32xf32> to vector<16x32xf32>
    %827 = arith.addf %823, %826 : vector<16x32xf32>
    %828 = arith.addf %809, %827 : vector<16x32xf32>
    %c5_455 = arith.constant 5 : index
    %c0_456 = arith.constant 0 : index
    %c0_457 = arith.constant 0 : index
    %829 = vector.load %arg11[%c5_455, %c0_456, %c0_457] : memref<6x1x32xf32, #tpu.memory_space<vmem>>, vector<1x1x32xf32>
    %830 = vector.shape_cast %829 : vector<1x1x32xf32> to vector<1x32xf32>
    %c5_458 = arith.constant 5 : index
    %c0_459 = arith.constant 0 : index
    %c0_460 = arith.constant 0 : index
    %831 = vector.load %arg12[%c5_458, %c0_459, %c0_460] : memref<6x1x32xf32, #tpu.memory_space<vmem>>, vector<1x1x32xf32>
    %832 = vector.shape_cast %831 : vector<1x1x32xf32> to vector<1x32xf32>
    %cst_461 = arith.constant dense<0.000000e+00> : vector<16xf32>
    %833 = vector.multi_reduction <add>, %828, %cst_461 [1] : vector<16x32xf32> to vector<16xf32>
    %834 = vector.shape_cast %833 : vector<16xf32> to vector<16x1xf32>
    %cst_462 = arith.constant 3.200000e+01 : f32
    %835 = vector.broadcast %cst_462 : f32 to vector<16x1xf32>
    %836 = arith.divf %834, %835 : vector<16x1xf32>
    %837 = vector.broadcast %836 : vector<16x1xf32> to vector<16x32xf32>
    %838 = arith.subf %828, %837 : vector<16x32xf32>
    %839 = arith.mulf %838, %838 : vector<16x32xf32>
    %cst_463 = arith.constant dense<0.000000e+00> : vector<16xf32>
    %840 = vector.multi_reduction <add>, %839, %cst_463 [1] : vector<16x32xf32> to vector<16xf32>
    %841 = vector.shape_cast %840 : vector<16xf32> to vector<16x1xf32>
    %cst_464 = arith.constant 3.200000e+01 : f32
    %842 = vector.broadcast %cst_464 : f32 to vector<16x1xf32>
    %843 = arith.divf %841, %842 : vector<16x1xf32>
    %cst_465 = arith.constant 9.99999974E-6 : f32
    %844 = vector.broadcast %cst_465 : f32 to vector<16x1xf32>
    %845 = arith.addf %843, %844 : vector<16x1xf32>
    %846 = math.rsqrt %845 : vector<16x1xf32>
    %847 = vector.broadcast %846 : vector<16x1xf32> to vector<16x32xf32>
    %848 = arith.mulf %838, %847 : vector<16x32xf32>
    %849 = vector.broadcast %830 : vector<1x32xf32> to vector<16x32xf32>
    %850 = arith.mulf %848, %849 : vector<16x32xf32>
    %851 = vector.broadcast %832 : vector<1x32xf32> to vector<16x32xf32>
    %852 = arith.addf %850, %851 : vector<16x32xf32>
    %c0_466 = arith.constant 0 : index
    %c0_467 = arith.constant 0 : index
    %853 = vector.load %arg16[%c0_466, %c0_467] : memref<16x32xf32, #tpu.memory_space<vmem>>, vector<16x32xf32>
    tpu.vector_store %arg16[%c0_466, %c0_467], %852 {strides = array<i32>} : memref<16x32xf32, #tpu.memory_space<vmem>>, vector<16x32xf32>,
    %c0_468 = arith.constant 0 : index
    %c0_469 = arith.constant 0 : index
    %854 = vector.load %arg14[%c0_468, %c0_469] : memref<1x12xf32, #tpu.memory_space<vmem>>, vector<1x12xf32>
    %c0_470 = arith.constant 0 : index
    %c0_471 = arith.constant 0 : index
    %855 = vector.load %arg16[%c0_470, %c0_471] : memref<16x32xf32, #tpu.memory_space<vmem>>, vector<1x32xf32>
    %c0_472 = arith.constant 0 : index
    %c0_473 = arith.constant 0 : index
    %c0_474 = arith.constant 0 : index
    %856 = vector.load %arg13[%c0_472, %c0_473, %c0_474] : memref<16x32x12xbf16, #tpu.memory_space<vmem>>, vector<1x32x12xbf16>
    %857 = vector.shape_cast %856 : vector<1x32x12xbf16> to vector<32x12xbf16>
    %858 = arith.truncf %855 : vector<1x32xf32> to vector<1x32xbf16>
    %cst_475 = arith.constant dense<0.000000e+00> : vector<1x12xf32>
    %859 = tpu.matmul %858, %857, %cst_475 {dimension_numbers = #tpu.dot_dimension_numbers<[1], [0], [0], [1], [0, 0, 1, 1], [], []>} : vector<1x32xbf16>, vector<32x12xbf16>, vector<1x12xf32> -> vector<1x12xf32>
    %860 = arith.addf %854, %859 : vector<1x12xf32>
    %c1_476 = arith.constant 1 : index
    %c0_477 = arith.constant 0 : index
    %861 = vector.load %arg16[%c1_476, %c0_477] : memref<16x32xf32, #tpu.memory_space<vmem>>, vector<1x32xf32>
    %c1_478 = arith.constant 1 : index
    %c0_479 = arith.constant 0 : index
    %c0_480 = arith.constant 0 : index
    %862 = vector.load %arg13[%c1_478, %c0_479, %c0_480] : memref<16x32x12xbf16, #tpu.memory_space<vmem>>, vector<1x32x12xbf16>
    %863 = vector.shape_cast %862 : vector<1x32x12xbf16> to vector<32x12xbf16>
    %864 = arith.truncf %861 : vector<1x32xf32> to vector<1x32xbf16>
    %cst_481 = arith.constant dense<0.000000e+00> : vector<1x12xf32>
    %865 = tpu.matmul %864, %863, %cst_481 {dimension_numbers = #tpu.dot_dimension_numbers<[1], [0], [0], [1], [0, 0, 1, 1], [], []>} : vector<1x32xbf16>, vector<32x12xbf16>, vector<1x12xf32> -> vector<1x12xf32>
    %866 = arith.addf %860, %865 : vector<1x12xf32>
    %c2_482 = arith.constant 2 : index
    %c0_483 = arith.constant 0 : index
    %867 = vector.load %arg16[%c2_482, %c0_483] : memref<16x32xf32, #tpu.memory_space<vmem>>, vector<1x32xf32>
    %c2_484 = arith.constant 2 : index
    %c0_485 = arith.constant 0 : index
    %c0_486 = arith.constant 0 : index
    %868 = vector.load %arg13[%c2_484, %c0_485, %c0_486] : memref<16x32x12xbf16, #tpu.memory_space<vmem>>, vector<1x32x12xbf16>
    %869 = vector.shape_cast %868 : vector<1x32x12xbf16> to vector<32x12xbf16>
    %870 = arith.truncf %867 : vector<1x32xf32> to vector<1x32xbf16>
    %cst_487 = arith.constant dense<0.000000e+00> : vector<1x12xf32>
    %871 = tpu.matmul %870, %869, %cst_487 {dimension_numbers = #tpu.dot_dimension_numbers<[1], [0], [0], [1], [0, 0, 1, 1], [], []>} : vector<1x32xbf16>, vector<32x12xbf16>, vector<1x12xf32> -> vector<1x12xf32>
    %872 = arith.addf %866, %871 : vector<1x12xf32>
    %c3_488 = arith.constant 3 : index
    %c0_489 = arith.constant 0 : index
    %873 = vector.load %arg16[%c3_488, %c0_489] : memref<16x32xf32, #tpu.memory_space<vmem>>, vector<1x32xf32>
    %c3_490 = arith.constant 3 : index
    %c0_491 = arith.constant 0 : index
    %c0_492 = arith.constant 0 : index
    %874 = vector.load %arg13[%c3_490, %c0_491, %c0_492] : memref<16x32x12xbf16, #tpu.memory_space<vmem>>, vector<1x32x12xbf16>
    %875 = vector.shape_cast %874 : vector<1x32x12xbf16> to vector<32x12xbf16>
    %876 = arith.truncf %873 : vector<1x32xf32> to vector<1x32xbf16>
    %cst_493 = arith.constant dense<0.000000e+00> : vector<1x12xf32>
    %877 = tpu.matmul %876, %875, %cst_493 {dimension_numbers = #tpu.dot_dimension_numbers<[1], [0], [0], [1], [0, 0, 1, 1], [], []>} : vector<1x32xbf16>, vector<32x12xbf16>, vector<1x12xf32> -> vector<1x12xf32>
    %878 = arith.addf %872, %877 : vector<1x12xf32>
    %c4_494 = arith.constant 4 : index
    %c0_495 = arith.constant 0 : index
    %879 = vector.load %arg16[%c4_494, %c0_495] : memref<16x32xf32, #tpu.memory_space<vmem>>, vector<1x32xf32>
    %c4_496 = arith.constant 4 : index
    %c0_497 = arith.constant 0 : index
    %c0_498 = arith.constant 0 : index
    %880 = vector.load %arg13[%c4_496, %c0_497, %c0_498] : memref<16x32x12xbf16, #tpu.memory_space<vmem>>, vector<1x32x12xbf16>
    %881 = vector.shape_cast %880 : vector<1x32x12xbf16> to vector<32x12xbf16>
    %882 = arith.truncf %879 : vector<1x32xf32> to vector<1x32xbf16>
    %cst_499 = arith.constant dense<0.000000e+00> : vector<1x12xf32>
    %883 = tpu.matmul %882, %881, %cst_499 {dimension_numbers = #tpu.dot_dimension_numbers<[1], [0], [0], [1], [0, 0, 1, 1], [], []>} : vector<1x32xbf16>, vector<32x12xbf16>, vector<1x12xf32> -> vector<1x12xf32>
    %884 = arith.addf %878, %883 : vector<1x12xf32>
    %c5_500 = arith.constant 5 : index
    %c0_501 = arith.constant 0 : index
    %885 = vector.load %arg16[%c5_500, %c0_501] : memref<16x32xf32, #tpu.memory_space<vmem>>, vector<1x32xf32>
    %c5_502 = arith.constant 5 : index
    %c0_503 = arith.constant 0 : index
    %c0_504 = arith.constant 0 : index
    %886 = vector.load %arg13[%c5_502, %c0_503, %c0_504] : memref<16x32x12xbf16, #tpu.memory_space<vmem>>, vector<1x32x12xbf16>
    %887 = vector.shape_cast %886 : vector<1x32x12xbf16> to vector<32x12xbf16>
    %888 = arith.truncf %885 : vector<1x32xf32> to vector<1x32xbf16>
    %cst_505 = arith.constant dense<0.000000e+00> : vector<1x12xf32>
    %889 = tpu.matmul %888, %887, %cst_505 {dimension_numbers = #tpu.dot_dimension_numbers<[1], [0], [0], [1], [0, 0, 1, 1], [], []>} : vector<1x32xbf16>, vector<32x12xbf16>, vector<1x12xf32> -> vector<1x12xf32>
    %890 = arith.addf %884, %889 : vector<1x12xf32>
    %c6 = arith.constant 6 : index
    %c0_506 = arith.constant 0 : index
    %891 = vector.load %arg16[%c6, %c0_506] : memref<16x32xf32, #tpu.memory_space<vmem>>, vector<1x32xf32>
    %c6_507 = arith.constant 6 : index
    %c0_508 = arith.constant 0 : index
    %c0_509 = arith.constant 0 : index
    %892 = vector.load %arg13[%c6_507, %c0_508, %c0_509] : memref<16x32x12xbf16, #tpu.memory_space<vmem>>, vector<1x32x12xbf16>
    %893 = vector.shape_cast %892 : vector<1x32x12xbf16> to vector<32x12xbf16>
    %894 = arith.truncf %891 : vector<1x32xf32> to vector<1x32xbf16>
    %cst_510 = arith.constant dense<0.000000e+00> : vector<1x12xf32>
    %895 = tpu.matmul %894, %893, %cst_510 {dimension_numbers = #tpu.dot_dimension_numbers<[1], [0], [0], [1], [0, 0, 1, 1], [], []>} : vector<1x32xbf16>, vector<32x12xbf16>, vector<1x12xf32> -> vector<1x12xf32>
    %896 = arith.addf %890, %895 : vector<1x12xf32>
    %c7 = arith.constant 7 : index
    %c0_511 = arith.constant 0 : index
    %897 = vector.load %arg16[%c7, %c0_511] : memref<16x32xf32, #tpu.memory_space<vmem>>, vector<1x32xf32>
    %c7_512 = arith.constant 7 : index
    %c0_513 = arith.constant 0 : index
    %c0_514 = arith.constant 0 : index
    %898 = vector.load %arg13[%c7_512, %c0_513, %c0_514] : memref<16x32x12xbf16, #tpu.memory_space<vmem>>, vector<1x32x12xbf16>
    %899 = vector.shape_cast %898 : vector<1x32x12xbf16> to vector<32x12xbf16>
    %900 = arith.truncf %897 : vector<1x32xf32> to vector<1x32xbf16>
    %cst_515 = arith.constant dense<0.000000e+00> : vector<1x12xf32>
    %901 = tpu.matmul %900, %899, %cst_515 {dimension_numbers = #tpu.dot_dimension_numbers<[1], [0], [0], [1], [0, 0, 1, 1], [], []>} : vector<1x32xbf16>, vector<32x12xbf16>, vector<1x12xf32> -> vector<1x12xf32>
    %902 = arith.addf %896, %901 : vector<1x12xf32>
    %c8_516 = arith.constant 8 : index
    %c0_517 = arith.constant 0 : index
    %903 = vector.load %arg16[%c8_516, %c0_517] : memref<16x32xf32, #tpu.memory_space<vmem>>, vector<1x32xf32>
    %c8_518 = arith.constant 8 : index
    %c0_519 = arith.constant 0 : index
    %c0_520 = arith.constant 0 : index
    %904 = vector.load %arg13[%c8_518, %c0_519, %c0_520] : memref<16x32x12xbf16, #tpu.memory_space<vmem>>, vector<1x32x12xbf16>
    %905 = vector.shape_cast %904 : vector<1x32x12xbf16> to vector<32x12xbf16>
    %906 = arith.truncf %903 : vector<1x32xf32> to vector<1x32xbf16>
    %cst_521 = arith.constant dense<0.000000e+00> : vector<1x12xf32>
    %907 = tpu.matmul %906, %905, %cst_521 {dimension_numbers = #tpu.dot_dimension_numbers<[1], [0], [0], [1], [0, 0, 1, 1], [], []>} : vector<1x32xbf16>, vector<32x12xbf16>, vector<1x12xf32> -> vector<1x12xf32>
    %908 = arith.addf %902, %907 : vector<1x12xf32>
    %c9 = arith.constant 9 : index
    %c0_522 = arith.constant 0 : index
    %909 = vector.load %arg16[%c9, %c0_522] : memref<16x32xf32, #tpu.memory_space<vmem>>, vector<1x32xf32>
    %c9_523 = arith.constant 9 : index
    %c0_524 = arith.constant 0 : index
    %c0_525 = arith.constant 0 : index
    %910 = vector.load %arg13[%c9_523, %c0_524, %c0_525] : memref<16x32x12xbf16, #tpu.memory_space<vmem>>, vector<1x32x12xbf16>
    %911 = vector.shape_cast %910 : vector<1x32x12xbf16> to vector<32x12xbf16>
    %912 = arith.truncf %909 : vector<1x32xf32> to vector<1x32xbf16>
    %cst_526 = arith.constant dense<0.000000e+00> : vector<1x12xf32>
    %913 = tpu.matmul %912, %911, %cst_526 {dimension_numbers = #tpu.dot_dimension_numbers<[1], [0], [0], [1], [0, 0, 1, 1], [], []>} : vector<1x32xbf16>, vector<32x12xbf16>, vector<1x12xf32> -> vector<1x12xf32>
    %914 = arith.addf %908, %913 : vector<1x12xf32>
    %c10 = arith.constant 10 : index
    %c0_527 = arith.constant 0 : index
    %915 = vector.load %arg16[%c10, %c0_527] : memref<16x32xf32, #tpu.memory_space<vmem>>, vector<1x32xf32>
    %c10_528 = arith.constant 10 : index
    %c0_529 = arith.constant 0 : index
    %c0_530 = arith.constant 0 : index
    %916 = vector.load %arg13[%c10_528, %c0_529, %c0_530] : memref<16x32x12xbf16, #tpu.memory_space<vmem>>, vector<1x32x12xbf16>
    %917 = vector.shape_cast %916 : vector<1x32x12xbf16> to vector<32x12xbf16>
    %918 = arith.truncf %915 : vector<1x32xf32> to vector<1x32xbf16>
    %cst_531 = arith.constant dense<0.000000e+00> : vector<1x12xf32>
    %919 = tpu.matmul %918, %917, %cst_531 {dimension_numbers = #tpu.dot_dimension_numbers<[1], [0], [0], [1], [0, 0, 1, 1], [], []>} : vector<1x32xbf16>, vector<32x12xbf16>, vector<1x12xf32> -> vector<1x12xf32>
    %920 = arith.addf %914, %919 : vector<1x12xf32>
    %c11 = arith.constant 11 : index
    %c0_532 = arith.constant 0 : index
    %921 = vector.load %arg16[%c11, %c0_532] : memref<16x32xf32, #tpu.memory_space<vmem>>, vector<1x32xf32>
    %c11_533 = arith.constant 11 : index
    %c0_534 = arith.constant 0 : index
    %c0_535 = arith.constant 0 : index
    %922 = vector.load %arg13[%c11_533, %c0_534, %c0_535] : memref<16x32x12xbf16, #tpu.memory_space<vmem>>, vector<1x32x12xbf16>
    %923 = vector.shape_cast %922 : vector<1x32x12xbf16> to vector<32x12xbf16>
    %924 = arith.truncf %921 : vector<1x32xf32> to vector<1x32xbf16>
    %cst_536 = arith.constant dense<0.000000e+00> : vector<1x12xf32>
    %925 = tpu.matmul %924, %923, %cst_536 {dimension_numbers = #tpu.dot_dimension_numbers<[1], [0], [0], [1], [0, 0, 1, 1], [], []>} : vector<1x32xbf16>, vector<32x12xbf16>, vector<1x12xf32> -> vector<1x12xf32>
    %926 = arith.addf %920, %925 : vector<1x12xf32>
    %c12 = arith.constant 12 : index
    %c0_537 = arith.constant 0 : index
    %927 = vector.load %arg16[%c12, %c0_537] : memref<16x32xf32, #tpu.memory_space<vmem>>, vector<1x32xf32>
    %c12_538 = arith.constant 12 : index
    %c0_539 = arith.constant 0 : index
    %c0_540 = arith.constant 0 : index
    %928 = vector.load %arg13[%c12_538, %c0_539, %c0_540] : memref<16x32x12xbf16, #tpu.memory_space<vmem>>, vector<1x32x12xbf16>
    %929 = vector.shape_cast %928 : vector<1x32x12xbf16> to vector<32x12xbf16>
    %930 = arith.truncf %927 : vector<1x32xf32> to vector<1x32xbf16>
    %cst_541 = arith.constant dense<0.000000e+00> : vector<1x12xf32>
    %931 = tpu.matmul %930, %929, %cst_541 {dimension_numbers = #tpu.dot_dimension_numbers<[1], [0], [0], [1], [0, 0, 1, 1], [], []>} : vector<1x32xbf16>, vector<32x12xbf16>, vector<1x12xf32> -> vector<1x12xf32>
    %932 = arith.addf %926, %931 : vector<1x12xf32>
    %c13 = arith.constant 13 : index
    %c0_542 = arith.constant 0 : index
    %933 = vector.load %arg16[%c13, %c0_542] : memref<16x32xf32, #tpu.memory_space<vmem>>, vector<1x32xf32>
    %c13_543 = arith.constant 13 : index
    %c0_544 = arith.constant 0 : index
    %c0_545 = arith.constant 0 : index
    %934 = vector.load %arg13[%c13_543, %c0_544, %c0_545] : memref<16x32x12xbf16, #tpu.memory_space<vmem>>, vector<1x32x12xbf16>
    %935 = vector.shape_cast %934 : vector<1x32x12xbf16> to vector<32x12xbf16>
    %936 = arith.truncf %933 : vector<1x32xf32> to vector<1x32xbf16>
    %cst_546 = arith.constant dense<0.000000e+00> : vector<1x12xf32>
    %937 = tpu.matmul %936, %935, %cst_546 {dimension_numbers = #tpu.dot_dimension_numbers<[1], [0], [0], [1], [0, 0, 1, 1], [], []>} : vector<1x32xbf16>, vector<32x12xbf16>, vector<1x12xf32> -> vector<1x12xf32>
    %938 = arith.addf %932, %937 : vector<1x12xf32>
    %c14 = arith.constant 14 : index
    %c0_547 = arith.constant 0 : index
    %939 = vector.load %arg16[%c14, %c0_547] : memref<16x32xf32, #tpu.memory_space<vmem>>, vector<1x32xf32>
    %c14_548 = arith.constant 14 : index
    %c0_549 = arith.constant 0 : index
    %c0_550 = arith.constant 0 : index
    %940 = vector.load %arg13[%c14_548, %c0_549, %c0_550] : memref<16x32x12xbf16, #tpu.memory_space<vmem>>, vector<1x32x12xbf16>
    %941 = vector.shape_cast %940 : vector<1x32x12xbf16> to vector<32x12xbf16>
    %942 = arith.truncf %939 : vector<1x32xf32> to vector<1x32xbf16>
    %cst_551 = arith.constant dense<0.000000e+00> : vector<1x12xf32>
    %943 = tpu.matmul %942, %941, %cst_551 {dimension_numbers = #tpu.dot_dimension_numbers<[1], [0], [0], [1], [0, 0, 1, 1], [], []>} : vector<1x32xbf16>, vector<32x12xbf16>, vector<1x12xf32> -> vector<1x12xf32>
    %944 = arith.addf %938, %943 : vector<1x12xf32>
    %c15 = arith.constant 15 : index
    %c0_552 = arith.constant 0 : index
    %945 = vector.load %arg16[%c15, %c0_552] : memref<16x32xf32, #tpu.memory_space<vmem>>, vector<1x32xf32>
    %c15_553 = arith.constant 15 : index
    %c0_554 = arith.constant 0 : index
    %c0_555 = arith.constant 0 : index
    %946 = vector.load %arg13[%c15_553, %c0_554, %c0_555] : memref<16x32x12xbf16, #tpu.memory_space<vmem>>, vector<1x32x12xbf16>
    %947 = vector.shape_cast %946 : vector<1x32x12xbf16> to vector<32x12xbf16>
    %948 = arith.truncf %945 : vector<1x32xf32> to vector<1x32xbf16>
    %cst_556 = arith.constant dense<0.000000e+00> : vector<1x12xf32>
    %949 = tpu.matmul %948, %947, %cst_556 {dimension_numbers = #tpu.dot_dimension_numbers<[1], [0], [0], [1], [0, 0, 1, 1], [], []>} : vector<1x32xbf16>, vector<32x12xbf16>, vector<1x12xf32> -> vector<1x12xf32>
    %950 = arith.addf %944, %949 : vector<1x12xf32>
    %c0_557 = arith.constant 0 : index
    %c0_558 = arith.constant 0 : index
    %951 = vector.load %arg15[%c0_557, %c0_558] : memref<1x12xf32, #tpu.memory_space<vmem>>, vector<1x12xf32>
    tpu.vector_store %arg15[%c0_557, %c0_558], %950 {strides = array<i32>} : memref<1x12xf32, #tpu.memory_space<vmem>>, vector<1x12xf32>,
    return
  }
}

</mosaic_0001>

<bundles_post_ra>
// kernel: dialect_nn_forward.1
= control target key start
LH: loop header
LB: loop body
LE: loop exit
PB: predicated region body
PF: predicated region fallthrough
CT: control target
= control target key end

     0   :  { %v20678_v2 = vmov 0   ;;  %v20679_v6 = vmov 0.0   ;;  %vm20680_vm0 = vmmov 0   ;;  %vm112_vm1 = vcmask 261120   ;;  %s25023_s0 = inlined_call_operand.vmem [shape: f32[16,32], index: 0, kind: input, shape index: {}]   ;;  %s25024_s1 = inlined_call_operand.vmem [shape: bf16[6,32,384], index: 1, kind: input, shape index: {}]   ;;  %s25025_s2 = inlined_call_operand.vmem [shape: f32[6,1,384], index: 2, kind: input, shape index: {}]   ;;  %s25026_s3 = inlined_call_operand.vmem [shape: bf16[6,32,32], index: 3, kind: input, shape index: {}]   ;;  %s25027_s4 = inlined_call_operand.vmem [shape: f32[6,1,32], index: 4, kind: input, shape index: {}]   ;;  %s25028_s5 = inlined_call_operand.vmem [shape: f32[6,1,32], index: 5, kind: input, shape index: {}]   ;;  %s25029_s6 = inlined_call_operand.vmem [shape: f32[6,1,32], index: 6, kind: input, shape index: {}]   ;;  %s25030_s7 = inlined_call_operand.vmem [shape: bf16[6,32,2048], index: 7, kind: input, shape index: {}]   ;;  %s25031_s8 = inlined_call_operand.vmem [shape: f32[6,1,2048], index: 8, kind: input, shape index: {}]   ;;  %s25032_s9 = inlined_call_operand.vmem [shape: bf16[6,2048,32], index: 9, kind: input, shape index: {}]   ;;  %s25033_s10 = inlined_call_operand.vmem [shape: f32[6,1,32], index: 10, kind: input, shape index: {}]   ;;  %s25034_s11 = inlined_call_operand.vmem [shape: f32[6,1,32], index: 11, kind: input, shape index: {}]   ;;  %s25035_s12 = inlined_call_operand.vmem [shape: f32[6,1,32], index: 12, kind: input, shape index: {}]   ;;  %s25036_s13 = inlined_call_operand.vmem [shape: bf16[16,32,12], index: 13, kind: input, shape index: {}]   ;;  %s25037_s14 = inlined_call_operand.vmem [shape: f32[1,12], index: 14, kind: input, shape index: {}]   ;;  %s25038_s15 = inlined_call_operand.hbm [shape: f32[1,12], index: 15, kind: output, shape index: {}]  }
   0x1   :  { %v19673_v0 = vld [vmem:[%s25024_s1 + $0x1c] ss:$12 sps:$4 sm:$0xff]   ;;  %v19675_v1 = vld [vmem:[%s25024_s1 + $0x18] ss:$12 sps:$4 sm:$0xff]   ;;  %148 = vmatprep.mubr.bf16.mxu0 %v20678_v2  ;;  %v19678_v4 = vld [vmem:[%s25024_s1] ss:$12 sps:$4 sm:$0xff]   ;;  %19445 = vmatprep.subr.bf16.mxu1 %v20679_v6  ;;  %v65_v11 = vlaneseq }
   0x2   :  { %128 = vmatprep.subr.bf16.mxu0 %v19673_v0  ;;  %v19676_v3 = vld [vmem:[%s25024_s1 + $0x4] ss:$12 sps:$4 sm:$0xff]   ;;  %v53_v7 = vld [vmem:[%s25023_s0 + $0x8] sm:$0xff]  ;;  %19449 = vmatprep.mubr.msk.bf16.mxu1 %vm20680_vm0, %v20679_v6  ;;  %v63_v15 = vld [vmem:[%s25025_s2] sm:$0x7] }
   0x3   :  { %v52_v5 = vld [vmem:[%s25023_s0] sm:$0xff]  ;;  %129 = vmatpush1.bf16.msra.mxu0 %v19675_v1  ;;  %v19680_v9 = vld [vmem:[%s25024_s1 + $0x8] ss:$12 sps:$4 sm:$0xff]   ;;  %v20797_v12 = vshrl.u32 %v65_v11, 7 }
   0x4   :  { %130 = vmatprep.subr.bf16.mxu0 %v19676_v3  ;;  %v19679_v8 = vld [vmem:[%s25024_s1 + $0x20] ss:$12 sps:$4 sm:$0xff]   ;;  %v62_v10 = vpack.c.bf16 %v53_v7, %v52_v5 }
   0x5   :  { %19446 = vmatpush3.bf16.msra.mxu1 %v19679_v8  ;;  %v20800_v13 = vsub.s32 0, %v20797_v12  ;;  %v20803_v14 = vsub.s32 1, %v20797_v12  ;;  %v19681_v38 = vld [vmem:[%s25026_s3 + $0x8] sm:$0xff]   ;;  %v19682_v39 = vld [vmem:[%s25026_s3] sm:$0xff]   ;;  %v20822_v58 = vsub.s32 2, %v20797_v12 }
   0x6   :  { %19447 = vmatprep.subr.bf16.mxu1 %v20679_v6  ;;  %v20653_v1 = vld [vmem:[%s25025_s2] sm:$0x7] }
   0x7   :  { %131 = vmatpush1.bf16.msra.mxu0 %v19678_v4  ;;  %v68_v16 = vrot.slane %v63_v15, %v20800_v13  ;;  %v72_v17 = vrot.slane %v63_v15, %v20803_v14  ;;  %v76_v3 = vrot.slane %v20653_v1, %v20822_v58 }
   0x8   :  { %19453 = vmatprep.subr.bf16.mxu0 %v20679_v6 }
   0x9   :  { %19448 = vmatpush3.bf16.msra.mxu1 %v19680_v9 }
   0xa   :  { %15548 = vmatmul.mubr.msk.bf16.vlgmr.msra.gmra.mxu0 %vm112_vm1, %v62_v10 }
   0xb   :  { %19457 = vmatprep.mubr.msk.bf16.mxu0 %vm20680_vm0, %v20679_v6  ;;  %19454 = vmatpush3.bf16.msra.mxu0 %v19681_v38 }
   0xc   :  { %19450 = vmatmul.mubr.msk.bf16.vlgmr.msra.gmra.mxu1 %vm112_vm1, %v62_v10  ;;  %19455 = vmatprep.subr.bf16.mxu0 %v20679_v6 }
   0xd   :  { %691 = vmatprep.mubr.bf16.mxu1 %v20678_v2 }
   0xf   :  { %19456 = vmatpush3.bf16.msra.mxu0 %v19682_v39 }
  0xca   :  { %v150_v18 = vpop.f32.mrf.mxu0 }
  0xcb   :  { %v151_v20 = vadd.f32 %v150_v18, %v68_v16 }
  0xcc   :  { %v152_v19 = vpop.f32.mrf.mxu0  ;;  %v193_v34 = vpop.f32.mrf.mxu1 }
  0xcd   :  { %v153_v21 = vadd.f32 %v152_v19, %v72_v17  ;;  %v194_v5 = vadd.f32 %v193_v34, %v76_v3 }
  0xce   :  { %v154_v22 = vpop.f32.mrf.mxu0  ;;  %v19451_v35 = vpop.f32.mrf.mxu1 }
  0xcf   :  { %v155_v23 = vadd.f32 %v154_v22, %v68_v16  ;;  %v212_v24 = vmul.f32 %v153_v21, %v151_v20 }
  0xd0   :  { %v156_v25 = vpop.f32.mrf.mxu0  ;;  %v196_v36 = vpop.f32.mrf.mxu1 }
  0xd1   :  { %v157_v26 = vadd.f32 %v156_v25, %v72_v17  ;;  %v213_v27 = vsel %vm112_vm1, %v212_v24, 0.0  ;;  %v237_v28 = vmul.f32 %v155_v23, %v153_v21  ;;  %v197_v8 = vadd.f32 %v196_v36, %v76_v3 }
  0xd2   :  { %214 = vadd.xlane.f32.xlu0 %v213_v27  ;;  %v19452_v37 = vpop.f32.mrf.mxu1 }
  0xd3   :  { %v238_v29 = vsel %vm112_vm1, %v237_v28, 0.0  ;;  %v217_v30 = vmul.f32 %v157_v26, %v151_v20  ;;  %v242_v31 = vmul.f32 %v157_v26, %v155_v23 }
  0xd4   :  { %239 = vadd.xlane.f32.xlu1 %v238_v29 }
  0xd5   :  { %v218_v32 = vsel %vm112_vm1, %v217_v30, 0.0  ;;  %v243_v33 = vsel %vm112_vm1, %v242_v31, 0.0 }
  0xd6   :  { %219 = vadd.xlane.f32.xlu0 %v218_v32 }
  0xd8   :  { %244 = vadd.xlane.f32.xlu1 %v243_v33 }
 0x15b   :  { %v215_v40 = vpop.xlane.xlu0 %214 }
 0x15c   :  { %v216_v41 = vmul.f32 0.17677669, %v215_v40 }
 0x15d   :  { %v240_v42 = vpop.xlane.xlu1 %239 }
 0x15e   :  { %v241_v43 = vmul.f32 0.17677669, %v240_v42 }
 0x15f   :  { %v220_v44 = vpop.xlane.xlu0 %219 }
 0x160   :  { %v221_v45 = vmul.f32 0.17677669, %v220_v44 }
 0x161   :  { %v245_v46 = vpop.xlane.xlu1 %244 }
 0x162   :  { %v222_v47 = vmax.f32 %v216_v41, %v221_v45  ;;  %v246_v48 = vmul.f32 0.17677669, %v245_v46 }
 0x164   :  { %v223_v49 = vsub.f32 %v216_v41, %v222_v47  ;;  %v226_v50 = vsub.f32 %v221_v45, %v222_v47  ;;  %v247_v51 = vmax.f32 %v241_v43, %v246_v48 }
 0x166   :  { %v224_v52 = vmul.f32 1.442695, %v223_v49  ;;  %v227_v53 = vmul.f32 1.442695, %v226_v50  ;;  %v248_v54 = vsub.f32 %v241_v43, %v247_v51  ;;  %v251_v55 = vsub.f32 %v246_v48, %v247_v51 }
 0x168   :  { %20533 = vpow2.f32 %v224_v52  ;;  %v249_v56 = vmul.f32 1.442695, %v248_v54  ;;  %v252_v57 = vmul.f32 1.442695, %v251_v55 }
 0x169   :  { %20535 = vpow2.f32 %v227_v53 }
 0x16a   :  { %20537 = vpow2.f32 %v249_v56 }
 0x16b   :  { %20539 = vpow2.f32 %v252_v57 }
 0x175   :  { %v20534_v59 = vpop.eup %20533 }
 0x176   :  { %v20536_v60 = vpop.eup %20535 }
 0x177   :  { %v20538_v61 = vpop.eup %20537  ;;  %v229_v62 = vadd.f32 %v20536_v60, %v20534_v59 }
 0x178   :  { %v20540_v63 = vpop.eup %20539 }
 0x179   :  { %20541 = vrcp.f32 %v229_v62  ;;  %v254_v0 = vadd.f32 %v20540_v63, %v20538_v61 }
 0x17b   :  { %20543 = vrcp.f32 %v254_v0 }
 0x186   :  { %v20542_v4 = vpop.eup %20541 }
 0x187   :  { %v231_v7 = vmul.f32 %v20542_v4, %v20534_v59  ;;  %v233_v9 = vmul.f32 %v20542_v4, %v20536_v60 }
 0x188   :  { %v20544_v10 = vpop.eup %20543 }
 0x189   :  { %v232_v11 = vmul.f32 %v231_v7, %v194_v5  ;;  %v256_v15 = vmul.f32 %v20544_v10, %v20538_v61  ;;  %v234_v16 = vmul.f32 %v233_v9, %v197_v8  ;;  %v258_v17 = vmul.f32 %v20544_v10, %v20540_v63 }
 0x18b   :  { %v257_v18 = vmul.f32 %v256_v15, %v194_v5  ;;  %v235_v19 = vadd.f32 %v234_v16, %v232_v11  ;;  %v259_v20 = vmul.f32 %v258_v17, %v197_v8 }
 0x18d   :  { %236 = vst.msk [vmem:[#allocation2] sm:$0xff] %vm112_vm1, %v235_v19  ;;  %v260_v21 = vadd.f32 %v259_v20, %v257_v18 }
 0x18f   :  { %261 = vst.msk [vmem:[#allocation2 + $0x8] sm:$0xff] %vm112_vm1, %v260_v21 }
 0x194   :  { %v262_v22 = vld [vmem:[#allocation2] sm:$0xff] }
 0x196   :  { %v263_v23 = vld [vmem:[#allocation2 + $0x8] sm:$0xff] }
 0x197   :  { %v268_v24 = vpack.c.bf16 %v263_v23, %v262_v22 }
 0x199   :  { %19458 = vmatmul.mubr.msk.bf16.vlgmr.msra.gmra.mxu0 %vm112_vm1, %v268_v24 }
 0x19a   :  { %734 = vmatprep.mubr.bf16.mxu0 %v20678_v2 }
 0x19b   :  { %20 = vsyncpa [#allocation5], 0  ;;  %v15550_v25 = vld [vmem:[%s25027_s4] ss:$0 sm:$0xff]  ;;  %v20655_v35 = vld [vmem:[%s25023_s0 + $0x8] sm:$0xff]  ;;  %vm15526_vm2 = vcmask 90112  }
 0x19c   :  { %v20654_v29 = vld [vmem:[%s25023_s0] sm:$0xff]  ;;  %v396_v50 = vld [vmem:[%s25030_s7 + $0x88] sm:$0xff]  ;;  %v397_v1 = vld [vmem:[%s25030_s7 + $0x90] sm:$0xff] }
 0x19d   :  { %v395_v48 = vld [vmem:[%s25030_s7 + $0x80] sm:$0xff]  ;;  %v404_v52 = vld [vmem:[%s25030_s7 + $0xc8] sm:$0xff]  ;;  %v405_v3 = vld [vmem:[%s25030_s7 + $0xd0] sm:$0xff] }
 0x19e   :  { %v403_v49 = vld [vmem:[%s25030_s7 + $0xc0] sm:$0xff]  ;;  %v15574_v54 = vcombine.low %v396_v50, %v404_v52  ;;  %v15575_v55 = vcombine.high %v396_v50, %v404_v52  ;;  %v380_v59 = vld [vmem:[%s25030_s7 + $0x8] sm:$0xff]  ;;  %v398_v4 = vld [vmem:[%s25030_s7 + $0x98] sm:$0xff]  ;;  %v15577_v5 = vcombine.high %v397_v1, %v405_v3  ;;  %v15576_v8 = vcombine.low %v397_v1, %v405_v3 }
 0x19f   :  { %v15573_v51 = vcombine.high %v395_v48, %v403_v49  ;;  %v15572_v53 = vcombine.low %v395_v48, %v403_v49  ;;  %v379_v56 = vld [vmem:[%s25030_s7] sm:$0xff]  ;;  %v388_v61 = vld [vmem:[%s25030_s7 + $0x48] sm:$0xff]  ;;  %v406_v7 = vld [vmem:[%s25030_s7 + $0xd8] sm:$0xff] }
 0x1a0   :  { %714 = vmatprep.subr.bf16.mxu0 %v15575_v55  ;;  %v387_v57 = vld [vmem:[%s25030_s7 + $0x40] sm:$0xff]  ;;  %v15558_v63 = vcombine.low %v380_v59, %v388_v61  ;;  %v15559_v0 = vcombine.high %v380_v59, %v388_v61  ;;  %v15578_v9 = vcombine.low %v398_v4, %v406_v7  ;;  %v15579_v10 = vcombine.high %v398_v4, %v406_v7  ;;  %v392_v48 = vld [vmem:[%s25030_s7 + $0x68] sm:$0xff]  ;;  %v402_v55 = vld [vmem:[%s25030_s7 + $0xb8] sm:$0xff] }
 0x1a1   :  { %671 = vmatprep.subr.bf16.mxu1 %v15573_v51  ;;  %715 = vmatpush1.bf16.msra.mxu0 %v15574_v54  ;;  %v15557_v60 = vcombine.high %v379_v56, %v387_v57  ;;  %v15556_v62 = vcombine.low %v379_v56, %v387_v57  ;;  %v15554_v22 = vld [vmem:[%s25028_s5] ss:$0 sm:$0xff]  ;;  %v409_v54 = vld [vmem:[%s25030_s7 + $0xf0] sm:$0xff]  ;;  %v410_v56 = vld [vmem:[%s25030_s7 + $0xf8] sm:$0xff] }
 0x1a2   :  { %672 = vmatpush1.bf16.msra.mxu1 %v15572_v53  ;;  %716 = vmatprep.subr.bf16.mxu0 %v15559_v0  ;;  %v401_v53 = vld [vmem:[%s25030_s7 + $0xb0] sm:$0xff]  ;;  %v15587_v61 = vcombine.high %v402_v55, %v410_v56  ;;  %v386_v0 = vld [vmem:[%s25030_s7 + $0x38] sm:$0xff]  ;;  %v15586_v4 = vcombine.low %v402_v55, %v410_v56 }
 0x1a3   :  { %673 = vmatprep.subr.bf16.mxu1 %v15557_v60  ;;  %v15585_v60 = vcombine.high %v401_v53, %v409_v54  ;;  %v394_v1 = vld [vmem:[%s25030_s7 + $0x78] sm:$0xff]  ;;  %v15584_v3 = vcombine.low %v401_v53, %v409_v54 }
 0x1a4   :  { %v15571_v7 = vcombine.high %v386_v0, %v394_v1 }
 0x1a5   :  { %717 = vmatpush1.bf16.msra.mxu0 %v15558_v63  ;;  %v393_v63 = vld [vmem:[%s25030_s7 + $0x70] sm:$0xff] }
 0x1a6   :  { %674 = vmatpush1.bf16.msra.mxu1 %v15556_v62  ;;  %800 = vmatprep.subr.bf16.mxu0 %v15579_v10  ;;  %v385_v62 = vld [vmem:[%s25030_s7 + $0x30] sm:$0xff]  ;;  %v19683_v10 = vld [vmem:[%s25032_s9 + $0x78] sm:$0xff]  }
 0x1a7   :  { %757 = vmatprep.subr.bf16.mxu1 %v15577_v5  ;;  %v15569_v5 = vcombine.high %v385_v62, %v393_v63 }
 0x259   :  { %v325_v26 = vpop.f32.mrf.mxu0 }
 0x25a   :  { %v326_v27 = vadd.f32 %v15550_v25, %v325_v26  ;;  %v15555_v26 = vld [vmem:[%s25029_s6] ss:$0 sm:$0xff] }
 0x25b   :  { %v19459_v28 = vpop.f32.mrf.mxu0 }
 0x25c   :  { %v332_v30 = vadd.f32 %v20654_v29, %v326_v27  ;;  %v381_v28 = vld [vmem:[%s25030_s7 + $0x10] sm:$0xff] }
 0x25d   :  { %v328_v31 = vpop.f32.mrf.mxu0  ;;  %v389_v29 = vld [vmem:[%s25030_s7 + $0x50] sm:$0xff] }
 0x25e   :  { %v329_v32 = vadd.f32 %v15550_v25, %v328_v31  ;;  %v336_v33 = vsel %vm112_vm1, %v332_v30, 0.0  ;;  %v390_v31 = vld [vmem:[%s25030_s7 + $0x58] sm:$0xff] }
 0x25f   :  { %337 = vadd.xlane.f32.xlu0 %v336_v33  ;;  %v19460_v34 = vpop.f32.mrf.mxu0 }
 0x260   :  { %v333_v36 = vadd.f32 %v20655_v35, %v329_v32  ;;  %v15561_v35 = vcombine.high %v381_v28, %v389_v29 }
 0x262   :  { %v339_v37 = vsel %vm112_vm1, %v333_v36, 0.0 }
 0x263   :  { %340 = vadd.xlane.f32.xlu1 %v339_v37  ;;  %v399_v37 = vld [vmem:[%s25030_s7 + $0xa0] sm:$0xff] }
 0x2e8   :  { %v338_v38 = vpop.xlane.xlu0 %337 }
 0x2e9   :  { %v343_v39 = vmul.f32 0.03125, %v338_v38  ;;  %v407_v38 = vld [vmem:[%s25030_s7 + $0xe0] sm:$0xff] }
 0x2ea   :  { %v15580_v49 = vcombine.low %v399_v37, %v407_v38 }
 0x2eb   :  { %v345_v40 = vsub.f32 %v332_v30, %v343_v39  ;;  %v382_v30 = vld [vmem:[%s25030_s7 + $0x18] sm:$0xff]  ;;  %v400_v39 = vld [vmem:[%s25030_s7 + $0xa8] sm:$0xff] }
 0x2ec   :  { %v341_v41 = vpop.xlane.xlu1 %340 }
 0x2ed   :  { %v344_v42 = vmul.f32 0.03125, %v341_v41  ;;  %v347_v43 = vmul.f32 %v345_v40, %v345_v40  ;;  %v15560_v41 = vcombine.low %v381_v28, %v389_v29  ;;  %v19698_v28 = vld [vmem:[%s25032_s9 + $0xa0] sm:$0xff]   ;;  %v19699_v29 = vld [vmem:[%s25032_s9 + $0x58] sm:$0xff]  }
 0x2ef   :  { %v346_v44 = vsub.f32 %v333_v36, %v344_v42  ;;  %v349_v45 = vsel %vm112_vm1, %v347_v43, 0.0  ;;  %v15563_v36 = vcombine.high %v382_v30, %v390_v31  ;;  %v15562_v42 = vcombine.low %v382_v30, %v390_v31  ;;  %v19700_v30 = vld [vmem:[%s25032_s9 + $0xd8] sm:$0xff]  }
 0x2f0   :  { %350 = vadd.xlane.f32.xlu0 %v349_v45  ;;  %v15581_v43 = vcombine.high %v399_v37, %v407_v38  ;;  %v383_v45 = vld [vmem:[%s25030_s7 + $0x20] sm:$0xff]  ;;  %v19701_v31 = vld [vmem:[%s25032_s9 + $0x18] sm:$0xff]   ;;  %v19705_v37 = vld [vmem:[%s25032_s9 + $0x10] sm:$0xff]  }
 0x2f1   :  { %v348_v46 = vmul.f32 %v346_v44, %v346_v44  ;;  %v19706_v38 = vld [vmem:[%s25032_s9 + $0x90] sm:$0xff]  }
 0x2f3   :  { %v352_v47 = vsel %vm112_vm1, %v348_v46, 0.0  ;;  %v391_v46 = vld [vmem:[%s25030_s7 + $0x60] sm:$0xff] }
 0x2f4   :  { %353 = vadd.xlane.f32.xlu1 %v352_v47  ;;  %v384_v47 = vld [vmem:[%s25030_s7 + $0x28] sm:$0xff]  ;;  %v15565_v51 = vcombine.high %v383_v45, %v391_v46  ;;  %v15564_v57 = vcombine.low %v383_v45, %v391_v46  ;;  %v19713_v45 = vld [vmem:[%s25032_s9] sm:$0xff]  }
 0x2f5   :  { %v15567_v52 = vcombine.high %v384_v47, %v392_v48  ;;  %v15566_v59 = vcombine.low %v384_v47, %v392_v48  ;;  %v19714_v46 = vld [vmem:[%s25032_s9 + $0x80] sm:$0xff]   ;;  %v19715_v47 = vld [vmem:[%s25032_s9 + $0x178] sm:$0xff]  }
 0x2f6   :  { %v19716_v48 = vld [vmem:[%s25032_s9 + $0x1f8] sm:$0xff]  }
 0x379   :  { %v351_v11 = vpop.xlane.xlu0 %350 }
 0x37a   :  { %v355_v15 = vmul.f32 0.03125, %v351_v11  ;;  %v19684_v11 = vld [vmem:[%s25032_s9 + $0xf8] sm:$0xff]  }
 0x37c   :  { %v357_v16 = vadd.f32 1e-05, %v355_v15  ;;  %v19685_v15 = vld [vmem:[%s25032_s9 + $0x38] sm:$0xff]  }
 0x37d   :  { %v354_v17 = vpop.xlane.xlu1 %353 }
 0x37e   :  { %20545 = vrsqrt.f32 %v357_v16  ;;  %v356_v18 = vmul.f32 0.03125, %v354_v17  ;;  %v19686_v16 = vld [vmem:[%s25032_s9 + $0xb8] sm:$0xff]   ;;  %v19687_v17 = vld [vmem:[%s25032_s9 + $0x70] sm:$0xff]  }
 0x380   :  { %v358_v19 = vadd.f32 1e-05, %v356_v18  ;;  %v19688_v18 = vld [vmem:[%s25032_s9 + $0xf0] sm:$0xff]  }
 0x382   :  { %20547 = vrsqrt.f32 %v358_v19  ;;  %v19689_v19 = vld [vmem:[%s25032_s9 + $0x30] sm:$0xff]  }
 0x38b   :  { %v20546_v20 = vpop.eup %20545 }
 0x38c   :  { %v361_v21 = vmul.f32 %v20546_v20, %v345_v40  ;;  %v408_v40 = vld [vmem:[%s25030_s7 + $0xe8] sm:$0xff]  ;;  %v19690_v20 = vld [vmem:[%s25032_s9 + $0xb0] sm:$0xff]  }
 0x38d   :  { %v15582_v50 = vcombine.low %v400_v39, %v408_v40 }
 0x38e   :  { %v369_v24 = vmul.f32 %v15554_v22, %v361_v21  ;;  %v19691_v21 = vld [vmem:[%s25032_s9 + $0x68] sm:$0xff]  }
 0x38f   :  { %v20548_v23 = vpop.eup %20547 }
 0x390   :  { %v362_v25 = vmul.f32 %v20548_v23, %v346_v44  ;;  %v20899_v32 = vadd.f32 %v15555_v26, %v369_v24  ;;  %v15583_v44 = vcombine.high %v400_v39, %v408_v40  ;;  %v19693_v23 = vld [vmem:[%s25032_s9 + $0x28] sm:$0xff]  }
 0x391   :  { %v19694_v24 = vld [vmem:[%s25032_s9 + $0xa8] sm:$0xff]  }
 0x392   :  { %v370_v27 = vmul.f32 %v15554_v22, %v362_v25  ;;  %v19692_v22 = vld [vmem:[%s25032_s9 + $0xe8] sm:$0xff]   ;;  %v19695_v25 = vld [vmem:[%s25032_s9 + $0x60] sm:$0xff]  }
 0x393   :  { %v19707_v39 = vld [vmem:[%s25032_s9 + $0x48] sm:$0xff]  }
 0x394   :  { %v20901_v33 = vadd.f32 %v15555_v26, %v370_v27  ;;  %v19696_v26 = vld [vmem:[%s25032_s9 + $0xe0] sm:$0xff]   ;;  %v19708_v40 = vld [vmem:[%s25032_s9 + $0xc8] sm:$0xff]  }
 0x395   :  { %v19697_v27 = vld [vmem:[%s25032_s9 + $0x20] sm:$0xff]  }
 0x396   :  { %v20905_v34 = vpack.c.bf16 %v20901_v33, %v20899_v32 }
 0x398   :  { %15588 = vmatmul.mubr.msk.bf16.vlgmr.msra.gmra.mxu1 %vm112_vm1, %v20905_v34  ;;  %15589 = vmatmul.mubr.msk.bf16.vlgmr.msra.gmra.mxu0 %vm112_vm1, %v20905_v34 }
 0x399   :  { %758 = vmatpush1.bf16.msra.mxu1 %v15576_v8  ;;  %801 = vmatpush1.bf16.msra.mxu0 %v15578_v9  ;;  %v15568_v8 = vcombine.low %v385_v62, %v393_v63  ;;  %v15570_v9 = vcombine.low %v386_v0, %v394_v1  ;;  %v21096_v62 = vsub.s32 5, %v20797_v12 }
 0x39a   :  { %759 = vmatprep.subr.bf16.mxu1 %v15561_v35  ;;  %802 = vmatprep.subr.bf16.mxu0 %v15563_v36  ;;  %v19703_v35 = vld [vmem:[%s25032_s9 + $0x50] sm:$0xff]  }
 0x39b   :  { %777 = vmatprep.mubr.bf16.mxu1 %v20678_v2  ;;  %820 = vmatprep.mubr.bf16.mxu0 %v20678_v2  ;;  %v19704_v36 = vld [vmem:[%s25032_s9 + $0xd0] sm:$0xff]  }
 0x39d   :  { %760 = vmatpush1.bf16.msra.mxu1 %v15560_v41  ;;  %803 = vmatpush1.bf16.msra.mxu0 %v15562_v42  ;;  %v19709_v41 = vld [vmem:[%s25032_s9 + $0x8] sm:$0xff]  }
 0x39e   :  { %843 = vmatprep.subr.bf16.mxu1 %v15581_v43  ;;  %886 = vmatprep.subr.bf16.mxu0 %v15583_v44  ;;  %v19710_v42 = vld [vmem:[%s25032_s9 + $0x88] sm:$0xff]   ;;  %v19711_v43 = vld [vmem:[%s25032_s9 + $0x40] sm:$0xff]  }
 0x39f   :  { %v19712_v44 = vld [vmem:[%s25032_s9 + $0xc0] sm:$0xff]  }
 0x3a0   :  { %15590 = vmatmul.mubr.msk.bf16.vlgmr.msra.gmra.mxu1 %vm112_vm1, %v20905_v34  ;;  %15591 = vmatmul.mubr.msk.bf16.vlgmr.msra.gmra.mxu0 %vm112_vm1, %v20905_v34 }
 0x3a1   :  { %844 = vmatpush1.bf16.msra.mxu1 %v15580_v49  ;;  %887 = vmatpush1.bf16.msra.mxu0 %v15582_v50  ;;  %v21080_v49 = vsub.s32 3, %v20797_v12  ;;  %v21085_v50 = vld [vmem:[%s25031_s8] sm:$0xff] }
 0x3a2   :  { %845 = vmatprep.subr.bf16.mxu1 %v15565_v51  ;;  %888 = vmatprep.subr.bf16.mxu0 %v15567_v52  ;;  %v423_v53 = vrot.slane %v21085_v50, %v20803_v14  ;;  %v419_v55 = vrot.slane %v21085_v50, %v20800_v13  ;;  %v427_v56 = vrot.slane %v21085_v50, %v20822_v58 }
 0x3a3   :  { %863 = vmatprep.mubr.bf16.mxu1 %v20678_v2  ;;  %906 = vmatprep.mubr.bf16.mxu0 %v20678_v2  ;;  %v431_v54 = vrot.slane %v21085_v50, %v21080_v49 }
 0x3a5   :  { %846 = vmatpush1.bf16.msra.mxu1 %v15564_v57  ;;  %889 = vmatpush1.bf16.msra.mxu0 %v15566_v59 }
 0x3a6   :  { %929 = vmatprep.subr.bf16.mxu1 %v15585_v60  ;;  %972 = vmatprep.subr.bf16.mxu0 %v15587_v61 }
 0x3a8   :  { %15592 = vmatmul.mubr.msk.bf16.vlgmr.msra.gmra.mxu1 %vm112_vm1, %v20905_v34  ;;  %15593 = vmatmul.mubr.msk.bf16.vlgmr.msra.gmra.mxu0 %vm112_vm1, %v20905_v34 }
 0x3a9   :  { %930 = vmatpush1.bf16.msra.mxu1 %v15584_v3  ;;  %973 = vmatpush1.bf16.msra.mxu0 %v15586_v4 }
 0x3aa   :  { %931 = vmatprep.subr.bf16.mxu1 %v15569_v5  ;;  %974 = vmatprep.subr.bf16.mxu0 %v15571_v7 }
 0x3ab   :  { %949 = vmatprep.mubr.bf16.mxu1 %v20678_v2  ;;  %992 = vmatprep.mubr.bf16.mxu0 %v20678_v2 }
 0x3ad   :  { %932 = vmatpush1.bf16.msra.mxu1 %v15568_v8  ;;  %975 = vmatpush1.bf16.msra.mxu0 %v15570_v9  ;;  %v21099_v9 = vsub.s32 7, %v20797_v12 }
 0x3ae   :  { %18311 = vmatprep.subr.bf16.mxu1 %v19683_v10  ;;  %18333 = vmatprep.subr.bf16.mxu0 %v19684_v11 }
 0x3b0   :  { %15594 = vmatmul.mubr.msk.bf16.vlgmr.msra.gmra.mxu1 %vm112_vm1, %v20905_v34  ;;  %15595 = vmatmul.mubr.msk.bf16.vlgmr.msra.gmra.mxu0 %vm112_vm1, %v20905_v34  ;;  %v19702_v34 = vld [vmem:[%s25032_s9 + $0x98] sm:$0xff]  }
 0x3b1   :  { %18312 = vmatpush3.bf16.msra.mxu1 %v19685_v15  ;;  %18334 = vmatpush3.bf16.msra.mxu0 %v19686_v16 }
 0x3b2   :  { %18313 = vmatprep.subr.bf16.mxu1 %v19687_v17  ;;  %18335 = vmatprep.subr.bf16.mxu0 %v19688_v18 }
 0x3b5   :  { %18314 = vmatpush3.bf16.msra.mxu1 %v19689_v19  ;;  %18336 = vmatpush3.bf16.msra.mxu0 %v19690_v20  ;;  %v439_v19 = vrot.slane %v21085_v50, %v21096_v62 }
 0x3b6   :  { %18315 = vmatprep.subr.bf16.mxu1 %v19691_v21  ;;  %18337 = vmatprep.subr.bf16.mxu0 %v19692_v22 }
 0x3b9   :  { %18316 = vmatpush3.bf16.msra.mxu1 %v19693_v23  ;;  %18338 = vmatpush3.bf16.msra.mxu0 %v19694_v24 }
 0x3ba   :  { %18317 = vmatprep.subr.bf16.mxu1 %v19695_v25  ;;  %18339 = vmatprep.subr.bf16.mxu0 %v19696_v26 }
 0x3bd   :  { %18318 = vmatpush3.bf16.msra.mxu1 %v19697_v27  ;;  %18340 = vmatpush3.bf16.msra.mxu0 %v19698_v28  ;;  %v447_v27 = vrot.slane %v21085_v50, %v21099_v9 }
 0x3be   :  { %18319 = vmatprep.subr.bf16.mxu1 %v19699_v29  ;;  %18341 = vmatprep.subr.bf16.mxu0 %v19700_v30 }
 0x3c1   :  { %18320 = vmatpush3.bf16.msra.mxu1 %v19701_v31  ;;  %18342 = vmatpush3.bf16.msra.mxu0 %v19702_v34  ;;  %v19717_v31 = vld [vmem:[%s25032_s9 + $0x138] sm:$0xff]  }
 0x3c2   :  { %18321 = vmatprep.subr.bf16.mxu1 %v19703_v35  ;;  %18343 = vmatprep.subr.bf16.mxu0 %v19704_v36  ;;  %v19718_v34 = vld [vmem:[%s25032_s9 + $0x1b8] sm:$0xff]  }
 0x3c5   :  { %18322 = vmatpush3.bf16.msra.mxu1 %v19705_v37  ;;  %18344 = vmatpush3.bf16.msra.mxu0 %v19706_v38 }
 0x3c6   :  { %18323 = vmatprep.subr.bf16.mxu1 %v19707_v39  ;;  %18345 = vmatprep.subr.bf16.mxu0 %v19708_v40  ;;  %v19719_v39 = vld [vmem:[%s25032_s9 + $0x170] sm:$0xff]  }
 0x3c7   :  { %v19720_v40 = vld [vmem:[%s25032_s9 + $0x1f0] sm:$0xff]  }
 0x3c9   :  { %18324 = vmatpush3.bf16.msra.mxu1 %v19709_v41  ;;  %18346 = vmatpush3.bf16.msra.mxu0 %v19710_v42 }
 0x3ca   :  { %18325 = vmatprep.subr.bf16.mxu1 %v19711_v43  ;;  %18347 = vmatprep.subr.bf16.mxu0 %v19712_v44 }
 0x3cd   :  { %18326 = vmatpush3.bf16.msra.mxu1 %v19713_v45  ;;  %18348 = vmatpush3.bf16.msra.mxu0 %v19714_v46 }
 0x3ce   :  { %18355 = vmatprep.subr.bf16.mxu1 %v19715_v47  ;;  %18377 = vmatprep.subr.bf16.mxu0 %v19716_v48  ;;  %v19721_v47 = vld [vmem:[%s25032_s9 + $0x130] sm:$0xff]  }
 0x3cf   :  { %v19722_v48 = vld [vmem:[%s25032_s9 + $0x1b0] sm:$0xff]  }
 0x458   :  { %v693_v51 = vpop.f32.mrf.mxu1  ;;  %v736_v52 = vpop.f32.mrf.mxu0 }
 0x459   :  { %v694_v4 = vadd.f32 %v693_v51, %v419_v55  ;;  %v737_v5 = vadd.f32 %v736_v52, %v427_v56  ;;  %v19723_v51 = vld [vmem:[%s25032_s9 + $0x168] sm:$0xff]  }
 0x45a   :  { %v695_v57 = vpop.f32.mrf.mxu1  ;;  %v738_v59 = vpop.f32.mrf.mxu0  ;;  %v19724_v52 = vld [vmem:[%s25032_s9 + $0x1e8] sm:$0xff]  }
 0x45b   :  { %v696_v63 = vadd.f32 %v695_v57, %v423_v53  ;;  %v739_v0 = vadd.f32 %v738_v59, %v431_v54  ;;  %v1003_v24 = vmax.f32 %v694_v4, 0.0  ;;  %v1005_v25 = vmax.f32 %v737_v5, 0.0  ;;  %v19725_v59 = vld [vmem:[%s25032_s9 + $0x128] sm:$0xff]   ;;  %v19729_v4 = vld [vmem:[%s25032_s9 + $0x120] sm:$0xff]  }
 0x45c   :  { %v697_v60 = vpop.f32.mrf.mxu1  ;;  %v740_v61 = vpop.f32.mrf.mxu0  ;;  %v19730_v5 = vld [vmem:[%s25032_s9 + $0x1a0] sm:$0xff]  }
 0x45d   :  { %v698_v1 = vadd.f32 %v697_v60, %v419_v55  ;;  %v741_v3 = vadd.f32 %v740_v61, %v427_v56  ;;  %v1004_v20 = vmax.f32 %v696_v63, 0.0  ;;  %v1006_v21 = vmax.f32 %v739_v0, 0.0  ;;  %v19726_v60 = vld [vmem:[%s25032_s9 + $0x1a8] sm:$0xff]   ;;  %v19727_v63 = vld [vmem:[%s25032_s9 + $0x160] sm:$0xff]  }
 0x45e   :  { %v699_v7 = vpop.f32.mrf.mxu1  ;;  %v742_v8 = vpop.f32.mrf.mxu0  ;;  %v19728_v0 = vld [vmem:[%s25032_s9 + $0x1e0] sm:$0xff]  }
 0x45f   :  { %v700_v10 = vadd.f32 %v699_v7, %v423_v53  ;;  %v743_v11 = vadd.f32 %v742_v8, %v431_v54  ;;  %v1019_v15 = vmax.f32 %v698_v1, 0.0  ;;  %v1021_v16 = vmax.f32 %v741_v3, 0.0  ;;  %v19731_v7 = vld [vmem:[%s25032_s9 + $0x158] sm:$0xff]  }
 0x460   :  { %v21101_v17 = vpop.f32.mrf.mxu1  ;;  %v21103_v18 = vpop.f32.mrf.mxu0  ;;  %v19732_v8 = vld [vmem:[%s25032_s9 + $0x1d8] sm:$0xff]  }
 0x461   :  { %v1020_v22 = vmax.f32 %v700_v10, 0.0  ;;  %v1022_v23 = vmax.f32 %v743_v11, 0.0  ;;  %v1291_v35 = vpack.c.bf16 %v1019_v15, %v1003_v24  ;;  %v1293_v36 = vpack.c.bf16 %v1021_v16, %v1005_v25  ;;  %v19733_v15 = vld [vmem:[%s25032_s9 + $0x118] sm:$0xff]   ;;  %v19737_v25 = vld [vmem:[%s25032_s9 + $0x110] sm:$0xff]  }
 0x462   :  { %v781_v26 = vpop.f32.mrf.mxu1  ;;  %v824_v28 = vpop.f32.mrf.mxu0  ;;  %v19734_v16 = vld [vmem:[%s25032_s9 + $0x198] sm:$0xff]  }
 0x463   :  { %v1292_v29 = vpack.c.bf16 %v1020_v22, %v1004_v20  ;;  %v1294_v30 = vpack.c.bf16 %v1022_v23, %v1006_v21  ;;  %v782_v41 = vadd.f32 %v781_v26, %v439_v19  ;;  %v825_v42 = vadd.f32 %v824_v28, %v447_v27  ;;  %v19736_v20 = vld [vmem:[%s25032_s9 + $0x1d0] sm:$0xff]  }
 0x464   :  { %v21115_v37 = vpop.f32.mrf.mxu1  ;;  %v21117_v38 = vpop.f32.mrf.mxu0  ;;  %v21178_v21 = vsub.s32 4, %v20797_v12  ;;  %v21181_v22 = vsub.s32 6, %v20797_v12  ;;  %v19738_v26 = vld [vmem:[%s25032_s9 + $0x190] sm:$0xff]   ;;  %v19739_v12 = vld [vmem:[%s25032_s9 + $0x148] sm:$0xff]  }
 0x465   :  { %2114 = vmatprep.mubr.bf16.mxu1 %v1292_v29  ;;  %2155 = vmatprep.mubr.bf16.mxu0 %v1294_v30  ;;  %v1008_v53 = vmax.f32 %v782_v41, 0.0  ;;  %v1010_v56 = vmax.f32 %v825_v42, 0.0  ;;  %v21206_v30 = vld [vmem:[%s25031_s8 + $0x8] sm:$0xff]  ;;  %v19743_v42 = vld [vmem:[%s25032_s9 + $0x140] sm:$0xff]  }
 0x466   :  { %v785_v43 = vpop.f32.mrf.mxu1  ;;  %v828_v44 = vpop.f32.mrf.mxu0  ;;  %2115 = vmatmul.mubr.bf16.vlgmr.msra.gmra.mxu1 %v1291_v35  ;;  %2156 = vmatmul.mubr.bf16.vlgmr.msra.gmra.mxu0 %v1293_v36  ;;  %v435_v28 = vrot.slane %v21085_v50, %v21178_v21  ;;  %v443_v29 = vrot.slane %v21085_v50, %v21181_v22  ;;  %v19741_v36 = vld [vmem:[%s25032_s9 + $0x108] sm:$0xff]   ;;  %v463_v41 = vrot.slane %v21206_v30, %v21080_v49 }
 0x467   :  { %v786_v45 = vadd.f32 %v785_v43, %v439_v19  ;;  %v829_v46 = vadd.f32 %v828_v44, %v447_v27  ;;  %18356 = vmatpush3.bf16.msra.mxu1 %v19717_v31  ;;  %18378 = vmatpush3.bf16.msra.mxu0 %v19718_v34  ;;  %v19735_v19 = vld [vmem:[%s25032_s9 + $0x150] sm:$0xff]   ;;  %v19740_v27 = vld [vmem:[%s25032_s9 + $0x1c8] sm:$0xff]   ;;  %v455_v34 = vrot.slane %v21206_v30, %v20803_v14  ;;  %v19744_v43 = vld [vmem:[%s25032_s9 + $0x1c0] sm:$0xff]  }
 0x468   :  { %18357 = vmatprep.subr.bf16.mxu1 %v19719_v39  ;;  %18379 = vmatprep.subr.bf16.mxu0 %v19720_v40  ;;  %v21149_v1 = vpop.f32.mrf.mxu1  ;;  %v21151_v3 = vpop.f32.mrf.mxu0  ;;  %v19742_v50 = vld [vmem:[%s25032_s9 + $0x188] sm:$0xff]   ;;  %v784_v39 = vadd.f32 %v21115_v37, %v435_v28  ;;  %v827_v40 = vadd.f32 %v21117_v38, %v443_v29  ;;  %v823_v37 = vadd.f32 %v21103_v18, %v443_v29  ;;  %v19748_v18 = vld [vmem:[%s25032_s9 + $0x2f8] sm:$0xff]  }
 0x469   :  { %v1024_v54 = vmax.f32 %v786_v45, 0.0  ;;  %v1026_v55 = vmax.f32 %v829_v46, 0.0  ;;  %v780_v45 = vadd.f32 %v21101_v17, %v435_v28  ;;  %v19747_v17 = vld [vmem:[%s25032_s9 + $0x278] sm:$0xff]   ;;  %v19761_v28 = vld [vmem:[%s25032_s9 + $0x220] sm:$0xff]  }
 0x46a   :  { %v867_v10 = vpop.f32.mrf.mxu1  ;;  %v910_v11 = vpop.f32.mrf.mxu0 }
 0x46b   :  { %18358 = vmatpush3.bf16.msra.mxu1 %v19721_v47  ;;  %18380 = vmatpush3.bf16.msra.mxu0 %v19722_v48  ;;  %v1296_v57 = vpack.c.bf16 %v1024_v54, %v1008_v53  ;;  %v1298_v61 = vpack.c.bf16 %v1026_v55, %v1010_v56  ;;  %v868_v38 = vadd.f32 %v867_v10, %v455_v34  ;;  %v19745_v47 = vld [vmem:[%s25032_s9 + $0x100] sm:$0xff]   ;;  %v1007_v55 = vmax.f32 %v780_v45, 0.0 }
 0x46c   :  { %18359 = vmatprep.subr.bf16.mxu1 %v19723_v51  ;;  %18381 = vmatprep.subr.bf16.mxu0 %v19724_v52  ;;  %v21183_v23 = vpop.f32.mrf.mxu1  ;;  %v21185_v24 = vpop.f32.mrf.mxu0  ;;  %v19746_v48 = vld [vmem:[%s25032_s9 + $0x180] sm:$0xff]   ;;  %v1023_v51 = vmax.f32 %v784_v39, 0.0  ;;  %v1025_v52 = vmax.f32 %v827_v40, 0.0  ;;  %v911_v53 = vadd.f32 %v910_v11, %v463_v41  ;;  %v1009_v56 = vmax.f32 %v823_v37, 0.0  ;;  %v19753_v11 = vld [vmem:[%s25032_s9 + $0x230] sm:$0xff]   ;;  %v19766_v40 = vld [vmem:[%s25032_s9 + $0x298] sm:$0xff]  }
 0x46d   :  { %2196 = vmatprep.mubr.bf16.mxu1 %v1296_v57  ;;  %2237 = vmatprep.mubr.bf16.mxu0 %v1298_v61  ;;  %v19770_v37 = vld [vmem:[%s25032_s9 + $0x290] sm:$0xff]  }
 0x46e   :  { %v871_v31 = vpop.f32.mrf.mxu1  ;;  %v914_v35 = vpop.f32.mrf.mxu0  ;;  %v1295_v61 = vpack.c.bf16 %v1023_v51, %v1007_v55  ;;  %v19775_v55 = vld [vmem:[%s25032_s9 + $0x240] sm:$0xff]  }
 0x46f   :  { %18360 = vmatpush3.bf16.msra.mxu1 %v19725_v59  ;;  %18382 = vmatpush3.bf16.msra.mxu0 %v19726_v60  ;;  %v872_v44 = vadd.f32 %v871_v31, %v455_v34  ;;  %v915_v46 = vadd.f32 %v914_v35, %v463_v41  ;;  %v1012_v59 = vmax.f32 %v868_v38, 0.0  ;;  %v19749_v60 = vld [vmem:[%s25032_s9 + $0x238] sm:$0xff]   ;;  %v19762_v31 = vld [vmem:[%s25032_s9 + $0x2a0] sm:$0xff]   ;;  %v19767_v41 = vld [vmem:[%s25032_s9 + $0x250] sm:$0xff]  }
 0x470   :  { %18361 = vmatprep.subr.bf16.mxu1 %v19727_v63  ;;  %18383 = vmatprep.subr.bf16.mxu0 %v19728_v0  ;;  %v1297_v63 = vpack.c.bf16 %v1025_v52, %v1009_v56  ;;  %v1014_v0 = vmax.f32 %v911_v53, 0.0  ;;  %v21281_v29 = vpop.f32.mrf.mxu0  ;;  %v19763_v34 = vld [vmem:[%s25032_s9 + $0x258] sm:$0xff]   ;;  %v19772_v38 = vld [vmem:[%s25032_s9 + $0x2c8] sm:$0xff]  }
 0x471   :  { %v1028_v54 = vmax.f32 %v872_v44, 0.0  ;;  %v1030_v57 = vmax.f32 %v915_v46, 0.0  ;;  %v19764_v35 = vld [vmem:[%s25032_s9 + $0x2d8] sm:$0xff]   ;;  %v19769_v44 = vld [vmem:[%s25032_s9 + $0x210] sm:$0xff]   ;;  %v19771_v46 = vld [vmem:[%s25032_s9 + $0x248] sm:$0xff]  }
 0x472   :  { %v996_v39 = vpop.f32.mrf.mxu0  ;;  %v19773_v52 = vld [vmem:[%s25032_s9 + $0x208] sm:$0xff]  }
 0x473   :  { %18362 = vmatpush3.bf16.msra.mxu1 %v19729_v4  ;;  %18384 = vmatpush3.bf16.msra.mxu0 %v19730_v5  ;;  %v19750_v4 = vld [vmem:[%s25032_s9 + $0x2b8] sm:$0xff]   ;;  %v1300_v5 = vpack.c.bf16 %v1028_v54, %v1012_v59  ;;  %v1302_v10 = vpack.c.bf16 %v1030_v57, %v1014_v0  ;;  %v19774_v54 = vld [vmem:[%s25032_s9 + $0x288] sm:$0xff]   ;;  %v479_v57 = vrot.slane %v21206_v30, %v21099_v9  ;;  %v19777_v0 = vld [vmem:[%s25032_s9 + $0x200] sm:$0xff]  }
 0x474   :  { %18363 = vmatprep.subr.bf16.mxu1 %v19731_v7  ;;  %18385 = vmatprep.subr.bf16.mxu0 %v19732_v8  ;;  %v19751_v7 = vld [vmem:[%s25032_s9 + $0x270] sm:$0xff]   ;;  %v21309_v45 = vpop.f32.mrf.mxu0 }
 0x475   :  { %v19752_v8 = vld [vmem:[%s25032_s9 + $0x2f0] sm:$0xff]  }
 0x477   :  { %18364 = vmatpush3.bf16.msra.mxu1 %v19733_v15  ;;  %18386 = vmatpush3.bf16.msra.mxu0 %v19734_v16  ;;  %v19754_v15 = vld [vmem:[%s25032_s9 + $0x2b0] sm:$0xff]   ;;  %v19755_v16 = vld [vmem:[%s25032_s9 + $0x268] sm:$0xff]  }
 0x478   :  { %18365 = vmatprep.subr.bf16.mxu1 %v19735_v19  ;;  %18387 = vmatprep.subr.bf16.mxu0 %v19736_v20  ;;  %v19756_v19 = vld [vmem:[%s25032_s9 + $0x2e8] sm:$0xff]  }
 0x479   :  { %v19757_v20 = vld [vmem:[%s25032_s9 + $0x228] sm:$0xff]  }
 0x47b   :  { %18366 = vmatpush3.bf16.msra.mxu1 %v19737_v25  ;;  %18388 = vmatpush3.bf16.msra.mxu0 %v19738_v26  ;;  %v19758_v25 = vld [vmem:[%s25032_s9 + $0x2a8] sm:$0xff]   ;;  %v19759_v26 = vld [vmem:[%s25032_s9 + $0x260] sm:$0xff]  }
 0x47c   :  { %18367 = vmatprep.subr.bf16.mxu1 %v19739_v12  ;;  %18389 = vmatprep.subr.bf16.mxu0 %v19740_v27  ;;  %v19760_v12 = vld [vmem:[%s25032_s9 + $0x2e0] sm:$0xff]   ;;  %v21276_v27 = vpop.f32.mrf.mxu1 }
 0x47f   :  { %18368 = vmatpush3.bf16.msra.mxu1 %v19741_v36  ;;  %18390 = vmatpush3.bf16.msra.mxu0 %v19742_v50  ;;  %v953_v36 = vpop.f32.mrf.mxu1  ;;  %v19765_v50 = vld [vmem:[%s25032_s9 + $0x218] sm:$0xff]  }
 0x480   :  { %18369 = vmatprep.subr.bf16.mxu1 %v19743_v42  ;;  %18391 = vmatprep.subr.bf16.mxu0 %v19744_v43  ;;  %v19768_v42 = vld [vmem:[%s25032_s9 + $0x2d0] sm:$0xff]  }
 0x481   :  { %v21304_v43 = vpop.f32.mrf.mxu1 }
 0x483   :  { %18370 = vmatpush3.bf16.msra.mxu1 %v19745_v47  ;;  %18392 = vmatpush3.bf16.msra.mxu0 %v19746_v48  ;;  %v451_v47 = vrot.slane %v21206_v30, %v20800_v13  ;;  %v459_v48 = vrot.slane %v21206_v30, %v20822_v58  ;;  %v957_v51 = vpop.f32.mrf.mxu1 }
 0x484   :  { %18399 = vmatprep.subr.bf16.mxu1 %v19747_v17  ;;  %18421 = vmatprep.subr.bf16.mxu0 %v19748_v18  ;;  %v471_v17 = vrot.slane %v21206_v30, %v21096_v62  ;;  %v1000_v18 = vpop.f32.mrf.mxu0 }
 0x485   :  { %v870_v53 = vadd.f32 %v21183_v23, %v451_v47  ;;  %v913_v56 = vadd.f32 %v21185_v24, %v459_v48  ;;  %v19776_v23 = vld [vmem:[%s25032_s9 + $0x2c0] sm:$0xff]   ;;  %v866_v59 = vadd.f32 %v21149_v1, %v451_v47  ;;  %v19779_v1 = vld [vmem:[%s25032_s9 + $0x378] sm:$0xff]  }
 0x486   :  { %2197 = vmatmul.mubr.bf16.vlgmr.msra.gmra.mxu1 %v1295_v61  ;;  %2238 = vmatmul.mubr.bf16.vlgmr.msra.gmra.mxu0 %v1297_v63  ;;  %v909_v61 = vadd.f32 %v21151_v3, %v459_v48  ;;  %v1001_v63 = vadd.f32 %v1000_v18, %v479_v57  ;;  %v997_v3 = vadd.f32 %v996_v39, %v479_v57  ;;  %v19786_v39 = vld [vmem:[%s25032_s9 + $0x3b0] sm:$0xff]   ;;  %v19794_v47 = vld [vmem:[%s25032_s9 + $0x3a0] sm:$0xff]   ;;  %v19795_v48 = vld [vmem:[%s25032_s9 + $0x358] sm:$0xff]  }
 0x487   :  { %18400 = vmatpush3.bf16.msra.mxu1 %v19749_v60  ;;  %2278 = vmatprep.mubr.bf16.mxu1 %v1300_v5  ;;  %v958_v60 = vadd.f32 %v957_v51, %v471_v17  ;;  %v1027_v24 = vmax.f32 %v870_v53, 0.0  ;;  %v19778_v5 = vld [vmem:[%s25032_s9 + $0x280] sm:$0xff]   ;;  %v19796_v51 = vld [vmem:[%s25032_s9 + $0x3d8] sm:$0xff]   ;;  %v19800_v18 = vld [vmem:[%s25032_s9 + $0x3d0] sm:$0xff]  }
 0x488   :  { %18422 = vmatpush3.bf16.msra.mxu0 %v19750_v4  ;;  %2319 = vmatprep.mubr.bf16.mxu0 %v1302_v10  ;;  %v954_v4 = vadd.f32 %v953_v36, %v471_v17  ;;  %v1011_v10 = vmax.f32 %v866_v59, 0.0  ;;  %v19798_v53 = vld [vmem:[%s25032_s9 + $0x398] sm:$0xff]   ;;  %v19799_v17 = vld [vmem:[%s25032_s9 + $0x350] sm:$0xff]   ;;  %v19804_v57 = vld [vmem:[%s25032_s9 + $0x3c8] sm:$0xff]   ;;  %v475_v59 = vrot.slane %v21206_v30, %v21181_v22 }
 0x489   :  { %18401 = vmatprep.subr.bf16.mxu1 %v19751_v7  ;;  %18423 = vmatprep.subr.bf16.mxu0 %v19752_v8  ;;  %v1029_v7 = vmax.f32 %v913_v56, 0.0  ;;  %v19780_v8 = vld [vmem:[%s25032_s9 + $0x3f8] sm:$0xff]   ;;  %v19803_v56 = vld [vmem:[%s25032_s9 + $0x348] sm:$0xff]  }
 0x48b   :  { %18402 = vmatpush3.bf16.msra.mxu1 %v19753_v11  ;;  %v1032_v11 = vmax.f32 %v958_v60, 0.0  ;;  %v19805_v60 = vld [vmem:[%s25032_s9 + $0x308] sm:$0xff]  }
 0x48c   :  { %18424 = vmatpush3.bf16.msra.mxu0 %v19754_v15  ;;  %18403 = vmatprep.subr.bf16.mxu1 %v19755_v16  ;;  %v1013_v15 = vmax.f32 %v909_v61, 0.0  ;;  %v1034_v16 = vmax.f32 %v1001_v63, 0.0  ;;  %v19806_v63 = vld [vmem:[%s25032_s9 + $0x388] sm:$0xff]  }
 0x48d   :  { %18425 = vmatprep.subr.bf16.mxu0 %v19756_v19  ;;  %v19781_v19 = vld [vmem:[%s25032_s9 + $0x338] sm:$0xff]  }
 0x48f   :  { %18404 = vmatpush3.bf16.msra.mxu1 %v19757_v20  ;;  %v1299_v20 = vpack.c.bf16 %v1027_v24, %v1011_v10  ;;  %v999_v24 = vadd.f32 %v21309_v45, %v475_v59  ;;  %v19810_v45 = vld [vmem:[%s25032_s9 + $0x380] sm:$0xff]  }
 0x490   :  { %18426 = vmatpush3.bf16.msra.mxu0 %v19758_v25  ;;  %18405 = vmatprep.subr.bf16.mxu1 %v19759_v26  ;;  %v1016_v25 = vmax.f32 %v954_v4, 0.0  ;;  %v19782_v26 = vld [vmem:[%s25032_s9 + $0x3b8] sm:$0xff]  }
 0x491   :  { %18427 = vmatprep.subr.bf16.mxu0 %v19760_v12  ;;  %v1301_v12 = vpack.c.bf16 %v1029_v7, %v1013_v15  ;;  %v1033_v7 = vmax.f32 %v999_v24, 0.0 }
 0x493   :  { %18406 = vmatpush3.bf16.msra.mxu1 %v19761_v28  ;;  %v1018_v28 = vmax.f32 %v997_v3, 0.0 }
 0x494   :  { %18428 = vmatpush3.bf16.msra.mxu0 %v19762_v31  ;;  %18407 = vmatprep.subr.bf16.mxu1 %v19763_v34  ;;  %v19783_v31 = vld [vmem:[%s25032_s9 + $0x370] sm:$0xff]   ;;  %v1304_v34 = vpack.c.bf16 %v1032_v11, %v1016_v25 }
 0x495   :  { %18429 = vmatprep.subr.bf16.mxu0 %v19764_v35  ;;  %v19784_v35 = vld [vmem:[%s25032_s9 + $0x3f0] sm:$0xff]   ;;  %v1306_v36 = vpack.c.bf16 %v1034_v16, %v1018_v28 }
 0x497   :  { %18408 = vmatpush3.bf16.msra.mxu1 %v19765_v50  ;;  %v19785_v50 = vld [vmem:[%s25032_s9 + $0x330] sm:$0xff]  }
 0x498   :  { %18430 = vmatpush3.bf16.msra.mxu0 %v19766_v40  ;;  %18409 = vmatprep.subr.bf16.mxu1 %v19767_v41  ;;  %v19787_v40 = vld [vmem:[%s25032_s9 + $0x368] sm:$0xff]  }
 0x499   :  { %18431 = vmatprep.subr.bf16.mxu0 %v19768_v42  ;;  %v19788_v41 = vld [vmem:[%s25032_s9 + $0x3e8] sm:$0xff]  }
 0x49a   :  { %v19789_v42 = vld [vmem:[%s25032_s9 + $0x328] sm:$0xff]  }
 0x49b   :  { %18410 = vmatpush3.bf16.msra.mxu1 %v19769_v44  ;;  %v19790_v44 = vld [vmem:[%s25032_s9 + $0x3a8] sm:$0xff]  }
 0x49c   :  { %18432 = vmatpush3.bf16.msra.mxu0 %v19770_v37  ;;  %18411 = vmatprep.subr.bf16.mxu1 %v19771_v46  ;;  %v19791_v37 = vld [vmem:[%s25032_s9 + $0x360] sm:$0xff]  }
 0x49d   :  { %18433 = vmatprep.subr.bf16.mxu0 %v19772_v38  ;;  %v19792_v46 = vld [vmem:[%s25032_s9 + $0x3e0] sm:$0xff]  }
 0x49e   :  { %v19793_v38 = vld [vmem:[%s25032_s9 + $0x320] sm:$0xff]  }
 0x49f   :  { %18412 = vmatpush3.bf16.msra.mxu1 %v19773_v52  ;;  %v19797_v52 = vld [vmem:[%s25032_s9 + $0x318] sm:$0xff]  }
 0x4a0   :  { %18434 = vmatpush3.bf16.msra.mxu0 %v19774_v54  ;;  %18413 = vmatprep.subr.bf16.mxu1 %v19775_v55  ;;  %v19801_v54 = vld [vmem:[%s25032_s9 + $0x310] sm:$0xff]  }
 0x4a1   :  { %18435 = vmatprep.subr.bf16.mxu0 %v19776_v23  ;;  %v19802_v55 = vld [vmem:[%s25032_s9 + $0x390] sm:$0xff]   ;;  %v467_v23 = vrot.slane %v21206_v30, %v21178_v21  ;;  %v19808_v30 = vld [vmem:[%s25032_s9 + $0x3c0] sm:$0xff]  }
 0x4a3   :  { %18414 = vmatpush3.bf16.msra.mxu1 %v19777_v0  ;;  %v956_v61 = vadd.f32 %v21304_v43, %v467_v23  ;;  %v19807_v0 = vld [vmem:[%s25032_s9 + $0x340] sm:$0xff]   ;;  %v952_v4 = vadd.f32 %v21276_v27, %v467_v23  ;;  %v995_v43 = vadd.f32 %v21281_v29, %v475_v59 }
 0x4a4   :  { %18436 = vmatpush3.bf16.msra.mxu0 %v19778_v5  ;;  %18443 = vmatprep.subr.bf16.mxu1 %v19779_v1  ;;  %v19809_v5 = vld [vmem:[%s25032_s9 + $0x300] sm:$0xff]  }
 0x4a5   :  { %18465 = vmatprep.subr.bf16.mxu0 %v19780_v8  ;;  %v1031_v1 = vmax.f32 %v956_v61, 0.0  ;;  %v1015_v3 = vmax.f32 %v952_v4, 0.0  ;;  %v1017_v8 = vmax.f32 %v995_v43, 0.0 }
 0x4a6   :  { %2279 = vmatmul.mubr.bf16.vlgmr.msra.gmra.mxu1 %v1299_v20 }
 0x4a7   :  { %2320 = vmatmul.mubr.bf16.vlgmr.msra.gmra.mxu0 %v1301_v12  ;;  %18444 = vmatpush3.bf16.msra.mxu1 %v19781_v19  ;;  %v1303_v27 = vpack.c.bf16 %v1031_v1, %v1015_v3  ;;  %v1305_v29 = vpack.c.bf16 %v1033_v7, %v1017_v8 }
 0x4a8   :  { %2360 = vmatprep.mubr.bf16.mxu1 %v1304_v34  ;;  %18466 = vmatpush3.bf16.msra.mxu0 %v19782_v26 }
 0x4a9   :  { %2401 = vmatprep.mubr.bf16.mxu0 %v1306_v36  ;;  %18445 = vmatprep.subr.bf16.mxu1 %v19783_v31 }
 0x4aa   :  { %18467 = vmatprep.subr.bf16.mxu0 %v19784_v35 }
 0x4ab   :  { %18446 = vmatpush3.bf16.msra.mxu1 %v19785_v50 }
 0x4ac   :  { %18468 = vmatpush3.bf16.msra.mxu0 %v19786_v39  ;;  %18447 = vmatprep.subr.bf16.mxu1 %v19787_v40  ;;  %v15596_v40 = vld [vmem:[%s25033_s10] ss:$0 sm:$0xff] }
 0x4ad   :  { %18469 = vmatprep.subr.bf16.mxu0 %v19788_v41 }
 0x4af   :  { %18448 = vmatpush3.bf16.msra.mxu1 %v19789_v42 }
 0x4b0   :  { %18470 = vmatpush3.bf16.msra.mxu0 %v19790_v44  ;;  %18449 = vmatprep.subr.bf16.mxu1 %v19791_v37 }
 0x4b1   :  { %18471 = vmatprep.subr.bf16.mxu0 %v19792_v46 }
 0x4b3   :  { %18450 = vmatpush3.bf16.msra.mxu1 %v19793_v38 }
 0x4b4   :  { %18472 = vmatpush3.bf16.msra.mxu0 %v19794_v47  ;;  %18451 = vmatprep.subr.bf16.mxu1 %v19795_v48 }
 0x4b5   :  { %18473 = vmatprep.subr.bf16.mxu0 %v19796_v51 }
 0x4b7   :  { %18452 = vmatpush3.bf16.msra.mxu1 %v19797_v52 }
 0x4b8   :  { %18474 = vmatpush3.bf16.msra.mxu0 %v19798_v53  ;;  %18453 = vmatprep.subr.bf16.mxu1 %v19799_v17 }
 0x4b9   :  { %18475 = vmatprep.subr.bf16.mxu0 %v19800_v18 }
 0x4bb   :  { %18454 = vmatpush3.bf16.msra.mxu1 %v19801_v54 }
 0x4bc   :  { %18476 = vmatpush3.bf16.msra.mxu0 %v19802_v55  ;;  %18455 = vmatprep.subr.bf16.mxu1 %v19803_v56 }
 0x4bd   :  { %18477 = vmatprep.subr.bf16.mxu0 %v19804_v57 }
 0x4bf   :  { %18456 = vmatpush3.bf16.msra.mxu1 %v19805_v60 }
 0x4c0   :  { %18478 = vmatpush3.bf16.msra.mxu0 %v19806_v63  ;;  %18457 = vmatprep.subr.bf16.mxu1 %v19807_v0 }
 0x4c1   :  { %18479 = vmatprep.subr.bf16.mxu0 %v19808_v30 }
 0x4c3   :  { %18458 = vmatpush3.bf16.msra.mxu1 %v19809_v5 }
 0x4c4   :  { %18480 = vmatpush3.bf16.msra.mxu0 %v19810_v45 }
 0x4c5   :  { %19461 = vmatprep.subr.bf16.mxu0 %v20679_v6 }
 0x4c6   :  { %2361 = vmatmul.mubr.bf16.vlgmr.msra.gmra.mxu1 %v1303_v27 }
 0x4c7   :  { %2402 = vmatmul.mubr.bf16.vlgmr.msra.gmra.mxu0 %v1305_v29  ;;  %2551 = vmatprep.mubr.bf16.mxu1 %v20678_v2 }
 0x4c8   :  { %19465 = vmatprep.mubr.msk.bf16.mxu0 %vm20680_vm0, %v20679_v6 }
 0x526   :  { %v18327_v10 = vpop.f32.mrf.mxu1  ;;  %v18349_v11 = vpop.f32.mrf.mxu0 }
 0x528   :  { %v18328_v15 = vpop.f32.mrf.mxu1  ;;  %v18350_v16 = vpop.f32.mrf.mxu0 }
 0x529   :  { %v18329_v39 = vadd.f32 %v18328_v15, %v18327_v10  ;;  %v18351_v47 = vadd.f32 %v18350_v16, %v18349_v11 }
 0x52a   :  { %v18330_v19 = vpop.f32.mrf.mxu1  ;;  %v18352_v20 = vpop.f32.mrf.mxu0 }
 0x52b   :  { %v2117_v44 = vadd.f32 %v18329_v39, %v15596_v40 }
 0x52c   :  { %v18331_v25 = vpop.f32.mrf.mxu1  ;;  %v18353_v12 = vpop.f32.mrf.mxu0 }
 0x52d   :  { %v18332_v37 = vadd.f32 %v18331_v25, %v18330_v19  ;;  %v2158_v51 = vadd.f32 %v18351_v47, %v2117_v44  ;;  %v18354_v18 = vadd.f32 %v18353_v12, %v18352_v20 }
 0x52f   :  { %v2120_v52 = vadd.f32 %v18332_v37, %v15596_v40 }
 0x531   :  { %v2161_v56 = vadd.f32 %v18354_v18, %v2120_v52  ;;  %v19813_v52 = vld [vmem:[%s25024_s1 + $0x4c] ss:$12 sps:$4 sm:$0xff]  }
 0x532   :  { %2531 = vmatprep.subr.bf16.mxu1 %v19813_v52  ;;  %v19818_v18 = vld [vmem:[%s25024_s1 + $0x38] ss:$12 sps:$4 sm:$0xff]  }
 0x546   :  { %v18371_v26 = vpop.f32.mrf.mxu1  ;;  %v18393_v28 = vpop.f32.mrf.mxu0 }
 0x548   :  { %v18372_v31 = vpop.f32.mrf.mxu1  ;;  %v18394_v34 = vpop.f32.mrf.mxu0 }
 0x549   :  { %v18373_v48 = vadd.f32 %v18372_v31, %v18371_v26  ;;  %v18395_v57 = vadd.f32 %v18394_v34, %v18393_v28 }
 0x54a   :  { %v18374_v35 = vpop.f32.mrf.mxu1  ;;  %v18396_v36 = vpop.f32.mrf.mxu0 }
 0x54b   :  { %v2199_v54 = vadd.f32 %v18373_v48, %v2158_v51 }
 0x54c   :  { %v18375_v50 = vpop.f32.mrf.mxu1  ;;  %v18397_v42 = vpop.f32.mrf.mxu0 }
 0x54d   :  { %v18376_v55 = vadd.f32 %v18375_v50, %v18374_v35  ;;  %v2240_v61 = vadd.f32 %v18395_v57, %v2199_v54  ;;  %v18398_v0 = vadd.f32 %v18397_v42, %v18396_v36  ;;  %v19815_v54 = vld [vmem:[%s25024_s1 + $0x30] ss:$12 sps:$4 sm:$0xff]  }
 0x54f   :  { %v2202_v63 = vadd.f32 %v18376_v55, %v2161_v56 }
 0x551   :  { %v2243_v5 = vadd.f32 %v18398_v0, %v2202_v63  ;;  %v15725_v0 = vld [vmem:[%s25034_s11] ss:$0 sm:$0xff] }
 0x566   :  { %v18415_v41 = vpop.f32.mrf.mxu1 }
 0x567   :  { %v18437_v46 = vpop.f32.mrf.mxu0 }
 0x568   :  { %v18416_v38 = vpop.f32.mrf.mxu1 }
 0x569   :  { %v18438_v53 = vpop.f32.mrf.mxu0  ;;  %v18417_v23 = vadd.f32 %v18416_v38, %v18415_v41 }
 0x56a   :  { %v18418_v17 = vpop.f32.mrf.mxu1  ;;  %v18439_v1 = vadd.f32 %v18438_v53, %v18437_v46  ;;  %v19814_v53 = vld [vmem:[%s25024_s1 + $0x50] ss:$12 sps:$4 sm:$0xff]  }
 0x56b   :  { %v18440_v59 = vpop.f32.mrf.mxu0  ;;  %v2281_v24 = vadd.f32 %v18417_v23, %v2240_v61  ;;  %19462 = vmatpush3.bf16.msra.mxu0 %v19814_v53 }
 0x56c   :  { %v18419_v60 = vpop.f32.mrf.mxu1  ;;  %19463 = vmatprep.subr.bf16.mxu0 %v20679_v6 }
 0x56d   :  { %v18420_v30 = vadd.f32 %v18419_v60, %v18418_v17  ;;  %v18441_v4 = vpop.f32.mrf.mxu0  ;;  %v2322_v3 = vadd.f32 %v18439_v1, %v2281_v24  ;;  %v19817_v17 = vld [vmem:[%s25024_s1 + $0x34] ss:$12 sps:$4 sm:$0xff]  }
 0x56e   :  { %v18442_v11 = vadd.f32 %v18441_v4, %v18440_v59 }
 0x56f   :  { %v2284_v8 = vadd.f32 %v18420_v30, %v2243_v5  ;;  %19464 = vmatpush3.bf16.msra.mxu0 %v19818_v18 }
 0x571   :  { %v2325_v25 = vadd.f32 %v18442_v11, %v2284_v8 }
 0x586   :  { %v18459_v43 = vpop.f32.mrf.mxu1 }
 0x587   :  { %v18481_v45 = vpop.f32.mrf.mxu0 }
 0x588   :  { %v18460_v7 = vpop.f32.mrf.mxu1 }
 0x589   :  { %v18461_v27 = vadd.f32 %v18460_v7, %v18459_v43  ;;  %v18482_v29 = vpop.f32.mrf.mxu0  ;;  %v15726_v43 = vld [vmem:[%s25035_s12] ss:$0 sm:$0xff] }
 0x58a   :  { %v18462_v10 = vpop.f32.mrf.mxu1  ;;  %v18483_v16 = vadd.f32 %v18482_v29, %v18481_v45 }
 0x58b   :  { %v2363_v15 = vadd.f32 %v18461_v27, %v2322_v3  ;;  %v18484_v19 = vpop.f32.mrf.mxu0  ;;  %v15735_v3 = vld [vmem:[%s25025_s2 + $0x3] sm:$0x7] }
 0x58c   :  { %v18463_v20 = vpop.f32.mrf.mxu1  ;;  %v2472_v8 = vrot.slane %v15735_v3, %v20800_v13  ;;  %v2476_v27 = vrot.slane %v15735_v3, %v20803_v14 }
 0x58d   :  { %v2404_v26 = vadd.f32 %v18483_v16, %v2363_v15  ;;  %v18464_v12 = vadd.f32 %v18463_v20, %v18462_v10  ;;  %v18485_v28 = vpop.f32.mrf.mxu0 }
 0x58e   :  { %v18486_v34 = vadd.f32 %v18485_v28, %v18484_v19 }
 0x58f   :  { %v2366_v31 = vadd.f32 %v18464_v12, %v2325_v25  ;;  %v2410_v35 = vadd.f32 %v2404_v26, %v20899_v32 }
 0x591   :  { %v2407_v36 = vadd.f32 %v18486_v34, %v2366_v31  ;;  %v2414_v50 = vsel %vm112_vm1, %v2410_v35, 0.0 }
 0x592   :  { %2415 = vadd.xlane.f32.xlu0 %v2414_v50 }
 0x593   :  { %v2411_v39 = vadd.f32 %v2407_v36, %v20901_v33  ;;  %v19811_v33 = vld [vmem:[%s25024_s1 + $0x48] ss:$12 sps:$4 sm:$0xff]  }
 0x594   :  { %2532 = vmatpush1.bf16.msra.mxu1 %v19811_v33 }
 0x595   :  { %v2417_v40 = vsel %vm112_vm1, %v2411_v39, 0.0  ;;  %2533 = vmatprep.subr.bf16.mxu1 %v19817_v17 }
 0x596   :  { %2418 = vadd.xlane.f32.xlu1 %v2417_v40 }
 0x598   :  { %2534 = vmatpush1.bf16.msra.mxu1 %v19815_v54 }
 0x599   :  { %19469 = vmatprep.subr.bf16.mxu1 %v20679_v6 }
 0x61b   :  { %v2416_v41 = vpop.xlane.xlu0 %2415 }
 0x61c   :  { %v2420_v42 = vmul.f32 0.03125, %v2416_v41 }
 0x61e   :  { %v2422_v44 = vsub.f32 %v2410_v35, %v2420_v42 }
 0x61f   :  { %v2419_v37 = vpop.xlane.xlu1 %2418 }
 0x620   :  { %v2421_v46 = vmul.f32 0.03125, %v2419_v37  ;;  %v2424_v38 = vmul.f32 %v2422_v44, %v2422_v44  ;;  %v19820_v37 = vld [vmem:[%s25026_s3 + $0x10] sm:$0xff]  }
 0x622   :  { %v2423_v47 = vsub.f32 %v2411_v39, %v2421_v46  ;;  %v2426_v48 = vsel %vm112_vm1, %v2424_v38, 0.0 }
 0x623   :  { %2427 = vadd.xlane.f32.xlu0 %v2426_v48 }
 0x624   :  { %v2425_v32 = vmul.f32 %v2423_v47, %v2423_v47 }
 0x626   :  { %v2429_v51 = vsel %vm112_vm1, %v2425_v32, 0.0 }
 0x627   :  { %2430 = vadd.xlane.f32.xlu1 %v2429_v51 }
 0x6ac   :  { %v2428_v55 = vpop.xlane.xlu0 %2427 }
 0x6ad   :  { %v2432_v56 = vmul.f32 0.03125, %v2428_v55 }
 0x6af   :  { %v2434_v57 = vadd.f32 1e-05, %v2432_v56 }
 0x6b0   :  { %v2431_v23 = vpop.xlane.xlu1 %2430 }
 0x6b1   :  { %20549 = vrsqrt.f32 %v2434_v57  ;;  %v2433_v59 = vmul.f32 0.03125, %v2431_v23 }
 0x6b3   :  { %v2435_v60 = vadd.f32 1e-05, %v2433_v59 }
 0x6b5   :  { %20551 = vrsqrt.f32 %v2435_v60 }
 0x6be   :  { %v20550_v61 = vpop.eup %20549 }
 0x6bf   :  { %v2438_v63 = vmul.f32 %v20550_v61, %v2422_v44  ;;  %v19819_v44 = vld [vmem:[%s25026_s3 + $0x18] sm:$0xff]  }
 0x6c1   :  { %v2446_v4 = vmul.f32 %v15725_v0, %v2438_v63 }
 0x6c2   :  { %v20552_v24 = vpop.eup %20551 }
 0x6c3   :  { %v2439_v30 = vmul.f32 %v20552_v24, %v2423_v47  ;;  %v21493_v1 = vadd.f32 %v15726_v43, %v2446_v4 }
 0x6c5   :  { %v2447_v5 = vmul.f32 %v15725_v0, %v2439_v30 }
 0x6c7   :  { %v21495_v45 = vadd.f32 %v15726_v43, %v2447_v5  ;;  %v2480_v43 = vrot.slane %v15735_v3, %v20822_v58 }
 0x6c9   :  { %v2465_v7 = vpack.c.bf16 %v21495_v45, %v21493_v1 }
 0x6cb   :  { %15742 = vmatmul.mubr.msk.bf16.vlgmr.msra.gmra.mxu1 %vm112_vm1, %v2465_v7  ;;  %19466 = vmatmul.mubr.msk.bf16.vlgmr.msra.gmra.mxu0 %vm112_vm1, %v2465_v7 }
 0x6cc   :  { %19473 = vmatprep.mubr.msk.bf16.mxu1 %vm20680_vm0, %v20679_v6  ;;  %3099 = vmatprep.mubr.bf16.mxu0 %v20678_v2 }
 0x6cd   :  { %19470 = vmatpush3.bf16.msra.mxu1 %v19819_v44 }
 0x6ce   :  { %19471 = vmatprep.subr.bf16.mxu1 %v20679_v6 }
 0x6d1   :  { %19472 = vmatpush3.bf16.msra.mxu1 %v19820_v37 }
 0x78b   :  { %v2553_v29 = vpop.f32.mrf.mxu1  ;;  %v2596_v10 = vpop.f32.mrf.mxu0 }
 0x78c   :  { %v2554_v16 = vadd.f32 %v2553_v29, %v2472_v8  ;;  %v2597_v7 = vadd.f32 %v2596_v10, %v2480_v43  ;;  %v15749_v10 = vld [vmem:[%s25027_s4 + $0x1] ss:$0 sm:$0xff] }
 0x78d   :  { %v2555_v11 = vpop.f32.mrf.mxu1  ;;  %v19467_v15 = vpop.f32.mrf.mxu0 }
 0x78e   :  { %v2556_v19 = vadd.f32 %v2555_v11, %v2476_v27 }
 0x78f   :  { %v2557_v20 = vpop.f32.mrf.mxu1  ;;  %v2599_v25 = vpop.f32.mrf.mxu0 }
 0x790   :  { %v2558_v26 = vadd.f32 %v2557_v20, %v2472_v8  ;;  %v2615_v12 = vmul.f32 %v2556_v19, %v2554_v16  ;;  %v2600_v8 = vadd.f32 %v2599_v25, %v2480_v43 }
 0x791   :  { %v2559_v28 = vpop.f32.mrf.mxu1  ;;  %v19468_v31 = vpop.f32.mrf.mxu0 }
 0x792   :  { %v2560_v34 = vadd.f32 %v2559_v28, %v2476_v27  ;;  %v2616_v35 = vsel %vm112_vm1, %v2615_v12, 0.0  ;;  %v2640_v36 = vmul.f32 %v2558_v26, %v2556_v19 }
 0x793   :  { %2617 = vadd.xlane.f32.xlu0 %v2616_v35 }
 0x794   :  { %v2620_v50 = vmul.f32 %v2560_v34, %v2554_v16  ;;  %v2641_v40 = vsel %vm112_vm1, %v2640_v36, 0.0  ;;  %v2645_v41 = vmul.f32 %v2560_v34, %v2558_v26 }
 0x796   :  { %v2621_v39 = vsel %vm112_vm1, %v2620_v50, 0.0  ;;  %v2646_v42 = vsel %vm112_vm1, %v2645_v41, 0.0 }
 0x797   :  { %2622 = vadd.xlane.f32.xlu1 %v2621_v39  ;;  %2642 = vadd.xlane.f32.xlu0 %v2641_v40 }
 0x79b   :  { %2647 = vadd.xlane.f32.xlu1 %v2646_v42 }
 0x81c   :  { %v2618_v46 = vpop.xlane.xlu0 %2617 }
 0x81d   :  { %v2619_v47 = vmul.f32 0.17677669, %v2618_v46 }
 0x820   :  { %v2623_v38 = vpop.xlane.xlu1 %2622  ;;  %v2643_v32 = vpop.xlane.xlu0 %2642 }
 0x821   :  { %v2624_v48 = vmul.f32 0.17677669, %v2623_v38  ;;  %v2644_v17 = vmul.f32 0.17677669, %v2643_v32 }
 0x823   :  { %v2625_v51 = vmax.f32 %v2619_v47, %v2624_v48 }
 0x824   :  { %v2648_v33 = vpop.xlane.xlu1 %2647 }
 0x825   :  { %v2626_v52 = vsub.f32 %v2619_v47, %v2625_v51  ;;  %v2629_v53 = vsub.f32 %v2624_v48, %v2625_v51  ;;  %v2649_v18 = vmul.f32 0.17677669, %v2648_v33 }
 0x827   :  { %v2627_v54 = vmul.f32 1.442695, %v2626_v52  ;;  %v2630_v55 = vmul.f32 1.442695, %v2629_v53  ;;  %v2650_v56 = vmax.f32 %v2644_v17, %v2649_v18 }
 0x829   :  { %20553 = vpow2.f32 %v2627_v54  ;;  %v2651_v57 = vsub.f32 %v2644_v17, %v2650_v56  ;;  %v2654_v23 = vsub.f32 %v2649_v18, %v2650_v56  ;;  %v15781_v18 = vld [vmem:[%s25030_s7 + $0x1c0] sm:$0xff]  ;;  %v15774_v54 = vld [vmem:[%s25030_s7 + $0x188] sm:$0xff] }
 0x82a   :  { %20555 = vpow2.f32 %v2630_v55  ;;  %v15782_v56 = vld [vmem:[%s25030_s7 + $0x1c8] sm:$0xff] }
 0x82b   :  { %v2652_v59 = vmul.f32 1.442695, %v2651_v57  ;;  %v2655_v60 = vmul.f32 1.442695, %v2654_v23  ;;  %v15809_v23 = vcombine.low %v15774_v54, %v15782_v56 }
 0x82d   :  { %20557 = vpow2.f32 %v2652_v59  ;;  %v15810_v59 = vcombine.high %v15774_v54, %v15782_v56  ;;  %v15769_v54 = vld [vmem:[%s25030_s7 + $0x160] sm:$0xff]  ;;  %v15770_v56 = vld [vmem:[%s25030_s7 + $0x168] sm:$0xff] }
 0x82e   :  { %20559 = vpow2.f32 %v2655_v60  ;;  %v15757_v60 = vld [vmem:[%s25030_s7 + $0x100] sm:$0xff] }
 0x82f   :  { %3122 = vmatprep.subr.bf16.mxu1 %v15810_v59 }
 0x836   :  { %v20554_v61 = vpop.eup %20553 }
 0x837   :  { %v20556_v63 = vpop.eup %20555 }
 0x838   :  { %v2632_v0 = vadd.f32 %v20556_v63, %v20554_v61 }
 0x83a   :  { %v20558_v24 = vpop.eup %20557  ;;  %20561 = vrcp.f32 %v2632_v0 }
 0x83b   :  { %v20560_v30 = vpop.eup %20559 }
 0x83c   :  { %v2657_v4 = vadd.f32 %v20560_v30, %v20558_v24 }
 0x83e   :  { %20563 = vrcp.f32 %v2657_v4 }
 0x847   :  { %v20562_v5 = vpop.eup %20561 }
 0x848   :  { %v2634_v27 = vmul.f32 %v20562_v5, %v20554_v61  ;;  %v2636_v29 = vmul.f32 %v20562_v5, %v20556_v63  ;;  %v15765_v61 = vld [vmem:[%s25030_s7 + $0x140] sm:$0xff]  ;;  %v15758_v63 = vld [vmem:[%s25030_s7 + $0x108] sm:$0xff]  ;;  %v15775_v5 = vld [vmem:[%s25030_s7 + $0x190] sm:$0xff] }
 0x849   :  { %v15792_v0 = vcombine.high %v15757_v60, %v15765_v61 }
 0x84a   :  { %v2635_v11 = vmul.f32 %v2634_v27, %v2597_v7  ;;  %v2637_v15 = vmul.f32 %v2636_v29, %v2600_v8  ;;  %v15784_v29 = vld [vmem:[%s25030_s7 + $0x1d8] sm:$0xff] }
 0x84b   :  { %v20564_v16 = vpop.eup %20563 }
 0x84c   :  { %v2638_v19 = vadd.f32 %v2637_v15, %v2635_v11  ;;  %v2659_v20 = vmul.f32 %v20564_v16, %v20558_v24  ;;  %v2661_v26 = vmul.f32 %v20564_v16, %v20560_v30  ;;  %v15766_v24 = vld [vmem:[%s25030_s7 + $0x148] sm:$0xff]  ;;  %v15791_v30 = vcombine.low %v15757_v60, %v15765_v61  ;;  %v15779_v61 = vld [vmem:[%s25030_s7 + $0x1b0] sm:$0xff] }
 0x84d   :  { %v15793_v4 = vcombine.low %v15758_v63, %v15766_v24  ;;  %v15794_v43 = vcombine.high %v15758_v63, %v15766_v24  ;;  %v15787_v63 = vld [vmem:[%s25030_s7 + $0x1f0] sm:$0xff]  ;;  %v15788_v24 = vld [vmem:[%s25030_s7 + $0x1f8] sm:$0xff] }
 0x84e   :  { %2639 = vst.msk [vmem:[#allocation2] sm:$0xff] %vm112_vm1, %v2638_v19  ;;  %v2660_v12 = vmul.f32 %v2659_v20, %v2597_v7  ;;  %v2662_v28 = vmul.f32 %v2661_v26, %v2600_v8  ;;  %v15783_v7 = vld [vmem:[%s25030_s7 + $0x1d0] sm:$0xff]  ;;  %v15776_v8 = vld [vmem:[%s25030_s7 + $0x198] sm:$0xff] }
 0x84f   :  { %v15812_v27 = vcombine.high %v15775_v5, %v15783_v7  ;;  %v15811_v11 = vcombine.low %v15775_v5, %v15783_v7  ;;  %v15813_v15 = vcombine.low %v15776_v8, %v15784_v29  ;;  %v15814_v16 = vcombine.high %v15776_v8, %v15784_v29  ;;  %v15763_v7 = vld [vmem:[%s25030_s7 + $0x130] sm:$0xff]  ;;  %v15772_v29 = vld [vmem:[%s25030_s7 + $0x178] sm:$0xff] }
 0x850   :  { %v2663_v31 = vadd.f32 %v2662_v28, %v2660_v12  ;;  %v15771_v8 = vld [vmem:[%s25030_s7 + $0x170] sm:$0xff] }
 0x852   :  { %2664 = vst.msk [vmem:[#allocation2 + $0x8] sm:$0xff] %vm112_vm1, %v2663_v31 }
 0x855   :  { %v2665_v34 = vld [vmem:[#allocation2] sm:$0xff] }
 0x859   :  { %v2666_v3 = vld [vmem:[#allocation2 + $0x8] sm:$0xff] }
 0x85a   :  { %v2672_v35 = vpack.c.bf16 %v2666_v3, %v2665_v34 }
 0x85c   :  { %19474 = vmatmul.mubr.msk.bf16.vlgmr.msra.gmra.mxu1 %vm112_vm1, %v2672_v35  ;;  %v15755_v35 = vld [vmem:[%s25028_s5 + $0x1] ss:$0 sm:$0xff] }
 0x85d   :  { %3142 = vmatprep.mubr.bf16.mxu1 %v20678_v2  ;;  %3123 = vmatpush1.bf16.msra.mxu1 %v15809_v23 }
 0x85e   :  { %3124 = vmatprep.subr.bf16.mxu1 %v15794_v43  ;;  %v15820_v43 = vcombine.high %v15779_v61, %v15787_v63 }
 0x861   :  { %3125 = vmatpush1.bf16.msra.mxu1 %v15793_v4 }
 0x862   :  { %3208 = vmatprep.subr.bf16.mxu1 %v15814_v16  ;;  %v15804_v16 = vcombine.high %v15763_v7, %v15771_v8 }
 0x91c   :  { %v2730_v25 = vpop.f32.mrf.mxu1 }
 0x91d   :  { %v2731_v36 = vadd.f32 %v15749_v10, %v2730_v25 }
 0x91e   :  { %v19475_v50 = vpop.f32.mrf.mxu1 }
 0x91f   :  { %v2737_v39 = vadd.f32 %v2731_v36, %v21493_v1  ;;  %v15756_v50 = vld [vmem:[%s25029_s6 + $0x1] ss:$0 sm:$0xff] }
 0x920   :  { %v2733_v40 = vpop.f32.mrf.mxu1 }
 0x921   :  { %v2734_v41 = vadd.f32 %v15749_v10, %v2733_v40  ;;  %v2743_v42 = vsel %vm112_vm1, %v2737_v39, 0.0  ;;  %v15759_v40 = vld [vmem:[%s25030_s7 + $0x110] sm:$0xff] }
 0x922   :  { %2744 = vadd.xlane.f32.xlu0 %v2743_v42  ;;  %v19476_v44 = vpop.f32.mrf.mxu1  ;;  %v15760_v42 = vld [vmem:[%s25030_s7 + $0x118] sm:$0xff] }
 0x923   :  { %v2738_v37 = vadd.f32 %v2734_v41, %v21495_v45  ;;  %v15773_v45 = vld [vmem:[%s25030_s7 + $0x180] sm:$0xff]  ;;  %v15767_v41 = vld [vmem:[%s25030_s7 + $0x150] sm:$0xff]  ;;  %v15768_v44 = vld [vmem:[%s25030_s7 + $0x158] sm:$0xff] }
 0x924   :  { %v15808_v55 = vcombine.high %v15773_v45, %v15781_v18  ;;  %v15807_v57 = vcombine.low %v15773_v45, %v15781_v18  ;;  %v15761_v18 = vld [vmem:[%s25030_s7 + $0x120] sm:$0xff] }
 0x925   :  { %v2746_v46 = vsel %vm112_vm1, %v2738_v37, 0.0  ;;  %v15800_v59 = vcombine.high %v15761_v18, %v15769_v54 }
 0x926   :  { %2747 = vadd.xlane.f32.xlu1 %v2746_v46  ;;  %3079 = vmatprep.subr.bf16.mxu0 %v15808_v55  ;;  %v15762_v55 = vld [vmem:[%s25030_s7 + $0x128] sm:$0xff] }
 0x927   :  { %3080 = vmatpush1.bf16.msra.mxu0 %v15807_v57  ;;  %v15802_v60 = vcombine.high %v15762_v55, %v15770_v56  ;;  %v15801_v4 = vcombine.low %v15762_v55, %v15770_v56  ;;  %v19849_v55 = vld [vmem:[%s25032_s9 + $0x440] sm:$0xff]  }
 0x928   :  { %3081 = vmatprep.subr.bf16.mxu0 %v15792_v0  ;;  %v15780_v0 = vld [vmem:[%s25030_s7 + $0x1b8] sm:$0xff]  ;;  %v19850_v56 = vld [vmem:[%s25032_s9 + $0x4c0] sm:$0xff]  }
 0x929   :  { %v15822_v5 = vcombine.high %v15780_v0, %v15788_v24 }
 0x92b   :  { %3082 = vmatpush1.bf16.msra.mxu0 %v15791_v30  ;;  %v15799_v30 = vcombine.low %v15761_v18, %v15769_v54  ;;  %v19847_v18 = vld [vmem:[%s25032_s9 + $0x408] sm:$0xff]  }
 0x92c   :  { %3165 = vmatprep.subr.bf16.mxu0 %v15812_v27  ;;  %v15764_v27 = vld [vmem:[%s25030_s7 + $0x138] sm:$0xff]  ;;  %v19848_v54 = vld [vmem:[%s25032_s9 + $0x488] sm:$0xff]  }
 0x9ab   :  { %v2745_v38 = vpop.xlane.xlu0 %2744 }
 0x9ac   :  { %v2749_v47 = vmul.f32 0.03125, %v2745_v38 }
 0x9ae   :  { %v2751_v48 = vsub.f32 %v2737_v39, %v2749_v47  ;;  %v15796_v47 = vcombine.high %v15759_v40, %v15767_v41 }
 0x9af   :  { %v2748_v32 = vpop.xlane.xlu1 %2747 }
 0x9b0   :  { %v2750_v51 = vmul.f32 0.03125, %v2748_v32  ;;  %v2753_v33 = vmul.f32 %v2751_v48, %v2751_v48  ;;  %v15777_v32 = vld [vmem:[%s25030_s7 + $0x1a0] sm:$0xff] }
 0x9b2   :  { %v2752_v52 = vsub.f32 %v2738_v37, %v2750_v51  ;;  %v2755_v1 = vsel %vm112_vm1, %v2753_v33, 0.0  ;;  %v15785_v51 = vld [vmem:[%s25030_s7 + $0x1e0] sm:$0xff]  ;;  %v15778_v33 = vld [vmem:[%s25030_s7 + $0x1a8] sm:$0xff] }
 0x9b3   :  { %2756 = vadd.xlane.f32.xlu0 %v2755_v1  ;;  %v15795_v1 = vcombine.low %v15759_v40, %v15767_v41  ;;  %v15815_v57 = vcombine.low %v15777_v32, %v15785_v51  ;;  %v19832_v40 = vld [vmem:[%s25032_s9 + $0x4a8] sm:$0xff]   ;;  %v19833_v41 = vld [vmem:[%s25032_s9 + $0x460] sm:$0xff]  }
 0x9b4   :  { %v2754_v53 = vmul.f32 %v2752_v52, %v2752_v52 }
 0x9b6   :  { %v2758_v17 = vsel %vm112_vm1, %v2754_v53, 0.0  ;;  %v15797_v53 = vcombine.low %v15760_v42, %v15768_v44 }
 0x9b7   :  { %2759 = vadd.xlane.f32.xlu1 %v2758_v17  ;;  %v15816_v17 = vcombine.high %v15777_v32, %v15785_v51  ;;  %v19839_v32 = vld [vmem:[%s25032_s9 + $0x418] sm:$0xff]  }
 0x9b8   :  { %v19840_v51 = vld [vmem:[%s25032_s9 + $0x498] sm:$0xff]  }
 0xa3c   :  { %v2757_v19 = vpop.xlane.xlu0 %2756 }
 0xa3d   :  { %v2761_v20 = vmul.f32 0.03125, %v2757_v19  ;;  %v15806_v19 = vcombine.high %v15764_v27, %v15772_v29 }
 0xa3f   :  { %v2763_v26 = vadd.f32 1e-05, %v2761_v20  ;;  %v15803_v20 = vcombine.low %v15763_v7, %v15771_v8 }
 0xa40   :  { %v2760_v12 = vpop.xlane.xlu1 %2759 }
 0xa41   :  { %20565 = vrsqrt.f32 %v2763_v26  ;;  %v2762_v28 = vmul.f32 0.03125, %v2760_v12  ;;  %v15805_v26 = vcombine.low %v15764_v27, %v15772_v29  ;;  %v19821_v12 = vld [vmem:[%s25032_s9 + $0x478] sm:$0xff]  }
 0xa43   :  { %v2764_v31 = vadd.f32 1e-05, %v2762_v28  ;;  %v19822_v28 = vld [vmem:[%s25032_s9 + $0x4f8] sm:$0xff]  }
 0xa45   :  { %20567 = vrsqrt.f32 %v2764_v31  ;;  %v19823_v31 = vld [vmem:[%s25032_s9 + $0x438] sm:$0xff]  }
 0xa4e   :  { %v20566_v34 = vpop.eup %20565 }
 0xa4f   :  { %v2767_v3 = vmul.f32 %v20566_v34, %v2751_v48  ;;  %v15798_v48 = vcombine.high %v15760_v42, %v15768_v44  ;;  %v19824_v34 = vld [vmem:[%s25032_s9 + $0x4b8] sm:$0xff]   ;;  %v19834_v42 = vld [vmem:[%s25032_s9 + $0x4e0] sm:$0xff]  }
 0xa50   :  { %v19835_v44 = vld [vmem:[%s25032_s9 + $0x420] sm:$0xff]  }
 0xa51   :  { %v2775_v25 = vmul.f32 %v15755_v35, %v2767_v3  ;;  %v19825_v3 = vld [vmem:[%s25032_s9 + $0x470] sm:$0xff]  }
 0xa52   :  { %v20568_v10 = vpop.eup %20567 }
 0xa53   :  { %v2768_v36 = vmul.f32 %v20568_v10, %v2752_v52  ;;  %v21588_v37 = vadd.f32 %v15756_v50, %v2775_v25  ;;  %v15786_v52 = vld [vmem:[%s25030_s7 + $0x1e8] sm:$0xff]  ;;  %v19827_v10 = vld [vmem:[%s25032_s9 + $0x430] sm:$0xff]  }
 0xa54   :  { %v15818_v45 = vcombine.high %v15778_v33, %v15786_v52  ;;  %v15817_v23 = vcombine.low %v15778_v33, %v15786_v52  ;;  %v19828_v25 = vld [vmem:[%s25032_s9 + $0x4b0] sm:$0xff]  }
 0xa55   :  { %v2776_v39 = vmul.f32 %v15755_v35, %v2768_v36  ;;  %v19826_v35 = vld [vmem:[%s25032_s9 + $0x4f0] sm:$0xff]   ;;  %v19829_v36 = vld [vmem:[%s25032_s9 + $0x468] sm:$0xff]  }
 0xa56   :  { %v19841_v33 = vld [vmem:[%s25032_s9 + $0x450] sm:$0xff]  }
 0xa57   :  { %v21590_v46 = vadd.f32 %v15756_v50, %v2776_v39  ;;  %v19830_v50 = vld [vmem:[%s25032_s9 + $0x4e8] sm:$0xff]   ;;  %v19842_v52 = vld [vmem:[%s25032_s9 + $0x4d0] sm:$0xff]  }
 0xa58   :  { %v19831_v39 = vld [vmem:[%s25032_s9 + $0x428] sm:$0xff]  }
 0xa59   :  { %v21594_v38 = vpack.c.bf16 %v21590_v46, %v21588_v37 }
 0xa5b   :  { %15823 = vmatmul.mubr.msk.bf16.vlgmr.msra.gmra.mxu0 %vm112_vm1, %v21594_v38  ;;  %15824 = vmatmul.mubr.msk.bf16.vlgmr.msra.gmra.mxu1 %vm112_vm1, %v21594_v38 }
 0xa5c   :  { %3166 = vmatpush1.bf16.msra.mxu0 %v15811_v11  ;;  %3209 = vmatpush1.bf16.msra.mxu1 %v15813_v15  ;;  %v15819_v11 = vcombine.low %v15779_v61, %v15787_v63  ;;  %v15821_v15 = vcombine.low %v15780_v0, %v15788_v24  ;;  %v21771_v61 = vld [vmem:[%s25031_s8 + $0x10] sm:$0xff] }
 0xa5d   :  { %3167 = vmatprep.subr.bf16.mxu0 %v15796_v47  ;;  %3210 = vmatprep.subr.bf16.mxu1 %v15798_v48  ;;  %v19837_v47 = vld [vmem:[%s25032_s9 + $0x458] sm:$0xff]   ;;  %v2831_v24 = vrot.slane %v21771_v61, %v20803_v14 }
 0xa5e   :  { %3185 = vmatprep.mubr.bf16.mxu0 %v20678_v2  ;;  %3228 = vmatprep.mubr.bf16.mxu1 %v20678_v2  ;;  %v19838_v48 = vld [vmem:[%s25032_s9 + $0x4d8] sm:$0xff]  }
 0xa60   :  { %3168 = vmatpush1.bf16.msra.mxu0 %v15795_v1  ;;  %3211 = vmatpush1.bf16.msra.mxu1 %v15797_v53  ;;  %v19843_v1 = vld [vmem:[%s25032_s9 + $0x410] sm:$0xff]  }
 0xa61   :  { %3251 = vmatprep.subr.bf16.mxu0 %v15816_v17  ;;  %3294 = vmatprep.subr.bf16.mxu1 %v15818_v45  ;;  %v19844_v53 = vld [vmem:[%s25032_s9 + $0x490] sm:$0xff]   ;;  %v19845_v17 = vld [vmem:[%s25032_s9 + $0x448] sm:$0xff]  }
 0xa62   :  { %v19846_v45 = vld [vmem:[%s25032_s9 + $0x4c8] sm:$0xff]  }
 0xa63   :  { %15825 = vmatmul.mubr.msk.bf16.vlgmr.msra.gmra.mxu0 %vm112_vm1, %v21594_v38  ;;  %15826 = vmatmul.mubr.msk.bf16.vlgmr.msra.gmra.mxu1 %vm112_vm1, %v21594_v38 }
 0xa64   :  { %3252 = vmatpush1.bf16.msra.mxu0 %v15815_v57  ;;  %3295 = vmatpush1.bf16.msra.mxu1 %v15817_v23  ;;  %v19851_v57 = vld [vmem:[%s25032_s9 + $0x400] sm:$0xff]  }
 0xa65   :  { %3253 = vmatprep.subr.bf16.mxu0 %v15800_v59  ;;  %3296 = vmatprep.subr.bf16.mxu1 %v15802_v60  ;;  %v19852_v23 = vld [vmem:[%s25032_s9 + $0x480] sm:$0xff]   ;;  %v19853_v59 = vld [vmem:[%s25032_s9 + $0x578] sm:$0xff]  }
 0xa66   :  { %3271 = vmatprep.mubr.bf16.mxu0 %v20678_v2  ;;  %3314 = vmatprep.mubr.bf16.mxu1 %v20678_v2  ;;  %v19854_v60 = vld [vmem:[%s25032_s9 + $0x5f8] sm:$0xff]  }
 0xa68   :  { %3254 = vmatpush1.bf16.msra.mxu0 %v15799_v30  ;;  %3297 = vmatpush1.bf16.msra.mxu1 %v15801_v4  ;;  %v2839_v30 = vrot.slane %v21771_v61, %v21080_v49  ;;  %v2827_v4 = vrot.slane %v21771_v61, %v20800_v13 }
 0xa69   :  { %3337 = vmatprep.subr.bf16.mxu0 %v15820_v43  ;;  %3380 = vmatprep.subr.bf16.mxu1 %v15822_v5  ;;  %v2835_v43 = vrot.slane %v21771_v61, %v20822_v58 }
 0xa6b   :  { %15827 = vmatmul.mubr.msk.bf16.vlgmr.msra.gmra.mxu0 %vm112_vm1, %v21594_v38  ;;  %15828 = vmatmul.mubr.msk.bf16.vlgmr.msra.gmra.mxu1 %vm112_vm1, %v21594_v38 }
 0xa6c   :  { %3338 = vmatpush1.bf16.msra.mxu0 %v15819_v11  ;;  %3381 = vmatpush1.bf16.msra.mxu1 %v15821_v15 }
 0xa6d   :  { %3339 = vmatprep.subr.bf16.mxu0 %v15804_v16  ;;  %3382 = vmatprep.subr.bf16.mxu1 %v15806_v19 }
 0xa6e   :  { %3357 = vmatprep.mubr.bf16.mxu0 %v20678_v2  ;;  %3400 = vmatprep.mubr.bf16.mxu1 %v20678_v2 }
 0xa70   :  { %3340 = vmatpush1.bf16.msra.mxu0 %v15803_v20  ;;  %3383 = vmatpush1.bf16.msra.mxu1 %v15805_v26 }
 0xa71   :  { %18493 = vmatprep.subr.bf16.mxu0 %v19821_v12  ;;  %18515 = vmatprep.subr.bf16.mxu1 %v19822_v28 }
 0xa73   :  { %15829 = vmatmul.mubr.msk.bf16.vlgmr.msra.gmra.mxu0 %vm112_vm1, %v21594_v38  ;;  %15830 = vmatmul.mubr.msk.bf16.vlgmr.msra.gmra.mxu1 %vm112_vm1, %v21594_v38  ;;  %v19836_v38 = vld [vmem:[%s25032_s9 + $0x4a0] sm:$0xff]  }
 0xa74   :  { %18494 = vmatpush3.bf16.msra.mxu0 %v19823_v31  ;;  %18516 = vmatpush3.bf16.msra.mxu1 %v19824_v34 }
 0xa75   :  { %18495 = vmatprep.subr.bf16.mxu0 %v19825_v3  ;;  %18517 = vmatprep.subr.bf16.mxu1 %v19826_v35 }
 0xa78   :  { %18496 = vmatpush3.bf16.msra.mxu0 %v19827_v10  ;;  %18518 = vmatpush3.bf16.msra.mxu1 %v19828_v25  ;;  %v2847_v25 = vrot.slane %v21771_v61, %v21096_v62 }
 0xa79   :  { %18497 = vmatprep.subr.bf16.mxu0 %v19829_v36  ;;  %18519 = vmatprep.subr.bf16.mxu1 %v19830_v50 }
 0xa7c   :  { %18498 = vmatpush3.bf16.msra.mxu0 %v19831_v39  ;;  %18520 = vmatpush3.bf16.msra.mxu1 %v19832_v40 }
 0xa7d   :  { %18499 = vmatprep.subr.bf16.mxu0 %v19833_v41  ;;  %18521 = vmatprep.subr.bf16.mxu1 %v19834_v42 }
 0xa80   :  { %18500 = vmatpush3.bf16.msra.mxu0 %v19835_v44  ;;  %18522 = vmatpush3.bf16.msra.mxu1 %v19836_v38  ;;  %v2855_v38 = vrot.slane %v21771_v61, %v21099_v9 }
 0xa81   :  { %18501 = vmatprep.subr.bf16.mxu0 %v19837_v47  ;;  %18523 = vmatprep.subr.bf16.mxu1 %v19838_v48 }
 0xa84   :  { %18502 = vmatpush3.bf16.msra.mxu0 %v19839_v32  ;;  %18524 = vmatpush3.bf16.msra.mxu1 %v19840_v51  ;;  %v19855_v51 = vld [vmem:[%s25032_s9 + $0x538] sm:$0xff]  }
 0xa85   :  { %18503 = vmatprep.subr.bf16.mxu0 %v19841_v33  ;;  %18525 = vmatprep.subr.bf16.mxu1 %v19842_v52  ;;  %v19856_v33 = vld [vmem:[%s25032_s9 + $0x5b8] sm:$0xff]  }
 0xa88   :  { %18504 = vmatpush3.bf16.msra.mxu0 %v19843_v1  ;;  %18526 = vmatpush3.bf16.msra.mxu1 %v19844_v53 }
 0xa89   :  { %18505 = vmatprep.subr.bf16.mxu0 %v19845_v17  ;;  %18527 = vmatprep.subr.bf16.mxu1 %v19846_v45  ;;  %v19857_v45 = vld [vmem:[%s25032_s9 + $0x570] sm:$0xff]  }
 0xa8c   :  { %18506 = vmatpush3.bf16.msra.mxu0 %v19847_v18  ;;  %18528 = vmatpush3.bf16.msra.mxu1 %v19848_v54  ;;  %v19858_v18 = vld [vmem:[%s25032_s9 + $0x5f0] sm:$0xff]  }
 0xa8d   :  { %18507 = vmatprep.subr.bf16.mxu0 %v19849_v55  ;;  %18529 = vmatprep.subr.bf16.mxu1 %v19850_v56 }
 0xa90   :  { %18508 = vmatpush3.bf16.msra.mxu0 %v19851_v57  ;;  %18530 = vmatpush3.bf16.msra.mxu1 %v19852_v23 }
 0xa91   :  { %18537 = vmatprep.subr.bf16.mxu0 %v19853_v59  ;;  %18559 = vmatprep.subr.bf16.mxu1 %v19854_v60  ;;  %v19859_v60 = vld [vmem:[%s25032_s9 + $0x530] sm:$0xff]  }
 0xb1b   :  { %v3101_v63 = vpop.f32.mrf.mxu0  ;;  %v3144_v0 = vpop.f32.mrf.mxu1 }
 0xb1c   :  { %v3102_v19 = vadd.f32 %v3101_v63, %v2827_v4  ;;  %v3145_v20 = vadd.f32 %v3144_v0, %v2835_v43  ;;  %v19860_v63 = vld [vmem:[%s25032_s9 + $0x5b0] sm:$0xff]   ;;  %v19861_v0 = vld [vmem:[%s25032_s9 + $0x568] sm:$0xff]  }
 0xb1d   :  { %v3103_v5 = vpop.f32.mrf.mxu0  ;;  %v3146_v7 = vpop.f32.mrf.mxu1 }
 0xb1e   :  { %v3104_v29 = vadd.f32 %v3103_v5, %v2831_v24  ;;  %v3147_v11 = vadd.f32 %v3146_v7, %v2839_v30  ;;  %v3411_v41 = vmax.f32 %v3102_v19, 0.0  ;;  %v3413_v42 = vmax.f32 %v3145_v20, 0.0  ;;  %v19867_v20 = vld [vmem:[%s25032_s9 + $0x520] sm:$0xff]  }
 0xb1f   :  { %v3105_v8 = vpop.f32.mrf.mxu0  ;;  %v3148_v27 = vpop.f32.mrf.mxu1 }
 0xb20   :  { %v3106_v15 = vadd.f32 %v3105_v8, %v2827_v4  ;;  %v3149_v16 = vadd.f32 %v3148_v27, %v2835_v43  ;;  %v3412_v36 = vmax.f32 %v3104_v29, 0.0  ;;  %v3414_v50 = vmax.f32 %v3147_v11, 0.0  ;;  %v19863_v8 = vld [vmem:[%s25032_s9 + $0x528] sm:$0xff]   ;;  %v19865_v11 = vld [vmem:[%s25032_s9 + $0x560] sm:$0xff]  }
 0xb21   :  { %v3107_v26 = vpop.f32.mrf.mxu0  ;;  %v3150_v12 = vpop.f32.mrf.mxu1  ;;  %v19864_v27 = vld [vmem:[%s25032_s9 + $0x5a8] sm:$0xff]  }
 0xb22   :  { %v3108_v28 = vadd.f32 %v3107_v26, %v2831_v24  ;;  %v3151_v31 = vadd.f32 %v3150_v12, %v2839_v30  ;;  %v3427_v34 = vmax.f32 %v3106_v15, 0.0  ;;  %v3429_v3 = vmax.f32 %v3149_v16, 0.0  ;;  %v19862_v24 = vld [vmem:[%s25032_s9 + $0x5e8] sm:$0xff]   ;;  %v19866_v15 = vld [vmem:[%s25032_s9 + $0x5e0] sm:$0xff]   ;;  %v19869_v12 = vld [vmem:[%s25032_s9 + $0x558] sm:$0xff]  }
 0xb23   :  { %v21781_v35 = vpop.f32.mrf.mxu0  ;;  %v21783_v10 = vpop.f32.mrf.mxu1  ;;  %v19868_v26 = vld [vmem:[%s25032_s9 + $0x5a0] sm:$0xff]  }
 0xb24   :  { %v3428_v39 = vmax.f32 %v3108_v28, 0.0  ;;  %v3430_v40 = vmax.f32 %v3151_v31, 0.0  ;;  %v3700_v52 = vpack.c.bf16 %v3427_v34, %v3411_v41  ;;  %v3702_v1 = vpack.c.bf16 %v3429_v3, %v3413_v42  ;;  %v19870_v28 = vld [vmem:[%s25032_s9 + $0x5d8] sm:$0xff]   ;;  %v19875_v41 = vld [vmem:[%s25032_s9 + $0x510] sm:$0xff]  }
 0xb25   :  { %v3189_v44 = vpop.f32.mrf.mxu0  ;;  %v3232_v47 = vpop.f32.mrf.mxu1  ;;  %v19871_v3 = vld [vmem:[%s25032_s9 + $0x518] sm:$0xff]   ;;  %v19876_v42 = vld [vmem:[%s25032_s9 + $0x590] sm:$0xff]  }
 0xb26   :  { %v3701_v48 = vpack.c.bf16 %v3428_v39, %v3412_v36  ;;  %v3703_v32 = vpack.c.bf16 %v3430_v40, %v3414_v50  ;;  %v3190_v54 = vadd.f32 %v3189_v44, %v2847_v25  ;;  %v3233_v55 = vadd.f32 %v3232_v47, %v2855_v38  ;;  %v19873_v36 = vld [vmem:[%s25032_s9 + $0x550] sm:$0xff]   ;;  %v19877_v44 = vld [vmem:[%s25032_s9 + $0x548] sm:$0xff]  }
 0xb27   :  { %v21795_v53 = vpop.f32.mrf.mxu0  ;;  %v21797_v17 = vpop.f32.mrf.mxu1  ;;  %v19874_v50 = vld [vmem:[%s25032_s9 + $0x5d0] sm:$0xff]   ;;  %v2843_v47 = vrot.slane %v21771_v61, %v21178_v21 }
 0xb28   :  { %4524 = vmatprep.mubr.bf16.mxu0 %v3701_v48  ;;  %4565 = vmatprep.mubr.bf16.mxu1 %v3703_v32  ;;  %v3416_v30 = vmax.f32 %v3190_v54, 0.0  ;;  %v3418_v5 = vmax.f32 %v3233_v55, 0.0  ;;  %v2851_v48 = vrot.slane %v21771_v61, %v21181_v22  ;;  %v21880_v32 = vld [vmem:[%s25031_s8 + $0x18] sm:$0xff]  ;;  %v19880_v61 = vld [vmem:[%s25032_s9 + $0x588] sm:$0xff]   ;;  %v19881_v55 = vld [vmem:[%s25032_s9 + $0x540] sm:$0xff]  }
 0xb29   :  { %v3193_v56 = vpop.f32.mrf.mxu0  ;;  %v3236_v57 = vpop.f32.mrf.mxu1  ;;  %4525 = vmatmul.mubr.bf16.vlgmr.msra.gmra.mxu0 %v3700_v52  ;;  %4566 = vmatmul.mubr.bf16.vlgmr.msra.gmra.mxu1 %v3702_v1  ;;  %v19879_v1 = vld [vmem:[%s25032_s9 + $0x508] sm:$0xff]   ;;  %v2871_v54 = vrot.slane %v21880_v32, %v21080_v49 }
 0xb2a   :  { %v3194_v23 = vadd.f32 %v3193_v56, %v2847_v25  ;;  %v3237_v59 = vadd.f32 %v3236_v57, %v2855_v38  ;;  %18538 = vmatpush3.bf16.msra.mxu0 %v19855_v51  ;;  %18560 = vmatpush3.bf16.msra.mxu1 %v19856_v33  ;;  %v19872_v25 = vld [vmem:[%s25032_s9 + $0x598] sm:$0xff]   ;;  %v19878_v38 = vld [vmem:[%s25032_s9 + $0x5c8] sm:$0xff]   ;;  %v2863_v33 = vrot.slane %v21880_v32, %v20803_v14  ;;  %v19882_v56 = vld [vmem:[%s25032_s9 + $0x5c0] sm:$0xff]  }
 0xb2b   :  { %18539 = vmatprep.subr.bf16.mxu0 %v19857_v45  ;;  %18561 = vmatprep.subr.bf16.mxu1 %v19858_v18  ;;  %v21829_v16 = vpop.f32.mrf.mxu0  ;;  %v21831_v19 = vpop.f32.mrf.mxu1  ;;  %v3192_v45 = vadd.f32 %v21795_v53, %v2843_v47  ;;  %v3235_v18 = vadd.f32 %v21797_v17, %v2851_v48  ;;  %v3231_v53 = vadd.f32 %v21783_v10, %v2851_v48  ;;  %v19886_v10 = vld [vmem:[%s25032_s9 + $0x6f8] sm:$0xff]  }
 0xb2c   :  { %v3432_v4 = vmax.f32 %v3194_v23, 0.0  ;;  %v3434_v43 = vmax.f32 %v3237_v59, 0.0  ;;  %v3188_v23 = vadd.f32 %v21781_v35, %v2843_v47  ;;  %v19885_v35 = vld [vmem:[%s25032_s9 + $0x678] sm:$0xff]   ;;  %v19899_v47 = vld [vmem:[%s25032_s9 + $0x620] sm:$0xff]  }
 0xb2d   :  { %v3275_v31 = vpop.f32.mrf.mxu0  ;;  %v3318_v34 = vpop.f32.mrf.mxu1 }
 0xb2e   :  { %18540 = vmatpush3.bf16.msra.mxu0 %v19859_v60  ;;  %18562 = vmatpush3.bf16.msra.mxu1 %v19860_v63  ;;  %v3705_v7 = vpack.c.bf16 %v3432_v4, %v3416_v30  ;;  %v3707_v29 = vpack.c.bf16 %v3434_v43, %v3418_v5  ;;  %v3276_v17 = vadd.f32 %v3275_v31, %v2863_v33  ;;  %v19883_v60 = vld [vmem:[%s25032_s9 + $0x500] sm:$0xff]   ;;  %v3415_v43 = vmax.f32 %v3188_v23, 0.0 }
 0xb2f   :  { %18541 = vmatprep.subr.bf16.mxu0 %v19861_v0  ;;  %18563 = vmatprep.subr.bf16.mxu1 %v19862_v24  ;;  %v21857_v39 = vpop.f32.mrf.mxu0  ;;  %v21859_v40 = vpop.f32.mrf.mxu1  ;;  %v19884_v63 = vld [vmem:[%s25032_s9 + $0x580] sm:$0xff]   ;;  %v3431_v0 = vmax.f32 %v3192_v45, 0.0  ;;  %v3433_v24 = vmax.f32 %v3235_v18, 0.0  ;;  %v3319_v30 = vadd.f32 %v3318_v34, %v2871_v54  ;;  %v3417_v5 = vmax.f32 %v3231_v53, 0.0  ;;  %v19891_v34 = vld [vmem:[%s25032_s9 + $0x630] sm:$0xff]   ;;  %v19904_v18 = vld [vmem:[%s25032_s9 + $0x698] sm:$0xff]  }
 0xb30   :  { %4606 = vmatprep.mubr.bf16.mxu0 %v3705_v7  ;;  %4647 = vmatprep.mubr.bf16.mxu1 %v3707_v29  ;;  %v19908_v53 = vld [vmem:[%s25032_s9 + $0x690] sm:$0xff]  }
 0xb31   :  { %v3279_v51 = vpop.f32.mrf.mxu0  ;;  %v3322_v52 = vpop.f32.mrf.mxu1  ;;  %v3704_v29 = vpack.c.bf16 %v3431_v0, %v3415_v43  ;;  %v19913_v43 = vld [vmem:[%s25032_s9 + $0x640] sm:$0xff]  }
 0xb32   :  { %18542 = vmatpush3.bf16.msra.mxu0 %v19863_v8  ;;  %18564 = vmatpush3.bf16.msra.mxu1 %v19864_v27  ;;  %v3280_v57 = vadd.f32 %v3279_v51, %v2863_v33  ;;  %v3323_v59 = vadd.f32 %v3322_v52, %v2871_v54  ;;  %v3420_v8 = vmax.f32 %v3276_v17, 0.0  ;;  %v19887_v27 = vld [vmem:[%s25032_s9 + $0x638] sm:$0xff]   ;;  %v19900_v51 = vld [vmem:[%s25032_s9 + $0x6a0] sm:$0xff]   ;;  %v19905_v54 = vld [vmem:[%s25032_s9 + $0x650] sm:$0xff]  }
 0xb33   :  { %18543 = vmatprep.subr.bf16.mxu0 %v19865_v11  ;;  %18565 = vmatprep.subr.bf16.mxu1 %v19866_v15  ;;  %v3706_v11 = vpack.c.bf16 %v3433_v24, %v3417_v5  ;;  %v3422_v15 = vmax.f32 %v3319_v30, 0.0  ;;  %v21955_v48 = vpop.f32.mrf.mxu1  ;;  %v19901_v33 = vld [vmem:[%s25032_s9 + $0x658] sm:$0xff]   ;;  %v19910_v17 = vld [vmem:[%s25032_s9 + $0x6c8] sm:$0xff]  }
 0xb34   :  { %v3436_v4 = vmax.f32 %v3280_v57, 0.0  ;;  %v3438_v7 = vmax.f32 %v3323_v59, 0.0  ;;  %v19902_v52 = vld [vmem:[%s25032_s9 + $0x6d8] sm:$0xff]   ;;  %v19907_v57 = vld [vmem:[%s25032_s9 + $0x610] sm:$0xff]   ;;  %v19909_v59 = vld [vmem:[%s25032_s9 + $0x648] sm:$0xff]  }
 0xb35   :  { %v3404_v45 = vpop.f32.mrf.mxu1  ;;  %v19911_v24 = vld [vmem:[%s25032_s9 + $0x608] sm:$0xff]  }
 0xb36   :  { %18544 = vmatpush3.bf16.msra.mxu0 %v19867_v20  ;;  %18566 = vmatpush3.bf16.msra.mxu1 %v19868_v26  ;;  %v19888_v20 = vld [vmem:[%s25032_s9 + $0x6b8] sm:$0xff]   ;;  %v3709_v26 = vpack.c.bf16 %v3436_v4, %v3420_v8  ;;  %v3711_v31 = vpack.c.bf16 %v3438_v7, %v3422_v15  ;;  %v19912_v4 = vld [vmem:[%s25032_s9 + $0x688] sm:$0xff]   ;;  %v2887_v7 = vrot.slane %v21880_v32, %v21099_v9  ;;  %v19915_v15 = vld [vmem:[%s25032_s9 + $0x600] sm:$0xff]  }
 0xb37   :  { %18545 = vmatprep.subr.bf16.mxu0 %v19869_v12  ;;  %18567 = vmatprep.subr.bf16.mxu1 %v19870_v28  ;;  %v19889_v12 = vld [vmem:[%s25032_s9 + $0x670] sm:$0xff]   ;;  %v21983_v23 = vpop.f32.mrf.mxu1 }
 0xb38   :  { %v19890_v28 = vld [vmem:[%s25032_s9 + $0x6f0] sm:$0xff]  }
 0xb3a   :  { %18546 = vmatpush3.bf16.msra.mxu0 %v19871_v3  ;;  %18568 = vmatpush3.bf16.msra.mxu1 %v19872_v25  ;;  %v19892_v3 = vld [vmem:[%s25032_s9 + $0x6b0] sm:$0xff]   ;;  %v19893_v25 = vld [vmem:[%s25032_s9 + $0x668] sm:$0xff]  }
 0xb3b   :  { %18547 = vmatprep.subr.bf16.mxu0 %v19873_v36  ;;  %18569 = vmatprep.subr.bf16.mxu1 %v19874_v50  ;;  %v19894_v36 = vld [vmem:[%s25032_s9 + $0x6e8] sm:$0xff]  }
 0xb3c   :  { %v19895_v50 = vld [vmem:[%s25032_s9 + $0x628] sm:$0xff]  }
 0xb3e   :  { %18548 = vmatpush3.bf16.msra.mxu0 %v19875_v41  ;;  %18570 = vmatpush3.bf16.msra.mxu1 %v19876_v42  ;;  %v19896_v41 = vld [vmem:[%s25032_s9 + $0x6a8] sm:$0xff]   ;;  %v19897_v42 = vld [vmem:[%s25032_s9 + $0x660] sm:$0xff]  }
 0xb3f   :  { %18549 = vmatprep.subr.bf16.mxu0 %v19877_v44  ;;  %18571 = vmatprep.subr.bf16.mxu1 %v19878_v38  ;;  %v19898_v44 = vld [vmem:[%s25032_s9 + $0x6e0] sm:$0xff]   ;;  %v21950_v38 = vpop.f32.mrf.mxu0 }
 0xb42   :  { %18550 = vmatpush3.bf16.msra.mxu0 %v19879_v1  ;;  %18572 = vmatpush3.bf16.msra.mxu1 %v19880_v61  ;;  %v3361_v1 = vpop.f32.mrf.mxu0  ;;  %v19903_v61 = vld [vmem:[%s25032_s9 + $0x618] sm:$0xff]  }
 0xb43   :  { %18551 = vmatprep.subr.bf16.mxu0 %v19881_v55  ;;  %18573 = vmatprep.subr.bf16.mxu1 %v19882_v56  ;;  %v19906_v55 = vld [vmem:[%s25032_s9 + $0x6d0] sm:$0xff]  }
 0xb44   :  { %v21978_v56 = vpop.f32.mrf.mxu0 }
 0xb46   :  { %18552 = vmatpush3.bf16.msra.mxu0 %v19883_v60  ;;  %18574 = vmatpush3.bf16.msra.mxu1 %v19884_v63  ;;  %v2859_v60 = vrot.slane %v21880_v32, %v20800_v13  ;;  %v2867_v63 = vrot.slane %v21880_v32, %v20822_v58  ;;  %v3365_v0 = vpop.f32.mrf.mxu0 }
 0xb47   :  { %18581 = vmatprep.subr.bf16.mxu0 %v19885_v35  ;;  %18603 = vmatprep.subr.bf16.mxu1 %v19886_v10  ;;  %v2879_v35 = vrot.slane %v21880_v32, %v21096_v62  ;;  %v3408_v10 = vpop.f32.mrf.mxu1 }
 0xb48   :  { %v3278_v30 = vadd.f32 %v21857_v39, %v2859_v60  ;;  %v3321_v5 = vadd.f32 %v21859_v40, %v2867_v63  ;;  %v19914_v39 = vld [vmem:[%s25032_s9 + $0x6c0] sm:$0xff]   ;;  %v3274_v8 = vadd.f32 %v21829_v16, %v2859_v60  ;;  %v19917_v16 = vld [vmem:[%s25032_s9 + $0x778] sm:$0xff]  }
 0xb49   :  { %4607 = vmatmul.mubr.bf16.vlgmr.msra.gmra.mxu0 %v3704_v29  ;;  %4648 = vmatmul.mubr.bf16.vlgmr.msra.gmra.mxu1 %v3706_v11  ;;  %v3317_v29 = vadd.f32 %v21831_v19, %v2867_v63  ;;  %v3409_v11 = vadd.f32 %v3408_v10, %v2887_v7  ;;  %v3405_v19 = vadd.f32 %v3404_v45, %v2887_v7  ;;  %v19924_v45 = vld [vmem:[%s25032_s9 + $0x7b0] sm:$0xff]   ;;  %v19932_v60 = vld [vmem:[%s25032_s9 + $0x7a0] sm:$0xff]   ;;  %v19933_v63 = vld [vmem:[%s25032_s9 + $0x758] sm:$0xff]  }
 0xb4a   :  { %18582 = vmatpush3.bf16.msra.mxu0 %v19887_v27  ;;  %4688 = vmatprep.mubr.bf16.mxu0 %v3709_v26  ;;  %v3366_v27 = vadd.f32 %v3365_v0, %v2879_v35  ;;  %v3435_v40 = vmax.f32 %v3278_v30, 0.0  ;;  %v19916_v26 = vld [vmem:[%s25032_s9 + $0x680] sm:$0xff]   ;;  %v19934_v0 = vld [vmem:[%s25032_s9 + $0x7d8] sm:$0xff]   ;;  %v19938_v10 = vld [vmem:[%s25032_s9 + $0x7d0] sm:$0xff]  }
 0xb4b   :  { %18604 = vmatpush3.bf16.msra.mxu1 %v19888_v20  ;;  %4729 = vmatprep.mubr.bf16.mxu1 %v3711_v31  ;;  %v3362_v20 = vadd.f32 %v3361_v1, %v2879_v35  ;;  %v3419_v31 = vmax.f32 %v3274_v8, 0.0  ;;  %v19936_v30 = vld [vmem:[%s25032_s9 + $0x798] sm:$0xff]   ;;  %v19937_v35 = vld [vmem:[%s25032_s9 + $0x750] sm:$0xff]   ;;  %v19942_v7 = vld [vmem:[%s25032_s9 + $0x7c8] sm:$0xff]   ;;  %v2883_v8 = vrot.slane %v21880_v32, %v21181_v22 }
 0xb4c   :  { %18583 = vmatprep.subr.bf16.mxu0 %v19889_v12  ;;  %18605 = vmatprep.subr.bf16.mxu1 %v19890_v28  ;;  %v3437_v12 = vmax.f32 %v3321_v5, 0.0  ;;  %v19918_v28 = vld [vmem:[%s25032_s9 + $0x7f8] sm:$0xff]   ;;  %v19941_v5 = vld [vmem:[%s25032_s9 + $0x748] sm:$0xff]  }
 0xb4e   :  { %18584 = vmatpush3.bf16.msra.mxu0 %v19891_v34  ;;  %v3440_v34 = vmax.f32 %v3366_v27, 0.0  ;;  %v19943_v27 = vld [vmem:[%s25032_s9 + $0x708] sm:$0xff]  }
 0xb4f   :  { %18606 = vmatpush3.bf16.msra.mxu1 %v19892_v3  ;;  %18585 = vmatprep.subr.bf16.mxu0 %v19893_v25  ;;  %v3421_v3 = vmax.f32 %v3317_v29, 0.0  ;;  %v3442_v25 = vmax.f32 %v3409_v11, 0.0  ;;  %v19944_v11 = vld [vmem:[%s25032_s9 + $0x788] sm:$0xff]  }
 0xb50   :  { %18607 = vmatprep.subr.bf16.mxu1 %v19894_v36  ;;  %v19919_v36 = vld [vmem:[%s25032_s9 + $0x738] sm:$0xff]  }
 0xb52   :  { %18586 = vmatpush3.bf16.msra.mxu0 %v19895_v50  ;;  %v3708_v50 = vpack.c.bf16 %v3435_v40, %v3419_v31  ;;  %v3407_v40 = vadd.f32 %v21983_v23, %v2883_v8  ;;  %v19948_v23 = vld [vmem:[%s25032_s9 + $0x780] sm:$0xff]  }
 0xb53   :  { %18608 = vmatpush3.bf16.msra.mxu1 %v19896_v41  ;;  %18587 = vmatprep.subr.bf16.mxu0 %v19897_v42  ;;  %v3424_v41 = vmax.f32 %v3362_v20, 0.0  ;;  %v19920_v42 = vld [vmem:[%s25032_s9 + $0x7b8] sm:$0xff]  }
 0xb54   :  { %18609 = vmatprep.subr.bf16.mxu1 %v19898_v44  ;;  %v3710_v44 = vpack.c.bf16 %v3437_v12, %v3421_v3  ;;  %v3441_v12 = vmax.f32 %v3407_v40, 0.0 }
 0xb56   :  { %18588 = vmatpush3.bf16.msra.mxu0 %v19899_v47  ;;  %v3426_v47 = vmax.f32 %v3405_v19, 0.0 }
 0xb57   :  { %18610 = vmatpush3.bf16.msra.mxu1 %v19900_v51  ;;  %18589 = vmatprep.subr.bf16.mxu0 %v19901_v33  ;;  %v19921_v51 = vld [vmem:[%s25032_s9 + $0x770] sm:$0xff]   ;;  %v3713_v33 = vpack.c.bf16 %v3440_v34, %v3424_v41 }
 0xb58   :  { %18611 = vmatprep.subr.bf16.mxu1 %v19902_v52  ;;  %v19922_v52 = vld [vmem:[%s25032_s9 + $0x7f0] sm:$0xff]   ;;  %v3715_v1 = vpack.c.bf16 %v3442_v25, %v3426_v47 }
 0xb5a   :  { %18590 = vmatpush3.bf16.msra.mxu0 %v19903_v61  ;;  %v19923_v61 = vld [vmem:[%s25032_s9 + $0x730] sm:$0xff]  }
 0xb5b   :  { %18612 = vmatpush3.bf16.msra.mxu1 %v19904_v18  ;;  %18591 = vmatprep.subr.bf16.mxu0 %v19905_v54  ;;  %v19925_v18 = vld [vmem:[%s25032_s9 + $0x768] sm:$0xff]  }
 0xb5c   :  { %18613 = vmatprep.subr.bf16.mxu1 %v19906_v55  ;;  %v19926_v54 = vld [vmem:[%s25032_s9 + $0x7e8] sm:$0xff]  }
 0xb5d   :  { %v19927_v55 = vld [vmem:[%s25032_s9 + $0x728] sm:$0xff]  }
 0xb5e   :  { %18592 = vmatpush3.bf16.msra.mxu0 %v19907_v57  ;;  %v19928_v57 = vld [vmem:[%s25032_s9 + $0x7a8] sm:$0xff]  }
 0xb5f   :  { %18614 = vmatpush3.bf16.msra.mxu1 %v19908_v53  ;;  %18593 = vmatprep.subr.bf16.mxu0 %v19909_v59  ;;  %v19929_v53 = vld [vmem:[%s25032_s9 + $0x760] sm:$0xff]  }
 0xb60   :  { %18615 = vmatprep.subr.bf16.mxu1 %v19910_v17  ;;  %v19930_v59 = vld [vmem:[%s25032_s9 + $0x7e0] sm:$0xff]  }
 0xb61   :  { %v19931_v17 = vld [vmem:[%s25032_s9 + $0x720] sm:$0xff]  }
 0xb62   :  { %18594 = vmatpush3.bf16.msra.mxu0 %v19911_v24  ;;  %v19935_v24 = vld [vmem:[%s25032_s9 + $0x718] sm:$0xff]  }
 0xb63   :  { %18616 = vmatpush3.bf16.msra.mxu1 %v19912_v4  ;;  %18595 = vmatprep.subr.bf16.mxu0 %v19913_v43  ;;  %v19939_v4 = vld [vmem:[%s25032_s9 + $0x710] sm:$0xff]  }
 0xb64   :  { %18617 = vmatprep.subr.bf16.mxu1 %v19914_v39  ;;  %v19940_v43 = vld [vmem:[%s25032_s9 + $0x790] sm:$0xff]   ;;  %v2875_v39 = vrot.slane %v21880_v32, %v21178_v21  ;;  %v19946_v32 = vld [vmem:[%s25032_s9 + $0x7c0] sm:$0xff]  }
 0xb66   :  { %18596 = vmatpush3.bf16.msra.mxu0 %v19915_v15  ;;  %v3364_v29 = vadd.f32 %v21978_v56, %v2875_v39  ;;  %v19945_v15 = vld [vmem:[%s25032_s9 + $0x740] sm:$0xff]   ;;  %v3360_v20 = vadd.f32 %v21950_v38, %v2875_v39  ;;  %v3403_v56 = vadd.f32 %v21955_v48, %v2883_v8 }
 0xb67   :  { %18618 = vmatpush3.bf16.msra.mxu1 %v19916_v26  ;;  %18625 = vmatprep.subr.bf16.mxu0 %v19917_v16  ;;  %v19947_v26 = vld [vmem:[%s25032_s9 + $0x700] sm:$0xff]  }
 0xb68   :  { %18647 = vmatprep.subr.bf16.mxu1 %v19918_v28  ;;  %v3439_v16 = vmax.f32 %v3364_v29, 0.0  ;;  %v3423_v19 = vmax.f32 %v3360_v20, 0.0  ;;  %v3425_v28 = vmax.f32 %v3403_v56, 0.0 }
 0xb69   :  { %4689 = vmatmul.mubr.bf16.vlgmr.msra.gmra.mxu0 %v3708_v50 }
 0xb6a   :  { %4730 = vmatmul.mubr.bf16.vlgmr.msra.gmra.mxu1 %v3710_v44  ;;  %18626 = vmatpush3.bf16.msra.mxu0 %v19919_v36  ;;  %v3712_v38 = vpack.c.bf16 %v3439_v16, %v3423_v19  ;;  %v3714_v48 = vpack.c.bf16 %v3441_v12, %v3425_v28 }
 0xb6b   :  { %4770 = vmatprep.mubr.bf16.mxu0 %v3713_v33  ;;  %18648 = vmatpush3.bf16.msra.mxu1 %v19920_v42 }
 0xb6c   :  { %4811 = vmatprep.mubr.bf16.mxu1 %v3715_v1  ;;  %18627 = vmatprep.subr.bf16.mxu0 %v19921_v51 }
 0xb6d   :  { %18649 = vmatprep.subr.bf16.mxu1 %v19922_v52 }
 0xb6e   :  { %18628 = vmatpush3.bf16.msra.mxu0 %v19923_v61 }
 0xb6f   :  { %18650 = vmatpush3.bf16.msra.mxu1 %v19924_v45  ;;  %18629 = vmatprep.subr.bf16.mxu0 %v19925_v18  ;;  %v16088_v18 = vld [vmem:[%s25033_s10 + $0x1] ss:$0 sm:$0xff] }
 0xb70   :  { %18651 = vmatprep.subr.bf16.mxu1 %v19926_v54 }
 0xb72   :  { %18630 = vmatpush3.bf16.msra.mxu0 %v19927_v55 }
 0xb73   :  { %18652 = vmatpush3.bf16.msra.mxu1 %v19928_v57  ;;  %18631 = vmatprep.subr.bf16.mxu0 %v19929_v53 }
 0xb74   :  { %18653 = vmatprep.subr.bf16.mxu1 %v19930_v59 }
 0xb76   :  { %18632 = vmatpush3.bf16.msra.mxu0 %v19931_v17 }
 0xb77   :  { %18654 = vmatpush3.bf16.msra.mxu1 %v19932_v60  ;;  %18633 = vmatprep.subr.bf16.mxu0 %v19933_v63 }
 0xb78   :  { %18655 = vmatprep.subr.bf16.mxu1 %v19934_v0 }
 0xb7a   :  { %18634 = vmatpush3.bf16.msra.mxu0 %v19935_v24 }
 0xb7b   :  { %18656 = vmatpush3.bf16.msra.mxu1 %v19936_v30  ;;  %18635 = vmatprep.subr.bf16.mxu0 %v19937_v35 }
 0xb7c   :  { %18657 = vmatprep.subr.bf16.mxu1 %v19938_v10 }
 0xb7e   :  { %18636 = vmatpush3.bf16.msra.mxu0 %v19939_v4 }
 0xb7f   :  { %18658 = vmatpush3.bf16.msra.mxu1 %v19940_v43  ;;  %18637 = vmatprep.subr.bf16.mxu0 %v19941_v5 }
 0xb80   :  { %18659 = vmatprep.subr.bf16.mxu1 %v19942_v7 }
 0xb82   :  { %18638 = vmatpush3.bf16.msra.mxu0 %v19943_v27 }
 0xb83   :  { %18660 = vmatpush3.bf16.msra.mxu1 %v19944_v11  ;;  %18639 = vmatprep.subr.bf16.mxu0 %v19945_v15 }
 0xb84   :  { %18661 = vmatprep.subr.bf16.mxu1 %v19946_v32 }
 0xb86   :  { %18640 = vmatpush3.bf16.msra.mxu0 %v19947_v26 }
 0xb87   :  { %18662 = vmatpush3.bf16.msra.mxu1 %v19948_v23 }
 0xb88   :  { %19477 = vmatprep.subr.bf16.mxu1 %v20679_v6 }
 0xb89   :  { %4771 = vmatmul.mubr.bf16.vlgmr.msra.gmra.mxu0 %v3712_v38 }
 0xb8a   :  { %4812 = vmatmul.mubr.bf16.vlgmr.msra.gmra.mxu1 %v3714_v48  ;;  %4963 = vmatprep.mubr.bf16.mxu0 %v20678_v2 }
 0xb8b   :  { %19481 = vmatprep.mubr.msk.bf16.mxu1 %vm20680_vm0, %v20679_v6 }
 0xbe9   :  { %v18509_v31 = vpop.f32.mrf.mxu0  ;;  %v18531_v34 = vpop.f32.mrf.mxu1 }
 0xbeb   :  { %v18510_v3 = vpop.f32.mrf.mxu0  ;;  %v18532_v25 = vpop.f32.mrf.mxu1 }
 0xbec   :  { %v18511_v45 = vadd.f32 %v18510_v3, %v18509_v31  ;;  %v18533_v60 = vadd.f32 %v18532_v25, %v18531_v34 }
 0xbed   :  { %v18512_v36 = vpop.f32.mrf.mxu0  ;;  %v18534_v50 = vpop.f32.mrf.mxu1 }
 0xbee   :  { %v4527_v57 = vadd.f32 %v18511_v45, %v16088_v18 }
 0xbef   :  { %v18513_v41 = vpop.f32.mrf.mxu0  ;;  %v18535_v44 = vpop.f32.mrf.mxu1 }
 0xbf0   :  { %v18514_v53 = vadd.f32 %v18513_v41, %v18512_v36  ;;  %v4568_v0 = vadd.f32 %v18533_v60, %v4527_v57  ;;  %v18536_v10 = vadd.f32 %v18535_v44, %v18534_v50 }
 0xbf2   :  { %v4530_v24 = vadd.f32 %v18514_v53, %v16088_v18 }
 0xbf4   :  { %v4571_v5 = vadd.f32 %v18536_v10, %v4530_v24  ;;  %v19951_v24 = vld [vmem:[%s25024_s1 + $0x7c] ss:$12 sps:$4 sm:$0xff]  }
 0xbf5   :  { %4943 = vmatprep.subr.bf16.mxu0 %v19951_v24  ;;  %v19956_v10 = vld [vmem:[%s25024_s1 + $0x68] ss:$12 sps:$4 sm:$0xff]  }
 0xc09   :  { %v18553_v42 = vpop.f32.mrf.mxu0  ;;  %v18575_v47 = vpop.f32.mrf.mxu1 }
 0xc0b   :  { %v18554_v51 = vpop.f32.mrf.mxu0  ;;  %v18576_v33 = vpop.f32.mrf.mxu1 }
 0xc0c   :  { %v18555_v63 = vadd.f32 %v18554_v51, %v18553_v42  ;;  %v18577_v7 = vadd.f32 %v18576_v33, %v18575_v47 }
 0xc0d   :  { %v18556_v52 = vpop.f32.mrf.mxu0  ;;  %v18578_v1 = vpop.f32.mrf.mxu1 }
 0xc0e   :  { %v4609_v4 = vadd.f32 %v18555_v63, %v4568_v0 }
 0xc0f   :  { %v18557_v61 = vpop.f32.mrf.mxu0  ;;  %v18579_v55 = vpop.f32.mrf.mxu1 }
 0xc10   :  { %v18558_v43 = vadd.f32 %v18557_v61, %v18556_v52  ;;  %v4650_v29 = vadd.f32 %v18577_v7, %v4609_v4  ;;  %v18580_v15 = vadd.f32 %v18579_v55, %v18578_v1  ;;  %v19953_v4 = vld [vmem:[%s25024_s1 + $0x60] ss:$12 sps:$4 sm:$0xff]  }
 0xc12   :  { %v4612_v11 = vadd.f32 %v18558_v43, %v4571_v5 }
 0xc14   :  { %v4653_v26 = vadd.f32 %v18580_v15, %v4612_v11  ;;  %v16219_v15 = vld [vmem:[%s25034_s11 + $0x1] ss:$0 sm:$0xff] }
 0xc29   :  { %v18597_v54 = vpop.f32.mrf.mxu0 }
 0xc2a   :  { %v18619_v59 = vpop.f32.mrf.mxu1 }
 0xc2b   :  { %v18598_v17 = vpop.f32.mrf.mxu0 }
 0xc2c   :  { %v18620_v30 = vpop.f32.mrf.mxu1  ;;  %v18599_v39 = vadd.f32 %v18598_v17, %v18597_v54 }
 0xc2d   :  { %v18600_v35 = vpop.f32.mrf.mxu0  ;;  %v18621_v16 = vadd.f32 %v18620_v30, %v18619_v59  ;;  %v19952_v30 = vld [vmem:[%s25024_s1 + $0x80] ss:$12 sps:$4 sm:$0xff]  }
 0xc2e   :  { %v18622_v8 = vpop.f32.mrf.mxu1  ;;  %v4691_v40 = vadd.f32 %v18599_v39, %v4650_v29  ;;  %19478 = vmatpush3.bf16.msra.mxu1 %v19952_v30 }
 0xc2f   :  { %v18601_v27 = vpop.f32.mrf.mxu0  ;;  %19479 = vmatprep.subr.bf16.mxu1 %v20679_v6 }
 0xc30   :  { %v18602_v32 = vadd.f32 %v18601_v27, %v18600_v35  ;;  %v18623_v20 = vpop.f32.mrf.mxu1  ;;  %v4732_v19 = vadd.f32 %v18621_v16, %v4691_v40  ;;  %v19955_v35 = vld [vmem:[%s25024_s1 + $0x64] ss:$12 sps:$4 sm:$0xff]  }
 0xc31   :  { %v18624_v34 = vadd.f32 %v18623_v20, %v18622_v8 }
 0xc32   :  { %v4694_v28 = vadd.f32 %v18602_v32, %v4653_v26  ;;  %19480 = vmatpush3.bf16.msra.mxu1 %v19956_v10 }
 0xc34   :  { %v4735_v41 = vadd.f32 %v18624_v34, %v4694_v28 }
 0xc49   :  { %v18641_v56 = vpop.f32.mrf.mxu0 }
 0xc4a   :  { %v18663_v23 = vpop.f32.mrf.mxu1 }
 0xc4b   :  { %v18642_v12 = vpop.f32.mrf.mxu0 }
 0xc4c   :  { %v18643_v38 = vadd.f32 %v18642_v12, %v18641_v56  ;;  %v18664_v48 = vpop.f32.mrf.mxu1  ;;  %v16220_v56 = vld [vmem:[%s25035_s12 + $0x1] ss:$0 sm:$0xff] }
 0xc4d   :  { %v18644_v31 = vpop.f32.mrf.mxu0  ;;  %v18665_v25 = vadd.f32 %v18664_v48, %v18663_v23 }
 0xc4e   :  { %v4773_v3 = vadd.f32 %v18643_v38, %v4732_v19  ;;  %v18666_v36 = vpop.f32.mrf.mxu1  ;;  %v16229_v19 = vld [vmem:[%s25025_s2 + $0x6] sm:$0x7] }
 0xc4f   :  { %v18645_v50 = vpop.f32.mrf.mxu0  ;;  %v4884_v28 = vrot.slane %v16229_v19, %v20800_v13  ;;  %v4888_v38 = vrot.slane %v16229_v19, %v20803_v14 }
 0xc50   :  { %v4814_v42 = vadd.f32 %v18665_v25, %v4773_v3  ;;  %v18646_v44 = vadd.f32 %v18645_v50, %v18644_v31  ;;  %v18667_v47 = vpop.f32.mrf.mxu1 }
 0xc51   :  { %v18668_v33 = vadd.f32 %v18667_v47, %v18666_v36 }
 0xc52   :  { %v4776_v51 = vadd.f32 %v18646_v44, %v4735_v41  ;;  %v4820_v52 = vadd.f32 %v4814_v42, %v21588_v37 }
 0xc54   :  { %v4817_v1 = vadd.f32 %v18668_v33, %v4776_v51  ;;  %v4826_v61 = vsel %vm112_vm1, %v4820_v52, 0.0 }
 0xc55   :  { %4827 = vadd.xlane.f32.xlu0 %v4826_v61 }
 0xc56   :  { %v4821_v45 = vadd.f32 %v4817_v1, %v21590_v46  ;;  %v19949_v46 = vld [vmem:[%s25024_s1 + $0x78] ss:$12 sps:$4 sm:$0xff]  }
 0xc57   :  { %4944 = vmatpush1.bf16.msra.mxu0 %v19949_v46 }
 0xc58   :  { %v4829_v18 = vsel %vm112_vm1, %v4821_v45, 0.0  ;;  %4945 = vmatprep.subr.bf16.mxu0 %v19955_v35 }
 0xc59   :  { %4830 = vadd.xlane.f32.xlu1 %v4829_v18 }
 0xc5b   :  { %4946 = vmatpush1.bf16.msra.mxu0 %v19953_v4 }
 0xc5c   :  { %19485 = vmatprep.subr.bf16.mxu0 %v20679_v6 }
 0xcde   :  { %v4828_v54 = vpop.xlane.xlu0 %4827 }
 0xcdf   :  { %v4832_v55 = vmul.f32 0.03125, %v4828_v54 }
 0xce1   :  { %v4834_v57 = vsub.f32 %v4820_v52, %v4832_v55 }
 0xce2   :  { %v4831_v53 = vpop.xlane.xlu1 %4830 }
 0xce3   :  { %v4833_v59 = vmul.f32 0.03125, %v4831_v53  ;;  %v4836_v17 = vmul.f32 %v4834_v57, %v4834_v57  ;;  %v19958_v53 = vld [vmem:[%s25026_s3 + $0x20] sm:$0xff]  }
 0xce5   :  { %v4835_v60 = vsub.f32 %v4821_v45, %v4833_v59  ;;  %v4838_v63 = vsel %vm112_vm1, %v4836_v17, 0.0 }
 0xce6   :  { %4839 = vadd.xlane.f32.xlu0 %v4838_v63 }
 0xce7   :  { %v4837_v37 = vmul.f32 %v4835_v60, %v4835_v60 }
 0xce9   :  { %v4841_v0 = vsel %vm112_vm1, %v4837_v37, 0.0 }
 0xcea   :  { %4842 = vadd.xlane.f32.xlu1 %v4841_v0 }
 0xd6f   :  { %v4840_v43 = vpop.xlane.xlu0 %4839 }
 0xd70   :  { %v4844_v5 = vmul.f32 0.03125, %v4840_v43 }
 0xd72   :  { %v4846_v7 = vadd.f32 1e-05, %v4844_v5 }
 0xd73   :  { %v4843_v39 = vpop.xlane.xlu1 %4842 }
 0xd74   :  { %20569 = vrsqrt.f32 %v4846_v7  ;;  %v4845_v8 = vmul.f32 0.03125, %v4843_v39 }
 0xd76   :  { %v4847_v27 = vadd.f32 1e-05, %v4845_v8 }
 0xd78   :  { %20571 = vrsqrt.f32 %v4847_v27 }
 0xd81   :  { %v20570_v29 = vpop.eup %20569 }
 0xd82   :  { %v4850_v11 = vmul.f32 %v20570_v29, %v4834_v57  ;;  %v19957_v57 = vld [vmem:[%s25026_s3 + $0x28] sm:$0xff]  }
 0xd84   :  { %v4858_v20 = vmul.f32 %v16219_v15, %v4850_v11 }
 0xd85   :  { %v20572_v40 = vpop.eup %20571 }
 0xd86   :  { %v4851_v32 = vmul.f32 %v20572_v40, %v4835_v60  ;;  %v22167_v16 = vadd.f32 %v16220_v56, %v4858_v20 }
 0xd88   :  { %v4859_v26 = vmul.f32 %v16219_v15, %v4851_v32 }
 0xd8a   :  { %v22169_v23 = vadd.f32 %v16220_v56, %v4859_v26  ;;  %v4892_v56 = vrot.slane %v16229_v19, %v20822_v58 }
 0xd8c   :  { %v4877_v12 = vpack.c.bf16 %v22169_v23, %v22167_v16 }
 0xd8e   :  { %16236 = vmatmul.mubr.msk.bf16.vlgmr.msra.gmra.mxu0 %vm112_vm1, %v4877_v12  ;;  %19482 = vmatmul.mubr.msk.bf16.vlgmr.msra.gmra.mxu1 %vm112_vm1, %v4877_v12 }
 0xd8f   :  { %19489 = vmatprep.mubr.msk.bf16.mxu0 %vm20680_vm0, %v20679_v6  ;;  %5511 = vmatprep.mubr.bf16.mxu1 %v20678_v2 }
 0xd90   :  { %19486 = vmatpush3.bf16.msra.mxu0 %v19957_v57 }
 0xd91   :  { %19487 = vmatprep.subr.bf16.mxu0 %v20679_v6 }
 0xd94   :  { %19488 = vmatpush3.bf16.msra.mxu0 %v19958_v53 }
 0xe4e   :  { %v4965_v48 = vpop.f32.mrf.mxu0  ;;  %v5008_v31 = vpop.f32.mrf.mxu1 }
 0xe4f   :  { %v4966_v25 = vadd.f32 %v4965_v48, %v4884_v28  ;;  %v5009_v12 = vadd.f32 %v5008_v31, %v4892_v56  ;;  %v16243_v31 = vld [vmem:[%s25027_s4 + $0x2] ss:$0 sm:$0xff] }
 0xe50   :  { %v4967_v34 = vpop.f32.mrf.mxu0  ;;  %v19483_v3 = vpop.f32.mrf.mxu1 }
 0xe51   :  { %v4968_v36 = vadd.f32 %v4967_v34, %v4888_v38 }
 0xe52   :  { %v4969_v50 = vpop.f32.mrf.mxu0  ;;  %v5011_v41 = vpop.f32.mrf.mxu1 }
 0xe53   :  { %v4970_v42 = vadd.f32 %v4969_v50, %v4884_v28  ;;  %v5027_v44 = vmul.f32 %v4968_v36, %v4966_v25  ;;  %v5012_v28 = vadd.f32 %v5011_v41, %v4892_v56 }
 0xe54   :  { %v4971_v47 = vpop.f32.mrf.mxu0  ;;  %v19484_v51 = vpop.f32.mrf.mxu1 }
 0xe55   :  { %v4972_v33 = vadd.f32 %v4971_v47, %v4888_v38  ;;  %v5028_v52 = vsel %vm112_vm1, %v5027_v44, 0.0  ;;  %v5052_v1 = vmul.f32 %v4970_v42, %v4968_v36 }
 0xe56   :  { %5029 = vadd.xlane.f32.xlu0 %v5028_v52 }
 0xe57   :  { %v5032_v61 = vmul.f32 %v4972_v33, %v4966_v25  ;;  %v5053_v18 = vsel %vm112_vm1, %v5052_v1, 0.0  ;;  %v5057_v54 = vmul.f32 %v4972_v33, %v4970_v42 }
 0xe59   :  { %v5033_v45 = vsel %vm112_vm1, %v5032_v61, 0.0  ;;  %v5058_v55 = vsel %vm112_vm1, %v5057_v54, 0.0 }
 0xe5a   :  { %5034 = vadd.xlane.f32.xlu1 %v5033_v45  ;;  %5054 = vadd.xlane.f32.xlu0 %v5053_v18 }
 0xe5e   :  { %5059 = vadd.xlane.f32.xlu1 %v5058_v55 }
 0xedf   :  { %v5030_v59 = vpop.xlane.xlu0 %5029 }
 0xee0   :  { %v5031_v60 = vmul.f32 0.17677669, %v5030_v59 }
 0xee3   :  { %v5035_v17 = vpop.xlane.xlu1 %5034  ;;  %v5055_v37 = vpop.xlane.xlu0 %5054 }
 0xee4   :  { %v5036_v63 = vmul.f32 0.17677669, %v5035_v17  ;;  %v5056_v35 = vmul.f32 0.17677669, %v5055_v37 }
 0xee6   :  { %v5037_v0 = vmax.f32 %v5031_v60, %v5036_v63 }
 0xee7   :  { %v5060_v46 = vpop.xlane.xlu1 %5059 }
 0xee8   :  { %v5038_v24 = vsub.f32 %v5031_v60, %v5037_v0  ;;  %v5041_v30 = vsub.f32 %v5036_v63, %v5037_v0  ;;  %v5061_v10 = vmul.f32 0.17677669, %v5060_v46 }
 0xeea   :  { %v5039_v4 = vmul.f32 1.442695, %v5038_v24  ;;  %v5042_v43 = vmul.f32 1.442695, %v5041_v30  ;;  %v5062_v5 = vmax.f32 %v5056_v35, %v5061_v10 }
 0xeec   :  { %20573 = vpow2.f32 %v5039_v4  ;;  %v5063_v7 = vsub.f32 %v5056_v35, %v5062_v5  ;;  %v5066_v39 = vsub.f32 %v5061_v10, %v5062_v5  ;;  %v16275_v10 = vld [vmem:[%s25030_s7 + $0x2c0] sm:$0xff]  ;;  %v16268_v4 = vld [vmem:[%s25030_s7 + $0x288] sm:$0xff] }
 0xeed   :  { %20575 = vpow2.f32 %v5042_v43  ;;  %v16276_v5 = vld [vmem:[%s25030_s7 + $0x2c8] sm:$0xff] }
 0xeee   :  { %v5064_v8 = vmul.f32 1.442695, %v5063_v7  ;;  %v5067_v27 = vmul.f32 1.442695, %v5066_v39  ;;  %v16303_v39 = vcombine.low %v16268_v4, %v16276_v5 }
 0xef0   :  { %20577 = vpow2.f32 %v5064_v8  ;;  %v16304_v8 = vcombine.high %v16268_v4, %v16276_v5  ;;  %v16263_v4 = vld [vmem:[%s25030_s7 + $0x260] sm:$0xff]  ;;  %v16264_v5 = vld [vmem:[%s25030_s7 + $0x268] sm:$0xff] }
 0xef1   :  { %20579 = vpow2.f32 %v5067_v27  ;;  %v16251_v27 = vld [vmem:[%s25030_s7 + $0x200] sm:$0xff] }
 0xef2   :  { %5534 = vmatprep.subr.bf16.mxu0 %v16304_v8 }
 0xef9   :  { %v20574_v29 = vpop.eup %20573 }
 0xefa   :  { %v20576_v11 = vpop.eup %20575 }
 0xefb   :  { %v5044_v15 = vadd.f32 %v20576_v11, %v20574_v29 }
 0xefd   :  { %v20578_v40 = vpop.eup %20577  ;;  %20581 = vrcp.f32 %v5044_v15 }
 0xefe   :  { %v20580_v32 = vpop.eup %20579 }
 0xeff   :  { %v5069_v20 = vadd.f32 %v20580_v32, %v20578_v40 }
 0xf01   :  { %20583 = vrcp.f32 %v5069_v20 }
 0xf0a   :  { %v20582_v26 = vpop.eup %20581 }
 0xf0b   :  { %v5046_v38 = vmul.f32 %v20582_v26, %v20574_v29  ;;  %v5048_v48 = vmul.f32 %v20582_v26, %v20576_v11  ;;  %v16259_v29 = vld [vmem:[%s25030_s7 + $0x240] sm:$0xff]  ;;  %v16252_v11 = vld [vmem:[%s25030_s7 + $0x208] sm:$0xff]  ;;  %v16269_v26 = vld [vmem:[%s25030_s7 + $0x290] sm:$0xff] }
 0xf0c   :  { %v16286_v15 = vcombine.high %v16251_v27, %v16259_v29 }
 0xf0d   :  { %v5047_v34 = vmul.f32 %v5046_v38, %v5009_v12  ;;  %v5049_v3 = vmul.f32 %v5048_v48, %v5012_v28  ;;  %v16278_v48 = vld [vmem:[%s25030_s7 + $0x2d8] sm:$0xff] }
 0xf0e   :  { %v20584_v25 = vpop.eup %20583 }
 0xf0f   :  { %v5050_v36 = vadd.f32 %v5049_v3, %v5047_v34  ;;  %v5071_v50 = vmul.f32 %v20584_v25, %v20578_v40  ;;  %v5073_v42 = vmul.f32 %v20584_v25, %v20580_v32  ;;  %v16260_v40 = vld [vmem:[%s25030_s7 + $0x248] sm:$0xff]  ;;  %v16285_v32 = vcombine.low %v16251_v27, %v16259_v29  ;;  %v16273_v29 = vld [vmem:[%s25030_s7 + $0x2b0] sm:$0xff] }
 0xf10   :  { %v16287_v20 = vcombine.low %v16252_v11, %v16260_v40  ;;  %v16288_v56 = vcombine.high %v16252_v11, %v16260_v40  ;;  %v16281_v11 = vld [vmem:[%s25030_s7 + $0x2f0] sm:$0xff]  ;;  %v16282_v40 = vld [vmem:[%s25030_s7 + $0x2f8] sm:$0xff] }
 0xf11   :  { %5051 = vst.msk [vmem:[#allocation2] sm:$0xff] %vm112_vm1, %v5050_v36  ;;  %v5072_v44 = vmul.f32 %v5071_v50, %v5009_v12  ;;  %v5074_v47 = vmul.f32 %v5073_v42, %v5012_v28  ;;  %v16277_v12 = vld [vmem:[%s25030_s7 + $0x2d0] sm:$0xff]  ;;  %v16270_v28 = vld [vmem:[%s25030_s7 + $0x298] sm:$0xff] }
 0xf12   :  { %v16306_v38 = vcombine.high %v16269_v26, %v16277_v12  ;;  %v16305_v34 = vcombine.low %v16269_v26, %v16277_v12  ;;  %v16307_v3 = vcombine.low %v16270_v28, %v16278_v48  ;;  %v16308_v25 = vcombine.high %v16270_v28, %v16278_v48  ;;  %v16257_v12 = vld [vmem:[%s25030_s7 + $0x230] sm:$0xff]  ;;  %v16266_v48 = vld [vmem:[%s25030_s7 + $0x278] sm:$0xff] }
 0xf13   :  { %v5075_v51 = vadd.f32 %v5074_v47, %v5072_v44  ;;  %v16265_v28 = vld [vmem:[%s25030_s7 + $0x270] sm:$0xff] }
 0xf15   :  { %5076 = vst.msk [vmem:[#allocation2 + $0x8] sm:$0xff] %vm112_vm1, %v5075_v51 }
 0xf18   :  { %v5077_v33 = vld [vmem:[#allocation2] sm:$0xff] }
 0xf1c   :  { %v5078_v19 = vld [vmem:[#allocation2 + $0x8] sm:$0xff] }
 0xf1d   :  { %v5084_v52 = vpack.c.bf16 %v5078_v19, %v5077_v33 }
 0xf1f   :  { %19490 = vmatmul.mubr.msk.bf16.vlgmr.msra.gmra.mxu0 %vm112_vm1, %v5084_v52  ;;  %v16249_v52 = vld [vmem:[%s25028_s5 + $0x2] ss:$0 sm:$0xff] }
 0xf20   :  { %5554 = vmatprep.mubr.bf16.mxu0 %v20678_v2  ;;  %5535 = vmatpush1.bf16.msra.mxu0 %v16303_v39 }
 0xf21   :  { %5536 = vmatprep.subr.bf16.mxu0 %v16288_v56  ;;  %v16314_v56 = vcombine.high %v16273_v29, %v16281_v11 }
 0xf24   :  { %5537 = vmatpush1.bf16.msra.mxu0 %v16287_v20 }
 0xf25   :  { %5620 = vmatprep.subr.bf16.mxu0 %v16308_v25  ;;  %v16298_v25 = vcombine.high %v16257_v12, %v16265_v28 }
 0xfdf   :  { %v5142_v41 = vpop.f32.mrf.mxu0 }
 0xfe0   :  { %v5143_v1 = vadd.f32 %v16243_v31, %v5142_v41 }
 0xfe1   :  { %v19491_v61 = vpop.f32.mrf.mxu0 }
 0xfe2   :  { %v5149_v45 = vadd.f32 %v5143_v1, %v22167_v16  ;;  %v16250_v61 = vld [vmem:[%s25029_s6 + $0x2] ss:$0 sm:$0xff] }
 0xfe3   :  { %v5145_v18 = vpop.f32.mrf.mxu0 }
 0xfe4   :  { %v5146_v54 = vadd.f32 %v16243_v31, %v5145_v18  ;;  %v5155_v55 = vsel %vm112_vm1, %v5149_v45, 0.0  ;;  %v16253_v18 = vld [vmem:[%s25030_s7 + $0x210] sm:$0xff] }
 0xfe5   :  { %5156 = vadd.xlane.f32.xlu0 %v5155_v55  ;;  %v19492_v57 = vpop.f32.mrf.mxu0  ;;  %v16254_v55 = vld [vmem:[%s25030_s7 + $0x218] sm:$0xff] }
 0xfe6   :  { %v5150_v53 = vadd.f32 %v5146_v54, %v22169_v23  ;;  %v16267_v23 = vld [vmem:[%s25030_s7 + $0x280] sm:$0xff]  ;;  %v16261_v54 = vld [vmem:[%s25030_s7 + $0x250] sm:$0xff]  ;;  %v16262_v57 = vld [vmem:[%s25030_s7 + $0x258] sm:$0xff] }
 0xfe7   :  { %v16302_v43 = vcombine.high %v16267_v23, %v16275_v10  ;;  %v16301_v7 = vcombine.low %v16267_v23, %v16275_v10  ;;  %v16255_v10 = vld [vmem:[%s25030_s7 + $0x220] sm:$0xff] }
 0xfe8   :  { %v5158_v59 = vsel %vm112_vm1, %v5150_v53, 0.0  ;;  %v16294_v8 = vcombine.high %v16255_v10, %v16263_v4 }
 0xfe9   :  { %5159 = vadd.xlane.f32.xlu1 %v5158_v59  ;;  %5491 = vmatprep.subr.bf16.mxu1 %v16302_v43  ;;  %v16256_v43 = vld [vmem:[%s25030_s7 + $0x228] sm:$0xff] }
 0xfea   :  { %5492 = vmatpush1.bf16.msra.mxu1 %v16301_v7  ;;  %v16296_v27 = vcombine.high %v16256_v43, %v16264_v5  ;;  %v16295_v20 = vcombine.low %v16256_v43, %v16264_v5  ;;  %v19987_v43 = vld [vmem:[%s25032_s9 + $0x840] sm:$0xff]  }
 0xfeb   :  { %5493 = vmatprep.subr.bf16.mxu1 %v16286_v15  ;;  %v16274_v15 = vld [vmem:[%s25030_s7 + $0x2b8] sm:$0xff]  ;;  %v19988_v5 = vld [vmem:[%s25032_s9 + $0x8c0] sm:$0xff]  }
 0xfec   :  { %v16316_v26 = vcombine.high %v16274_v15, %v16282_v40 }
 0xfee   :  { %5494 = vmatpush1.bf16.msra.mxu1 %v16285_v32  ;;  %v16293_v32 = vcombine.low %v16255_v10, %v16263_v4  ;;  %v19985_v10 = vld [vmem:[%s25032_s9 + $0x808] sm:$0xff]  }
 0xfef   :  { %5577 = vmatprep.subr.bf16.mxu1 %v16306_v38  ;;  %v16258_v38 = vld [vmem:[%s25030_s7 + $0x238] sm:$0xff]  ;;  %v19986_v4 = vld [vmem:[%s25032_s9 + $0x888] sm:$0xff]  }
0x106e   :  { %v5157_v17 = vpop.xlane.xlu0 %5156 }
0x106f   :  { %v5161_v60 = vmul.f32 0.03125, %v5157_v17 }
0x1071   :  { %v5163_v63 = vsub.f32 %v5149_v45, %v5161_v60  ;;  %v16290_v60 = vcombine.high %v16253_v18, %v16261_v54 }
0x1072   :  { %v5160_v37 = vpop.xlane.xlu1 %5159 }
0x1073   :  { %v5162_v0 = vmul.f32 0.03125, %v5160_v37  ;;  %v5165_v46 = vmul.f32 %v5163_v63, %v5163_v63  ;;  %v16271_v37 = vld [vmem:[%s25030_s7 + $0x2a0] sm:$0xff] }
0x1075   :  { %v5164_v24 = vsub.f32 %v5150_v53, %v5162_v0  ;;  %v5167_v16 = vsel %vm112_vm1, %v5165_v46, 0.0  ;;  %v16279_v0 = vld [vmem:[%s25030_s7 + $0x2e0] sm:$0xff]  ;;  %v16272_v46 = vld [vmem:[%s25030_s7 + $0x2a8] sm:$0xff] }
0x1076   :  { %5168 = vadd.xlane.f32.xlu0 %v5167_v16  ;;  %v16289_v16 = vcombine.low %v16253_v18, %v16261_v54  ;;  %v16309_v7 = vcombine.low %v16271_v37, %v16279_v0  ;;  %v19970_v18 = vld [vmem:[%s25032_s9 + $0x8a8] sm:$0xff]   ;;  %v19971_v54 = vld [vmem:[%s25032_s9 + $0x860] sm:$0xff]  }
0x1077   :  { %v5166_v30 = vmul.f32 %v5164_v24, %v5164_v24 }
0x1079   :  { %v5170_v35 = vsel %vm112_vm1, %v5166_v30, 0.0  ;;  %v16291_v30 = vcombine.low %v16254_v55, %v16262_v57 }
0x107a   :  { %5171 = vadd.xlane.f32.xlu1 %v5170_v35  ;;  %v16310_v35 = vcombine.high %v16271_v37, %v16279_v0  ;;  %v19977_v37 = vld [vmem:[%s25032_s9 + $0x818] sm:$0xff]  }
0x107b   :  { %v19978_v0 = vld [vmem:[%s25032_s9 + $0x898] sm:$0xff]  }
0x10ff   :  { %v5169_v36 = vpop.xlane.xlu0 %5168 }
0x1100   :  { %v5173_v50 = vmul.f32 0.03125, %v5169_v36  ;;  %v16300_v36 = vcombine.high %v16258_v38, %v16266_v48 }
0x1102   :  { %v5175_v42 = vadd.f32 1e-05, %v5173_v50  ;;  %v16297_v50 = vcombine.low %v16257_v12, %v16265_v28 }
0x1103   :  { %v5172_v44 = vpop.xlane.xlu1 %5171 }
0x1104   :  { %20585 = vrsqrt.f32 %v5175_v42  ;;  %v5174_v47 = vmul.f32 0.03125, %v5172_v44  ;;  %v16299_v42 = vcombine.low %v16258_v38, %v16266_v48  ;;  %v19959_v44 = vld [vmem:[%s25032_s9 + $0x878] sm:$0xff]  }
0x1106   :  { %v5176_v51 = vadd.f32 1e-05, %v5174_v47  ;;  %v19960_v47 = vld [vmem:[%s25032_s9 + $0x8f8] sm:$0xff]  }
0x1108   :  { %20587 = vrsqrt.f32 %v5176_v51  ;;  %v19961_v51 = vld [vmem:[%s25032_s9 + $0x838] sm:$0xff]  }
0x1111   :  { %v20586_v33 = vpop.eup %20585 }
0x1112   :  { %v5179_v19 = vmul.f32 %v20586_v33, %v5163_v63  ;;  %v16292_v63 = vcombine.high %v16254_v55, %v16262_v57  ;;  %v19962_v33 = vld [vmem:[%s25032_s9 + $0x8b8] sm:$0xff]   ;;  %v19972_v55 = vld [vmem:[%s25032_s9 + $0x8e0] sm:$0xff]  }
0x1113   :  { %v19973_v57 = vld [vmem:[%s25032_s9 + $0x820] sm:$0xff]  }
0x1114   :  { %v5187_v41 = vmul.f32 %v16249_v52, %v5179_v19  ;;  %v19963_v19 = vld [vmem:[%s25032_s9 + $0x870] sm:$0xff]  }
0x1115   :  { %v20588_v31 = vpop.eup %20587 }
0x1116   :  { %v5180_v1 = vmul.f32 %v20588_v31, %v5164_v24  ;;  %v22262_v53 = vadd.f32 %v16250_v61, %v5187_v41  ;;  %v16280_v24 = vld [vmem:[%s25030_s7 + $0x2e8] sm:$0xff]  ;;  %v19965_v31 = vld [vmem:[%s25032_s9 + $0x830] sm:$0xff]  }
0x1117   :  { %v16312_v23 = vcombine.high %v16272_v46, %v16280_v24  ;;  %v16311_v39 = vcombine.low %v16272_v46, %v16280_v24  ;;  %v19966_v41 = vld [vmem:[%s25032_s9 + $0x8b0] sm:$0xff]  }
0x1118   :  { %v5188_v45 = vmul.f32 %v16249_v52, %v5180_v1  ;;  %v19964_v52 = vld [vmem:[%s25032_s9 + $0x8f0] sm:$0xff]   ;;  %v19967_v1 = vld [vmem:[%s25032_s9 + $0x868] sm:$0xff]  }
0x1119   :  { %v19979_v46 = vld [vmem:[%s25032_s9 + $0x850] sm:$0xff]  }
0x111a   :  { %v22264_v59 = vadd.f32 %v16250_v61, %v5188_v45  ;;  %v19968_v61 = vld [vmem:[%s25032_s9 + $0x8e8] sm:$0xff]   ;;  %v19980_v24 = vld [vmem:[%s25032_s9 + $0x8d0] sm:$0xff]  }
0x111b   :  { %v19969_v45 = vld [vmem:[%s25032_s9 + $0x828] sm:$0xff]  }
0x111c   :  { %v22268_v17 = vpack.c.bf16 %v22264_v59, %v22262_v53 }
0x111e   :  { %16317 = vmatmul.mubr.msk.bf16.vlgmr.msra.gmra.mxu1 %vm112_vm1, %v22268_v17  ;;  %16318 = vmatmul.mubr.msk.bf16.vlgmr.msra.gmra.mxu0 %vm112_vm1, %v22268_v17 }
0x111f   :  { %5578 = vmatpush1.bf16.msra.mxu1 %v16305_v34  ;;  %5621 = vmatpush1.bf16.msra.mxu0 %v16307_v3  ;;  %v16313_v34 = vcombine.low %v16273_v29, %v16281_v11  ;;  %v16315_v3 = vcombine.low %v16274_v15, %v16282_v40  ;;  %v22445_v29 = vld [vmem:[%s25031_s8 + $0x20] sm:$0xff] }
0x1120   :  { %5579 = vmatprep.subr.bf16.mxu1 %v16290_v60  ;;  %5622 = vmatprep.subr.bf16.mxu0 %v16292_v63  ;;  %v19975_v60 = vld [vmem:[%s25032_s9 + $0x858] sm:$0xff]   ;;  %v5243_v40 = vrot.slane %v22445_v29, %v20803_v14 }
0x1121   :  { %5597 = vmatprep.mubr.bf16.mxu1 %v20678_v2  ;;  %5640 = vmatprep.mubr.bf16.mxu0 %v20678_v2  ;;  %v19976_v63 = vld [vmem:[%s25032_s9 + $0x8d8] sm:$0xff]  }
0x1123   :  { %5580 = vmatpush1.bf16.msra.mxu1 %v16289_v16  ;;  %5623 = vmatpush1.bf16.msra.mxu0 %v16291_v30  ;;  %v19981_v16 = vld [vmem:[%s25032_s9 + $0x810] sm:$0xff]  }
0x1124   :  { %5663 = vmatprep.subr.bf16.mxu1 %v16310_v35  ;;  %5706 = vmatprep.subr.bf16.mxu0 %v16312_v23  ;;  %v19982_v30 = vld [vmem:[%s25032_s9 + $0x890] sm:$0xff]   ;;  %v19983_v35 = vld [vmem:[%s25032_s9 + $0x848] sm:$0xff]  }
0x1125   :  { %v19984_v23 = vld [vmem:[%s25032_s9 + $0x8c8] sm:$0xff]  }
0x1126   :  { %16319 = vmatmul.mubr.msk.bf16.vlgmr.msra.gmra.mxu1 %vm112_vm1, %v22268_v17  ;;  %16320 = vmatmul.mubr.msk.bf16.vlgmr.msra.gmra.mxu0 %vm112_vm1, %v22268_v17 }
0x1127   :  { %5664 = vmatpush1.bf16.msra.mxu1 %v16309_v7  ;;  %5707 = vmatpush1.bf16.msra.mxu0 %v16311_v39  ;;  %v19989_v7 = vld [vmem:[%s25032_s9 + $0x800] sm:$0xff]  }
0x1128   :  { %5665 = vmatprep.subr.bf16.mxu1 %v16294_v8  ;;  %5708 = vmatprep.subr.bf16.mxu0 %v16296_v27  ;;  %v19990_v39 = vld [vmem:[%s25032_s9 + $0x880] sm:$0xff]   ;;  %v19991_v8 = vld [vmem:[%s25032_s9 + $0x978] sm:$0xff]  }
0x1129   :  { %5683 = vmatprep.mubr.bf16.mxu1 %v20678_v2  ;;  %5726 = vmatprep.mubr.bf16.mxu0 %v20678_v2  ;;  %v19992_v27 = vld [vmem:[%s25032_s9 + $0x9f8] sm:$0xff]  }
0x112b   :  { %5666 = vmatpush1.bf16.msra.mxu1 %v16293_v32  ;;  %5709 = vmatpush1.bf16.msra.mxu0 %v16295_v20  ;;  %v5251_v32 = vrot.slane %v22445_v29, %v21080_v49  ;;  %v5239_v20 = vrot.slane %v22445_v29, %v20800_v13 }
0x112c   :  { %5749 = vmatprep.subr.bf16.mxu1 %v16314_v56  ;;  %5792 = vmatprep.subr.bf16.mxu0 %v16316_v26  ;;  %v5247_v56 = vrot.slane %v22445_v29, %v20822_v58 }
0x112e   :  { %16321 = vmatmul.mubr.msk.bf16.vlgmr.msra.gmra.mxu1 %vm112_vm1, %v22268_v17  ;;  %16322 = vmatmul.mubr.msk.bf16.vlgmr.msra.gmra.mxu0 %vm112_vm1, %v22268_v17 }
0x112f   :  { %5750 = vmatpush1.bf16.msra.mxu1 %v16313_v34  ;;  %5793 = vmatpush1.bf16.msra.mxu0 %v16315_v3 }
0x1130   :  { %5751 = vmatprep.subr.bf16.mxu1 %v16298_v25  ;;  %5794 = vmatprep.subr.bf16.mxu0 %v16300_v36 }
0x1131   :  { %5769 = vmatprep.mubr.bf16.mxu1 %v20678_v2  ;;  %5812 = vmatprep.mubr.bf16.mxu0 %v20678_v2 }
0x1133   :  { %5752 = vmatpush1.bf16.msra.mxu1 %v16297_v50  ;;  %5795 = vmatpush1.bf16.msra.mxu0 %v16299_v42 }
0x1134   :  { %18675 = vmatprep.subr.bf16.mxu1 %v19959_v44  ;;  %18697 = vmatprep.subr.bf16.mxu0 %v19960_v47 }
0x1136   :  { %16323 = vmatmul.mubr.msk.bf16.vlgmr.msra.gmra.mxu1 %vm112_vm1, %v22268_v17  ;;  %16324 = vmatmul.mubr.msk.bf16.vlgmr.msra.gmra.mxu0 %vm112_vm1, %v22268_v17  ;;  %v19974_v17 = vld [vmem:[%s25032_s9 + $0x8a0] sm:$0xff]  }
0x1137   :  { %18676 = vmatpush3.bf16.msra.mxu1 %v19961_v51  ;;  %18698 = vmatpush3.bf16.msra.mxu0 %v19962_v33 }
0x1138   :  { %18677 = vmatprep.subr.bf16.mxu1 %v19963_v19  ;;  %18699 = vmatprep.subr.bf16.mxu0 %v19964_v52 }
0x113b   :  { %18678 = vmatpush3.bf16.msra.mxu1 %v19965_v31  ;;  %18700 = vmatpush3.bf16.msra.mxu0 %v19966_v41  ;;  %v5259_v41 = vrot.slane %v22445_v29, %v21096_v62 }
0x113c   :  { %18679 = vmatprep.subr.bf16.mxu1 %v19967_v1  ;;  %18701 = vmatprep.subr.bf16.mxu0 %v19968_v61 }
0x113f   :  { %18680 = vmatpush3.bf16.msra.mxu1 %v19969_v45  ;;  %18702 = vmatpush3.bf16.msra.mxu0 %v19970_v18 }
0x1140   :  { %18681 = vmatprep.subr.bf16.mxu1 %v19971_v54  ;;  %18703 = vmatprep.subr.bf16.mxu0 %v19972_v55 }
0x1143   :  { %18682 = vmatpush3.bf16.msra.mxu1 %v19973_v57  ;;  %18704 = vmatpush3.bf16.msra.mxu0 %v19974_v17  ;;  %v5267_v17 = vrot.slane %v22445_v29, %v21099_v9 }
0x1144   :  { %18683 = vmatprep.subr.bf16.mxu1 %v19975_v60  ;;  %18705 = vmatprep.subr.bf16.mxu0 %v19976_v63 }
0x1147   :  { %18684 = vmatpush3.bf16.msra.mxu1 %v19977_v37  ;;  %18706 = vmatpush3.bf16.msra.mxu0 %v19978_v0  ;;  %v19993_v0 = vld [vmem:[%s25032_s9 + $0x938] sm:$0xff]  }
0x1148   :  { %18685 = vmatprep.subr.bf16.mxu1 %v19979_v46  ;;  %18707 = vmatprep.subr.bf16.mxu0 %v19980_v24  ;;  %v19994_v46 = vld [vmem:[%s25032_s9 + $0x9b8] sm:$0xff]  }
0x114b   :  { %18686 = vmatpush3.bf16.msra.mxu1 %v19981_v16  ;;  %18708 = vmatpush3.bf16.msra.mxu0 %v19982_v30 }
0x114c   :  { %18687 = vmatprep.subr.bf16.mxu1 %v19983_v35  ;;  %18709 = vmatprep.subr.bf16.mxu0 %v19984_v23  ;;  %v19995_v23 = vld [vmem:[%s25032_s9 + $0x970] sm:$0xff]  }
0x114f   :  { %18688 = vmatpush3.bf16.msra.mxu1 %v19985_v10  ;;  %18710 = vmatpush3.bf16.msra.mxu0 %v19986_v4  ;;  %v19996_v10 = vld [vmem:[%s25032_s9 + $0x9f0] sm:$0xff]  }
0x1150   :  { %18689 = vmatprep.subr.bf16.mxu1 %v19987_v43  ;;  %18711 = vmatprep.subr.bf16.mxu0 %v19988_v5 }
0x1153   :  { %18690 = vmatpush3.bf16.msra.mxu1 %v19989_v7  ;;  %18712 = vmatpush3.bf16.msra.mxu0 %v19990_v39 }
0x1154   :  { %18719 = vmatprep.subr.bf16.mxu1 %v19991_v8  ;;  %18741 = vmatprep.subr.bf16.mxu0 %v19992_v27  ;;  %v19997_v27 = vld [vmem:[%s25032_s9 + $0x930] sm:$0xff]  }
0x11de   :  { %v5513_v11 = vpop.f32.mrf.mxu1  ;;  %v5556_v15 = vpop.f32.mrf.mxu0 }
0x11df   :  { %v5514_v36 = vadd.f32 %v5513_v11, %v5239_v20  ;;  %v5557_v50 = vadd.f32 %v5556_v15, %v5247_v56  ;;  %v19998_v11 = vld [vmem:[%s25032_s9 + $0x9b0] sm:$0xff]   ;;  %v19999_v15 = vld [vmem:[%s25032_s9 + $0x968] sm:$0xff]  }
0x11e0   :  { %v5515_v26 = vpop.f32.mrf.mxu1  ;;  %v5558_v12 = vpop.f32.mrf.mxu0 }
0x11e1   :  { %v5516_v48 = vadd.f32 %v5515_v26, %v5243_v40  ;;  %v5559_v34 = vadd.f32 %v5558_v12, %v5251_v32  ;;  %v5823_v54 = vmax.f32 %v5514_v36, 0.0  ;;  %v5825_v55 = vmax.f32 %v5557_v50, 0.0  ;;  %v20005_v50 = vld [vmem:[%s25032_s9 + $0x920] sm:$0xff]  }
0x11e2   :  { %v5517_v28 = vpop.f32.mrf.mxu1  ;;  %v5560_v38 = vpop.f32.mrf.mxu0 }
0x11e3   :  { %v5518_v3 = vadd.f32 %v5517_v28, %v5239_v20  ;;  %v5561_v25 = vadd.f32 %v5560_v38, %v5247_v56  ;;  %v5824_v1 = vmax.f32 %v5516_v48, 0.0  ;;  %v5826_v61 = vmax.f32 %v5559_v34, 0.0  ;;  %v20001_v28 = vld [vmem:[%s25032_s9 + $0x928] sm:$0xff]   ;;  %v20003_v34 = vld [vmem:[%s25032_s9 + $0x960] sm:$0xff]  }
0x11e4   :  { %v5519_v42 = vpop.f32.mrf.mxu1  ;;  %v5562_v44 = vpop.f32.mrf.mxu0  ;;  %v20002_v38 = vld [vmem:[%s25032_s9 + $0x9a8] sm:$0xff]  }
0x11e5   :  { %v5520_v47 = vadd.f32 %v5519_v42, %v5243_v40  ;;  %v5563_v51 = vadd.f32 %v5562_v44, %v5251_v32  ;;  %v5839_v33 = vmax.f32 %v5518_v3, 0.0  ;;  %v5841_v19 = vmax.f32 %v5561_v25, 0.0  ;;  %v20000_v40 = vld [vmem:[%s25032_s9 + $0x9e8] sm:$0xff]   ;;  %v20004_v3 = vld [vmem:[%s25032_s9 + $0x9e0] sm:$0xff]   ;;  %v20007_v44 = vld [vmem:[%s25032_s9 + $0x958] sm:$0xff]  }
0x11e6   :  { %v22455_v52 = vpop.f32.mrf.mxu1  ;;  %v22457_v31 = vpop.f32.mrf.mxu0  ;;  %v20006_v42 = vld [vmem:[%s25032_s9 + $0x9a0] sm:$0xff]  }
0x11e7   :  { %v5840_v45 = vmax.f32 %v5520_v47, 0.0  ;;  %v5842_v18 = vmax.f32 %v5563_v51, 0.0  ;;  %v6112_v24 = vpack.c.bf16 %v5839_v33, %v5823_v54  ;;  %v6114_v16 = vpack.c.bf16 %v5841_v19, %v5825_v55  ;;  %v20008_v47 = vld [vmem:[%s25032_s9 + $0x9d8] sm:$0xff]   ;;  %v20013_v54 = vld [vmem:[%s25032_s9 + $0x910] sm:$0xff]  }
0x11e8   :  { %v5601_v57 = vpop.f32.mrf.mxu1  ;;  %v5644_v60 = vpop.f32.mrf.mxu0  ;;  %v20009_v19 = vld [vmem:[%s25032_s9 + $0x918] sm:$0xff]   ;;  %v20014_v55 = vld [vmem:[%s25032_s9 + $0x990] sm:$0xff]  }
0x11e9   :  { %v6113_v63 = vpack.c.bf16 %v5840_v45, %v5824_v1  ;;  %v6115_v37 = vpack.c.bf16 %v5842_v18, %v5826_v61  ;;  %v5602_v4 = vadd.f32 %v5601_v57, %v5259_v41  ;;  %v5645_v43 = vadd.f32 %v5644_v60, %v5267_v17  ;;  %v20011_v1 = vld [vmem:[%s25032_s9 + $0x950] sm:$0xff]   ;;  %v20015_v57 = vld [vmem:[%s25032_s9 + $0x948] sm:$0xff]  }
0x11ea   :  { %v22469_v30 = vpop.f32.mrf.mxu1  ;;  %v22471_v35 = vpop.f32.mrf.mxu0  ;;  %v20012_v61 = vld [vmem:[%s25032_s9 + $0x9d0] sm:$0xff]   ;;  %v5255_v60 = vrot.slane %v22445_v29, %v21178_v21 }
0x11eb   :  { %6936 = vmatprep.mubr.bf16.mxu1 %v6113_v63  ;;  %6977 = vmatprep.mubr.bf16.mxu0 %v6115_v37  ;;  %v5828_v32 = vmax.f32 %v5602_v4, 0.0  ;;  %v5830_v26 = vmax.f32 %v5645_v43, 0.0  ;;  %v5263_v63 = vrot.slane %v22445_v29, %v21181_v22  ;;  %v22554_v37 = vld [vmem:[%s25031_s8 + $0x28] sm:$0xff]  ;;  %v20019_v43 = vld [vmem:[%s25032_s9 + $0x940] sm:$0xff]  }
0x11ec   :  { %v5605_v5 = vpop.f32.mrf.mxu1  ;;  %v5648_v7 = vpop.f32.mrf.mxu0  ;;  %6937 = vmatmul.mubr.bf16.vlgmr.msra.gmra.mxu1 %v6112_v24  ;;  %6978 = vmatmul.mubr.bf16.vlgmr.msra.gmra.mxu0 %v6114_v16  ;;  %v20017_v16 = vld [vmem:[%s25032_s9 + $0x908] sm:$0xff]   ;;  %v5283_v4 = vrot.slane %v22554_v37, %v21080_v49 }
0x11ed   :  { %v5606_v39 = vadd.f32 %v5605_v5, %v5259_v41  ;;  %v5649_v8 = vadd.f32 %v5648_v7, %v5267_v17  ;;  %18720 = vmatpush3.bf16.msra.mxu1 %v19993_v0  ;;  %18742 = vmatpush3.bf16.msra.mxu0 %v19994_v46  ;;  %v20010_v41 = vld [vmem:[%s25032_s9 + $0x998] sm:$0xff]   ;;  %v20016_v17 = vld [vmem:[%s25032_s9 + $0x9c8] sm:$0xff]   ;;  %v5275_v46 = vrot.slane %v22554_v37, %v20803_v14  ;;  %v20020_v5 = vld [vmem:[%s25032_s9 + $0x9c0] sm:$0xff]  }
0x11ee   :  { %18721 = vmatprep.subr.bf16.mxu1 %v19995_v23  ;;  %18743 = vmatprep.subr.bf16.mxu0 %v19996_v10  ;;  %v22503_v25 = vpop.f32.mrf.mxu1  ;;  %v22505_v36 = vpop.f32.mrf.mxu0  ;;  %v20018_v29 = vld [vmem:[%s25032_s9 + $0x988] sm:$0xff]   ;;  %v5604_v23 = vadd.f32 %v22469_v30, %v5255_v60  ;;  %v5647_v10 = vadd.f32 %v22471_v35, %v5263_v63  ;;  %v5643_v30 = vadd.f32 %v22457_v31, %v5263_v63  ;;  %v20024_v31 = vld [vmem:[%s25032_s9 + $0xaf8] sm:$0xff]  }
0x11ef   :  { %v5844_v20 = vmax.f32 %v5606_v39, 0.0  ;;  %v5846_v56 = vmax.f32 %v5649_v8, 0.0  ;;  %v5600_v39 = vadd.f32 %v22455_v52, %v5255_v60  ;;  %v20023_v52 = vld [vmem:[%s25032_s9 + $0xa78] sm:$0xff]   ;;  %v20037_v60 = vld [vmem:[%s25032_s9 + $0xa20] sm:$0xff]  }
0x11f0   :  { %v5687_v51 = vpop.f32.mrf.mxu1  ;;  %v5730_v33 = vpop.f32.mrf.mxu0 }
0x11f1   :  { %18722 = vmatpush3.bf16.msra.mxu1 %v19997_v27  ;;  %18744 = vmatpush3.bf16.msra.mxu0 %v19998_v11  ;;  %v6117_v12 = vpack.c.bf16 %v5844_v20, %v5828_v32  ;;  %v6119_v48 = vpack.c.bf16 %v5846_v56, %v5830_v26  ;;  %v5688_v35 = vadd.f32 %v5687_v51, %v5275_v46  ;;  %v20021_v27 = vld [vmem:[%s25032_s9 + $0x900] sm:$0xff]   ;;  %v5827_v56 = vmax.f32 %v5600_v39, 0.0 }
0x11f2   :  { %18723 = vmatprep.subr.bf16.mxu1 %v19999_v15  ;;  %18745 = vmatprep.subr.bf16.mxu0 %v20000_v40  ;;  %v22531_v45 = vpop.f32.mrf.mxu1  ;;  %v22533_v18 = vpop.f32.mrf.mxu0  ;;  %v20022_v11 = vld [vmem:[%s25032_s9 + $0x980] sm:$0xff]   ;;  %v5843_v15 = vmax.f32 %v5604_v23, 0.0  ;;  %v5845_v40 = vmax.f32 %v5647_v10, 0.0  ;;  %v5731_v32 = vadd.f32 %v5730_v33, %v5283_v4  ;;  %v5829_v26 = vmax.f32 %v5643_v30, 0.0  ;;  %v20029_v33 = vld [vmem:[%s25032_s9 + $0xa30] sm:$0xff]   ;;  %v20042_v10 = vld [vmem:[%s25032_s9 + $0xa98] sm:$0xff]  }
0x11f3   :  { %7018 = vmatprep.mubr.bf16.mxu1 %v6117_v12  ;;  %7059 = vmatprep.mubr.bf16.mxu0 %v6119_v48  ;;  %v20046_v30 = vld [vmem:[%s25032_s9 + $0xa90] sm:$0xff]  }
0x11f4   :  { %v5691_v0 = vpop.f32.mrf.mxu1  ;;  %v5734_v24 = vpop.f32.mrf.mxu0  ;;  %v6116_v48 = vpack.c.bf16 %v5843_v15, %v5827_v56  ;;  %v20051_v56 = vld [vmem:[%s25032_s9 + $0xa40] sm:$0xff]  }
0x11f5   :  { %18724 = vmatpush3.bf16.msra.mxu1 %v20001_v28  ;;  %18746 = vmatpush3.bf16.msra.mxu0 %v20002_v38  ;;  %v5692_v7 = vadd.f32 %v5691_v0, %v5275_v46  ;;  %v5735_v8 = vadd.f32 %v5734_v24, %v5283_v4  ;;  %v5832_v28 = vmax.f32 %v5688_v35, 0.0  ;;  %v20025_v38 = vld [vmem:[%s25032_s9 + $0xa38] sm:$0xff]   ;;  %v20038_v0 = vld [vmem:[%s25032_s9 + $0xaa0] sm:$0xff]   ;;  %v20043_v4 = vld [vmem:[%s25032_s9 + $0xa50] sm:$0xff]  }
0x11f6   :  { %18725 = vmatprep.subr.bf16.mxu1 %v20003_v34  ;;  %18747 = vmatprep.subr.bf16.mxu0 %v20004_v3  ;;  %v6118_v34 = vpack.c.bf16 %v5845_v40, %v5829_v26  ;;  %v5834_v3 = vmax.f32 %v5731_v32, 0.0  ;;  %v22629_v63 = vpop.f32.mrf.mxu0  ;;  %v20039_v46 = vld [vmem:[%s25032_s9 + $0xa58] sm:$0xff]   ;;  %v20048_v35 = vld [vmem:[%s25032_s9 + $0xac8] sm:$0xff]  }
0x11f7   :  { %v5848_v20 = vmax.f32 %v5692_v7, 0.0  ;;  %v5850_v12 = vmax.f32 %v5735_v8, 0.0  ;;  %v20040_v24 = vld [vmem:[%s25032_s9 + $0xad8] sm:$0xff]   ;;  %v20045_v7 = vld [vmem:[%s25032_s9 + $0xa10] sm:$0xff]   ;;  %v20047_v8 = vld [vmem:[%s25032_s9 + $0xa48] sm:$0xff]  }
0x11f8   :  { %v5816_v23 = vpop.f32.mrf.mxu0  ;;  %v20049_v40 = vld [vmem:[%s25032_s9 + $0xa08] sm:$0xff]  }
0x11f9   :  { %18726 = vmatpush3.bf16.msra.mxu1 %v20005_v50  ;;  %18748 = vmatpush3.bf16.msra.mxu0 %v20006_v42  ;;  %v20026_v50 = vld [vmem:[%s25032_s9 + $0xab8] sm:$0xff]   ;;  %v6121_v42 = vpack.c.bf16 %v5848_v20, %v5832_v28  ;;  %v6123_v51 = vpack.c.bf16 %v5850_v12, %v5834_v3  ;;  %v20050_v20 = vld [vmem:[%s25032_s9 + $0xa88] sm:$0xff]   ;;  %v5299_v12 = vrot.slane %v22554_v37, %v21099_v9  ;;  %v20053_v3 = vld [vmem:[%s25032_s9 + $0xa00] sm:$0xff]  }
0x11fa   :  { %18727 = vmatprep.subr.bf16.mxu1 %v20007_v44  ;;  %18749 = vmatprep.subr.bf16.mxu0 %v20008_v47  ;;  %v20027_v44 = vld [vmem:[%s25032_s9 + $0xa70] sm:$0xff]   ;;  %v22657_v39 = vpop.f32.mrf.mxu0 }
0x11fb   :  { %v20028_v47 = vld [vmem:[%s25032_s9 + $0xaf0] sm:$0xff]  }
0x11fd   :  { %18728 = vmatpush3.bf16.msra.mxu1 %v20009_v19  ;;  %18750 = vmatpush3.bf16.msra.mxu0 %v20010_v41  ;;  %v20030_v19 = vld [vmem:[%s25032_s9 + $0xab0] sm:$0xff]   ;;  %v20031_v41 = vld [vmem:[%s25032_s9 + $0xa68] sm:$0xff]  }
0x11fe   :  { %18729 = vmatprep.subr.bf16.mxu1 %v20011_v1  ;;  %18751 = vmatprep.subr.bf16.mxu0 %v20012_v61  ;;  %v20032_v1 = vld [vmem:[%s25032_s9 + $0xae8] sm:$0xff]  }
0x11ff   :  { %v20033_v61 = vld [vmem:[%s25032_s9 + $0xa28] sm:$0xff]  }
0x1201   :  { %18730 = vmatpush3.bf16.msra.mxu1 %v20013_v54  ;;  %18752 = vmatpush3.bf16.msra.mxu0 %v20014_v55  ;;  %v20034_v54 = vld [vmem:[%s25032_s9 + $0xaa8] sm:$0xff]   ;;  %v20035_v55 = vld [vmem:[%s25032_s9 + $0xa60] sm:$0xff]  }
0x1202   :  { %18731 = vmatprep.subr.bf16.mxu1 %v20015_v57  ;;  %18753 = vmatprep.subr.bf16.mxu0 %v20016_v17  ;;  %v20036_v57 = vld [vmem:[%s25032_s9 + $0xae0] sm:$0xff]   ;;  %v22624_v17 = vpop.f32.mrf.mxu1 }
0x1205   :  { %18732 = vmatpush3.bf16.msra.mxu1 %v20017_v16  ;;  %18754 = vmatpush3.bf16.msra.mxu0 %v20018_v29  ;;  %v5773_v16 = vpop.f32.mrf.mxu1  ;;  %v20041_v29 = vld [vmem:[%s25032_s9 + $0xa18] sm:$0xff]  }
0x1206   :  { %18733 = vmatprep.subr.bf16.mxu1 %v20019_v43  ;;  %18755 = vmatprep.subr.bf16.mxu0 %v20020_v5  ;;  %v20044_v43 = vld [vmem:[%s25032_s9 + $0xad0] sm:$0xff]  }
0x1207   :  { %v22652_v5 = vpop.f32.mrf.mxu1 }
0x1209   :  { %18734 = vmatpush3.bf16.msra.mxu1 %v20021_v27  ;;  %18756 = vmatpush3.bf16.msra.mxu0 %v20022_v11  ;;  %v5271_v27 = vrot.slane %v22554_v37, %v20800_v13  ;;  %v5279_v11 = vrot.slane %v22554_v37, %v20822_v58  ;;  %v5777_v15 = vpop.f32.mrf.mxu1 }
0x120a   :  { %18763 = vmatprep.subr.bf16.mxu1 %v20023_v52  ;;  %18785 = vmatprep.subr.bf16.mxu0 %v20024_v31  ;;  %v5291_v52 = vrot.slane %v22554_v37, %v21096_v62  ;;  %v5820_v31 = vpop.f32.mrf.mxu0 }
0x120b   :  { %v5690_v32 = vadd.f32 %v22531_v45, %v5271_v27  ;;  %v5733_v26 = vadd.f32 %v22533_v18, %v5279_v11  ;;  %v20052_v45 = vld [vmem:[%s25032_s9 + $0xac0] sm:$0xff]   ;;  %v5686_v28 = vadd.f32 %v22503_v25, %v5271_v27  ;;  %v20055_v25 = vld [vmem:[%s25032_s9 + $0xb78] sm:$0xff]  }
0x120c   :  { %7019 = vmatmul.mubr.bf16.vlgmr.msra.gmra.mxu1 %v6116_v48  ;;  %7060 = vmatmul.mubr.bf16.vlgmr.msra.gmra.mxu0 %v6118_v34  ;;  %v5729_v48 = vadd.f32 %v22505_v36, %v5279_v11  ;;  %v5821_v34 = vadd.f32 %v5820_v31, %v5299_v12  ;;  %v5817_v36 = vadd.f32 %v5816_v23, %v5299_v12  ;;  %v20062_v23 = vld [vmem:[%s25032_s9 + $0xbb0] sm:$0xff]   ;;  %v20070_v27 = vld [vmem:[%s25032_s9 + $0xba0] sm:$0xff]   ;;  %v20071_v11 = vld [vmem:[%s25032_s9 + $0xb58] sm:$0xff]  }
0x120d   :  { %18764 = vmatpush3.bf16.msra.mxu1 %v20025_v38  ;;  %7100 = vmatprep.mubr.bf16.mxu1 %v6121_v42  ;;  %v5778_v38 = vadd.f32 %v5777_v15, %v5291_v52  ;;  %v5847_v18 = vmax.f32 %v5690_v32, 0.0  ;;  %v20054_v42 = vld [vmem:[%s25032_s9 + $0xa80] sm:$0xff]   ;;  %v20072_v15 = vld [vmem:[%s25032_s9 + $0xbd8] sm:$0xff]   ;;  %v20076_v31 = vld [vmem:[%s25032_s9 + $0xbd0] sm:$0xff]  }
0x120e   :  { %18786 = vmatpush3.bf16.msra.mxu0 %v20026_v50  ;;  %7141 = vmatprep.mubr.bf16.mxu0 %v6123_v51  ;;  %v5774_v50 = vadd.f32 %v5773_v16, %v5291_v52  ;;  %v5831_v51 = vmax.f32 %v5686_v28, 0.0  ;;  %v20074_v32 = vld [vmem:[%s25032_s9 + $0xb98] sm:$0xff]   ;;  %v20075_v52 = vld [vmem:[%s25032_s9 + $0xb50] sm:$0xff]   ;;  %v20080_v12 = vld [vmem:[%s25032_s9 + $0xbc8] sm:$0xff]   ;;  %v5295_v28 = vrot.slane %v22554_v37, %v21181_v22 }
0x120f   :  { %18765 = vmatprep.subr.bf16.mxu1 %v20027_v44  ;;  %18787 = vmatprep.subr.bf16.mxu0 %v20028_v47  ;;  %v5849_v44 = vmax.f32 %v5733_v26, 0.0  ;;  %v20056_v47 = vld [vmem:[%s25032_s9 + $0xbf8] sm:$0xff]   ;;  %v20079_v26 = vld [vmem:[%s25032_s9 + $0xb48] sm:$0xff]  }
0x1211   :  { %18766 = vmatpush3.bf16.msra.mxu1 %v20029_v33  ;;  %v5852_v33 = vmax.f32 %v5778_v38, 0.0  ;;  %v20081_v38 = vld [vmem:[%s25032_s9 + $0xb08] sm:$0xff]  }
0x1212   :  { %18788 = vmatpush3.bf16.msra.mxu0 %v20030_v19  ;;  %18767 = vmatprep.subr.bf16.mxu1 %v20031_v41  ;;  %v5833_v19 = vmax.f32 %v5729_v48, 0.0  ;;  %v5854_v41 = vmax.f32 %v5821_v34, 0.0  ;;  %v20082_v34 = vld [vmem:[%s25032_s9 + $0xb88] sm:$0xff]  }
0x1213   :  { %18789 = vmatprep.subr.bf16.mxu0 %v20032_v1  ;;  %v20057_v1 = vld [vmem:[%s25032_s9 + $0xb38] sm:$0xff]  }
0x1215   :  { %18768 = vmatpush3.bf16.msra.mxu1 %v20033_v61  ;;  %v6120_v61 = vpack.c.bf16 %v5847_v18, %v5831_v51  ;;  %v5819_v18 = vadd.f32 %v22657_v39, %v5295_v28  ;;  %v20086_v39 = vld [vmem:[%s25032_s9 + $0xb80] sm:$0xff]  }
0x1216   :  { %18790 = vmatpush3.bf16.msra.mxu0 %v20034_v54  ;;  %18769 = vmatprep.subr.bf16.mxu1 %v20035_v55  ;;  %v5836_v54 = vmax.f32 %v5774_v50, 0.0  ;;  %v20058_v55 = vld [vmem:[%s25032_s9 + $0xbb8] sm:$0xff]  }
0x1217   :  { %18791 = vmatprep.subr.bf16.mxu0 %v20036_v57  ;;  %v6122_v57 = vpack.c.bf16 %v5849_v44, %v5833_v19  ;;  %v5853_v44 = vmax.f32 %v5819_v18, 0.0 }
0x1219   :  { %18770 = vmatpush3.bf16.msra.mxu1 %v20037_v60  ;;  %v5838_v60 = vmax.f32 %v5817_v36, 0.0 }
0x121a   :  { %18792 = vmatpush3.bf16.msra.mxu0 %v20038_v0  ;;  %18771 = vmatprep.subr.bf16.mxu1 %v20039_v46  ;;  %v20059_v0 = vld [vmem:[%s25032_s9 + $0xb70] sm:$0xff]   ;;  %v6125_v46 = vpack.c.bf16 %v5852_v33, %v5836_v54 }
0x121b   :  { %18793 = vmatprep.subr.bf16.mxu0 %v20040_v24  ;;  %v20060_v24 = vld [vmem:[%s25032_s9 + $0xbf0] sm:$0xff]   ;;  %v6127_v16 = vpack.c.bf16 %v5854_v41, %v5838_v60 }
0x121d   :  { %18772 = vmatpush3.bf16.msra.mxu1 %v20041_v29  ;;  %v20061_v29 = vld [vmem:[%s25032_s9 + $0xb30] sm:$0xff]  }
0x121e   :  { %18794 = vmatpush3.bf16.msra.mxu0 %v20042_v10  ;;  %18773 = vmatprep.subr.bf16.mxu1 %v20043_v4  ;;  %v20063_v10 = vld [vmem:[%s25032_s9 + $0xb68] sm:$0xff]  }
0x121f   :  { %18795 = vmatprep.subr.bf16.mxu0 %v20044_v43  ;;  %v20064_v4 = vld [vmem:[%s25032_s9 + $0xbe8] sm:$0xff]  }
0x1220   :  { %v20065_v43 = vld [vmem:[%s25032_s9 + $0xb28] sm:$0xff]  }
0x1221   :  { %18774 = vmatpush3.bf16.msra.mxu1 %v20045_v7  ;;  %v20066_v7 = vld [vmem:[%s25032_s9 + $0xba8] sm:$0xff]  }
0x1222   :  { %18796 = vmatpush3.bf16.msra.mxu0 %v20046_v30  ;;  %18775 = vmatprep.subr.bf16.mxu1 %v20047_v8  ;;  %v20067_v30 = vld [vmem:[%s25032_s9 + $0xb60] sm:$0xff]  }
0x1223   :  { %18797 = vmatprep.subr.bf16.mxu0 %v20048_v35  ;;  %v20068_v8 = vld [vmem:[%s25032_s9 + $0xbe0] sm:$0xff]  }
0x1224   :  { %v20069_v35 = vld [vmem:[%s25032_s9 + $0xb20] sm:$0xff]  }
0x1225   :  { %18776 = vmatpush3.bf16.msra.mxu1 %v20049_v40  ;;  %v20073_v40 = vld [vmem:[%s25032_s9 + $0xb18] sm:$0xff]  }
0x1226   :  { %18798 = vmatpush3.bf16.msra.mxu0 %v20050_v20  ;;  %18777 = vmatprep.subr.bf16.mxu1 %v20051_v56  ;;  %v20077_v20 = vld [vmem:[%s25032_s9 + $0xb10] sm:$0xff]  }
0x1227   :  { %18799 = vmatprep.subr.bf16.mxu0 %v20052_v45  ;;  %v20078_v56 = vld [vmem:[%s25032_s9 + $0xb90] sm:$0xff]   ;;  %v5287_v45 = vrot.slane %v22554_v37, %v21178_v21  ;;  %v20084_v37 = vld [vmem:[%s25032_s9 + $0xbc0] sm:$0xff]  }
0x1229   :  { %18778 = vmatpush3.bf16.msra.mxu1 %v20053_v3  ;;  %v5776_v48 = vadd.f32 %v22652_v5, %v5287_v45  ;;  %v20083_v3 = vld [vmem:[%s25032_s9 + $0xb40] sm:$0xff]   ;;  %v5772_v50 = vadd.f32 %v22624_v17, %v5287_v45  ;;  %v5815_v5 = vadd.f32 %v22629_v63, %v5295_v28 }
0x122a   :  { %18800 = vmatpush3.bf16.msra.mxu0 %v20054_v42  ;;  %18807 = vmatprep.subr.bf16.mxu1 %v20055_v25  ;;  %v20085_v42 = vld [vmem:[%s25032_s9 + $0xb00] sm:$0xff]  }
0x122b   :  { %18829 = vmatprep.subr.bf16.mxu0 %v20056_v47  ;;  %v5851_v25 = vmax.f32 %v5776_v48, 0.0  ;;  %v5835_v36 = vmax.f32 %v5772_v50, 0.0  ;;  %v5837_v47 = vmax.f32 %v5815_v5, 0.0 }
0x122c   :  { %7101 = vmatmul.mubr.bf16.vlgmr.msra.gmra.mxu1 %v6120_v61 }
0x122d   :  { %7142 = vmatmul.mubr.bf16.vlgmr.msra.gmra.mxu0 %v6122_v57  ;;  %18808 = vmatpush3.bf16.msra.mxu1 %v20057_v1  ;;  %v6124_v17 = vpack.c.bf16 %v5851_v25, %v5835_v36  ;;  %v6126_v63 = vpack.c.bf16 %v5853_v44, %v5837_v47 }
0x122e   :  { %7182 = vmatprep.mubr.bf16.mxu1 %v6125_v46  ;;  %18830 = vmatpush3.bf16.msra.mxu0 %v20058_v55 }
0x122f   :  { %7223 = vmatprep.mubr.bf16.mxu0 %v6127_v16  ;;  %18809 = vmatprep.subr.bf16.mxu1 %v20059_v0 }
0x1230   :  { %18831 = vmatprep.subr.bf16.mxu0 %v20060_v24 }
0x1231   :  { %18810 = vmatpush3.bf16.msra.mxu1 %v20061_v29 }
0x1232   :  { %18832 = vmatpush3.bf16.msra.mxu0 %v20062_v23  ;;  %18811 = vmatprep.subr.bf16.mxu1 %v20063_v10  ;;  %v16582_v10 = vld [vmem:[%s25033_s10 + $0x2] ss:$0 sm:$0xff] }
0x1233   :  { %18833 = vmatprep.subr.bf16.mxu0 %v20064_v4 }
0x1235   :  { %18812 = vmatpush3.bf16.msra.mxu1 %v20065_v43 }
0x1236   :  { %18834 = vmatpush3.bf16.msra.mxu0 %v20066_v7  ;;  %18813 = vmatprep.subr.bf16.mxu1 %v20067_v30 }
0x1237   :  { %18835 = vmatprep.subr.bf16.mxu0 %v20068_v8 }
0x1239   :  { %18814 = vmatpush3.bf16.msra.mxu1 %v20069_v35 }
0x123a   :  { %18836 = vmatpush3.bf16.msra.mxu0 %v20070_v27  ;;  %18815 = vmatprep.subr.bf16.mxu1 %v20071_v11 }
0x123b   :  { %18837 = vmatprep.subr.bf16.mxu0 %v20072_v15 }
0x123d   :  { %18816 = vmatpush3.bf16.msra.mxu1 %v20073_v40 }
0x123e   :  { %18838 = vmatpush3.bf16.msra.mxu0 %v20074_v32  ;;  %18817 = vmatprep.subr.bf16.mxu1 %v20075_v52 }
0x123f   :  { %18839 = vmatprep.subr.bf16.mxu0 %v20076_v31 }
0x1241   :  { %18818 = vmatpush3.bf16.msra.mxu1 %v20077_v20 }
0x1242   :  { %18840 = vmatpush3.bf16.msra.mxu0 %v20078_v56  ;;  %18819 = vmatprep.subr.bf16.mxu1 %v20079_v26 }
0x1243   :  { %18841 = vmatprep.subr.bf16.mxu0 %v20080_v12 }
0x1245   :  { %18820 = vmatpush3.bf16.msra.mxu1 %v20081_v38 }
0x1246   :  { %18842 = vmatpush3.bf16.msra.mxu0 %v20082_v34  ;;  %18821 = vmatprep.subr.bf16.mxu1 %v20083_v3 }
0x1247   :  { %18843 = vmatprep.subr.bf16.mxu0 %v20084_v37 }
0x1249   :  { %18822 = vmatpush3.bf16.msra.mxu1 %v20085_v42 }
0x124a   :  { %18844 = vmatpush3.bf16.msra.mxu0 %v20086_v39 }
0x124b   :  { %19493 = vmatprep.subr.bf16.mxu0 %v20679_v6 }
0x124c   :  { %7183 = vmatmul.mubr.bf16.vlgmr.msra.gmra.mxu1 %v6124_v17 }
0x124d   :  { %7224 = vmatmul.mubr.bf16.vlgmr.msra.gmra.mxu0 %v6126_v63  ;;  %7375 = vmatprep.mubr.bf16.mxu1 %v20678_v2 }
0x124e   :  { %19497 = vmatprep.mubr.msk.bf16.mxu0 %vm20680_vm0, %v20679_v6 }
0x12ac   :  { %v18691_v51 = vpop.f32.mrf.mxu1  ;;  %v18713_v33 = vpop.f32.mrf.mxu0 }
0x12ae   :  { %v18692_v19 = vpop.f32.mrf.mxu1  ;;  %v18714_v41 = vpop.f32.mrf.mxu0 }
0x12af   :  { %v18693_v23 = vadd.f32 %v18692_v19, %v18691_v51  ;;  %v18715_v27 = vadd.f32 %v18714_v41, %v18713_v33 }
0x12b0   :  { %v18694_v1 = vpop.f32.mrf.mxu1  ;;  %v18716_v61 = vpop.f32.mrf.mxu0 }
0x12b1   :  { %v6939_v7 = vadd.f32 %v18693_v23, %v16582_v10 }
0x12b2   :  { %v18695_v54 = vpop.f32.mrf.mxu1  ;;  %v18717_v57 = vpop.f32.mrf.mxu0 }
0x12b3   :  { %v18696_v30 = vadd.f32 %v18695_v54, %v18694_v1  ;;  %v6980_v15 = vadd.f32 %v18715_v27, %v6939_v7  ;;  %v18718_v31 = vadd.f32 %v18717_v57, %v18716_v61 }
0x12b5   :  { %v6942_v40 = vadd.f32 %v18696_v30, %v16582_v10 }
0x12b7   :  { %v6983_v26 = vadd.f32 %v18718_v31, %v6942_v40  ;;  %v20087_v40 = vld [vmem:[%s25024_s1 + $0xa8] ss:$12 sps:$4 sm:$0xff]   ;;  %v20091_v31 = vld [vmem:[%s25024_s1 + $0x90] ss:$12 sps:$4 sm:$0xff]  }
0x12cc   :  { %v18735_v55 = vpop.f32.mrf.mxu1  ;;  %v18757_v60 = vpop.f32.mrf.mxu0 }
0x12ce   :  { %v18736_v0 = vpop.f32.mrf.mxu1  ;;  %v18758_v46 = vpop.f32.mrf.mxu0 }
0x12cf   :  { %v18737_v11 = vadd.f32 %v18736_v0, %v18735_v55  ;;  %v18759_v12 = vadd.f32 %v18758_v46, %v18757_v60 }
0x12d0   :  { %v18738_v24 = vpop.f32.mrf.mxu1  ;;  %v18760_v16 = vpop.f32.mrf.mxu0 }
0x12d1   :  { %v7021_v20 = vadd.f32 %v18737_v11, %v6980_v15 }
0x12d2   :  { %v18739_v29 = vpop.f32.mrf.mxu1  ;;  %v18761_v43 = vpop.f32.mrf.mxu0 }
0x12d3   :  { %v18740_v56 = vadd.f32 %v18739_v29, %v18738_v24  ;;  %v7062_v48 = vadd.f32 %v18759_v12, %v7021_v20  ;;  %v18762_v3 = vadd.f32 %v18761_v43, %v18760_v16  ;;  %v20094_v20 = vld [vmem:[%s25024_s1 + $0x98] ss:$12 sps:$4 sm:$0xff]  }
0x12d5   :  { %v7024_v34 = vadd.f32 %v18740_v56, %v6983_v26 }
0x12d7   :  { %v7065_v42 = vadd.f32 %v18762_v3, %v7024_v34  ;;  %v16713_v3 = vld [vmem:[%s25034_s11 + $0x2] ss:$0 sm:$0xff] }
0x12ec   :  { %v18779_v4 = vpop.f32.mrf.mxu1 }
0x12ed   :  { %v18801_v8 = vpop.f32.mrf.mxu0 }
0x12ee   :  { %v18780_v35 = vpop.f32.mrf.mxu1 }
0x12ef   :  { %v18802_v32 = vpop.f32.mrf.mxu0  ;;  %v18781_v45 = vadd.f32 %v18780_v35, %v18779_v4 }
0x12f0   :  { %v18782_v52 = vpop.f32.mrf.mxu1  ;;  %v18803_v25 = vadd.f32 %v18802_v32, %v18801_v8  ;;  %v20090_v32 = vld [vmem:[%s25024_s1 + $0xb0] ss:$12 sps:$4 sm:$0xff]  }
0x12f1   :  { %v18804_v28 = vpop.f32.mrf.mxu0  ;;  %v7103_v18 = vadd.f32 %v18781_v45, %v7062_v48  ;;  %19494 = vmatpush3.bf16.msra.mxu0 %v20090_v32 }
0x12f2   :  { %v18783_v38 = vpop.f32.mrf.mxu1  ;;  %19495 = vmatprep.subr.bf16.mxu0 %v20679_v6 }
0x12f3   :  { %v18784_v37 = vadd.f32 %v18783_v38, %v18782_v52  ;;  %v18805_v50 = vpop.f32.mrf.mxu0  ;;  %v7144_v36 = vadd.f32 %v18803_v25, %v7103_v18  ;;  %v20093_v52 = vld [vmem:[%s25024_s1 + $0x94] ss:$12 sps:$4 sm:$0xff]  }
0x12f4   :  { %v18806_v33 = vadd.f32 %v18805_v50, %v18804_v28 }
0x12f5   :  { %v7106_v47 = vadd.f32 %v18784_v37, %v7065_v42  ;;  %19496 = vmatpush3.bf16.msra.mxu0 %v20094_v20 }
0x12f7   :  { %v7147_v54 = vadd.f32 %v18806_v33, %v7106_v47 }
0x130c   :  { %v18823_v5 = vpop.f32.mrf.mxu1 }
0x130d   :  { %v18845_v39 = vpop.f32.mrf.mxu0 }
0x130e   :  { %v18824_v44 = vpop.f32.mrf.mxu1 }
0x130f   :  { %v18825_v17 = vadd.f32 %v18824_v44, %v18823_v5  ;;  %v18846_v63 = vpop.f32.mrf.mxu0  ;;  %v16714_v5 = vld [vmem:[%s25035_s12 + $0x2] ss:$0 sm:$0xff] }
0x1310   :  { %v18826_v51 = vpop.f32.mrf.mxu1  ;;  %v18847_v41 = vadd.f32 %v18846_v63, %v18845_v39 }
0x1311   :  { %v7185_v19 = vadd.f32 %v18825_v17, %v7144_v36  ;;  %v18848_v1 = vpop.f32.mrf.mxu0  ;;  %v16723_v36 = vld [vmem:[%s25025_s2 + $0x9] sm:$0x7] }
0x1312   :  { %v18827_v61 = vpop.f32.mrf.mxu1  ;;  %v7296_v47 = vrot.slane %v16723_v36, %v20800_v13  ;;  %v7300_v17 = vrot.slane %v16723_v36, %v20803_v14 }
0x1313   :  { %v7226_v55 = vadd.f32 %v18847_v41, %v7185_v19  ;;  %v18828_v57 = vadd.f32 %v18827_v61, %v18826_v51  ;;  %v18849_v60 = vpop.f32.mrf.mxu0 }
0x1314   :  { %v18850_v46 = vadd.f32 %v18849_v60, %v18848_v1 }
0x1315   :  { %v7188_v0 = vadd.f32 %v18828_v57, %v7147_v54  ;;  %v7232_v24 = vadd.f32 %v7226_v55, %v22262_v53 }
0x1317   :  { %v7229_v16 = vadd.f32 %v18850_v46, %v7188_v0  ;;  %v7238_v29 = vsel %vm112_vm1, %v7232_v24, 0.0 }
0x1318   :  { %7239 = vadd.xlane.f32.xlu0 %v7238_v29 }
0x1319   :  { %v7233_v23 = vadd.f32 %v7229_v16, %v22264_v59  ;;  %v20089_v59 = vld [vmem:[%s25024_s1 + $0xac] ss:$12 sps:$4 sm:$0xff]  }
0x131a   :  { %7355 = vmatprep.subr.bf16.mxu1 %v20089_v59 }
0x131b   :  { %v7241_v10 = vsel %vm112_vm1, %v7233_v23, 0.0  ;;  %7356 = vmatpush1.bf16.msra.mxu1 %v20087_v40 }
0x131c   :  { %7242 = vadd.xlane.f32.xlu1 %v7241_v10  ;;  %7357 = vmatprep.subr.bf16.mxu1 %v20093_v52 }
0x131f   :  { %7358 = vmatpush1.bf16.msra.mxu1 %v20091_v31 }
0x1320   :  { %19501 = vmatprep.subr.bf16.mxu1 %v20679_v6 }
0x13a1   :  { %v7240_v4 = vpop.xlane.xlu0 %7239 }
0x13a2   :  { %v7244_v43 = vmul.f32 0.03125, %v7240_v4 }
0x13a4   :  { %v7246_v7 = vsub.f32 %v7232_v24, %v7244_v43 }
0x13a5   :  { %v7243_v30 = vpop.xlane.xlu1 %7242 }
0x13a6   :  { %v7245_v8 = vmul.f32 0.03125, %v7243_v30  ;;  %v7248_v35 = vmul.f32 %v7246_v7, %v7246_v7  ;;  %v20096_v30 = vld [vmem:[%s25026_s3 + $0x30] sm:$0xff]  }
0x13a8   :  { %v7247_v27 = vsub.f32 %v7233_v23, %v7245_v8  ;;  %v7250_v11 = vsel %vm112_vm1, %v7248_v35, 0.0 }
0x13a9   :  { %7251 = vadd.xlane.f32.xlu0 %v7250_v11 }
0x13aa   :  { %v7249_v53 = vmul.f32 %v7247_v27, %v7247_v27 }
0x13ac   :  { %v7253_v15 = vsel %vm112_vm1, %v7249_v53, 0.0 }
0x13ad   :  { %7254 = vadd.xlane.f32.xlu1 %v7253_v15 }
0x1432   :  { %v7252_v56 = vpop.xlane.xlu0 %7251 }
0x1433   :  { %v7256_v26 = vmul.f32 0.03125, %v7252_v56 }
0x1435   :  { %v7258_v12 = vadd.f32 1e-05, %v7256_v26 }
0x1436   :  { %v7255_v45 = vpop.xlane.xlu1 %7254 }
0x1437   :  { %20589 = vrsqrt.f32 %v7258_v12  ;;  %v7257_v28 = vmul.f32 0.03125, %v7255_v45 }
0x1439   :  { %v7259_v38 = vadd.f32 1e-05, %v7257_v28 }
0x143b   :  { %20591 = vrsqrt.f32 %v7259_v38 }
0x1444   :  { %v20590_v48 = vpop.eup %20589 }
0x1445   :  { %v7262_v34 = vmul.f32 %v20590_v48, %v7246_v7  ;;  %v20095_v7 = vld [vmem:[%s25026_s3 + $0x38] sm:$0xff]  }
0x1447   :  { %v7270_v37 = vmul.f32 %v16713_v3, %v7262_v34 }
0x1448   :  { %v20592_v18 = vpop.eup %20591 }
0x1449   :  { %v7263_v50 = vmul.f32 %v20592_v18, %v7247_v27  ;;  %v22841_v25 = vadd.f32 %v16714_v5, %v7270_v37 }
0x144b   :  { %v7271_v42 = vmul.f32 %v16713_v3, %v7263_v50 }
0x144d   :  { %v22843_v39 = vadd.f32 %v16714_v5, %v7271_v42  ;;  %v7304_v5 = vrot.slane %v16723_v36, %v20822_v58 }
0x144f   :  { %v7289_v44 = vpack.c.bf16 %v22843_v39, %v22841_v25 }
0x1451   :  { %16730 = vmatmul.mubr.msk.bf16.vlgmr.msra.gmra.mxu1 %vm112_vm1, %v7289_v44  ;;  %19498 = vmatmul.mubr.msk.bf16.vlgmr.msra.gmra.mxu0 %vm112_vm1, %v7289_v44 }
0x1452   :  { %19505 = vmatprep.mubr.msk.bf16.mxu1 %vm20680_vm0, %v20679_v6  ;;  %7923 = vmatprep.mubr.bf16.mxu0 %v20678_v2 }
0x1453   :  { %19502 = vmatpush3.bf16.msra.mxu1 %v20095_v7 }
0x1454   :  { %19503 = vmatprep.subr.bf16.mxu1 %v20679_v6 }
0x1457   :  { %19504 = vmatpush3.bf16.msra.mxu1 %v20096_v30 }
0x1511   :  { %v7377_v63 = vpop.f32.mrf.mxu1  ;;  %v7420_v51 = vpop.f32.mrf.mxu0 }
0x1512   :  { %v7378_v41 = vadd.f32 %v7377_v63, %v7296_v47  ;;  %v7421_v44 = vadd.f32 %v7420_v51, %v7304_v5  ;;  %v16737_v51 = vld [vmem:[%s25027_s4 + $0x3] ss:$0 sm:$0xff] }
0x1513   :  { %v7379_v33 = vpop.f32.mrf.mxu1  ;;  %v19499_v19 = vpop.f32.mrf.mxu0 }
0x1514   :  { %v7380_v1 = vadd.f32 %v7379_v33, %v7300_v17 }
0x1515   :  { %v7381_v61 = vpop.f32.mrf.mxu1  ;;  %v7423_v54 = vpop.f32.mrf.mxu0 }
0x1516   :  { %v7382_v55 = vadd.f32 %v7381_v61, %v7296_v47  ;;  %v7439_v57 = vmul.f32 %v7380_v1, %v7378_v41  ;;  %v7424_v47 = vadd.f32 %v7423_v54, %v7304_v5 }
0x1517   :  { %v7383_v60 = vpop.f32.mrf.mxu1  ;;  %v19500_v0 = vpop.f32.mrf.mxu0 }
0x1518   :  { %v7384_v46 = vadd.f32 %v7383_v60, %v7300_v17  ;;  %v7440_v24 = vsel %vm112_vm1, %v7439_v57, 0.0  ;;  %v7464_v16 = vmul.f32 %v7382_v55, %v7380_v1 }
0x1519   :  { %7441 = vadd.xlane.f32.xlu0 %v7440_v24 }
0x151a   :  { %v7444_v29 = vmul.f32 %v7384_v46, %v7378_v41  ;;  %v7465_v10 = vsel %vm112_vm1, %v7464_v16, 0.0  ;;  %v7469_v4 = vmul.f32 %v7384_v46, %v7382_v55 }
0x151c   :  { %v7445_v23 = vsel %vm112_vm1, %v7444_v29, 0.0  ;;  %v7470_v43 = vsel %vm112_vm1, %v7469_v4, 0.0 }
0x151d   :  { %7446 = vadd.xlane.f32.xlu1 %v7445_v23  ;;  %7466 = vadd.xlane.f32.xlu0 %v7465_v10 }
0x1521   :  { %7471 = vadd.xlane.f32.xlu1 %v7470_v43 }
0x15a2   :  { %v7442_v8 = vpop.xlane.xlu0 %7441 }
0x15a3   :  { %v7443_v27 = vmul.f32 0.17677669, %v7442_v8 }
0x15a6   :  { %v7447_v35 = vpop.xlane.xlu1 %7446  ;;  %v7467_v53 = vpop.xlane.xlu0 %7466 }
0x15a7   :  { %v7448_v11 = vmul.f32 0.17677669, %v7447_v35  ;;  %v7468_v52 = vmul.f32 0.17677669, %v7467_v53 }
0x15a9   :  { %v7449_v15 = vmax.f32 %v7443_v27, %v7448_v11 }
0x15aa   :  { %v7472_v59 = vpop.xlane.xlu1 %7471 }
0x15ab   :  { %v7450_v40 = vsub.f32 %v7443_v27, %v7449_v15  ;;  %v7453_v32 = vsub.f32 %v7448_v11, %v7449_v15  ;;  %v7473_v31 = vmul.f32 0.17677669, %v7472_v59 }
0x15ad   :  { %v7451_v20 = vmul.f32 1.442695, %v7450_v40  ;;  %v7454_v56 = vmul.f32 1.442695, %v7453_v32  ;;  %v7474_v26 = vmax.f32 %v7468_v52, %v7473_v31 }
0x15af   :  { %20593 = vpow2.f32 %v7451_v20  ;;  %v7475_v12 = vsub.f32 %v7468_v52, %v7474_v26  ;;  %v7478_v45 = vsub.f32 %v7473_v31, %v7474_v26  ;;  %v16769_v31 = vld [vmem:[%s25030_s7 + $0x3c0] sm:$0xff]  ;;  %v16762_v20 = vld [vmem:[%s25030_s7 + $0x388] sm:$0xff] }
0x15b0   :  { %20595 = vpow2.f32 %v7454_v56  ;;  %v16770_v26 = vld [vmem:[%s25030_s7 + $0x3c8] sm:$0xff] }
0x15b1   :  { %v7476_v28 = vmul.f32 1.442695, %v7475_v12  ;;  %v7479_v38 = vmul.f32 1.442695, %v7478_v45  ;;  %v16797_v45 = vcombine.low %v16762_v20, %v16770_v26 }
0x15b3   :  { %20597 = vpow2.f32 %v7476_v28  ;;  %v16798_v28 = vcombine.high %v16762_v20, %v16770_v26  ;;  %v16757_v20 = vld [vmem:[%s25030_s7 + $0x360] sm:$0xff]  ;;  %v16758_v26 = vld [vmem:[%s25030_s7 + $0x368] sm:$0xff] }
0x15b4   :  { %20599 = vpow2.f32 %v7479_v38  ;;  %v16745_v38 = vld [vmem:[%s25030_s7 + $0x300] sm:$0xff] }
0x15b5   :  { %7946 = vmatprep.subr.bf16.mxu1 %v16798_v28 }
0x15bc   :  { %v20594_v48 = vpop.eup %20593 }
0x15bd   :  { %v20596_v34 = vpop.eup %20595 }
0x15be   :  { %v7456_v3 = vadd.f32 %v20596_v34, %v20594_v48 }
0x15c0   :  { %v20598_v18 = vpop.eup %20597  ;;  %20601 = vrcp.f32 %v7456_v3 }
0x15c1   :  { %v20600_v37 = vpop.eup %20599 }
0x15c2   :  { %v7481_v50 = vadd.f32 %v20600_v37, %v20598_v18 }
0x15c4   :  { %20603 = vrcp.f32 %v7481_v50 }
0x15cd   :  { %v20602_v42 = vpop.eup %20601 }
0x15ce   :  { %v7458_v17 = vmul.f32 %v20602_v42, %v20594_v48  ;;  %v7460_v63 = vmul.f32 %v20602_v42, %v20596_v34  ;;  %v16753_v48 = vld [vmem:[%s25030_s7 + $0x340] sm:$0xff]  ;;  %v16746_v34 = vld [vmem:[%s25030_s7 + $0x308] sm:$0xff]  ;;  %v16763_v42 = vld [vmem:[%s25030_s7 + $0x390] sm:$0xff] }
0x15cf   :  { %v16780_v3 = vcombine.high %v16745_v38, %v16753_v48 }
0x15d0   :  { %v7459_v33 = vmul.f32 %v7458_v17, %v7421_v44  ;;  %v7461_v19 = vmul.f32 %v7460_v63, %v7424_v47  ;;  %v16772_v63 = vld [vmem:[%s25030_s7 + $0x3d8] sm:$0xff] }
0x15d1   :  { %v20604_v41 = vpop.eup %20603 }
0x15d2   :  { %v7462_v1 = vadd.f32 %v7461_v19, %v7459_v33  ;;  %v7483_v61 = vmul.f32 %v20604_v41, %v20598_v18  ;;  %v7485_v55 = vmul.f32 %v20604_v41, %v20600_v37  ;;  %v16754_v18 = vld [vmem:[%s25030_s7 + $0x348] sm:$0xff]  ;;  %v16779_v37 = vcombine.low %v16745_v38, %v16753_v48  ;;  %v16767_v48 = vld [vmem:[%s25030_s7 + $0x3b0] sm:$0xff] }
0x15d3   :  { %v16781_v50 = vcombine.low %v16746_v34, %v16754_v18  ;;  %v16782_v5 = vcombine.high %v16746_v34, %v16754_v18  ;;  %v16775_v34 = vld [vmem:[%s25030_s7 + $0x3f0] sm:$0xff]  ;;  %v16776_v18 = vld [vmem:[%s25030_s7 + $0x3f8] sm:$0xff] }
0x15d4   :  { %7463 = vst.msk [vmem:[#allocation2] sm:$0xff] %vm112_vm1, %v7462_v1  ;;  %v7484_v57 = vmul.f32 %v7483_v61, %v7421_v44  ;;  %v7486_v60 = vmul.f32 %v7485_v55, %v7424_v47  ;;  %v16771_v44 = vld [vmem:[%s25030_s7 + $0x3d0] sm:$0xff]  ;;  %v16764_v47 = vld [vmem:[%s25030_s7 + $0x398] sm:$0xff] }
0x15d5   :  { %v16800_v17 = vcombine.high %v16763_v42, %v16771_v44  ;;  %v16799_v33 = vcombine.low %v16763_v42, %v16771_v44  ;;  %v16801_v19 = vcombine.low %v16764_v47, %v16772_v63  ;;  %v16802_v41 = vcombine.high %v16764_v47, %v16772_v63  ;;  %v16751_v44 = vld [vmem:[%s25030_s7 + $0x330] sm:$0xff]  ;;  %v16760_v63 = vld [vmem:[%s25030_s7 + $0x378] sm:$0xff] }
0x15d6   :  { %v7487_v0 = vadd.f32 %v7486_v60, %v7484_v57  ;;  %v16759_v47 = vld [vmem:[%s25030_s7 + $0x370] sm:$0xff] }
0x15d8   :  { %7488 = vst.msk [vmem:[#allocation2 + $0x8] sm:$0xff] %vm112_vm1, %v7487_v0 }
0x15db   :  { %v7489_v46 = vld [vmem:[#allocation2] sm:$0xff] }
0x15df   :  { %v7490_v36 = vld [vmem:[#allocation2 + $0x8] sm:$0xff] }
0x15e0   :  { %v7496_v24 = vpack.c.bf16 %v7490_v36, %v7489_v46 }
0x15e2   :  { %19506 = vmatmul.mubr.msk.bf16.vlgmr.msra.gmra.mxu1 %vm112_vm1, %v7496_v24  ;;  %v16743_v24 = vld [vmem:[%s25028_s5 + $0x3] ss:$0 sm:$0xff] }
0x15e3   :  { %7966 = vmatprep.mubr.bf16.mxu1 %v20678_v2  ;;  %7947 = vmatpush1.bf16.msra.mxu1 %v16797_v45 }
0x15e4   :  { %7948 = vmatprep.subr.bf16.mxu1 %v16782_v5  ;;  %v16808_v5 = vcombine.high %v16767_v48, %v16775_v34 }
0x15e7   :  { %7949 = vmatpush1.bf16.msra.mxu1 %v16781_v50 }
0x15e8   :  { %8032 = vmatprep.subr.bf16.mxu1 %v16802_v41  ;;  %v16792_v41 = vcombine.high %v16751_v44, %v16759_v47 }
0x16a2   :  { %v7554_v54 = vpop.f32.mrf.mxu1 }
0x16a3   :  { %v7555_v16 = vadd.f32 %v16737_v51, %v7554_v54 }
0x16a4   :  { %v19507_v29 = vpop.f32.mrf.mxu1 }
0x16a5   :  { %v7561_v23 = vadd.f32 %v7555_v16, %v22841_v25  ;;  %v16744_v29 = vld [vmem:[%s25029_s6 + $0x3] ss:$0 sm:$0xff] }
0x16a6   :  { %v7557_v10 = vpop.f32.mrf.mxu1 }
0x16a7   :  { %v7558_v4 = vadd.f32 %v16737_v51, %v7557_v10  ;;  %v7567_v43 = vsel %vm112_vm1, %v7561_v23, 0.0  ;;  %v16747_v10 = vld [vmem:[%s25030_s7 + $0x310] sm:$0xff] }
0x16a8   :  { %7568 = vadd.xlane.f32.xlu0 %v7567_v43  ;;  %v19508_v7 = vpop.f32.mrf.mxu1  ;;  %v16748_v43 = vld [vmem:[%s25030_s7 + $0x318] sm:$0xff] }
0x16a9   :  { %v7562_v30 = vadd.f32 %v7558_v4, %v22843_v39  ;;  %v16761_v39 = vld [vmem:[%s25030_s7 + $0x380] sm:$0xff]  ;;  %v16755_v4 = vld [vmem:[%s25030_s7 + $0x350] sm:$0xff]  ;;  %v16756_v7 = vld [vmem:[%s25030_s7 + $0x358] sm:$0xff] }
0x16aa   :  { %v16796_v56 = vcombine.high %v16761_v39, %v16769_v31  ;;  %v16795_v12 = vcombine.low %v16761_v39, %v16769_v31  ;;  %v16749_v31 = vld [vmem:[%s25030_s7 + $0x320] sm:$0xff] }
0x16ab   :  { %v7570_v8 = vsel %vm112_vm1, %v7562_v30, 0.0  ;;  %v16788_v28 = vcombine.high %v16749_v31, %v16757_v20 }
0x16ac   :  { %7571 = vadd.xlane.f32.xlu1 %v7570_v8  ;;  %7903 = vmatprep.subr.bf16.mxu0 %v16796_v56  ;;  %v16750_v56 = vld [vmem:[%s25030_s7 + $0x328] sm:$0xff] }
0x16ad   :  { %7904 = vmatpush1.bf16.msra.mxu0 %v16795_v12  ;;  %v16790_v38 = vcombine.high %v16750_v56, %v16758_v26  ;;  %v16789_v50 = vcombine.low %v16750_v56, %v16758_v26  ;;  %v20125_v56 = vld [vmem:[%s25032_s9 + $0xc40] sm:$0xff]  }
0x16ae   :  { %7905 = vmatprep.subr.bf16.mxu0 %v16780_v3  ;;  %v16768_v3 = vld [vmem:[%s25030_s7 + $0x3b8] sm:$0xff]  ;;  %v20126_v26 = vld [vmem:[%s25032_s9 + $0xcc0] sm:$0xff]  }
0x16af   :  { %v16810_v42 = vcombine.high %v16768_v3, %v16776_v18 }
0x16b1   :  { %7906 = vmatpush1.bf16.msra.mxu0 %v16779_v37  ;;  %v16787_v37 = vcombine.low %v16749_v31, %v16757_v20  ;;  %v20123_v31 = vld [vmem:[%s25032_s9 + $0xc08] sm:$0xff]  }
0x16b2   :  { %7989 = vmatprep.subr.bf16.mxu0 %v16800_v17  ;;  %v16752_v17 = vld [vmem:[%s25030_s7 + $0x338] sm:$0xff]  ;;  %v20124_v20 = vld [vmem:[%s25032_s9 + $0xc88] sm:$0xff]  }
0x1731   :  { %v7569_v35 = vpop.xlane.xlu0 %7568 }
0x1732   :  { %v7573_v27 = vmul.f32 0.03125, %v7569_v35 }
0x1734   :  { %v7575_v11 = vsub.f32 %v7561_v23, %v7573_v27  ;;  %v16784_v27 = vcombine.high %v16747_v10, %v16755_v4 }
0x1735   :  { %v7572_v53 = vpop.xlane.xlu1 %7571 }
0x1736   :  { %v7574_v15 = vmul.f32 0.03125, %v7572_v53  ;;  %v7577_v59 = vmul.f32 %v7575_v11, %v7575_v11  ;;  %v16765_v53 = vld [vmem:[%s25030_s7 + $0x3a0] sm:$0xff] }
0x1738   :  { %v7576_v40 = vsub.f32 %v7562_v30, %v7574_v15  ;;  %v7579_v25 = vsel %vm112_vm1, %v7577_v59, 0.0  ;;  %v16773_v15 = vld [vmem:[%s25030_s7 + $0x3e0] sm:$0xff]  ;;  %v16766_v59 = vld [vmem:[%s25030_s7 + $0x3a8] sm:$0xff] }
0x1739   :  { %7580 = vadd.xlane.f32.xlu0 %v7579_v25  ;;  %v16783_v25 = vcombine.low %v16747_v10, %v16755_v4  ;;  %v16803_v12 = vcombine.low %v16765_v53, %v16773_v15  ;;  %v20108_v10 = vld [vmem:[%s25032_s9 + $0xca8] sm:$0xff]   ;;  %v20109_v4 = vld [vmem:[%s25032_s9 + $0xc60] sm:$0xff]  }
0x173a   :  { %v7578_v32 = vmul.f32 %v7576_v40, %v7576_v40 }
0x173c   :  { %v7582_v52 = vsel %vm112_vm1, %v7578_v32, 0.0  ;;  %v16785_v32 = vcombine.low %v16748_v43, %v16756_v7 }
0x173d   :  { %7583 = vadd.xlane.f32.xlu1 %v7582_v52  ;;  %v16804_v52 = vcombine.high %v16765_v53, %v16773_v15  ;;  %v20115_v53 = vld [vmem:[%s25032_s9 + $0xc18] sm:$0xff]  }
0x173e   :  { %v20116_v15 = vld [vmem:[%s25032_s9 + $0xc98] sm:$0xff]  }
0x17c2   :  { %v7581_v1 = vpop.xlane.xlu0 %7580 }
0x17c3   :  { %v7585_v61 = vmul.f32 0.03125, %v7581_v1  ;;  %v16794_v1 = vcombine.high %v16752_v17, %v16760_v63 }
0x17c5   :  { %v7587_v55 = vadd.f32 1e-05, %v7585_v61  ;;  %v16791_v61 = vcombine.low %v16751_v44, %v16759_v47 }
0x17c6   :  { %v7584_v57 = vpop.xlane.xlu1 %7583 }
0x17c7   :  { %20605 = vrsqrt.f32 %v7587_v55  ;;  %v7586_v60 = vmul.f32 0.03125, %v7584_v57  ;;  %v16793_v55 = vcombine.low %v16752_v17, %v16760_v63  ;;  %v20097_v57 = vld [vmem:[%s25032_s9 + $0xc78] sm:$0xff]  }
0x17c9   :  { %v7588_v0 = vadd.f32 1e-05, %v7586_v60  ;;  %v20098_v60 = vld [vmem:[%s25032_s9 + $0xcf8] sm:$0xff]  }
0x17cb   :  { %20607 = vrsqrt.f32 %v7588_v0  ;;  %v20099_v0 = vld [vmem:[%s25032_s9 + $0xc38] sm:$0xff]  }
0x17d4   :  { %v20606_v46 = vpop.eup %20605 }
0x17d5   :  { %v7591_v36 = vmul.f32 %v20606_v46, %v7575_v11  ;;  %v16786_v11 = vcombine.high %v16748_v43, %v16756_v7  ;;  %v20100_v46 = vld [vmem:[%s25032_s9 + $0xcb8] sm:$0xff]   ;;  %v20110_v43 = vld [vmem:[%s25032_s9 + $0xce0] sm:$0xff]  }
0x17d6   :  { %v20111_v7 = vld [vmem:[%s25032_s9 + $0xc20] sm:$0xff]  }
0x17d7   :  { %v7599_v54 = vmul.f32 %v16743_v24, %v7591_v36  ;;  %v20101_v36 = vld [vmem:[%s25032_s9 + $0xc70] sm:$0xff]  }
0x17d8   :  { %v20608_v51 = vpop.eup %20607 }
0x17d9   :  { %v7592_v16 = vmul.f32 %v20608_v51, %v7576_v40  ;;  %v22936_v30 = vadd.f32 %v16744_v29, %v7599_v54  ;;  %v16774_v40 = vld [vmem:[%s25030_s7 + $0x3e8] sm:$0xff]  ;;  %v20103_v51 = vld [vmem:[%s25032_s9 + $0xc30] sm:$0xff]  }
0x17da   :  { %v16806_v39 = vcombine.high %v16766_v59, %v16774_v40  ;;  %v16805_v45 = vcombine.low %v16766_v59, %v16774_v40  ;;  %v20104_v54 = vld [vmem:[%s25032_s9 + $0xcb0] sm:$0xff]  }
0x17db   :  { %v7600_v23 = vmul.f32 %v16743_v24, %v7592_v16  ;;  %v20102_v24 = vld [vmem:[%s25032_s9 + $0xcf0] sm:$0xff]   ;;  %v20105_v16 = vld [vmem:[%s25032_s9 + $0xc68] sm:$0xff]  }
0x17dc   :  { %v20117_v59 = vld [vmem:[%s25032_s9 + $0xc50] sm:$0xff]  }
0x17dd   :  { %v22938_v8 = vadd.f32 %v16744_v29, %v7600_v23  ;;  %v20106_v29 = vld [vmem:[%s25032_s9 + $0xce8] sm:$0xff]   ;;  %v20118_v40 = vld [vmem:[%s25032_s9 + $0xcd0] sm:$0xff]  }
0x17de   :  { %v20107_v23 = vld [vmem:[%s25032_s9 + $0xc28] sm:$0xff]  }
0x17df   :  { %v22942_v35 = vpack.c.bf16 %v22938_v8, %v22936_v30 }
0x17e1   :  { %16811 = vmatmul.mubr.msk.bf16.vlgmr.msra.gmra.mxu0 %vm112_vm1, %v22942_v35  ;;  %16812 = vmatmul.mubr.msk.bf16.vlgmr.msra.gmra.mxu1 %vm112_vm1, %v22942_v35 }
0x17e2   :  { %7990 = vmatpush1.bf16.msra.mxu0 %v16799_v33  ;;  %8033 = vmatpush1.bf16.msra.mxu1 %v16801_v19  ;;  %v16807_v33 = vcombine.low %v16767_v48, %v16775_v34  ;;  %v16809_v19 = vcombine.low %v16768_v3, %v16776_v18  ;;  %v23119_v48 = vld [vmem:[%s25031_s8 + $0x30] sm:$0xff] }
0x17e3   :  { %7991 = vmatprep.subr.bf16.mxu0 %v16784_v27  ;;  %8034 = vmatprep.subr.bf16.mxu1 %v16786_v11  ;;  %v20113_v27 = vld [vmem:[%s25032_s9 + $0xc58] sm:$0xff]   ;;  %v7655_v18 = vrot.slane %v23119_v48, %v20803_v14 }
0x17e4   :  { %8009 = vmatprep.mubr.bf16.mxu0 %v20678_v2  ;;  %8052 = vmatprep.mubr.bf16.mxu1 %v20678_v2  ;;  %v20114_v11 = vld [vmem:[%s25032_s9 + $0xcd8] sm:$0xff]  }
0x17e6   :  { %7992 = vmatpush1.bf16.msra.mxu0 %v16783_v25  ;;  %8035 = vmatpush1.bf16.msra.mxu1 %v16785_v32  ;;  %v20119_v25 = vld [vmem:[%s25032_s9 + $0xc10] sm:$0xff]  }
0x17e7   :  { %8075 = vmatprep.subr.bf16.mxu0 %v16804_v52  ;;  %8118 = vmatprep.subr.bf16.mxu1 %v16806_v39  ;;  %v20120_v32 = vld [vmem:[%s25032_s9 + $0xc90] sm:$0xff]   ;;  %v20121_v52 = vld [vmem:[%s25032_s9 + $0xc48] sm:$0xff]  }
0x17e8   :  { %v20122_v39 = vld [vmem:[%s25032_s9 + $0xcc8] sm:$0xff]  }
0x17e9   :  { %16813 = vmatmul.mubr.msk.bf16.vlgmr.msra.gmra.mxu0 %vm112_vm1, %v22942_v35  ;;  %16814 = vmatmul.mubr.msk.bf16.vlgmr.msra.gmra.mxu1 %vm112_vm1, %v22942_v35 }
0x17ea   :  { %8076 = vmatpush1.bf16.msra.mxu0 %v16803_v12  ;;  %8119 = vmatpush1.bf16.msra.mxu1 %v16805_v45  ;;  %v20127_v12 = vld [vmem:[%s25032_s9 + $0xc00] sm:$0xff]  }
0x17eb   :  { %8077 = vmatprep.subr.bf16.mxu0 %v16788_v28  ;;  %8120 = vmatprep.subr.bf16.mxu1 %v16790_v38  ;;  %v20128_v45 = vld [vmem:[%s25032_s9 + $0xc80] sm:$0xff]   ;;  %v20129_v28 = vld [vmem:[%s25032_s9 + $0xd78] sm:$0xff]  }
0x17ec   :  { %8095 = vmatprep.mubr.bf16.mxu0 %v20678_v2  ;;  %8138 = vmatprep.mubr.bf16.mxu1 %v20678_v2  ;;  %v20130_v38 = vld [vmem:[%s25032_s9 + $0xdf8] sm:$0xff]  }
0x17ee   :  { %8078 = vmatpush1.bf16.msra.mxu0 %v16787_v37  ;;  %8121 = vmatpush1.bf16.msra.mxu1 %v16789_v50  ;;  %v7663_v37 = vrot.slane %v23119_v48, %v21080_v49  ;;  %v7651_v50 = vrot.slane %v23119_v48, %v20800_v13 }
0x17ef   :  { %8161 = vmatprep.subr.bf16.mxu0 %v16808_v5  ;;  %8204 = vmatprep.subr.bf16.mxu1 %v16810_v42  ;;  %v7659_v5 = vrot.slane %v23119_v48, %v20822_v58 }
0x17f1   :  { %16815 = vmatmul.mubr.msk.bf16.vlgmr.msra.gmra.mxu0 %vm112_vm1, %v22942_v35  ;;  %16816 = vmatmul.mubr.msk.bf16.vlgmr.msra.gmra.mxu1 %vm112_vm1, %v22942_v35 }
0x17f2   :  { %8162 = vmatpush1.bf16.msra.mxu0 %v16807_v33  ;;  %8205 = vmatpush1.bf16.msra.mxu1 %v16809_v19 }
0x17f3   :  { %8163 = vmatprep.subr.bf16.mxu0 %v16792_v41  ;;  %8206 = vmatprep.subr.bf16.mxu1 %v16794_v1 }
0x17f4   :  { %8181 = vmatprep.mubr.bf16.mxu0 %v20678_v2  ;;  %8224 = vmatprep.mubr.bf16.mxu1 %v20678_v2 }
0x17f6   :  { %8164 = vmatpush1.bf16.msra.mxu0 %v16791_v61  ;;  %8207 = vmatpush1.bf16.msra.mxu1 %v16793_v55 }
0x17f7   :  { %18857 = vmatprep.subr.bf16.mxu0 %v20097_v57  ;;  %18879 = vmatprep.subr.bf16.mxu1 %v20098_v60 }
0x17f9   :  { %16817 = vmatmul.mubr.msk.bf16.vlgmr.msra.gmra.mxu0 %vm112_vm1, %v22942_v35  ;;  %16818 = vmatmul.mubr.msk.bf16.vlgmr.msra.gmra.mxu1 %vm112_vm1, %v22942_v35  ;;  %v20112_v35 = vld [vmem:[%s25032_s9 + $0xca0] sm:$0xff]  }
0x17fa   :  { %18858 = vmatpush3.bf16.msra.mxu0 %v20099_v0  ;;  %18880 = vmatpush3.bf16.msra.mxu1 %v20100_v46 }
0x17fb   :  { %18859 = vmatprep.subr.bf16.mxu0 %v20101_v36  ;;  %18881 = vmatprep.subr.bf16.mxu1 %v20102_v24 }
0x17fe   :  { %18860 = vmatpush3.bf16.msra.mxu0 %v20103_v51  ;;  %18882 = vmatpush3.bf16.msra.mxu1 %v20104_v54  ;;  %v7671_v54 = vrot.slane %v23119_v48, %v21096_v62 }
0x17ff   :  { %18861 = vmatprep.subr.bf16.mxu0 %v20105_v16  ;;  %18883 = vmatprep.subr.bf16.mxu1 %v20106_v29 }
0x1802   :  { %18862 = vmatpush3.bf16.msra.mxu0 %v20107_v23  ;;  %18884 = vmatpush3.bf16.msra.mxu1 %v20108_v10 }
0x1803   :  { %18863 = vmatprep.subr.bf16.mxu0 %v20109_v4  ;;  %18885 = vmatprep.subr.bf16.mxu1 %v20110_v43 }
0x1806   :  { %18864 = vmatpush3.bf16.msra.mxu0 %v20111_v7  ;;  %18886 = vmatpush3.bf16.msra.mxu1 %v20112_v35  ;;  %v7679_v35 = vrot.slane %v23119_v48, %v21099_v9 }
0x1807   :  { %18865 = vmatprep.subr.bf16.mxu0 %v20113_v27  ;;  %18887 = vmatprep.subr.bf16.mxu1 %v20114_v11 }
0x180a   :  { %18866 = vmatpush3.bf16.msra.mxu0 %v20115_v53  ;;  %18888 = vmatpush3.bf16.msra.mxu1 %v20116_v15  ;;  %v20131_v15 = vld [vmem:[%s25032_s9 + $0xd38] sm:$0xff]  }
0x180b   :  { %18867 = vmatprep.subr.bf16.mxu0 %v20117_v59  ;;  %18889 = vmatprep.subr.bf16.mxu1 %v20118_v40  ;;  %v20132_v59 = vld [vmem:[%s25032_s9 + $0xdb8] sm:$0xff]  }
0x180e   :  { %18868 = vmatpush3.bf16.msra.mxu0 %v20119_v25  ;;  %18890 = vmatpush3.bf16.msra.mxu1 %v20120_v32 }
0x180f   :  { %18869 = vmatprep.subr.bf16.mxu0 %v20121_v52  ;;  %18891 = vmatprep.subr.bf16.mxu1 %v20122_v39  ;;  %v20133_v39 = vld [vmem:[%s25032_s9 + $0xd70] sm:$0xff]  }
0x1812   :  { %18870 = vmatpush3.bf16.msra.mxu0 %v20123_v31  ;;  %18892 = vmatpush3.bf16.msra.mxu1 %v20124_v20  ;;  %v20134_v31 = vld [vmem:[%s25032_s9 + $0xdf0] sm:$0xff]  }
0x1813   :  { %18871 = vmatprep.subr.bf16.mxu0 %v20125_v56  ;;  %18893 = vmatprep.subr.bf16.mxu1 %v20126_v26 }
0x1816   :  { %18872 = vmatpush3.bf16.msra.mxu0 %v20127_v12  ;;  %18894 = vmatpush3.bf16.msra.mxu1 %v20128_v45 }
0x1817   :  { %18901 = vmatprep.subr.bf16.mxu0 %v20129_v28  ;;  %18923 = vmatprep.subr.bf16.mxu1 %v20130_v38  ;;  %v20135_v38 = vld [vmem:[%s25032_s9 + $0xd30] sm:$0xff]  }
0x18a1   :  { %v7925_v34 = vpop.f32.mrf.mxu0  ;;  %v7968_v3 = vpop.f32.mrf.mxu1 }
0x18a2   :  { %v7926_v1 = vadd.f32 %v7925_v34, %v7651_v50  ;;  %v7969_v61 = vadd.f32 %v7968_v3, %v7659_v5  ;;  %v20136_v34 = vld [vmem:[%s25032_s9 + $0xdb0] sm:$0xff]   ;;  %v20137_v3 = vld [vmem:[%s25032_s9 + $0xd68] sm:$0xff]  }
0x18a3   :  { %v7927_v42 = vpop.f32.mrf.mxu0  ;;  %v7970_v44 = vpop.f32.mrf.mxu1 }
0x18a4   :  { %v7928_v63 = vadd.f32 %v7927_v42, %v7655_v18  ;;  %v7971_v33 = vadd.f32 %v7970_v44, %v7663_v37  ;;  %v8235_v4 = vmax.f32 %v7926_v1, 0.0  ;;  %v8237_v43 = vmax.f32 %v7969_v61, 0.0  ;;  %v20143_v61 = vld [vmem:[%s25032_s9 + $0xd20] sm:$0xff]  }
0x18a5   :  { %v7929_v47 = vpop.f32.mrf.mxu0  ;;  %v7972_v17 = vpop.f32.mrf.mxu1 }
0x18a6   :  { %v7930_v19 = vadd.f32 %v7929_v47, %v7651_v50  ;;  %v7973_v41 = vadd.f32 %v7972_v17, %v7659_v5  ;;  %v8236_v16 = vmax.f32 %v7928_v63, 0.0  ;;  %v8238_v29 = vmax.f32 %v7971_v33, 0.0  ;;  %v20139_v47 = vld [vmem:[%s25032_s9 + $0xd28] sm:$0xff]   ;;  %v20141_v33 = vld [vmem:[%s25032_s9 + $0xd60] sm:$0xff]  }
0x18a7   :  { %v7931_v55 = vpop.f32.mrf.mxu0  ;;  %v7974_v57 = vpop.f32.mrf.mxu1  ;;  %v20140_v17 = vld [vmem:[%s25032_s9 + $0xda8] sm:$0xff]  }
0x18a8   :  { %v7932_v60 = vadd.f32 %v7931_v55, %v7655_v18  ;;  %v7975_v0 = vadd.f32 %v7974_v57, %v7663_v37  ;;  %v8251_v46 = vmax.f32 %v7930_v19, 0.0  ;;  %v8253_v36 = vmax.f32 %v7973_v41, 0.0  ;;  %v20138_v18 = vld [vmem:[%s25032_s9 + $0xde8] sm:$0xff]   ;;  %v20142_v19 = vld [vmem:[%s25032_s9 + $0xde0] sm:$0xff]   ;;  %v20145_v57 = vld [vmem:[%s25032_s9 + $0xd58] sm:$0xff]  }
0x18a9   :  { %v23129_v24 = vpop.f32.mrf.mxu0  ;;  %v23131_v51 = vpop.f32.mrf.mxu1  ;;  %v20144_v55 = vld [vmem:[%s25032_s9 + $0xda0] sm:$0xff]  }
0x18aa   :  { %v8252_v23 = vmax.f32 %v7932_v60, 0.0  ;;  %v8254_v10 = vmax.f32 %v7975_v0, 0.0  ;;  %v8524_v40 = vpack.c.bf16 %v8251_v46, %v8235_v4  ;;  %v8526_v25 = vpack.c.bf16 %v8253_v36, %v8237_v43  ;;  %v20146_v60 = vld [vmem:[%s25032_s9 + $0xdd8] sm:$0xff]   ;;  %v20151_v4 = vld [vmem:[%s25032_s9 + $0xd10] sm:$0xff]  }
0x18ab   :  { %v8013_v7 = vpop.f32.mrf.mxu0  ;;  %v8056_v27 = vpop.f32.mrf.mxu1  ;;  %v20147_v36 = vld [vmem:[%s25032_s9 + $0xd18] sm:$0xff]   ;;  %v20152_v43 = vld [vmem:[%s25032_s9 + $0xd90] sm:$0xff]  }
0x18ac   :  { %v8525_v11 = vpack.c.bf16 %v8252_v23, %v8236_v16  ;;  %v8527_v53 = vpack.c.bf16 %v8254_v10, %v8238_v29  ;;  %v8014_v20 = vadd.f32 %v8013_v7, %v7671_v54  ;;  %v8057_v56 = vadd.f32 %v8056_v27, %v7679_v35  ;;  %v20149_v16 = vld [vmem:[%s25032_s9 + $0xd50] sm:$0xff]   ;;  %v20153_v7 = vld [vmem:[%s25032_s9 + $0xd48] sm:$0xff]  }
0x18ad   :  { %v23143_v32 = vpop.f32.mrf.mxu0  ;;  %v23145_v52 = vpop.f32.mrf.mxu1  ;;  %v20150_v29 = vld [vmem:[%s25032_s9 + $0xdd0] sm:$0xff]   ;;  %v7667_v27 = vrot.slane %v23119_v48, %v21178_v21 }
0x18ae   :  { %9348 = vmatprep.mubr.bf16.mxu0 %v8525_v11  ;;  %9389 = vmatprep.mubr.bf16.mxu1 %v8527_v53  ;;  %v8240_v37 = vmax.f32 %v8014_v20, 0.0  ;;  %v8242_v42 = vmax.f32 %v8057_v56, 0.0  ;;  %v7675_v11 = vrot.slane %v23119_v48, %v21181_v22  ;;  %v23228_v53 = vld [vmem:[%s25031_s8 + $0x38] sm:$0xff]  ;;  %v20156_v48 = vld [vmem:[%s25032_s9 + $0xd88] sm:$0xff]   ;;  %v20157_v56 = vld [vmem:[%s25032_s9 + $0xd40] sm:$0xff]  }
0x18af   :  { %v8017_v26 = vpop.f32.mrf.mxu0  ;;  %v8060_v12 = vpop.f32.mrf.mxu1  ;;  %9349 = vmatmul.mubr.bf16.vlgmr.msra.gmra.mxu0 %v8524_v40  ;;  %9390 = vmatmul.mubr.bf16.vlgmr.msra.gmra.mxu1 %v8526_v25  ;;  %v20155_v25 = vld [vmem:[%s25032_s9 + $0xd08] sm:$0xff]   ;;  %v7695_v20 = vrot.slane %v23228_v53, %v21080_v49 }
0x18b0   :  { %v8018_v45 = vadd.f32 %v8017_v26, %v7671_v54  ;;  %v8061_v28 = vadd.f32 %v8060_v12, %v7679_v35  ;;  %18902 = vmatpush3.bf16.msra.mxu0 %v20131_v15  ;;  %18924 = vmatpush3.bf16.msra.mxu1 %v20132_v59  ;;  %v20148_v54 = vld [vmem:[%s25032_s9 + $0xd98] sm:$0xff]   ;;  %v20154_v35 = vld [vmem:[%s25032_s9 + $0xdc8] sm:$0xff]   ;;  %v7687_v59 = vrot.slane %v23228_v53, %v20803_v14  ;;  %v20158_v26 = vld [vmem:[%s25032_s9 + $0xdc0] sm:$0xff]  }
0x18b1   :  { %18903 = vmatprep.subr.bf16.mxu0 %v20133_v39  ;;  %18925 = vmatprep.subr.bf16.mxu1 %v20134_v31  ;;  %v23177_v41 = vpop.f32.mrf.mxu0  ;;  %v23179_v1 = vpop.f32.mrf.mxu1  ;;  %v8016_v39 = vadd.f32 %v23143_v32, %v7667_v27  ;;  %v8059_v31 = vadd.f32 %v23145_v52, %v7675_v11  ;;  %v8055_v32 = vadd.f32 %v23131_v51, %v7675_v11  ;;  %v20162_v51 = vld [vmem:[%s25032_s9 + $0xef8] sm:$0xff]  }
0x18b2   :  { %v8256_v50 = vmax.f32 %v8018_v45, 0.0  ;;  %v8258_v5 = vmax.f32 %v8061_v28, 0.0  ;;  %v8012_v45 = vadd.f32 %v23129_v24, %v7667_v27  ;;  %v20161_v24 = vld [vmem:[%s25032_s9 + $0xe78] sm:$0xff]   ;;  %v20175_v27 = vld [vmem:[%s25032_s9 + $0xe20] sm:$0xff]  }
0x18b3   :  { %v8099_v0 = vpop.f32.mrf.mxu0  ;;  %v8142_v46 = vpop.f32.mrf.mxu1 }
0x18b4   :  { %18904 = vmatpush3.bf16.msra.mxu0 %v20135_v38  ;;  %18926 = vmatpush3.bf16.msra.mxu1 %v20136_v34  ;;  %v8529_v44 = vpack.c.bf16 %v8256_v50, %v8240_v37  ;;  %v8531_v63 = vpack.c.bf16 %v8258_v5, %v8242_v42  ;;  %v8100_v52 = vadd.f32 %v8099_v0, %v7687_v59  ;;  %v20159_v38 = vld [vmem:[%s25032_s9 + $0xd00] sm:$0xff]   ;;  %v8239_v5 = vmax.f32 %v8012_v45, 0.0 }
0x18b5   :  { %18905 = vmatprep.subr.bf16.mxu0 %v20137_v3  ;;  %18927 = vmatprep.subr.bf16.mxu1 %v20138_v18  ;;  %v23205_v23 = vpop.f32.mrf.mxu0  ;;  %v23207_v10 = vpop.f32.mrf.mxu1  ;;  %v20160_v34 = vld [vmem:[%s25032_s9 + $0xd80] sm:$0xff]   ;;  %v8255_v3 = vmax.f32 %v8016_v39, 0.0  ;;  %v8257_v18 = vmax.f32 %v8059_v31, 0.0  ;;  %v8143_v37 = vadd.f32 %v8142_v46, %v7695_v20  ;;  %v8241_v42 = vmax.f32 %v8055_v32, 0.0  ;;  %v20167_v46 = vld [vmem:[%s25032_s9 + $0xe30] sm:$0xff]   ;;  %v20180_v31 = vld [vmem:[%s25032_s9 + $0xe98] sm:$0xff]  }
0x18b6   :  { %9430 = vmatprep.mubr.bf16.mxu0 %v8529_v44  ;;  %9471 = vmatprep.mubr.bf16.mxu1 %v8531_v63  ;;  %v20184_v32 = vld [vmem:[%s25032_s9 + $0xe90] sm:$0xff]  }
0x18b7   :  { %v8103_v15 = vpop.f32.mrf.mxu0  ;;  %v8146_v40 = vpop.f32.mrf.mxu1  ;;  %v8528_v63 = vpack.c.bf16 %v8255_v3, %v8239_v5  ;;  %v20189_v5 = vld [vmem:[%s25032_s9 + $0xe40] sm:$0xff]  }
0x18b8   :  { %18906 = vmatpush3.bf16.msra.mxu0 %v20139_v47  ;;  %18928 = vmatpush3.bf16.msra.mxu1 %v20140_v17  ;;  %v8104_v12 = vadd.f32 %v8103_v15, %v7687_v59  ;;  %v8147_v28 = vadd.f32 %v8146_v40, %v7695_v20  ;;  %v8244_v47 = vmax.f32 %v8100_v52, 0.0  ;;  %v20163_v17 = vld [vmem:[%s25032_s9 + $0xe38] sm:$0xff]   ;;  %v20176_v15 = vld [vmem:[%s25032_s9 + $0xea0] sm:$0xff]   ;;  %v20181_v20 = vld [vmem:[%s25032_s9 + $0xe50] sm:$0xff]  }
0x18b9   :  { %18907 = vmatprep.subr.bf16.mxu0 %v20141_v33  ;;  %18929 = vmatprep.subr.bf16.mxu1 %v20142_v19  ;;  %v8530_v33 = vpack.c.bf16 %v8257_v18, %v8241_v42  ;;  %v8246_v19 = vmax.f32 %v8143_v37, 0.0  ;;  %v23303_v11 = vpop.f32.mrf.mxu1  ;;  %v20177_v59 = vld [vmem:[%s25032_s9 + $0xe58] sm:$0xff]   ;;  %v20186_v52 = vld [vmem:[%s25032_s9 + $0xec8] sm:$0xff]  }
0x18ba   :  { %v8260_v50 = vmax.f32 %v8104_v12, 0.0  ;;  %v8262_v44 = vmax.f32 %v8147_v28, 0.0  ;;  %v20178_v40 = vld [vmem:[%s25032_s9 + $0xed8] sm:$0xff]   ;;  %v20183_v12 = vld [vmem:[%s25032_s9 + $0xe10] sm:$0xff]   ;;  %v20185_v28 = vld [vmem:[%s25032_s9 + $0xe48] sm:$0xff]  }
0x18bb   :  { %v8228_v39 = vpop.f32.mrf.mxu1  ;;  %v20187_v18 = vld [vmem:[%s25032_s9 + $0xe08] sm:$0xff]  }
0x18bc   :  { %18908 = vmatpush3.bf16.msra.mxu0 %v20143_v61  ;;  %18930 = vmatpush3.bf16.msra.mxu1 %v20144_v55  ;;  %v20164_v61 = vld [vmem:[%s25032_s9 + $0xeb8] sm:$0xff]   ;;  %v8533_v55 = vpack.c.bf16 %v8260_v50, %v8244_v47  ;;  %v8535_v0 = vpack.c.bf16 %v8262_v44, %v8246_v19  ;;  %v20188_v50 = vld [vmem:[%s25032_s9 + $0xe88] sm:$0xff]   ;;  %v7711_v44 = vrot.slane %v23228_v53, %v21099_v9  ;;  %v20191_v19 = vld [vmem:[%s25032_s9 + $0xe00] sm:$0xff]  }
0x18bd   :  { %18909 = vmatprep.subr.bf16.mxu0 %v20145_v57  ;;  %18931 = vmatprep.subr.bf16.mxu1 %v20146_v60  ;;  %v20165_v57 = vld [vmem:[%s25032_s9 + $0xe70] sm:$0xff]   ;;  %v23331_v45 = vpop.f32.mrf.mxu1 }
0x18be   :  { %v20166_v60 = vld [vmem:[%s25032_s9 + $0xef0] sm:$0xff]  }
0x18c0   :  { %18910 = vmatpush3.bf16.msra.mxu0 %v20147_v36  ;;  %18932 = vmatpush3.bf16.msra.mxu1 %v20148_v54  ;;  %v20168_v36 = vld [vmem:[%s25032_s9 + $0xeb0] sm:$0xff]   ;;  %v20169_v54 = vld [vmem:[%s25032_s9 + $0xe68] sm:$0xff]  }
0x18c1   :  { %18911 = vmatprep.subr.bf16.mxu0 %v20149_v16  ;;  %18933 = vmatprep.subr.bf16.mxu1 %v20150_v29  ;;  %v20170_v16 = vld [vmem:[%s25032_s9 + $0xee8] sm:$0xff]  }
0x18c2   :  { %v20171_v29 = vld [vmem:[%s25032_s9 + $0xe28] sm:$0xff]  }
0x18c4   :  { %18912 = vmatpush3.bf16.msra.mxu0 %v20151_v4  ;;  %18934 = vmatpush3.bf16.msra.mxu1 %v20152_v43  ;;  %v20172_v4 = vld [vmem:[%s25032_s9 + $0xea8] sm:$0xff]   ;;  %v20173_v43 = vld [vmem:[%s25032_s9 + $0xe60] sm:$0xff]  }
0x18c5   :  { %18913 = vmatprep.subr.bf16.mxu0 %v20153_v7  ;;  %18935 = vmatprep.subr.bf16.mxu1 %v20154_v35  ;;  %v20174_v7 = vld [vmem:[%s25032_s9 + $0xee0] sm:$0xff]   ;;  %v23298_v35 = vpop.f32.mrf.mxu0 }
0x18c8   :  { %18914 = vmatpush3.bf16.msra.mxu0 %v20155_v25  ;;  %18936 = vmatpush3.bf16.msra.mxu1 %v20156_v48  ;;  %v8185_v25 = vpop.f32.mrf.mxu0  ;;  %v20179_v48 = vld [vmem:[%s25032_s9 + $0xe18] sm:$0xff]  }
0x18c9   :  { %18915 = vmatprep.subr.bf16.mxu0 %v20157_v56  ;;  %18937 = vmatprep.subr.bf16.mxu1 %v20158_v26  ;;  %v20182_v56 = vld [vmem:[%s25032_s9 + $0xed0] sm:$0xff]  }
0x18ca   :  { %v23326_v26 = vpop.f32.mrf.mxu0 }
0x18cc   :  { %18916 = vmatpush3.bf16.msra.mxu0 %v20159_v38  ;;  %18938 = vmatpush3.bf16.msra.mxu1 %v20160_v34  ;;  %v7683_v38 = vrot.slane %v23228_v53, %v20800_v13  ;;  %v7691_v34 = vrot.slane %v23228_v53, %v20822_v58  ;;  %v8189_v3 = vpop.f32.mrf.mxu0 }
0x18cd   :  { %18945 = vmatprep.subr.bf16.mxu0 %v20161_v24  ;;  %18967 = vmatprep.subr.bf16.mxu1 %v20162_v51  ;;  %v7703_v24 = vrot.slane %v23228_v53, %v21096_v62  ;;  %v8232_v51 = vpop.f32.mrf.mxu1 }
0x18ce   :  { %v8102_v37 = vadd.f32 %v23205_v23, %v7683_v38  ;;  %v8145_v42 = vadd.f32 %v23207_v10, %v7691_v34  ;;  %v20190_v23 = vld [vmem:[%s25032_s9 + $0xec0] sm:$0xff]   ;;  %v8098_v47 = vadd.f32 %v23177_v41, %v7683_v38  ;;  %v20193_v41 = vld [vmem:[%s25032_s9 + $0xf78] sm:$0xff]  }
0x18cf   :  { %9431 = vmatmul.mubr.bf16.vlgmr.msra.gmra.mxu0 %v8528_v63  ;;  %9472 = vmatmul.mubr.bf16.vlgmr.msra.gmra.mxu1 %v8530_v33  ;;  %v8141_v63 = vadd.f32 %v23179_v1, %v7691_v34  ;;  %v8233_v33 = vadd.f32 %v8232_v51, %v7711_v44  ;;  %v8229_v1 = vadd.f32 %v8228_v39, %v7711_v44  ;;  %v20200_v39 = vld [vmem:[%s25032_s9 + $0xfb0] sm:$0xff]   ;;  %v20208_v38 = vld [vmem:[%s25032_s9 + $0xfa0] sm:$0xff]   ;;  %v20209_v34 = vld [vmem:[%s25032_s9 + $0xf58] sm:$0xff]  }
0x18d0   :  { %18946 = vmatpush3.bf16.msra.mxu0 %v20163_v17  ;;  %9512 = vmatprep.mubr.bf16.mxu0 %v8533_v55  ;;  %v8190_v17 = vadd.f32 %v8189_v3, %v7703_v24  ;;  %v8259_v10 = vmax.f32 %v8102_v37, 0.0  ;;  %v20192_v55 = vld [vmem:[%s25032_s9 + $0xe80] sm:$0xff]   ;;  %v20210_v3 = vld [vmem:[%s25032_s9 + $0xfd8] sm:$0xff]   ;;  %v20214_v51 = vld [vmem:[%s25032_s9 + $0xfd0] sm:$0xff]  }
0x18d1   :  { %18968 = vmatpush3.bf16.msra.mxu1 %v20164_v61  ;;  %9553 = vmatprep.mubr.bf16.mxu1 %v8535_v0  ;;  %v8186_v61 = vadd.f32 %v8185_v25, %v7703_v24  ;;  %v8243_v0 = vmax.f32 %v8098_v47, 0.0  ;;  %v20212_v37 = vld [vmem:[%s25032_s9 + $0xf98] sm:$0xff]   ;;  %v20213_v24 = vld [vmem:[%s25032_s9 + $0xf50] sm:$0xff]   ;;  %v20218_v44 = vld [vmem:[%s25032_s9 + $0xfc8] sm:$0xff]   ;;  %v7707_v47 = vrot.slane %v23228_v53, %v21181_v22 }
0x18d2   :  { %18947 = vmatprep.subr.bf16.mxu0 %v20165_v57  ;;  %18969 = vmatprep.subr.bf16.mxu1 %v20166_v60  ;;  %v8261_v57 = vmax.f32 %v8145_v42, 0.0  ;;  %v20194_v60 = vld [vmem:[%s25032_s9 + $0xff8] sm:$0xff]   ;;  %v20217_v42 = vld [vmem:[%s25032_s9 + $0xf48] sm:$0xff]  }
0x18d4   :  { %18948 = vmatpush3.bf16.msra.mxu0 %v20167_v46  ;;  %v8264_v46 = vmax.f32 %v8190_v17, 0.0  ;;  %v20219_v17 = vld [vmem:[%s25032_s9 + $0xf08] sm:$0xff]  }
0x18d5   :  { %18970 = vmatpush3.bf16.msra.mxu1 %v20168_v36  ;;  %18949 = vmatprep.subr.bf16.mxu0 %v20169_v54  ;;  %v8245_v36 = vmax.f32 %v8141_v63, 0.0  ;;  %v8266_v54 = vmax.f32 %v8233_v33, 0.0  ;;  %v20220_v33 = vld [vmem:[%s25032_s9 + $0xf88] sm:$0xff]  }
0x18d6   :  { %18971 = vmatprep.subr.bf16.mxu1 %v20170_v16  ;;  %v20195_v16 = vld [vmem:[%s25032_s9 + $0xf38] sm:$0xff]  }
0x18d8   :  { %18950 = vmatpush3.bf16.msra.mxu0 %v20171_v29  ;;  %v8532_v29 = vpack.c.bf16 %v8259_v10, %v8243_v0  ;;  %v8231_v10 = vadd.f32 %v23331_v45, %v7707_v47  ;;  %v20224_v45 = vld [vmem:[%s25032_s9 + $0xf80] sm:$0xff]  }
0x18d9   :  { %18972 = vmatpush3.bf16.msra.mxu1 %v20172_v4  ;;  %18951 = vmatprep.subr.bf16.mxu0 %v20173_v43  ;;  %v8248_v4 = vmax.f32 %v8186_v61, 0.0  ;;  %v20196_v43 = vld [vmem:[%s25032_s9 + $0xfb8] sm:$0xff]  }
0x18da   :  { %18973 = vmatprep.subr.bf16.mxu1 %v20174_v7  ;;  %v8534_v7 = vpack.c.bf16 %v8261_v57, %v8245_v36  ;;  %v8265_v57 = vmax.f32 %v8231_v10, 0.0 }
0x18dc   :  { %18952 = vmatpush3.bf16.msra.mxu0 %v20175_v27  ;;  %v8250_v27 = vmax.f32 %v8229_v1, 0.0 }
0x18dd   :  { %18974 = vmatpush3.bf16.msra.mxu1 %v20176_v15  ;;  %18953 = vmatprep.subr.bf16.mxu0 %v20177_v59  ;;  %v20197_v15 = vld [vmem:[%s25032_s9 + $0xf70] sm:$0xff]   ;;  %v8537_v59 = vpack.c.bf16 %v8264_v46, %v8248_v4 }
0x18de   :  { %18975 = vmatprep.subr.bf16.mxu1 %v20178_v40  ;;  %v20198_v40 = vld [vmem:[%s25032_s9 + $0xff0] sm:$0xff]   ;;  %v8539_v25 = vpack.c.bf16 %v8266_v54, %v8250_v27 }
0x18e0   :  { %18954 = vmatpush3.bf16.msra.mxu0 %v20179_v48  ;;  %v20199_v48 = vld [vmem:[%s25032_s9 + $0xf30] sm:$0xff]  }
0x18e1   :  { %18976 = vmatpush3.bf16.msra.mxu1 %v20180_v31  ;;  %18955 = vmatprep.subr.bf16.mxu0 %v20181_v20  ;;  %v20201_v31 = vld [vmem:[%s25032_s9 + $0xf68] sm:$0xff]  }
0x18e2   :  { %18977 = vmatprep.subr.bf16.mxu1 %v20182_v56  ;;  %v20202_v20 = vld [vmem:[%s25032_s9 + $0xfe8] sm:$0xff]  }
0x18e3   :  { %v20203_v56 = vld [vmem:[%s25032_s9 + $0xf28] sm:$0xff]  }
0x18e4   :  { %18956 = vmatpush3.bf16.msra.mxu0 %v20183_v12  ;;  %v20204_v12 = vld [vmem:[%s25032_s9 + $0xfa8] sm:$0xff]  }
0x18e5   :  { %18978 = vmatpush3.bf16.msra.mxu1 %v20184_v32  ;;  %18957 = vmatprep.subr.bf16.mxu0 %v20185_v28  ;;  %v20205_v32 = vld [vmem:[%s25032_s9 + $0xf60] sm:$0xff]  }
0x18e6   :  { %18979 = vmatprep.subr.bf16.mxu1 %v20186_v52  ;;  %v20206_v28 = vld [vmem:[%s25032_s9 + $0xfe0] sm:$0xff]  }
0x18e7   :  { %v20207_v52 = vld [vmem:[%s25032_s9 + $0xf20] sm:$0xff]  }
0x18e8   :  { %18958 = vmatpush3.bf16.msra.mxu0 %v20187_v18  ;;  %v20211_v18 = vld [vmem:[%s25032_s9 + $0xf18] sm:$0xff]  }
0x18e9   :  { %18980 = vmatpush3.bf16.msra.mxu1 %v20188_v50  ;;  %18959 = vmatprep.subr.bf16.mxu0 %v20189_v5  ;;  %v20215_v50 = vld [vmem:[%s25032_s9 + $0xf10] sm:$0xff]  }
0x18ea   :  { %18981 = vmatprep.subr.bf16.mxu1 %v20190_v23  ;;  %v20216_v5 = vld [vmem:[%s25032_s9 + $0xf90] sm:$0xff]   ;;  %v7699_v23 = vrot.slane %v23228_v53, %v21178_v21  ;;  %v20222_v53 = vld [vmem:[%s25032_s9 + $0xfc0] sm:$0xff]  }
0x18ec   :  { %18960 = vmatpush3.bf16.msra.mxu0 %v20191_v19  ;;  %v8188_v63 = vadd.f32 %v23326_v26, %v7699_v23  ;;  %v20221_v19 = vld [vmem:[%s25032_s9 + $0xf40] sm:$0xff]   ;;  %v8184_v61 = vadd.f32 %v23298_v35, %v7699_v23  ;;  %v8227_v26 = vadd.f32 %v23303_v11, %v7707_v47 }
0x18ed   :  { %18982 = vmatpush3.bf16.msra.mxu1 %v20192_v55  ;;  %18989 = vmatprep.subr.bf16.mxu0 %v20193_v41  ;;  %v20223_v55 = vld [vmem:[%s25032_s9 + $0xf00] sm:$0xff]  }
0x18ee   :  { %19011 = vmatprep.subr.bf16.mxu1 %v20194_v60  ;;  %v8263_v41 = vmax.f32 %v8188_v63, 0.0  ;;  %v8247_v1 = vmax.f32 %v8184_v61, 0.0  ;;  %v8249_v60 = vmax.f32 %v8227_v26, 0.0 }
0x18ef   :  { %9513 = vmatmul.mubr.bf16.vlgmr.msra.gmra.mxu0 %v8532_v29 }
0x18f0   :  { %9554 = vmatmul.mubr.bf16.vlgmr.msra.gmra.mxu1 %v8534_v7  ;;  %18990 = vmatpush3.bf16.msra.mxu0 %v20195_v16  ;;  %v8536_v35 = vpack.c.bf16 %v8263_v41, %v8247_v1  ;;  %v8538_v11 = vpack.c.bf16 %v8265_v57, %v8249_v60 }
0x18f1   :  { %9594 = vmatprep.mubr.bf16.mxu0 %v8537_v59  ;;  %19012 = vmatpush3.bf16.msra.mxu1 %v20196_v43 }
0x18f2   :  { %9635 = vmatprep.mubr.bf16.mxu1 %v8539_v25  ;;  %18991 = vmatprep.subr.bf16.mxu0 %v20197_v15 }
0x18f3   :  { %19013 = vmatprep.subr.bf16.mxu1 %v20198_v40 }
0x18f4   :  { %18992 = vmatpush3.bf16.msra.mxu0 %v20199_v48 }
0x18f5   :  { %19014 = vmatpush3.bf16.msra.mxu1 %v20200_v39  ;;  %18993 = vmatprep.subr.bf16.mxu0 %v20201_v31  ;;  %v17076_v31 = vld [vmem:[%s25033_s10 + $0x3] ss:$0 sm:$0xff] }
0x18f6   :  { %19015 = vmatprep.subr.bf16.mxu1 %v20202_v20 }
0x18f8   :  { %18994 = vmatpush3.bf16.msra.mxu0 %v20203_v56 }
0x18f9   :  { %19016 = vmatpush3.bf16.msra.mxu1 %v20204_v12  ;;  %18995 = vmatprep.subr.bf16.mxu0 %v20205_v32 }
0x18fa   :  { %19017 = vmatprep.subr.bf16.mxu1 %v20206_v28 }
0x18fc   :  { %18996 = vmatpush3.bf16.msra.mxu0 %v20207_v52 }
0x18fd   :  { %19018 = vmatpush3.bf16.msra.mxu1 %v20208_v38  ;;  %18997 = vmatprep.subr.bf16.mxu0 %v20209_v34 }
0x18fe   :  { %19019 = vmatprep.subr.bf16.mxu1 %v20210_v3 }
0x1900   :  { %18998 = vmatpush3.bf16.msra.mxu0 %v20211_v18 }
0x1901   :  { %19020 = vmatpush3.bf16.msra.mxu1 %v20212_v37  ;;  %18999 = vmatprep.subr.bf16.mxu0 %v20213_v24 }
0x1902   :  { %19021 = vmatprep.subr.bf16.mxu1 %v20214_v51 }
0x1904   :  { %19000 = vmatpush3.bf16.msra.mxu0 %v20215_v50 }
0x1905   :  { %19022 = vmatpush3.bf16.msra.mxu1 %v20216_v5  ;;  %19001 = vmatprep.subr.bf16.mxu0 %v20217_v42 }
0x1906   :  { %19023 = vmatprep.subr.bf16.mxu1 %v20218_v44 }
0x1908   :  { %19002 = vmatpush3.bf16.msra.mxu0 %v20219_v17 }
0x1909   :  { %19024 = vmatpush3.bf16.msra.mxu1 %v20220_v33  ;;  %19003 = vmatprep.subr.bf16.mxu0 %v20221_v19 }
0x190a   :  { %19025 = vmatprep.subr.bf16.mxu1 %v20222_v53 }
0x190c   :  { %19004 = vmatpush3.bf16.msra.mxu0 %v20223_v55 }
0x190d   :  { %19026 = vmatpush3.bf16.msra.mxu1 %v20224_v45 }
0x190e   :  { %19509 = vmatprep.subr.bf16.mxu1 %v20679_v6 }
0x190f   :  { %9595 = vmatmul.mubr.bf16.vlgmr.msra.gmra.mxu0 %v8536_v35 }
0x1910   :  { %9636 = vmatmul.mubr.bf16.vlgmr.msra.gmra.mxu1 %v8538_v11  ;;  %9787 = vmatprep.mubr.bf16.mxu0 %v20678_v2 }
0x1911   :  { %19513 = vmatprep.mubr.msk.bf16.mxu1 %vm20680_vm0, %v20679_v6 }
0x196f   :  { %v18873_v0 = vpop.f32.mrf.mxu0  ;;  %v18895_v46 = vpop.f32.mrf.mxu1 }
0x1971   :  { %v18874_v36 = vpop.f32.mrf.mxu0  ;;  %v18896_v54 = vpop.f32.mrf.mxu1 }
0x1972   :  { %v18875_v39 = vadd.f32 %v18874_v36, %v18873_v0  ;;  %v18897_v38 = vadd.f32 %v18896_v54, %v18895_v46 }
0x1973   :  { %v18876_v16 = vpop.f32.mrf.mxu0  ;;  %v18898_v29 = vpop.f32.mrf.mxu1 }
0x1974   :  { %v9351_v12 = vadd.f32 %v18875_v39, %v17076_v31 }
0x1975   :  { %v18877_v4 = vpop.f32.mrf.mxu0  ;;  %v18899_v7 = vpop.f32.mrf.mxu1 }
0x1976   :  { %v18878_v32 = vadd.f32 %v18877_v4, %v18876_v16  ;;  %v9392_v3 = vadd.f32 %v18897_v38, %v9351_v12  ;;  %v18900_v51 = vadd.f32 %v18899_v7, %v18898_v29 }
0x1978   :  { %v9354_v18 = vadd.f32 %v18878_v32, %v17076_v31 }
0x197a   :  { %v9395_v42 = vadd.f32 %v18900_v51, %v9354_v18  ;;  %v20225_v18 = vld [vmem:[%s25024_s1 + $0xd8] ss:$12 sps:$4 sm:$0xff]   ;;  %v20229_v51 = vld [vmem:[%s25024_s1 + $0xc0] ss:$12 sps:$4 sm:$0xff]  }
0x198f   :  { %v18917_v43 = vpop.f32.mrf.mxu0  ;;  %v18939_v27 = vpop.f32.mrf.mxu1 }
0x1991   :  { %v18918_v15 = vpop.f32.mrf.mxu0  ;;  %v18940_v59 = vpop.f32.mrf.mxu1 }
0x1992   :  { %v18919_v34 = vadd.f32 %v18918_v15, %v18917_v43  ;;  %v18941_v44 = vadd.f32 %v18940_v59, %v18939_v27 }
0x1993   :  { %v18920_v40 = vpop.f32.mrf.mxu0  ;;  %v18942_v25 = vpop.f32.mrf.mxu1 }
0x1994   :  { %v9433_v50 = vadd.f32 %v18919_v34, %v9392_v3 }
0x1995   :  { %v18921_v48 = vpop.f32.mrf.mxu0  ;;  %v18943_v56 = vpop.f32.mrf.mxu1 }
0x1996   :  { %v18922_v5 = vadd.f32 %v18921_v48, %v18920_v40  ;;  %v9474_v63 = vadd.f32 %v18941_v44, %v9433_v50  ;;  %v18944_v19 = vadd.f32 %v18943_v56, %v18942_v25  ;;  %v20232_v50 = vld [vmem:[%s25024_s1 + $0xc8] ss:$12 sps:$4 sm:$0xff]  }
0x1998   :  { %v9436_v33 = vadd.f32 %v18922_v5, %v9395_v42 }
0x199a   :  { %v9477_v55 = vadd.f32 %v18944_v19, %v9436_v33  ;;  %v17207_v19 = vld [vmem:[%s25034_s11 + $0x3] ss:$0 sm:$0xff] }
0x19af   :  { %v18961_v20 = vpop.f32.mrf.mxu0 }
0x19b0   :  { %v18983_v28 = vpop.f32.mrf.mxu1 }
0x19b1   :  { %v18962_v52 = vpop.f32.mrf.mxu0 }
0x19b2   :  { %v18984_v37 = vpop.f32.mrf.mxu1  ;;  %v18963_v23 = vadd.f32 %v18962_v52, %v18961_v20 }
0x19b3   :  { %v18964_v24 = vpop.f32.mrf.mxu0  ;;  %v18985_v41 = vadd.f32 %v18984_v37, %v18983_v28  ;;  %v20228_v37 = vld [vmem:[%s25024_s1 + $0xe0] ss:$12 sps:$4 sm:$0xff]  }
0x19b4   :  { %v18986_v47 = vpop.f32.mrf.mxu1  ;;  %v9515_v10 = vadd.f32 %v18963_v23, %v9474_v63  ;;  %19510 = vmatpush3.bf16.msra.mxu1 %v20228_v37 }
0x19b5   :  { %v18965_v17 = vpop.f32.mrf.mxu0  ;;  %19511 = vmatprep.subr.bf16.mxu1 %v20679_v6 }
0x19b6   :  { %v18966_v53 = vadd.f32 %v18965_v17, %v18964_v24  ;;  %v18987_v61 = vpop.f32.mrf.mxu1  ;;  %v9556_v1 = vadd.f32 %v18985_v41, %v9515_v10  ;;  %v20231_v24 = vld [vmem:[%s25024_s1 + $0xc4] ss:$12 sps:$4 sm:$0xff]  }
0x19b7   :  { %v18988_v46 = vadd.f32 %v18987_v61, %v18986_v47 }
0x19b8   :  { %v9518_v60 = vadd.f32 %v18966_v53, %v9477_v55  ;;  %19512 = vmatpush3.bf16.msra.mxu1 %v20232_v50 }
0x19ba   :  { %v9559_v4 = vadd.f32 %v18988_v46, %v9518_v60 }
0x19cf   :  { %v19005_v26 = vpop.f32.mrf.mxu0 }
0x19d0   :  { %v19027_v45 = vpop.f32.mrf.mxu1 }
0x19d1   :  { %v19006_v57 = vpop.f32.mrf.mxu0 }
0x19d2   :  { %v19007_v35 = vadd.f32 %v19006_v57, %v19005_v26  ;;  %v19028_v11 = vpop.f32.mrf.mxu1  ;;  %v17208_v26 = vld [vmem:[%s25035_s12 + $0x3] ss:$0 sm:$0xff] }
0x19d3   :  { %v19008_v0 = vpop.f32.mrf.mxu0  ;;  %v19029_v54 = vadd.f32 %v19028_v11, %v19027_v45 }
0x19d4   :  { %v9597_v36 = vadd.f32 %v19007_v35, %v9556_v1  ;;  %v19030_v16 = vpop.f32.mrf.mxu1  ;;  %v17217_v1 = vld [vmem:[%s25025_s2 + $0xc] sm:$0x7] }
0x19d5   :  { %v19009_v29 = vpop.f32.mrf.mxu0  ;;  %v9708_v60 = vrot.slane %v17217_v1, %v20800_v13  ;;  %v9712_v35 = vrot.slane %v17217_v1, %v20803_v14 }
0x19d6   :  { %v9638_v43 = vadd.f32 %v19029_v54, %v9597_v36  ;;  %v19010_v7 = vadd.f32 %v19009_v29, %v19008_v0  ;;  %v19031_v27 = vpop.f32.mrf.mxu1 }
0x19d7   :  { %v19032_v59 = vadd.f32 %v19031_v27, %v19030_v16 }
0x19d8   :  { %v9600_v15 = vadd.f32 %v19010_v7, %v9559_v4  ;;  %v9644_v40 = vadd.f32 %v9638_v43, %v22936_v30 }
0x19da   :  { %v9641_v25 = vadd.f32 %v19032_v59, %v9600_v15  ;;  %v9650_v48 = vsel %vm112_vm1, %v9644_v40, 0.0 }
0x19db   :  { %9651 = vadd.xlane.f32.xlu0 %v9650_v48 }
0x19dc   :  { %v9645_v39 = vadd.f32 %v9641_v25, %v22938_v8  ;;  %v20227_v8 = vld [vmem:[%s25024_s1 + $0xdc] ss:$12 sps:$4 sm:$0xff]  }
0x19dd   :  { %9767 = vmatprep.subr.bf16.mxu0 %v20227_v8 }
0x19de   :  { %v9653_v31 = vsel %vm112_vm1, %v9645_v39, 0.0  ;;  %9768 = vmatpush1.bf16.msra.mxu0 %v20225_v18 }
0x19df   :  { %9654 = vadd.xlane.f32.xlu1 %v9653_v31  ;;  %9769 = vmatprep.subr.bf16.mxu0 %v20231_v24 }
0x19e2   :  { %9770 = vmatpush1.bf16.msra.mxu0 %v20229_v51 }
0x19e3   :  { %19517 = vmatprep.subr.bf16.mxu0 %v20679_v6 }
0x1a64   :  { %v9652_v20 = vpop.xlane.xlu0 %9651 }
0x1a65   :  { %v9656_v56 = vmul.f32 0.03125, %v9652_v20 }
0x1a67   :  { %v9658_v12 = vsub.f32 %v9644_v40, %v9656_v56 }
0x1a68   :  { %v9655_v32 = vpop.xlane.xlu1 %9654 }
0x1a69   :  { %v9657_v28 = vmul.f32 0.03125, %v9655_v32  ;;  %v9660_v52 = vmul.f32 %v9658_v12, %v9658_v12  ;;  %v20234_v32 = vld [vmem:[%s25026_s3 + $0x40] sm:$0xff]  }
0x1a6b   :  { %v9659_v38 = vsub.f32 %v9645_v39, %v9657_v28  ;;  %v9662_v34 = vsel %vm112_vm1, %v9660_v52, 0.0 }
0x1a6c   :  { %9663 = vadd.xlane.f32.xlu0 %v9662_v34 }
0x1a6d   :  { %v9661_v30 = vmul.f32 %v9659_v38, %v9659_v38 }
0x1a6f   :  { %v9665_v3 = vsel %vm112_vm1, %v9661_v30, 0.0 }
0x1a70   :  { %9666 = vadd.xlane.f32.xlu1 %v9665_v3 }
0x1af5   :  { %v9664_v5 = vpop.xlane.xlu0 %9663 }
0x1af6   :  { %v9668_v42 = vmul.f32 0.03125, %v9664_v5 }
0x1af8   :  { %v9670_v44 = vadd.f32 1e-05, %v9668_v42 }
0x1af9   :  { %v9667_v23 = vpop.xlane.xlu1 %9666 }
0x1afa   :  { %20609 = vrsqrt.f32 %v9670_v44  ;;  %v9669_v47 = vmul.f32 0.03125, %v9667_v23 }
0x1afc   :  { %v9671_v17 = vadd.f32 1e-05, %v9669_v47 }
0x1afe   :  { %20611 = vrsqrt.f32 %v9671_v17 }
0x1b07   :  { %v20610_v63 = vpop.eup %20609 }
0x1b08   :  { %v9674_v33 = vmul.f32 %v20610_v63, %v9658_v12  ;;  %v20233_v12 = vld [vmem:[%s25026_s3 + $0x48] sm:$0xff]  }
0x1b0a   :  { %v9682_v53 = vmul.f32 %v17207_v19, %v9674_v33 }
0x1b0b   :  { %v20612_v10 = vpop.eup %20611 }
0x1b0c   :  { %v9675_v61 = vmul.f32 %v20612_v10, %v9659_v38  ;;  %v23515_v41 = vadd.f32 %v17208_v26, %v9682_v53 }
0x1b0e   :  { %v9683_v55 = vmul.f32 %v17207_v19, %v9675_v61 }
0x1b10   :  { %v23517_v45 = vadd.f32 %v17208_v26, %v9683_v55  ;;  %v9716_v26 = vrot.slane %v17217_v1, %v20822_v58 }
0x1b12   :  { %v9701_v57 = vpack.c.bf16 %v23517_v45, %v23515_v41 }
0x1b14   :  { %17224 = vmatmul.mubr.msk.bf16.vlgmr.msra.gmra.mxu0 %vm112_vm1, %v9701_v57  ;;  %19514 = vmatmul.mubr.msk.bf16.vlgmr.msra.gmra.mxu1 %vm112_vm1, %v9701_v57 }
0x1b15   :  { %19521 = vmatprep.mubr.msk.bf16.mxu0 %vm20680_vm0, %v20679_v6  ;;  %10335 = vmatprep.mubr.bf16.mxu1 %v20678_v2 }
0x1b16   :  { %19518 = vmatpush3.bf16.msra.mxu0 %v20233_v12 }
0x1b17   :  { %19519 = vmatprep.subr.bf16.mxu0 %v20679_v6 }
0x1b1a   :  { %19520 = vmatpush3.bf16.msra.mxu0 %v20234_v32 }
0x1bd4   :  { %v9789_v11 = vpop.f32.mrf.mxu0  ;;  %v9832_v0 = vpop.f32.mrf.mxu1 }
0x1bd5   :  { %v9790_v54 = vadd.f32 %v9789_v11, %v9708_v60  ;;  %v9833_v57 = vadd.f32 %v9832_v0, %v9716_v26  ;;  %v17231_v0 = vld [vmem:[%s25027_s4 + $0x4] ss:$0 sm:$0xff] }
0x1bd6   :  { %v9791_v46 = vpop.f32.mrf.mxu0  ;;  %v19515_v36 = vpop.f32.mrf.mxu1 }
0x1bd7   :  { %v9792_v16 = vadd.f32 %v9791_v46, %v9712_v35 }
0x1bd8   :  { %v9793_v29 = vpop.f32.mrf.mxu0  ;;  %v9835_v4 = vpop.f32.mrf.mxu1 }
0x1bd9   :  { %v9794_v43 = vadd.f32 %v9793_v29, %v9708_v60  ;;  %v9851_v7 = vmul.f32 %v9792_v16, %v9790_v54  ;;  %v9836_v60 = vadd.f32 %v9835_v4, %v9716_v26 }
0x1bda   :  { %v9795_v27 = vpop.f32.mrf.mxu0  ;;  %v19516_v15 = vpop.f32.mrf.mxu1 }
0x1bdb   :  { %v9796_v59 = vadd.f32 %v9795_v27, %v9712_v35  ;;  %v9852_v40 = vsel %vm112_vm1, %v9851_v7, 0.0  ;;  %v9876_v25 = vmul.f32 %v9794_v43, %v9792_v16 }
0x1bdc   :  { %9853 = vadd.xlane.f32.xlu0 %v9852_v40 }
0x1bdd   :  { %v9856_v48 = vmul.f32 %v9796_v59, %v9790_v54  ;;  %v9877_v31 = vsel %vm112_vm1, %v9876_v25, 0.0  ;;  %v9881_v20 = vmul.f32 %v9796_v59, %v9794_v43 }
0x1bdf   :  { %v9857_v39 = vsel %vm112_vm1, %v9856_v48, 0.0  ;;  %v9882_v56 = vsel %vm112_vm1, %v9881_v20, 0.0 }
0x1be0   :  { %9858 = vadd.xlane.f32.xlu1 %v9857_v39  ;;  %9878 = vadd.xlane.f32.xlu0 %v9877_v31 }
0x1be4   :  { %9883 = vadd.xlane.f32.xlu1 %v9882_v56 }
0x1c65   :  { %v9854_v28 = vpop.xlane.xlu0 %9853 }
0x1c66   :  { %v9855_v38 = vmul.f32 0.17677669, %v9854_v28 }
0x1c69   :  { %v9859_v52 = vpop.xlane.xlu1 %9858  ;;  %v9879_v30 = vpop.xlane.xlu0 %9878 }
0x1c6a   :  { %v9860_v34 = vmul.f32 0.17677669, %v9859_v52  ;;  %v9880_v24 = vmul.f32 0.17677669, %v9879_v30 }
0x1c6c   :  { %v9861_v3 = vmax.f32 %v9855_v38, %v9860_v34 }
0x1c6d   :  { %v9884_v8 = vpop.xlane.xlu1 %9883 }
0x1c6e   :  { %v9862_v18 = vsub.f32 %v9855_v38, %v9861_v3  ;;  %v9865_v37 = vsub.f32 %v9860_v34, %v9861_v3  ;;  %v9885_v51 = vmul.f32 0.17677669, %v9884_v8 }
0x1c70   :  { %v9863_v50 = vmul.f32 1.442695, %v9862_v18  ;;  %v9866_v5 = vmul.f32 1.442695, %v9865_v37  ;;  %v9886_v42 = vmax.f32 %v9880_v24, %v9885_v51 }
0x1c72   :  { %20613 = vpow2.f32 %v9863_v50  ;;  %v9887_v44 = vsub.f32 %v9880_v24, %v9886_v42  ;;  %v9890_v23 = vsub.f32 %v9885_v51, %v9886_v42  ;;  %v17263_v51 = vld [vmem:[%s25030_s7 + $0x4c0] sm:$0xff]  ;;  %v17256_v50 = vld [vmem:[%s25030_s7 + $0x488] sm:$0xff] }
0x1c73   :  { %20615 = vpow2.f32 %v9866_v5  ;;  %v17264_v42 = vld [vmem:[%s25030_s7 + $0x4c8] sm:$0xff] }
0x1c74   :  { %v9888_v47 = vmul.f32 1.442695, %v9887_v44  ;;  %v9891_v17 = vmul.f32 1.442695, %v9890_v23  ;;  %v17291_v23 = vcombine.low %v17256_v50, %v17264_v42 }
0x1c76   :  { %20617 = vpow2.f32 %v9888_v47  ;;  %v17292_v47 = vcombine.high %v17256_v50, %v17264_v42  ;;  %v17251_v50 = vld [vmem:[%s25030_s7 + $0x460] sm:$0xff]  ;;  %v17252_v42 = vld [vmem:[%s25030_s7 + $0x468] sm:$0xff] }
0x1c77   :  { %20619 = vpow2.f32 %v9891_v17  ;;  %v17239_v17 = vld [vmem:[%s25030_s7 + $0x400] sm:$0xff] }
0x1c78   :  { %10358 = vmatprep.subr.bf16.mxu0 %v17292_v47 }
0x1c7f   :  { %v20614_v63 = vpop.eup %20613 }
0x1c80   :  { %v20616_v33 = vpop.eup %20615 }
0x1c81   :  { %v9868_v19 = vadd.f32 %v20616_v33, %v20614_v63 }
0x1c83   :  { %v20618_v10 = vpop.eup %20617  ;;  %20621 = vrcp.f32 %v9868_v19 }
0x1c84   :  { %v20620_v53 = vpop.eup %20619 }
0x1c85   :  { %v9893_v61 = vadd.f32 %v20620_v53, %v20618_v10 }
0x1c87   :  { %20623 = vrcp.f32 %v9893_v61 }
0x1c90   :  { %v20622_v55 = vpop.eup %20621 }
0x1c91   :  { %v9870_v35 = vmul.f32 %v20622_v55, %v20614_v63  ;;  %v9872_v11 = vmul.f32 %v20622_v55, %v20616_v33  ;;  %v17247_v63 = vld [vmem:[%s25030_s7 + $0x440] sm:$0xff]  ;;  %v17240_v33 = vld [vmem:[%s25030_s7 + $0x408] sm:$0xff]  ;;  %v17257_v55 = vld [vmem:[%s25030_s7 + $0x490] sm:$0xff] }
0x1c92   :  { %v17274_v19 = vcombine.high %v17239_v17, %v17247_v63 }
0x1c93   :  { %v9871_v46 = vmul.f32 %v9870_v35, %v9833_v57  ;;  %v9873_v36 = vmul.f32 %v9872_v11, %v9836_v60  ;;  %v17266_v11 = vld [vmem:[%s25030_s7 + $0x4d8] sm:$0xff] }
0x1c94   :  { %v20624_v54 = vpop.eup %20623 }
0x1c95   :  { %v9874_v16 = vadd.f32 %v9873_v36, %v9871_v46  ;;  %v9895_v29 = vmul.f32 %v20624_v54, %v20618_v10  ;;  %v9897_v43 = vmul.f32 %v20624_v54, %v20620_v53  ;;  %v17248_v10 = vld [vmem:[%s25030_s7 + $0x448] sm:$0xff]  ;;  %v17273_v53 = vcombine.low %v17239_v17, %v17247_v63  ;;  %v17261_v63 = vld [vmem:[%s25030_s7 + $0x4b0] sm:$0xff] }
0x1c96   :  { %v17275_v61 = vcombine.low %v17240_v33, %v17248_v10  ;;  %v17276_v26 = vcombine.high %v17240_v33, %v17248_v10  ;;  %v17269_v33 = vld [vmem:[%s25030_s7 + $0x4f0] sm:$0xff]  ;;  %v17270_v10 = vld [vmem:[%s25030_s7 + $0x4f8] sm:$0xff] }
0x1c97   :  { %9875 = vst.msk [vmem:[#allocation2] sm:$0xff] %vm112_vm1, %v9874_v16  ;;  %v9896_v7 = vmul.f32 %v9895_v29, %v9833_v57  ;;  %v9898_v27 = vmul.f32 %v9897_v43, %v9836_v60  ;;  %v17265_v57 = vld [vmem:[%s25030_s7 + $0x4d0] sm:$0xff]  ;;  %v17258_v60 = vld [vmem:[%s25030_s7 + $0x498] sm:$0xff] }
0x1c98   :  { %v17294_v35 = vcombine.high %v17257_v55, %v17265_v57  ;;  %v17293_v46 = vcombine.low %v17257_v55, %v17265_v57  ;;  %v17295_v36 = vcombine.low %v17258_v60, %v17266_v11  ;;  %v17296_v54 = vcombine.high %v17258_v60, %v17266_v11  ;;  %v17245_v57 = vld [vmem:[%s25030_s7 + $0x430] sm:$0xff]  ;;  %v17254_v11 = vld [vmem:[%s25030_s7 + $0x478] sm:$0xff] }
0x1c99   :  { %v9899_v15 = vadd.f32 %v9898_v27, %v9896_v7  ;;  %v17253_v60 = vld [vmem:[%s25030_s7 + $0x470] sm:$0xff] }
0x1c9b   :  { %9900 = vst.msk [vmem:[#allocation2 + $0x8] sm:$0xff] %vm112_vm1, %v9899_v15 }
0x1c9e   :  { %v9901_v59 = vld [vmem:[#allocation2] sm:$0xff] }
0x1ca2   :  { %v9902_v1 = vld [vmem:[#allocation2 + $0x8] sm:$0xff] }
0x1ca3   :  { %v9908_v40 = vpack.c.bf16 %v9902_v1, %v9901_v59 }
0x1ca5   :  { %19522 = vmatmul.mubr.msk.bf16.vlgmr.msra.gmra.mxu0 %vm112_vm1, %v9908_v40  ;;  %v17237_v40 = vld [vmem:[%s25028_s5 + $0x4] ss:$0 sm:$0xff] }
0x1ca6   :  { %10378 = vmatprep.mubr.bf16.mxu0 %v20678_v2  ;;  %10359 = vmatpush1.bf16.msra.mxu0 %v17291_v23 }
0x1ca7   :  { %10360 = vmatprep.subr.bf16.mxu0 %v17276_v26  ;;  %v17302_v26 = vcombine.high %v17261_v63, %v17269_v33 }
0x1caa   :  { %10361 = vmatpush1.bf16.msra.mxu0 %v17275_v61 }
0x1cab   :  { %10444 = vmatprep.subr.bf16.mxu0 %v17296_v54  ;;  %v17286_v54 = vcombine.high %v17245_v57, %v17253_v60 }
0x1d65   :  { %v9966_v4 = vpop.f32.mrf.mxu0 }
0x1d66   :  { %v9967_v25 = vadd.f32 %v17231_v0, %v9966_v4 }
0x1d67   :  { %v19523_v48 = vpop.f32.mrf.mxu0 }
0x1d68   :  { %v9973_v39 = vadd.f32 %v9967_v25, %v23515_v41  ;;  %v17238_v48 = vld [vmem:[%s25029_s6 + $0x4] ss:$0 sm:$0xff] }
0x1d69   :  { %v9969_v31 = vpop.f32.mrf.mxu0 }
0x1d6a   :  { %v9970_v20 = vadd.f32 %v17231_v0, %v9969_v31  ;;  %v9979_v56 = vsel %vm112_vm1, %v9973_v39, 0.0  ;;  %v17241_v31 = vld [vmem:[%s25030_s7 + $0x410] sm:$0xff] }
0x1d6b   :  { %9980 = vadd.xlane.f32.xlu0 %v9979_v56  ;;  %v19524_v12 = vpop.f32.mrf.mxu0  ;;  %v17242_v56 = vld [vmem:[%s25030_s7 + $0x418] sm:$0xff] }
0x1d6c   :  { %v9974_v32 = vadd.f32 %v9970_v20, %v23517_v45  ;;  %v17255_v45 = vld [vmem:[%s25030_s7 + $0x480] sm:$0xff]  ;;  %v17249_v20 = vld [vmem:[%s25030_s7 + $0x450] sm:$0xff]  ;;  %v17250_v12 = vld [vmem:[%s25030_s7 + $0x458] sm:$0xff] }
0x1d6d   :  { %v17290_v5 = vcombine.high %v17255_v45, %v17263_v51  ;;  %v17289_v44 = vcombine.low %v17255_v45, %v17263_v51  ;;  %v17243_v51 = vld [vmem:[%s25030_s7 + $0x420] sm:$0xff] }
0x1d6e   :  { %v9982_v28 = vsel %vm112_vm1, %v9974_v32, 0.0  ;;  %v17282_v47 = vcombine.high %v17243_v51, %v17251_v50 }
0x1d6f   :  { %9983 = vadd.xlane.f32.xlu1 %v9982_v28  ;;  %10315 = vmatprep.subr.bf16.mxu1 %v17290_v5  ;;  %v17244_v5 = vld [vmem:[%s25030_s7 + $0x428] sm:$0xff] }
0x1d70   :  { %10316 = vmatpush1.bf16.msra.mxu1 %v17289_v44  ;;  %v17284_v17 = vcombine.high %v17244_v5, %v17252_v42  ;;  %v17283_v61 = vcombine.low %v17244_v5, %v17252_v42  ;;  %v20263_v5 = vld [vmem:[%s25032_s9 + $0x1040] sm:$0xff]  }
0x1d71   :  { %10317 = vmatprep.subr.bf16.mxu1 %v17274_v19  ;;  %v17262_v19 = vld [vmem:[%s25030_s7 + $0x4b8] sm:$0xff]  ;;  %v20264_v42 = vld [vmem:[%s25032_s9 + $0x10c0] sm:$0xff]  }
0x1d72   :  { %v17304_v55 = vcombine.high %v17262_v19, %v17270_v10 }
0x1d74   :  { %10318 = vmatpush1.bf16.msra.mxu1 %v17273_v53  ;;  %v17281_v53 = vcombine.low %v17243_v51, %v17251_v50  ;;  %v20261_v51 = vld [vmem:[%s25032_s9 + $0x1008] sm:$0xff]  }
0x1d75   :  { %10401 = vmatprep.subr.bf16.mxu1 %v17294_v35  ;;  %v17246_v35 = vld [vmem:[%s25030_s7 + $0x438] sm:$0xff]  ;;  %v20262_v50 = vld [vmem:[%s25032_s9 + $0x1088] sm:$0xff]  }
0x1df4   :  { %v9981_v52 = vpop.xlane.xlu0 %9980 }
0x1df5   :  { %v9985_v38 = vmul.f32 0.03125, %v9981_v52 }
0x1df7   :  { %v9987_v34 = vsub.f32 %v9973_v39, %v9985_v38  ;;  %v17278_v38 = vcombine.high %v17241_v31, %v17249_v20 }
0x1df8   :  { %v9984_v30 = vpop.xlane.xlu1 %9983 }
0x1df9   :  { %v9986_v3 = vmul.f32 0.03125, %v9984_v30  ;;  %v9989_v8 = vmul.f32 %v9987_v34, %v9987_v34  ;;  %v17259_v30 = vld [vmem:[%s25030_s7 + $0x4a0] sm:$0xff] }
0x1dfb   :  { %v9988_v18 = vsub.f32 %v9974_v32, %v9986_v3  ;;  %v9991_v41 = vsel %vm112_vm1, %v9989_v8, 0.0  ;;  %v17267_v3 = vld [vmem:[%s25030_s7 + $0x4e0] sm:$0xff]  ;;  %v17260_v8 = vld [vmem:[%s25030_s7 + $0x4a8] sm:$0xff] }
0x1dfc   :  { %9992 = vadd.xlane.f32.xlu0 %v9991_v41  ;;  %v17277_v41 = vcombine.low %v17241_v31, %v17249_v20  ;;  %v17297_v44 = vcombine.low %v17259_v30, %v17267_v3  ;;  %v20246_v31 = vld [vmem:[%s25032_s9 + $0x10a8] sm:$0xff]   ;;  %v20247_v20 = vld [vmem:[%s25032_s9 + $0x1060] sm:$0xff]  }
0x1dfd   :  { %v9990_v37 = vmul.f32 %v9988_v18, %v9988_v18 }
0x1dff   :  { %v9994_v24 = vsel %vm112_vm1, %v9990_v37, 0.0  ;;  %v17279_v37 = vcombine.low %v17242_v56, %v17250_v12 }
0x1e00   :  { %9995 = vadd.xlane.f32.xlu1 %v9994_v24  ;;  %v17298_v24 = vcombine.high %v17259_v30, %v17267_v3  ;;  %v20253_v30 = vld [vmem:[%s25032_s9 + $0x1018] sm:$0xff]  }
0x1e01   :  { %v20254_v3 = vld [vmem:[%s25032_s9 + $0x1098] sm:$0xff]  }
0x1e85   :  { %v9993_v16 = vpop.xlane.xlu0 %9992 }
0x1e86   :  { %v9997_v29 = vmul.f32 0.03125, %v9993_v16  ;;  %v17288_v16 = vcombine.high %v17246_v35, %v17254_v11 }
0x1e88   :  { %v9999_v43 = vadd.f32 1e-05, %v9997_v29  ;;  %v17285_v29 = vcombine.low %v17245_v57, %v17253_v60 }
0x1e89   :  { %v9996_v7 = vpop.xlane.xlu1 %9995 }
0x1e8a   :  { %20625 = vrsqrt.f32 %v9999_v43  ;;  %v9998_v27 = vmul.f32 0.03125, %v9996_v7  ;;  %v17287_v43 = vcombine.low %v17246_v35, %v17254_v11  ;;  %v20235_v7 = vld [vmem:[%s25032_s9 + $0x1078] sm:$0xff]  }
0x1e8c   :  { %v10000_v15 = vadd.f32 1e-05, %v9998_v27  ;;  %v20236_v27 = vld [vmem:[%s25032_s9 + $0x10f8] sm:$0xff]  }
0x1e8e   :  { %20627 = vrsqrt.f32 %v10000_v15  ;;  %v20237_v15 = vld [vmem:[%s25032_s9 + $0x1038] sm:$0xff]  }
0x1e97   :  { %v20626_v59 = vpop.eup %20625 }
0x1e98   :  { %v10003_v1 = vmul.f32 %v20626_v59, %v9987_v34  ;;  %v17280_v34 = vcombine.high %v17242_v56, %v17250_v12  ;;  %v20238_v59 = vld [vmem:[%s25032_s9 + $0x10b8] sm:$0xff]   ;;  %v20248_v56 = vld [vmem:[%s25032_s9 + $0x10e0] sm:$0xff]  }
0x1e99   :  { %v20249_v12 = vld [vmem:[%s25032_s9 + $0x1020] sm:$0xff]  }
0x1e9a   :  { %v10011_v4 = vmul.f32 %v17237_v40, %v10003_v1  ;;  %v20239_v1 = vld [vmem:[%s25032_s9 + $0x1070] sm:$0xff]  }
0x1e9b   :  { %v20628_v0 = vpop.eup %20627 }
0x1e9c   :  { %v10004_v25 = vmul.f32 %v20628_v0, %v9988_v18  ;;  %v23610_v32 = vadd.f32 %v17238_v48, %v10011_v4  ;;  %v17268_v18 = vld [vmem:[%s25030_s7 + $0x4e8] sm:$0xff]  ;;  %v20241_v0 = vld [vmem:[%s25032_s9 + $0x1030] sm:$0xff]  }
0x1e9d   :  { %v17300_v45 = vcombine.high %v17260_v8, %v17268_v18  ;;  %v17299_v23 = vcombine.low %v17260_v8, %v17268_v18  ;;  %v20242_v4 = vld [vmem:[%s25032_s9 + $0x10b0] sm:$0xff]  }
0x1e9e   :  { %v10012_v39 = vmul.f32 %v17237_v40, %v10004_v25  ;;  %v20240_v40 = vld [vmem:[%s25032_s9 + $0x10f0] sm:$0xff]   ;;  %v20243_v25 = vld [vmem:[%s25032_s9 + $0x1068] sm:$0xff]  }
0x1e9f   :  { %v20255_v8 = vld [vmem:[%s25032_s9 + $0x1050] sm:$0xff]  }
0x1ea0   :  { %v23612_v28 = vadd.f32 %v17238_v48, %v10012_v39  ;;  %v20244_v48 = vld [vmem:[%s25032_s9 + $0x10e8] sm:$0xff]   ;;  %v20256_v18 = vld [vmem:[%s25032_s9 + $0x10d0] sm:$0xff]  }
0x1ea1   :  { %v20245_v39 = vld [vmem:[%s25032_s9 + $0x1028] sm:$0xff]  }
0x1ea2   :  { %v23616_v52 = vpack.c.bf16 %v23612_v28, %v23610_v32 }
0x1ea4   :  { %17305 = vmatmul.mubr.msk.bf16.vlgmr.msra.gmra.mxu1 %vm112_vm1, %v23616_v52  ;;  %17306 = vmatmul.mubr.msk.bf16.vlgmr.msra.gmra.mxu0 %vm112_vm1, %v23616_v52 }
0x1ea5   :  { %10402 = vmatpush1.bf16.msra.mxu1 %v17293_v46  ;;  %10445 = vmatpush1.bf16.msra.mxu0 %v17295_v36  ;;  %v17301_v46 = vcombine.low %v17261_v63, %v17269_v33  ;;  %v17303_v36 = vcombine.low %v17262_v19, %v17270_v10  ;;  %v23793_v63 = vld [vmem:[%s25031_s8 + $0x40] sm:$0xff] }
0x1ea6   :  { %10403 = vmatprep.subr.bf16.mxu1 %v17278_v38  ;;  %10446 = vmatprep.subr.bf16.mxu0 %v17280_v34  ;;  %v20251_v38 = vld [vmem:[%s25032_s9 + $0x1058] sm:$0xff]   ;;  %v10067_v10 = vrot.slane %v23793_v63, %v20803_v14 }
0x1ea7   :  { %10421 = vmatprep.mubr.bf16.mxu1 %v20678_v2  ;;  %10464 = vmatprep.mubr.bf16.mxu0 %v20678_v2  ;;  %v20252_v34 = vld [vmem:[%s25032_s9 + $0x10d8] sm:$0xff]  }
0x1ea9   :  { %10404 = vmatpush1.bf16.msra.mxu1 %v17277_v41  ;;  %10447 = vmatpush1.bf16.msra.mxu0 %v17279_v37  ;;  %v20257_v41 = vld [vmem:[%s25032_s9 + $0x1010] sm:$0xff]  }
0x1eaa   :  { %10487 = vmatprep.subr.bf16.mxu1 %v17298_v24  ;;  %10530 = vmatprep.subr.bf16.mxu0 %v17300_v45  ;;  %v20258_v37 = vld [vmem:[%s25032_s9 + $0x1090] sm:$0xff]   ;;  %v20259_v24 = vld [vmem:[%s25032_s9 + $0x1048] sm:$0xff]  }
0x1eab   :  { %v20260_v45 = vld [vmem:[%s25032_s9 + $0x10c8] sm:$0xff]  }
0x1eac   :  { %17307 = vmatmul.mubr.msk.bf16.vlgmr.msra.gmra.mxu1 %vm112_vm1, %v23616_v52  ;;  %17308 = vmatmul.mubr.msk.bf16.vlgmr.msra.gmra.mxu0 %vm112_vm1, %v23616_v52 }
0x1ead   :  { %10488 = vmatpush1.bf16.msra.mxu1 %v17297_v44  ;;  %10531 = vmatpush1.bf16.msra.mxu0 %v17299_v23  ;;  %v20265_v44 = vld [vmem:[%s25032_s9 + $0x1000] sm:$0xff]  }
0x1eae   :  { %10489 = vmatprep.subr.bf16.mxu1 %v17282_v47  ;;  %10532 = vmatprep.subr.bf16.mxu0 %v17284_v17  ;;  %v20266_v23 = vld [vmem:[%s25032_s9 + $0x1080] sm:$0xff]   ;;  %v20267_v47 = vld [vmem:[%s25032_s9 + $0x1178] sm:$0xff]  }
0x1eaf   :  { %10507 = vmatprep.mubr.bf16.mxu1 %v20678_v2  ;;  %10550 = vmatprep.mubr.bf16.mxu0 %v20678_v2  ;;  %v20268_v17 = vld [vmem:[%s25032_s9 + $0x11f8] sm:$0xff]  }
0x1eb1   :  { %10490 = vmatpush1.bf16.msra.mxu1 %v17281_v53  ;;  %10533 = vmatpush1.bf16.msra.mxu0 %v17283_v61  ;;  %v10075_v53 = vrot.slane %v23793_v63, %v21080_v49  ;;  %v10063_v61 = vrot.slane %v23793_v63, %v20800_v13 }
0x1eb2   :  { %10573 = vmatprep.subr.bf16.mxu1 %v17302_v26  ;;  %10616 = vmatprep.subr.bf16.mxu0 %v17304_v55  ;;  %v10071_v26 = vrot.slane %v23793_v63, %v20822_v58 }
0x1eb4   :  { %17309 = vmatmul.mubr.msk.bf16.vlgmr.msra.gmra.mxu1 %vm112_vm1, %v23616_v52  ;;  %17310 = vmatmul.mubr.msk.bf16.vlgmr.msra.gmra.mxu0 %vm112_vm1, %v23616_v52 }
0x1eb5   :  { %10574 = vmatpush1.bf16.msra.mxu1 %v17301_v46  ;;  %10617 = vmatpush1.bf16.msra.mxu0 %v17303_v36 }
0x1eb6   :  { %10575 = vmatprep.subr.bf16.mxu1 %v17286_v54  ;;  %10618 = vmatprep.subr.bf16.mxu0 %v17288_v16 }
0x1eb7   :  { %10593 = vmatprep.mubr.bf16.mxu1 %v20678_v2  ;;  %10636 = vmatprep.mubr.bf16.mxu0 %v20678_v2 }
0x1eb9   :  { %10576 = vmatpush1.bf16.msra.mxu1 %v17285_v29  ;;  %10619 = vmatpush1.bf16.msra.mxu0 %v17287_v43 }
0x1eba   :  { %19039 = vmatprep.subr.bf16.mxu1 %v20235_v7  ;;  %19061 = vmatprep.subr.bf16.mxu0 %v20236_v27 }
0x1ebc   :  { %17311 = vmatmul.mubr.msk.bf16.vlgmr.msra.gmra.mxu1 %vm112_vm1, %v23616_v52  ;;  %17312 = vmatmul.mubr.msk.bf16.vlgmr.msra.gmra.mxu0 %vm112_vm1, %v23616_v52  ;;  %v20250_v52 = vld [vmem:[%s25032_s9 + $0x10a0] sm:$0xff]  }
0x1ebd   :  { %19040 = vmatpush3.bf16.msra.mxu1 %v20237_v15  ;;  %19062 = vmatpush3.bf16.msra.mxu0 %v20238_v59 }
0x1ebe   :  { %19041 = vmatprep.subr.bf16.mxu1 %v20239_v1  ;;  %19063 = vmatprep.subr.bf16.mxu0 %v20240_v40 }
0x1ec1   :  { %19042 = vmatpush3.bf16.msra.mxu1 %v20241_v0  ;;  %19064 = vmatpush3.bf16.msra.mxu0 %v20242_v4  ;;  %v10083_v4 = vrot.slane %v23793_v63, %v21096_v62 }
0x1ec2   :  { %19043 = vmatprep.subr.bf16.mxu1 %v20243_v25  ;;  %19065 = vmatprep.subr.bf16.mxu0 %v20244_v48  ;;  %v10091_v25 = vrot.slane %v23793_v63, %v21099_v9 }
0x1ec5   :  { %19044 = vmatpush3.bf16.msra.mxu1 %v20245_v39  ;;  %19066 = vmatpush3.bf16.msra.mxu0 %v20246_v31 }
0x1ec6   :  { %19045 = vmatprep.subr.bf16.mxu1 %v20247_v20  ;;  %19067 = vmatprep.subr.bf16.mxu0 %v20248_v56 }
0x1ec9   :  { %19046 = vmatpush3.bf16.msra.mxu1 %v20249_v12  ;;  %19068 = vmatpush3.bf16.msra.mxu0 %v20250_v52 }
0x1eca   :  { %19047 = vmatprep.subr.bf16.mxu1 %v20251_v38  ;;  %19069 = vmatprep.subr.bf16.mxu0 %v20252_v34 }
0x1ecd   :  { %19048 = vmatpush3.bf16.msra.mxu1 %v20253_v30  ;;  %19070 = vmatpush3.bf16.msra.mxu0 %v20254_v3  ;;  %v20269_v3 = vld [vmem:[%s25032_s9 + $0x1138] sm:$0xff]  }
0x1ece   :  { %19049 = vmatprep.subr.bf16.mxu1 %v20255_v8  ;;  %19071 = vmatprep.subr.bf16.mxu0 %v20256_v18  ;;  %v20270_v8 = vld [vmem:[%s25032_s9 + $0x11b8] sm:$0xff]  }
0x1ed1   :  { %19050 = vmatpush3.bf16.msra.mxu1 %v20257_v41  ;;  %19072 = vmatpush3.bf16.msra.mxu0 %v20258_v37 }
0x1ed2   :  { %19051 = vmatprep.subr.bf16.mxu1 %v20259_v24  ;;  %19073 = vmatprep.subr.bf16.mxu0 %v20260_v45  ;;  %v20271_v45 = vld [vmem:[%s25032_s9 + $0x1170] sm:$0xff]  }
0x1ed5   :  { %19052 = vmatpush3.bf16.msra.mxu1 %v20261_v51  ;;  %19074 = vmatpush3.bf16.msra.mxu0 %v20262_v50  ;;  %v20272_v51 = vld [vmem:[%s25032_s9 + $0x11f0] sm:$0xff]  }
0x1ed6   :  { %19053 = vmatprep.subr.bf16.mxu1 %v20263_v5  ;;  %19075 = vmatprep.subr.bf16.mxu0 %v20264_v42 }
0x1ed9   :  { %19054 = vmatpush3.bf16.msra.mxu1 %v20265_v44  ;;  %19076 = vmatpush3.bf16.msra.mxu0 %v20266_v23 }
0x1eda   :  { %19083 = vmatprep.subr.bf16.mxu1 %v20267_v47  ;;  %19105 = vmatprep.subr.bf16.mxu0 %v20268_v17  ;;  %v20273_v17 = vld [vmem:[%s25032_s9 + $0x1130] sm:$0xff]  }
0x1f64   :  { %v10337_v33 = vpop.f32.mrf.mxu1  ;;  %v10380_v19 = vpop.f32.mrf.mxu0 }
0x1f65   :  { %v10338_v16 = vadd.f32 %v10337_v33, %v10063_v61  ;;  %v10381_v29 = vadd.f32 %v10380_v19, %v10071_v26  ;;  %v20274_v33 = vld [vmem:[%s25032_s9 + $0x11b0] sm:$0xff]   ;;  %v20275_v19 = vld [vmem:[%s25032_s9 + $0x1168] sm:$0xff]  }
0x1f66   :  { %v10339_v55 = vpop.f32.mrf.mxu1  ;;  %v10382_v57 = vpop.f32.mrf.mxu0 }
0x1f67   :  { %v10340_v11 = vadd.f32 %v10339_v55, %v10067_v10  ;;  %v10383_v46 = vadd.f32 %v10382_v57, %v10075_v53  ;;  %v10647_v56 = vmax.f32 %v10338_v16, 0.0  ;;  %v10649_v12 = vmax.f32 %v10381_v29, 0.0  ;;  %v20276_v55 = vld [vmem:[%s25032_s9 + $0x11e8] sm:$0xff]   ;;  %v20281_v16 = vld [vmem:[%s25032_s9 + $0x1120] sm:$0xff]  }
0x1f68   :  { %v10341_v60 = vpop.f32.mrf.mxu1  ;;  %v10384_v35 = vpop.f32.mrf.mxu0 }
0x1f69   :  { %v10342_v36 = vadd.f32 %v10341_v60, %v10063_v61  ;;  %v10385_v54 = vadd.f32 %v10384_v35, %v10071_v26  ;;  %v10648_v48 = vmax.f32 %v10340_v11, 0.0  ;;  %v10650_v39 = vmax.f32 %v10383_v46, 0.0  ;;  %v20277_v35 = vld [vmem:[%s25032_s9 + $0x1128] sm:$0xff]   ;;  %v20279_v46 = vld [vmem:[%s25032_s9 + $0x1160] sm:$0xff]  }
0x1f6a   :  { %v10343_v43 = vpop.f32.mrf.mxu1  ;;  %v10386_v7 = vpop.f32.mrf.mxu0  ;;  %v20278_v11 = vld [vmem:[%s25032_s9 + $0x11a8] sm:$0xff]  }
0x1f6b   :  { %v10344_v27 = vadd.f32 %v10343_v43, %v10067_v10  ;;  %v10387_v15 = vadd.f32 %v10386_v7, %v10075_v53  ;;  %v10663_v59 = vmax.f32 %v10342_v36, 0.0  ;;  %v10665_v1 = vmax.f32 %v10385_v54, 0.0  ;;  %v20280_v36 = vld [vmem:[%s25032_s9 + $0x11e0] sm:$0xff]   ;;  %v20283_v7 = vld [vmem:[%s25032_s9 + $0x1158] sm:$0xff]  }
0x1f6c   :  { %v23803_v40 = vpop.f32.mrf.mxu1  ;;  %v23805_v0 = vpop.f32.mrf.mxu0  ;;  %v20282_v43 = vld [vmem:[%s25032_s9 + $0x11a0] sm:$0xff]  }
0x1f6d   :  { %v10664_v31 = vmax.f32 %v10344_v27, 0.0  ;;  %v10666_v20 = vmax.f32 %v10387_v15, 0.0  ;;  %v10936_v18 = vpack.c.bf16 %v10663_v59, %v10647_v56  ;;  %v10938_v41 = vpack.c.bf16 %v10665_v1, %v10649_v12  ;;  %v20284_v27 = vld [vmem:[%s25032_s9 + $0x11d8] sm:$0xff]   ;;  %v20290_v56 = vld [vmem:[%s25032_s9 + $0x1190] sm:$0xff]   ;;  %v20291_v12 = vld [vmem:[%s25032_s9 + $0x1148] sm:$0xff]  }
0x1f6e   :  { %v10425_v52 = vpop.f32.mrf.mxu1  ;;  %v10468_v38 = vpop.f32.mrf.mxu0  ;;  %v20285_v59 = vld [vmem:[%s25032_s9 + $0x1118] sm:$0xff]  }
0x1f6f   :  { %v10937_v34 = vpack.c.bf16 %v10664_v31, %v10648_v48  ;;  %v10939_v30 = vpack.c.bf16 %v10666_v20, %v10650_v39  ;;  %v10426_v50 = vadd.f32 %v10425_v52, %v10083_v4  ;;  %v10469_v5 = vadd.f32 %v10468_v38, %v10091_v25  ;;  %v20288_v48 = vld [vmem:[%s25032_s9 + $0x11d0] sm:$0xff]   ;;  %v20292_v52 = vld [vmem:[%s25032_s9 + $0x11c8] sm:$0xff]  }
0x1f70   :  { %v23817_v37 = vpop.f32.mrf.mxu1  ;;  %v23819_v24 = vpop.f32.mrf.mxu0  ;;  %v20289_v31 = vld [vmem:[%s25032_s9 + $0x1110] sm:$0xff]   ;;  %v10079_v38 = vrot.slane %v23793_v63, %v21178_v21 }
0x1f71   :  { %11760 = vmatprep.mubr.bf16.mxu1 %v10937_v34  ;;  %11801 = vmatprep.mubr.bf16.mxu0 %v10939_v30  ;;  %v10652_v10 = vmax.f32 %v10426_v50, 0.0  ;;  %v10654_v53 = vmax.f32 %v10469_v5, 0.0  ;;  %v10087_v34 = vrot.slane %v23793_v63, %v21181_v22  ;;  %v23902_v30 = vld [vmem:[%s25031_s8 + $0x48] sm:$0xff] }
0x1f72   :  { %v10429_v42 = vpop.f32.mrf.mxu1  ;;  %v10472_v44 = vpop.f32.mrf.mxu0  ;;  %11761 = vmatmul.mubr.bf16.vlgmr.msra.gmra.mxu1 %v10936_v18  ;;  %11802 = vmatmul.mubr.bf16.vlgmr.msra.gmra.mxu0 %v10938_v41  ;;  %v10428_v18 = vadd.f32 %v23817_v37, %v10079_v38  ;;  %v10099_v41 = vrot.slane %v23902_v30, %v20803_v14  ;;  %v20294_v63 = vld [vmem:[%s25032_s9 + $0x1188] sm:$0xff]   ;;  %v10107_v5 = vrot.slane %v23902_v30, %v21080_v49  ;;  %v20296_v37 = vld [vmem:[%s25032_s9 + $0x11c0] sm:$0xff]  }
0x1f73   :  { %v10430_v23 = vadd.f32 %v10429_v42, %v10083_v4  ;;  %v10473_v47 = vadd.f32 %v10472_v44, %v10091_v25  ;;  %19084 = vmatpush3.bf16.msra.mxu1 %v20269_v3  ;;  %19106 = vmatpush3.bf16.msra.mxu0 %v20270_v8  ;;  %v20286_v4 = vld [vmem:[%s25032_s9 + $0x1198] sm:$0xff]   ;;  %v20287_v25 = vld [vmem:[%s25032_s9 + $0x1150] sm:$0xff]   ;;  %v20293_v8 = vld [vmem:[%s25032_s9 + $0x1108] sm:$0xff]   ;;  %v10471_v50 = vadd.f32 %v23819_v24, %v10087_v34 }
0x1f74   :  { %19085 = vmatprep.subr.bf16.mxu1 %v20271_v45  ;;  %19107 = vmatprep.subr.bf16.mxu0 %v20272_v51  ;;  %v23851_v54 = vpop.f32.mrf.mxu1  ;;  %v23856_v29 = vpop.f32.mrf.mxu0  ;;  %v20295_v51 = vld [vmem:[%s25032_s9 + $0x1140] sm:$0xff]   ;;  %v10424_v42 = vadd.f32 %v23803_v40, %v10079_v38  ;;  %v10667_v24 = vmax.f32 %v10428_v18, 0.0  ;;  %v20299_v40 = vld [vmem:[%s25032_s9 + $0x1278] sm:$0xff]  }
0x1f75   :  { %v10668_v61 = vmax.f32 %v10430_v23, 0.0  ;;  %v10670_v26 = vmax.f32 %v10473_v47, 0.0  ;;  %v10467_v23 = vadd.f32 %v23805_v0, %v10087_v34  ;;  %v20313_v38 = vld [vmem:[%s25032_s9 + $0x1220] sm:$0xff]   ;;  %v20316_v18 = vld [vmem:[%s25032_s9 + $0x12d8] sm:$0xff]  }
0x1f76   :  { %v10511_v15 = vpop.f32.mrf.mxu1  ;;  %v10554_v1 = vpop.f32.mrf.mxu0 }
0x1f77   :  { %v10941_v57 = vpack.c.bf16 %v10668_v61, %v10652_v10  ;;  %v10943_v60 = vpack.c.bf16 %v10670_v26, %v10654_v53  ;;  %19086 = vmatpush3.bf16.msra.mxu1 %v20273_v17  ;;  %19108 = vmatpush3.bf16.msra.mxu0 %v20274_v33  ;;  %v20297_v17 = vld [vmem:[%s25032_s9 + $0x1100] sm:$0xff]   ;;  %v10512_v33 = vadd.f32 %v10511_v15, %v10099_v41  ;;  %v10669_v10 = vmax.f32 %v10471_v50, 0.0  ;;  %v20300_v53 = vld [vmem:[%s25032_s9 + $0x12f8] sm:$0xff]   ;;  %v20319_v50 = vld [vmem:[%s25032_s9 + $0x1250] sm:$0xff]  }
0x1f78   :  { %19087 = vmatprep.subr.bf16.mxu1 %v20275_v19  ;;  %19109 = vmatprep.subr.bf16.mxu0 %v20276_v55  ;;  %v23879_v39 = vpop.f32.mrf.mxu1  ;;  %v23884_v20 = vpop.f32.mrf.mxu0  ;;  %v20298_v19 = vld [vmem:[%s25032_s9 + $0x1180] sm:$0xff]   ;;  %v10555_v0 = vadd.f32 %v10554_v1, %v10107_v5  ;;  %v10651_v61 = vmax.f32 %v10424_v42, 0.0  ;;  %v10653_v55 = vmax.f32 %v10467_v23, 0.0  ;;  %v20306_v1 = vld [vmem:[%s25032_s9 + $0x12b0] sm:$0xff]  }
0x1f79   :  { %11842 = vmatprep.mubr.bf16.mxu1 %v10941_v57  ;;  %11883 = vmatprep.mubr.bf16.mxu0 %v10943_v60  ;;  %v20301_v60 = vld [vmem:[%s25032_s9 + $0x1238] sm:$0xff]   ;;  %v20321_v42 = vld [vmem:[%s25032_s9 + $0x1210] sm:$0xff]  }
0x1f7a   :  { %v10515_v3 = vpop.f32.mrf.mxu1  ;;  %v10558_v45 = vpop.f32.mrf.mxu0  ;;  %v20322_v23 = vld [vmem:[%s25032_s9 + $0x1290] sm:$0xff]  }
0x1f7b   :  { %19088 = vmatpush3.bf16.msra.mxu1 %v20277_v35  ;;  %19110 = vmatpush3.bf16.msra.mxu0 %v20278_v11  ;;  %v10516_v44 = vadd.f32 %v10515_v3, %v10099_v41  ;;  %v10559_v47 = vadd.f32 %v10558_v45, %v10107_v5  ;;  %v10940_v35 = vpack.c.bf16 %v10667_v24, %v10651_v61  ;;  %v10656_v11 = vmax.f32 %v10512_v33, 0.0  ;;  %v20314_v3 = vld [vmem:[%s25032_s9 + $0x12a0] sm:$0xff]   ;;  %v20317_v45 = vld [vmem:[%s25032_s9 + $0x1218] sm:$0xff]   ;;  %v20320_v5 = vld [vmem:[%s25032_s9 + $0x12d0] sm:$0xff]  }
0x1f7c   :  { %19089 = vmatprep.subr.bf16.mxu1 %v20279_v46  ;;  %19111 = vmatprep.subr.bf16.mxu0 %v20280_v36  ;;  %v20302_v46 = vld [vmem:[%s25032_s9 + $0x12b8] sm:$0xff]   ;;  %v10942_v36 = vpack.c.bf16 %v10669_v10, %v10653_v55  ;;  %v23977_v34 = vpop.f32.mrf.mxu0  ;;  %v10095_v24 = vrot.slane %v23902_v30, %v20800_v13  ;;  %v10103_v33 = vrot.slane %v23902_v30, %v20822_v58  ;;  %v20326_v61 = vld [vmem:[%s25032_s9 + $0x1288] sm:$0xff]  }
0x1f7d   :  { %v10672_v26 = vmax.f32 %v10516_v44, 0.0  ;;  %v10674_v57 = vmax.f32 %v10559_v47, 0.0  ;;  %v20323_v47 = vld [vmem:[%s25032_s9 + $0x1248] sm:$0xff]  }
0x1f7e   :  { %v10514_v10 = vadd.f32 %v23879_v39, %v10095_v24  ;;  %v10557_v55 = vadd.f32 %v23884_v20, %v10103_v33  ;;  %v20328_v39 = vld [vmem:[%s25032_s9 + $0x12c0] sm:$0xff]  }
0x1f7f   :  { %19090 = vmatpush3.bf16.msra.mxu1 %v20281_v16  ;;  %19112 = vmatpush3.bf16.msra.mxu0 %v20282_v43  ;;  %v10658_v16 = vmax.f32 %v10555_v0, 0.0  ;;  %v20303_v43 = vld [vmem:[%s25032_s9 + $0x1270] sm:$0xff]   ;;  %v10115_v0 = vrot.slane %v23902_v30, %v21096_v62 }
0x1f80   :  { %19091 = vmatprep.subr.bf16.mxu1 %v20283_v7  ;;  %19113 = vmatprep.subr.bf16.mxu0 %v20284_v27  ;;  %v10945_v7 = vpack.c.bf16 %v10672_v26, %v10656_v11  ;;  %v20304_v27 = vld [vmem:[%s25032_s9 + $0x12f0] sm:$0xff]   ;;  %v20327_v26 = vld [vmem:[%s25032_s9 + $0x1240] sm:$0xff]   ;;  %v10553_v11 = vadd.f32 %v23856_v29, %v10103_v33  ;;  %v10671_v20 = vmax.f32 %v10514_v10, 0.0  ;;  %v20347_v33 = vld [vmem:[%s25032_s9 + $0x1358] sm:$0xff]  }
0x1f81   :  { %v10947_v15 = vpack.c.bf16 %v10674_v57, %v10658_v16  ;;  %v10123_v57 = vrot.slane %v23902_v30, %v21099_v9  ;;  %v20350_v10 = vld [vmem:[%s25032_s9 + $0x1398] sm:$0xff]  }
0x1f83   :  { %19092 = vmatpush3.bf16.msra.mxu1 %v20285_v59  ;;  %19114 = vmatpush3.bf16.msra.mxu0 %v20286_v4  ;;  %v20305_v59 = vld [vmem:[%s25032_s9 + $0x1230] sm:$0xff]   ;;  %v20307_v4 = vld [vmem:[%s25032_s9 + $0x1268] sm:$0xff]  }
0x1f84   :  { %19093 = vmatprep.subr.bf16.mxu1 %v20287_v25  ;;  %19115 = vmatprep.subr.bf16.mxu0 %v20288_v48  ;;  %v20308_v25 = vld [vmem:[%s25032_s9 + $0x12e8] sm:$0xff]  }
0x1f85   :  { %v20309_v48 = vld [vmem:[%s25032_s9 + $0x1228] sm:$0xff]  }
0x1f87   :  { %19094 = vmatpush3.bf16.msra.mxu1 %v20289_v31  ;;  %19116 = vmatpush3.bf16.msra.mxu0 %v20290_v56  ;;  %v20310_v31 = vld [vmem:[%s25032_s9 + $0x12a8] sm:$0xff]   ;;  %v20311_v56 = vld [vmem:[%s25032_s9 + $0x1260] sm:$0xff]  }
0x1f88   :  { %19095 = vmatprep.subr.bf16.mxu1 %v20291_v12  ;;  %19117 = vmatprep.subr.bf16.mxu0 %v20292_v52  ;;  %v20312_v12 = vld [vmem:[%s25032_s9 + $0x12e0] sm:$0xff]   ;;  %v23972_v52 = vpop.f32.mrf.mxu1 }
0x1f8a   :  { %v10597_v41 = vpop.f32.mrf.mxu1 }
0x1f8b   :  { %19096 = vmatpush3.bf16.msra.mxu1 %v20293_v8  ;;  %19118 = vmatpush3.bf16.msra.mxu0 %v20294_v63  ;;  %v20315_v8 = vld [vmem:[%s25032_s9 + $0x1258] sm:$0xff]   ;;  %v10640_v63 = vpop.f32.mrf.mxu0  ;;  %v10598_v16 = vadd.f32 %v10597_v41, %v10115_v0 }
0x1f8c   :  { %19097 = vmatprep.subr.bf16.mxu1 %v20295_v51  ;;  %19119 = vmatprep.subr.bf16.mxu0 %v20296_v37  ;;  %v20318_v51 = vld [vmem:[%s25032_s9 + $0x1298] sm:$0xff]   ;;  %v24000_v37 = vpop.f32.mrf.mxu1  ;;  %v10641_v29 = vadd.f32 %v10640_v63, %v10123_v57  ;;  %v20338_v63 = vld [vmem:[%s25032_s9 + $0x13b0] sm:$0xff]  }
0x1f8d   :  { %v24005_v44 = vpop.f32.mrf.mxu0 }
0x1f8f   :  { %19098 = vmatpush3.bf16.msra.mxu1 %v20297_v17  ;;  %19120 = vmatpush3.bf16.msra.mxu0 %v20298_v19  ;;  %v20324_v17 = vld [vmem:[%s25032_s9 + $0x12c8] sm:$0xff]   ;;  %v10601_v19 = vpop.f32.mrf.mxu1 }
0x1f90   :  { %19127 = vmatprep.subr.bf16.mxu1 %v20299_v40  ;;  %19149 = vmatprep.subr.bf16.mxu0 %v20300_v53  ;;  %v20325_v40 = vld [vmem:[%s25032_s9 + $0x1208] sm:$0xff]   ;;  %v10644_v53 = vpop.f32.mrf.mxu0 }
0x1f92   :  { %11843 = vmatmul.mubr.bf16.vlgmr.msra.gmra.mxu1 %v10940_v35  ;;  %11884 = vmatmul.mubr.bf16.vlgmr.msra.gmra.mxu0 %v10942_v36  ;;  %v10602_v35 = vadd.f32 %v10601_v19, %v10115_v0  ;;  %v20329_v36 = vld [vmem:[%s25032_s9 + $0x1200] sm:$0xff]   ;;  %v20348_v19 = vld [vmem:[%s25032_s9 + $0x13d8] sm:$0xff]   ;;  %v20351_v0 = vld [vmem:[%s25032_s9 + $0x1350] sm:$0xff]  }
0x1f93   :  { %19128 = vmatpush3.bf16.msra.mxu1 %v20301_v60  ;;  %11924 = vmatprep.mubr.bf16.mxu1 %v10945_v7  ;;  %v10510_v60 = vadd.f32 %v23851_v54, %v10095_v24  ;;  %v20331_v54 = vld [vmem:[%s25032_s9 + $0x1378] sm:$0xff]   ;;  %v10673_v7 = vmax.f32 %v10557_v55, 0.0  ;;  %v20346_v24 = vld [vmem:[%s25032_s9 + $0x13a0] sm:$0xff]   ;;  %v20355_v55 = vld [vmem:[%s25032_s9 + $0x1348] sm:$0xff]  }
0x1f94   :  { %19150 = vmatpush3.bf16.msra.mxu0 %v20302_v46  ;;  %11965 = vmatprep.mubr.bf16.mxu0 %v10947_v15  ;;  %v10645_v46 = vadd.f32 %v10644_v53, %v10123_v57  ;;  %v20352_v53 = vld [vmem:[%s25032_s9 + $0x13d0] sm:$0xff]   ;;  %v20356_v57 = vld [vmem:[%s25032_s9 + $0x13c8] sm:$0xff]  }
0x1f95   :  { %19129 = vmatprep.subr.bf16.mxu1 %v20303_v43  ;;  %19151 = vmatprep.subr.bf16.mxu0 %v20304_v27  ;;  %v20330_v43 = vld [vmem:[%s25032_s9 + $0x1280] sm:$0xff]   ;;  %v20332_v27 = vld [vmem:[%s25032_s9 + $0x13f8] sm:$0xff]   ;;  %v10655_v15 = vmax.f32 %v10510_v60, 0.0  ;;  %v10119_v60 = vrot.slane %v23902_v30, %v21181_v22 }
0x1f97   :  { %19130 = vmatpush3.bf16.msra.mxu1 %v20305_v59  ;;  %v10676_v59 = vmax.f32 %v10602_v35, 0.0  ;;  %v20357_v35 = vld [vmem:[%s25032_s9 + $0x1308] sm:$0xff]  }
0x1f98   :  { %19152 = vmatpush3.bf16.msra.mxu0 %v20306_v1  ;;  %19131 = vmatprep.subr.bf16.mxu1 %v20307_v4  ;;  %v10657_v1 = vmax.f32 %v10553_v11, 0.0  ;;  %v10678_v4 = vmax.f32 %v10645_v46, 0.0  ;;  %v20358_v46 = vld [vmem:[%s25032_s9 + $0x1388] sm:$0xff]  }
0x1f99   :  { %19153 = vmatprep.subr.bf16.mxu0 %v20308_v25  ;;  %v20333_v25 = vld [vmem:[%s25032_s9 + $0x1338] sm:$0xff]  }
0x1f9b   :  { %19132 = vmatpush3.bf16.msra.mxu1 %v20309_v48  ;;  %v10944_v48 = vpack.c.bf16 %v10671_v20, %v10655_v15  ;;  %v10643_v20 = vadd.f32 %v24005_v44, %v10119_v60  ;;  %v20362_v44 = vld [vmem:[%s25032_s9 + $0x1380] sm:$0xff]  }
0x1f9c   :  { %19154 = vmatpush3.bf16.msra.mxu0 %v20310_v31  ;;  %19133 = vmatprep.subr.bf16.mxu1 %v20311_v56  ;;  %v10660_v31 = vmax.f32 %v10598_v16, 0.0  ;;  %v20334_v56 = vld [vmem:[%s25032_s9 + $0x13b8] sm:$0xff]  }
0x1f9d   :  { %19155 = vmatprep.subr.bf16.mxu0 %v20312_v12  ;;  %v10946_v12 = vpack.c.bf16 %v10673_v7, %v10657_v1  ;;  %v10677_v7 = vmax.f32 %v10643_v20, 0.0 }
0x1f9f   :  { %19134 = vmatpush3.bf16.msra.mxu1 %v20313_v38  ;;  %v10662_v38 = vmax.f32 %v10641_v29, 0.0 }
0x1fa0   :  { %19156 = vmatpush3.bf16.msra.mxu0 %v20314_v3  ;;  %19135 = vmatprep.subr.bf16.mxu1 %v20315_v8  ;;  %v20335_v3 = vld [vmem:[%s25032_s9 + $0x1370] sm:$0xff]   ;;  %v10949_v8 = vpack.c.bf16 %v10676_v59, %v10660_v31 }
0x1fa1   :  { %19157 = vmatprep.subr.bf16.mxu0 %v20316_v18  ;;  %v20336_v18 = vld [vmem:[%s25032_s9 + $0x13f0] sm:$0xff]   ;;  %v10951_v41 = vpack.c.bf16 %v10678_v4, %v10662_v38 }
0x1fa3   :  { %19136 = vmatpush3.bf16.msra.mxu1 %v20317_v45  ;;  %v20337_v45 = vld [vmem:[%s25032_s9 + $0x1330] sm:$0xff]  }
0x1fa4   :  { %19158 = vmatpush3.bf16.msra.mxu0 %v20318_v51  ;;  %19137 = vmatprep.subr.bf16.mxu1 %v20319_v50  ;;  %v20339_v51 = vld [vmem:[%s25032_s9 + $0x1368] sm:$0xff]  }
0x1fa5   :  { %19159 = vmatprep.subr.bf16.mxu0 %v20320_v5  ;;  %v20340_v50 = vld [vmem:[%s25032_s9 + $0x13e8] sm:$0xff]  }
0x1fa6   :  { %v20341_v5 = vld [vmem:[%s25032_s9 + $0x1328] sm:$0xff]  }
0x1fa7   :  { %19138 = vmatpush3.bf16.msra.mxu1 %v20321_v42  ;;  %v20342_v42 = vld [vmem:[%s25032_s9 + $0x13a8] sm:$0xff]  }
0x1fa8   :  { %19160 = vmatpush3.bf16.msra.mxu0 %v20322_v23  ;;  %19139 = vmatprep.subr.bf16.mxu1 %v20323_v47  ;;  %v20343_v23 = vld [vmem:[%s25032_s9 + $0x1360] sm:$0xff]  }
0x1fa9   :  { %19161 = vmatprep.subr.bf16.mxu0 %v20324_v17  ;;  %v20344_v47 = vld [vmem:[%s25032_s9 + $0x13e0] sm:$0xff]  }
0x1faa   :  { %v20345_v17 = vld [vmem:[%s25032_s9 + $0x1320] sm:$0xff]  }
0x1fab   :  { %19140 = vmatpush3.bf16.msra.mxu1 %v20325_v40  ;;  %v20349_v40 = vld [vmem:[%s25032_s9 + $0x1318] sm:$0xff]  }
0x1fac   :  { %19162 = vmatpush3.bf16.msra.mxu0 %v20326_v61  ;;  %19141 = vmatprep.subr.bf16.mxu1 %v20327_v26  ;;  %v20353_v61 = vld [vmem:[%s25032_s9 + $0x1310] sm:$0xff]  }
0x1fad   :  { %19163 = vmatprep.subr.bf16.mxu0 %v20328_v39  ;;  %v20354_v26 = vld [vmem:[%s25032_s9 + $0x1390] sm:$0xff]   ;;  %v10111_v39 = vrot.slane %v23902_v30, %v21178_v21  ;;  %v20360_v30 = vld [vmem:[%s25032_s9 + $0x13c0] sm:$0xff]  }
0x1faf   :  { %19142 = vmatpush3.bf16.msra.mxu1 %v20329_v36  ;;  %v10600_v11 = vadd.f32 %v24000_v37, %v10111_v39  ;;  %v20359_v36 = vld [vmem:[%s25032_s9 + $0x1340] sm:$0xff]   ;;  %v10596_v16 = vadd.f32 %v23972_v52, %v10111_v39  ;;  %v10639_v37 = vadd.f32 %v23977_v34, %v10119_v60 }
0x1fb0   :  { %19164 = vmatpush3.bf16.msra.mxu0 %v20330_v43  ;;  %19171 = vmatprep.subr.bf16.mxu1 %v20331_v54  ;;  %v20361_v43 = vld [vmem:[%s25032_s9 + $0x1300] sm:$0xff]  }
0x1fb1   :  { %19193 = vmatprep.subr.bf16.mxu0 %v20332_v27  ;;  %v10675_v54 = vmax.f32 %v10600_v11, 0.0  ;;  %v10659_v29 = vmax.f32 %v10596_v16, 0.0  ;;  %v10661_v27 = vmax.f32 %v10639_v37, 0.0 }
0x1fb2   :  { %11925 = vmatmul.mubr.bf16.vlgmr.msra.gmra.mxu1 %v10944_v48 }
0x1fb3   :  { %11966 = vmatmul.mubr.bf16.vlgmr.msra.gmra.mxu0 %v10946_v12  ;;  %19172 = vmatpush3.bf16.msra.mxu1 %v20333_v25  ;;  %v10948_v52 = vpack.c.bf16 %v10675_v54, %v10659_v29  ;;  %v10950_v34 = vpack.c.bf16 %v10677_v7, %v10661_v27 }
0x1fb4   :  { %12006 = vmatprep.mubr.bf16.mxu1 %v10949_v8  ;;  %19194 = vmatpush3.bf16.msra.mxu0 %v20334_v56 }
0x1fb5   :  { %12047 = vmatprep.mubr.bf16.mxu0 %v10951_v41  ;;  %19173 = vmatprep.subr.bf16.mxu1 %v20335_v3 }
0x1fb6   :  { %19195 = vmatprep.subr.bf16.mxu0 %v20336_v18 }
0x1fb7   :  { %19174 = vmatpush3.bf16.msra.mxu1 %v20337_v45 }
0x1fb8   :  { %19196 = vmatpush3.bf16.msra.mxu0 %v20338_v63  ;;  %19175 = vmatprep.subr.bf16.mxu1 %v20339_v51  ;;  %v17570_v51 = vld [vmem:[%s25033_s10 + $0x4] ss:$0 sm:$0xff] }
0x1fb9   :  { %19197 = vmatprep.subr.bf16.mxu0 %v20340_v50 }
0x1fbb   :  { %19176 = vmatpush3.bf16.msra.mxu1 %v20341_v5 }
0x1fbc   :  { %19198 = vmatpush3.bf16.msra.mxu0 %v20342_v42  ;;  %19177 = vmatprep.subr.bf16.mxu1 %v20343_v23 }
0x1fbd   :  { %19199 = vmatprep.subr.bf16.mxu0 %v20344_v47 }
0x1fbf   :  { %19178 = vmatpush3.bf16.msra.mxu1 %v20345_v17 }
0x1fc0   :  { %19200 = vmatpush3.bf16.msra.mxu0 %v20346_v24  ;;  %19179 = vmatprep.subr.bf16.mxu1 %v20347_v33 }
0x1fc1   :  { %19201 = vmatprep.subr.bf16.mxu0 %v20348_v19 }
0x1fc3   :  { %19180 = vmatpush3.bf16.msra.mxu1 %v20349_v40 }
0x1fc4   :  { %19202 = vmatpush3.bf16.msra.mxu0 %v20350_v10  ;;  %19181 = vmatprep.subr.bf16.mxu1 %v20351_v0 }
0x1fc5   :  { %19203 = vmatprep.subr.bf16.mxu0 %v20352_v53 }
0x1fc7   :  { %19182 = vmatpush3.bf16.msra.mxu1 %v20353_v61 }
0x1fc8   :  { %19204 = vmatpush3.bf16.msra.mxu0 %v20354_v26  ;;  %19183 = vmatprep.subr.bf16.mxu1 %v20355_v55 }
0x1fc9   :  { %19205 = vmatprep.subr.bf16.mxu0 %v20356_v57 }
0x1fcb   :  { %19184 = vmatpush3.bf16.msra.mxu1 %v20357_v35 }
0x1fcc   :  { %19206 = vmatpush3.bf16.msra.mxu0 %v20358_v46  ;;  %19185 = vmatprep.subr.bf16.mxu1 %v20359_v36 }
0x1fcd   :  { %19207 = vmatprep.subr.bf16.mxu0 %v20360_v30 }
0x1fcf   :  { %19186 = vmatpush3.bf16.msra.mxu1 %v20361_v43 }
0x1fd0   :  { %19208 = vmatpush3.bf16.msra.mxu0 %v20362_v44 }
0x1fd1   :  { %19525 = vmatprep.subr.bf16.mxu0 %v20679_v6 }
0x1fd2   :  { %12007 = vmatmul.mubr.bf16.vlgmr.msra.gmra.mxu1 %v10948_v52 }
0x1fd3   :  { %12048 = vmatmul.mubr.bf16.vlgmr.msra.gmra.mxu0 %v10950_v34  ;;  %12199 = vmatprep.mubr.bf16.mxu1 %v20678_v2 }
0x1fd4   :  { %19529 = vmatprep.mubr.msk.bf16.mxu0 %vm20680_vm0, %v20679_v6 }
0x2032   :  { %v19055_v15 = vpop.f32.mrf.mxu1  ;;  %v19077_v59 = vpop.f32.mrf.mxu0 }
0x2034   :  { %v19056_v1 = vpop.f32.mrf.mxu1  ;;  %v19078_v4 = vpop.f32.mrf.mxu0 }
0x2035   :  { %v19057_v63 = vadd.f32 %v19056_v1, %v19055_v15  ;;  %v19079_v24 = vadd.f32 %v19078_v4, %v19077_v59 }
0x2036   :  { %v19058_v25 = vpop.f32.mrf.mxu1  ;;  %v19080_v48 = vpop.f32.mrf.mxu0 }
0x2037   :  { %v11763_v42 = vadd.f32 %v19057_v63, %v17570_v51 }
0x2038   :  { %v19059_v31 = vpop.f32.mrf.mxu1  ;;  %v19081_v12 = vpop.f32.mrf.mxu0 }
0x2039   :  { %v19060_v23 = vadd.f32 %v19059_v31, %v19058_v25  ;;  %v11804_v19 = vadd.f32 %v19079_v24, %v11763_v42  ;;  %v19082_v53 = vadd.f32 %v19081_v12, %v19080_v48 }
0x203b   :  { %v11766_v40 = vadd.f32 %v19060_v23, %v17570_v51 }
0x203d   :  { %v11807_v55 = vadd.f32 %v19082_v53, %v11766_v40  ;;  %v20363_v40 = vld [vmem:[%s25024_s1 + $0x108] ss:$12 sps:$4 sm:$0xff]   ;;  %v20367_v53 = vld [vmem:[%s25024_s1 + $0xf0] ss:$12 sps:$4 sm:$0xff]  }
0x2052   :  { %v19099_v56 = vpop.f32.mrf.mxu1  ;;  %v19121_v38 = vpop.f32.mrf.mxu0 }
0x2054   :  { %v19100_v3 = vpop.f32.mrf.mxu1  ;;  %v19122_v8 = vpop.f32.mrf.mxu0 }
0x2055   :  { %v19101_v33 = vadd.f32 %v19100_v3, %v19099_v56  ;;  %v19123_v57 = vadd.f32 %v19122_v8, %v19121_v38 }
0x2056   :  { %v19102_v18 = vpop.f32.mrf.mxu1  ;;  %v19124_v41 = vpop.f32.mrf.mxu0 }
0x2057   :  { %v11845_v61 = vadd.f32 %v19101_v33, %v11804_v19 }
0x2058   :  { %v19103_v45 = vpop.f32.mrf.mxu1  ;;  %v19125_v5 = vpop.f32.mrf.mxu0 }
0x2059   :  { %v19104_v26 = vadd.f32 %v19103_v45, %v19102_v18  ;;  %v11886_v11 = vadd.f32 %v19123_v57, %v11845_v61  ;;  %v19126_v36 = vadd.f32 %v19125_v5, %v19124_v41  ;;  %v20370_v61 = vld [vmem:[%s25024_s1 + $0xf8] ss:$12 sps:$4 sm:$0xff]  }
0x205b   :  { %v11848_v46 = vadd.f32 %v19104_v26, %v11807_v55 }
0x205d   :  { %v11889_v43 = vadd.f32 %v19126_v36, %v11848_v46  ;;  %v17701_v36 = vld [vmem:[%s25034_s11 + $0x4] ss:$0 sm:$0xff] }
0x2072   :  { %v19143_v50 = vpop.f32.mrf.mxu1 }
0x2073   :  { %v19165_v47 = vpop.f32.mrf.mxu0 }
0x2074   :  { %v19144_v17 = vpop.f32.mrf.mxu1 }
0x2075   :  { %v19166_v10 = vpop.f32.mrf.mxu0  ;;  %v19145_v39 = vadd.f32 %v19144_v17, %v19143_v50 }
0x2076   :  { %v19146_v0 = vpop.f32.mrf.mxu1  ;;  %v19167_v54 = vadd.f32 %v19166_v10, %v19165_v47  ;;  %v20366_v10 = vld [vmem:[%s25024_s1 + $0x110] ss:$12 sps:$4 sm:$0xff]  }
0x2077   :  { %v19168_v60 = vpop.f32.mrf.mxu0  ;;  %v11927_v20 = vadd.f32 %v19145_v39, %v11886_v11  ;;  %19526 = vmatpush3.bf16.msra.mxu0 %v20366_v10 }
0x2078   :  { %v19147_v35 = vpop.f32.mrf.mxu1  ;;  %19527 = vmatprep.subr.bf16.mxu0 %v20679_v6 }
0x2079   :  { %v19148_v30 = vadd.f32 %v19147_v35, %v19146_v0  ;;  %v19169_v16 = vpop.f32.mrf.mxu0  ;;  %v11968_v29 = vadd.f32 %v19167_v54, %v11927_v20  ;;  %v20369_v0 = vld [vmem:[%s25024_s1 + $0xf4] ss:$12 sps:$4 sm:$0xff]  }
0x207a   :  { %v19170_v59 = vadd.f32 %v19169_v16, %v19168_v60 }
0x207b   :  { %v11930_v27 = vadd.f32 %v19148_v30, %v11889_v43  ;;  %19528 = vmatpush3.bf16.msra.mxu0 %v20370_v61 }
0x207d   :  { %v11971_v31 = vadd.f32 %v19170_v59, %v11930_v27 }
0x2092   :  { %v19187_v37 = vpop.f32.mrf.mxu1 }
0x2093   :  { %v19209_v44 = vpop.f32.mrf.mxu0 }
0x2094   :  { %v19188_v7 = vpop.f32.mrf.mxu1 }
0x2095   :  { %v19189_v52 = vadd.f32 %v19188_v7, %v19187_v37  ;;  %v19210_v34 = vpop.f32.mrf.mxu0  ;;  %v17702_v37 = vld [vmem:[%s25035_s12 + $0x4] ss:$0 sm:$0xff] }
0x2096   :  { %v19190_v15 = vpop.f32.mrf.mxu1  ;;  %v19211_v4 = vadd.f32 %v19210_v34, %v19209_v44 }
0x2097   :  { %v12009_v1 = vadd.f32 %v19189_v52, %v11968_v29  ;;  %v19212_v25 = vpop.f32.mrf.mxu0  ;;  %v17711_v29 = vld [vmem:[%s25025_s2 + $0xf] sm:$0x7] }
0x2098   :  { %v19191_v48 = vpop.f32.mrf.mxu1  ;;  %v12120_v27 = vrot.slane %v17711_v29, %v20800_v13  ;;  %v12124_v52 = vrot.slane %v17711_v29, %v20803_v14 }
0x2099   :  { %v12050_v56 = vadd.f32 %v19211_v4, %v12009_v1  ;;  %v19192_v12 = vadd.f32 %v19191_v48, %v19190_v15  ;;  %v19213_v38 = vpop.f32.mrf.mxu0 }
0x209a   :  { %v19214_v8 = vadd.f32 %v19213_v38, %v19212_v25 }
0x209b   :  { %v12012_v3 = vadd.f32 %v19192_v12, %v11971_v31  ;;  %v12056_v18 = vadd.f32 %v12050_v56, %v23610_v32 }
0x209d   :  { %v12053_v41 = vadd.f32 %v19214_v8, %v12012_v3  ;;  %v12062_v45 = vsel %vm112_vm1, %v12056_v18, 0.0 }
0x209e   :  { %12063 = vadd.xlane.f32.xlu0 %v12062_v45 }
0x209f   :  { %v12057_v63 = vadd.f32 %v12053_v41, %v23612_v28  ;;  %v20365_v28 = vld [vmem:[%s25024_s1 + $0x10c] ss:$12 sps:$4 sm:$0xff]  }
0x20a0   :  { %12179 = vmatprep.subr.bf16.mxu1 %v20365_v28 }
0x20a1   :  { %v12065_v51 = vsel %vm112_vm1, %v12057_v63, 0.0  ;;  %12180 = vmatpush1.bf16.msra.mxu1 %v20363_v40 }
0x20a2   :  { %12066 = vadd.xlane.f32.xlu1 %v12065_v51  ;;  %12181 = vmatprep.subr.bf16.mxu1 %v20369_v0 }
0x20a5   :  { %12182 = vmatpush1.bf16.msra.mxu1 %v20367_v53 }
0x20a6   :  { %19533 = vmatprep.subr.bf16.mxu1 %v20679_v6 }
0x2127   :  { %v12064_v50 = vpop.xlane.xlu0 %12063 }
0x2128   :  { %v12068_v5 = vmul.f32 0.03125, %v12064_v50 }
0x212a   :  { %v12070_v42 = vsub.f32 %v12056_v18, %v12068_v5 }
0x212b   :  { %v12067_v23 = vpop.xlane.xlu1 %12066 }
0x212c   :  { %v12069_v47 = vmul.f32 0.03125, %v12067_v23  ;;  %v12072_v17 = vmul.f32 %v12070_v42, %v12070_v42  ;;  %v20372_v23 = vld [vmem:[%s25026_s3 + $0x50] sm:$0xff]  }
0x212e   :  { %v12071_v24 = vsub.f32 %v12057_v63, %v12069_v47  ;;  %v12074_v33 = vsel %vm112_vm1, %v12072_v17, 0.0 }
0x212f   :  { %12075 = vadd.xlane.f32.xlu0 %v12074_v33 }
0x2130   :  { %v12073_v32 = vmul.f32 %v12071_v24, %v12071_v24 }
0x2132   :  { %v12077_v19 = vsel %vm112_vm1, %v12073_v32, 0.0 }
0x2133   :  { %12078 = vadd.xlane.f32.xlu1 %v12077_v19 }
0x21b8   :  { %v12076_v26 = vpop.xlane.xlu0 %12075 }
0x21b9   :  { %v12080_v55 = vmul.f32 0.03125, %v12076_v26 }
0x21bb   :  { %v12082_v57 = vadd.f32 1e-05, %v12080_v55 }
0x21bc   :  { %v12079_v39 = vpop.xlane.xlu1 %12078 }
0x21bd   :  { %20629 = vrsqrt.f32 %v12082_v57  ;;  %v12081_v60 = vmul.f32 0.03125, %v12079_v39 }
0x21bf   :  { %v12083_v35 = vadd.f32 1e-05, %v12081_v60 }
0x21c1   :  { %20631 = vrsqrt.f32 %v12083_v35 }
0x21ca   :  { %v20630_v11 = vpop.eup %20629 }
0x21cb   :  { %v12086_v46 = vmul.f32 %v20630_v11, %v12070_v42  ;;  %v20371_v42 = vld [vmem:[%s25026_s3 + $0x58] sm:$0xff]  }
0x21cd   :  { %v12094_v30 = vmul.f32 %v17701_v36, %v12086_v46 }
0x21ce   :  { %v20632_v20 = vpop.eup %20631 }
0x21cf   :  { %v12087_v16 = vmul.f32 %v20632_v20, %v12071_v24  ;;  %v24189_v54 = vadd.f32 %v17702_v37, %v12094_v30 }
0x21d1   :  { %v12095_v43 = vmul.f32 %v17701_v36, %v12087_v16 }
0x21d3   :  { %v24191_v44 = vadd.f32 %v17702_v37, %v12095_v43  ;;  %v12128_v37 = vrot.slane %v17711_v29, %v20822_v58 }
0x21d5   :  { %v12113_v7 = vpack.c.bf16 %v24191_v44, %v24189_v54 }
0x21d7   :  { %17718 = vmatmul.mubr.msk.bf16.vlgmr.msra.gmra.mxu1 %vm112_vm1, %v12113_v7  ;;  %19530 = vmatmul.mubr.msk.bf16.vlgmr.msra.gmra.mxu0 %vm112_vm1, %v12113_v7 }
0x21d8   :  { %19537 = vmatprep.mubr.msk.bf16.mxu1 %vm20680_vm0, %v20679_v6  ;;  %12747 = vmatprep.mubr.bf16.mxu0 %v20678_v2 }
0x21d9   :  { %19534 = vmatpush3.bf16.msra.mxu1 %v20371_v42 }
0x21da   :  { %19535 = vmatprep.subr.bf16.mxu1 %v20679_v6 }
0x21dd   :  { %19536 = vmatpush3.bf16.msra.mxu1 %v20372_v23 }
0x2297   :  { %v12201_v34 = vpop.f32.mrf.mxu1  ;;  %v12244_v15 = vpop.f32.mrf.mxu0 }
0x2298   :  { %v12202_v4 = vadd.f32 %v12201_v34, %v12120_v27  ;;  %v12245_v7 = vadd.f32 %v12244_v15, %v12128_v37  ;;  %v17725_v15 = vld [vmem:[%s25027_s4 + $0x5] ss:$0 sm:$0xff] }
0x2299   :  { %v12203_v59 = vpop.f32.mrf.mxu1  ;;  %v19531_v1 = vpop.f32.mrf.mxu0 }
0x229a   :  { %v12204_v25 = vadd.f32 %v12203_v59, %v12124_v52 }
0x229b   :  { %v12205_v48 = vpop.f32.mrf.mxu1  ;;  %v12247_v31 = vpop.f32.mrf.mxu0 }
0x229c   :  { %v12206_v56 = vadd.f32 %v12205_v48, %v12120_v27  ;;  %v12263_v12 = vmul.f32 %v12204_v25, %v12202_v4  ;;  %v12248_v27 = vadd.f32 %v12247_v31, %v12128_v37 }
0x229d   :  { %v12207_v38 = vpop.f32.mrf.mxu1  ;;  %v19532_v3 = vpop.f32.mrf.mxu0 }
0x229e   :  { %v12208_v8 = vadd.f32 %v12207_v38, %v12124_v52  ;;  %v12264_v18 = vsel %vm112_vm1, %v12263_v12, 0.0  ;;  %v12288_v41 = vmul.f32 %v12206_v56, %v12204_v25 }
0x229f   :  { %12265 = vadd.xlane.f32.xlu0 %v12264_v18 }
0x22a0   :  { %v12268_v45 = vmul.f32 %v12208_v8, %v12202_v4  ;;  %v12289_v51 = vsel %vm112_vm1, %v12288_v41, 0.0  ;;  %v12293_v50 = vmul.f32 %v12208_v8, %v12206_v56 }
0x22a2   :  { %v12269_v63 = vsel %vm112_vm1, %v12268_v45, 0.0  ;;  %v12294_v5 = vsel %vm112_vm1, %v12293_v50, 0.0 }
0x22a3   :  { %12270 = vadd.xlane.f32.xlu1 %v12269_v63  ;;  %12290 = vadd.xlane.f32.xlu0 %v12289_v51 }
0x22a7   :  { %12295 = vadd.xlane.f32.xlu1 %v12294_v5 }
0x2328   :  { %v12266_v47 = vpop.xlane.xlu0 %12265 }
0x2329   :  { %v12267_v24 = vmul.f32 0.17677669, %v12266_v47 }
0x232c   :  { %v12271_v17 = vpop.xlane.xlu1 %12270  ;;  %v12291_v32 = vpop.xlane.xlu0 %12290 }
0x232d   :  { %v12272_v33 = vmul.f32 0.17677669, %v12271_v17  ;;  %v12292_v0 = vmul.f32 0.17677669, %v12291_v32 }
0x232f   :  { %v12273_v19 = vmax.f32 %v12267_v24, %v12272_v33 }
0x2330   :  { %v12296_v28 = vpop.xlane.xlu1 %12295 }
0x2331   :  { %v12274_v40 = vsub.f32 %v12267_v24, %v12273_v19  ;;  %v12277_v10 = vsub.f32 %v12272_v33, %v12273_v19  ;;  %v12297_v53 = vmul.f32 0.17677669, %v12296_v28 }
0x2333   :  { %v12275_v61 = vmul.f32 1.442695, %v12274_v40  ;;  %v12278_v26 = vmul.f32 1.442695, %v12277_v10  ;;  %v12298_v55 = vmax.f32 %v12292_v0, %v12297_v53 }
0x2335   :  { %20633 = vpow2.f32 %v12275_v61  ;;  %v12299_v57 = vsub.f32 %v12292_v0, %v12298_v55  ;;  %v12302_v39 = vsub.f32 %v12297_v53, %v12298_v55  ;;  %v17757_v53 = vld [vmem:[%s25030_s7 + $0x5c0] sm:$0xff]  ;;  %v17750_v61 = vld [vmem:[%s25030_s7 + $0x588] sm:$0xff] }
0x2336   :  { %20635 = vpow2.f32 %v12278_v26  ;;  %v17758_v55 = vld [vmem:[%s25030_s7 + $0x5c8] sm:$0xff] }
0x2337   :  { %v12300_v60 = vmul.f32 1.442695, %v12299_v57  ;;  %v12303_v35 = vmul.f32 1.442695, %v12302_v39  ;;  %v17785_v39 = vcombine.low %v17750_v61, %v17758_v55 }
0x2339   :  { %20637 = vpow2.f32 %v12300_v60  ;;  %v17786_v60 = vcombine.high %v17750_v61, %v17758_v55  ;;  %v17745_v61 = vld [vmem:[%s25030_s7 + $0x560] sm:$0xff]  ;;  %v17746_v55 = vld [vmem:[%s25030_s7 + $0x568] sm:$0xff] }
0x233a   :  { %20639 = vpow2.f32 %v12303_v35  ;;  %v17733_v35 = vld [vmem:[%s25030_s7 + $0x500] sm:$0xff] }
0x233b   :  { %12770 = vmatprep.subr.bf16.mxu1 %v17786_v60 }
0x2342   :  { %v20634_v11 = vpop.eup %20633 }
0x2343   :  { %v20636_v46 = vpop.eup %20635 }
0x2344   :  { %v12280_v36 = vadd.f32 %v20636_v46, %v20634_v11 }
0x2346   :  { %v20638_v20 = vpop.eup %20637  ;;  %20641 = vrcp.f32 %v12280_v36 }
0x2347   :  { %v20640_v30 = vpop.eup %20639 }
0x2348   :  { %v12305_v16 = vadd.f32 %v20640_v30, %v20638_v20 }
0x234a   :  { %20643 = vrcp.f32 %v12305_v16 }
0x2353   :  { %v20642_v43 = vpop.eup %20641 }
0x2354   :  { %v12282_v52 = vmul.f32 %v20642_v43, %v20634_v11  ;;  %v12284_v34 = vmul.f32 %v20642_v43, %v20636_v46  ;;  %v17741_v11 = vld [vmem:[%s25030_s7 + $0x540] sm:$0xff]  ;;  %v17734_v46 = vld [vmem:[%s25030_s7 + $0x508] sm:$0xff]  ;;  %v17751_v43 = vld [vmem:[%s25030_s7 + $0x590] sm:$0xff] }
0x2355   :  { %v17768_v36 = vcombine.high %v17733_v35, %v17741_v11 }
0x2356   :  { %v12283_v59 = vmul.f32 %v12282_v52, %v12245_v7  ;;  %v12285_v1 = vmul.f32 %v12284_v34, %v12248_v27  ;;  %v17760_v34 = vld [vmem:[%s25030_s7 + $0x5d8] sm:$0xff] }
0x2357   :  { %v20644_v4 = vpop.eup %20643 }
0x2358   :  { %v12286_v25 = vadd.f32 %v12285_v1, %v12283_v59  ;;  %v12307_v48 = vmul.f32 %v20644_v4, %v20638_v20  ;;  %v12309_v56 = vmul.f32 %v20644_v4, %v20640_v30  ;;  %v17742_v20 = vld [vmem:[%s25030_s7 + $0x548] sm:$0xff]  ;;  %v17767_v30 = vcombine.low %v17733_v35, %v17741_v11  ;;  %v17755_v11 = vld [vmem:[%s25030_s7 + $0x5b0] sm:$0xff] }
0x2359   :  { %v17769_v16 = vcombine.low %v17734_v46, %v17742_v20  ;;  %v17770_v37 = vcombine.high %v17734_v46, %v17742_v20  ;;  %v17763_v46 = vld [vmem:[%s25030_s7 + $0x5f0] sm:$0xff]  ;;  %v17764_v20 = vld [vmem:[%s25030_s7 + $0x5f8] sm:$0xff] }
0x235a   :  { %12287 = vst.msk [vmem:[#allocation2] sm:$0xff] %vm112_vm1, %v12286_v25  ;;  %v12308_v12 = vmul.f32 %v12307_v48, %v12245_v7  ;;  %v12310_v38 = vmul.f32 %v12309_v56, %v12248_v27  ;;  %v17759_v7 = vld [vmem:[%s25030_s7 + $0x5d0] sm:$0xff]  ;;  %v17752_v27 = vld [vmem:[%s25030_s7 + $0x598] sm:$0xff] }
0x235b   :  { %v17788_v52 = vcombine.high %v17751_v43, %v17759_v7  ;;  %v17787_v59 = vcombine.low %v17751_v43, %v17759_v7  ;;  %v17789_v1 = vcombine.low %v17752_v27, %v17760_v34  ;;  %v17790_v4 = vcombine.high %v17752_v27, %v17760_v34  ;;  %v17739_v7 = vld [vmem:[%s25030_s7 + $0x530] sm:$0xff]  ;;  %v17748_v34 = vld [vmem:[%s25030_s7 + $0x578] sm:$0xff] }
0x235c   :  { %v12311_v3 = vadd.f32 %v12310_v38, %v12308_v12  ;;  %v17747_v27 = vld [vmem:[%s25030_s7 + $0x570] sm:$0xff] }
0x235e   :  { %12312 = vst.msk [vmem:[#allocation2 + $0x8] sm:$0xff] %vm112_vm1, %v12311_v3 }
0x2361   :  { %v12313_v8 = vld [vmem:[#allocation2] sm:$0xff] }
0x2365   :  { %v12314_v29 = vld [vmem:[#allocation2 + $0x8] sm:$0xff] }
0x2366   :  { %v12320_v18 = vpack.c.bf16 %v12314_v29, %v12313_v8 }
0x2368   :  { %19538 = vmatmul.mubr.msk.bf16.vlgmr.msra.gmra.mxu1 %vm112_vm1, %v12320_v18  ;;  %v17731_v18 = vld [vmem:[%s25028_s5 + $0x5] ss:$0 sm:$0xff] }
0x2369   :  { %12790 = vmatprep.mubr.bf16.mxu1 %v20678_v2  ;;  %12771 = vmatpush1.bf16.msra.mxu1 %v17785_v39 }
0x236a   :  { %12772 = vmatprep.subr.bf16.mxu1 %v17770_v37  ;;  %v17796_v37 = vcombine.high %v17755_v11, %v17763_v46 }
0x236d   :  { %12773 = vmatpush1.bf16.msra.mxu1 %v17769_v16 }
0x236e   :  { %12856 = vmatprep.subr.bf16.mxu1 %v17790_v4  ;;  %v17780_v4 = vcombine.high %v17739_v7, %v17747_v27 }
0x2428   :  { %v12378_v31 = vpop.f32.mrf.mxu1 }
0x2429   :  { %v12379_v41 = vadd.f32 %v17725_v15, %v12378_v31 }
0x242a   :  { %v19539_v45 = vpop.f32.mrf.mxu1 }
0x242b   :  { %v12385_v63 = vadd.f32 %v12379_v41, %v24189_v54  ;;  %v17732_v45 = vld [vmem:[%s25029_s6 + $0x5] ss:$0 sm:$0xff] }
0x242c   :  { %v12381_v51 = vpop.f32.mrf.mxu1 }
0x242d   :  { %v12382_v50 = vadd.f32 %v17725_v15, %v12381_v51  ;;  %v12391_v5 = vsel %vm112_vm1, %v12385_v63, 0.0  ;;  %v17735_v51 = vld [vmem:[%s25030_s7 + $0x510] sm:$0xff] }
0x242e   :  { %12392 = vadd.xlane.f32.xlu0 %v12391_v5  ;;  %v19540_v42 = vpop.f32.mrf.mxu1  ;;  %v17736_v5 = vld [vmem:[%s25030_s7 + $0x518] sm:$0xff] }
0x242f   :  { %v12386_v23 = vadd.f32 %v12382_v50, %v24191_v44  ;;  %v17749_v44 = vld [vmem:[%s25030_s7 + $0x580] sm:$0xff]  ;;  %v17743_v50 = vld [vmem:[%s25030_s7 + $0x550] sm:$0xff]  ;;  %v17744_v42 = vld [vmem:[%s25030_s7 + $0x558] sm:$0xff] }
0x2430   :  { %v17784_v26 = vcombine.high %v17749_v44, %v17757_v53  ;;  %v17783_v57 = vcombine.low %v17749_v44, %v17757_v53  ;;  %v17737_v53 = vld [vmem:[%s25030_s7 + $0x520] sm:$0xff] }
0x2431   :  { %v12394_v47 = vsel %vm112_vm1, %v12386_v23, 0.0  ;;  %v17776_v60 = vcombine.high %v17737_v53, %v17745_v61 }
0x2432   :  { %12395 = vadd.xlane.f32.xlu1 %v12394_v47  ;;  %12727 = vmatprep.subr.bf16.mxu0 %v17784_v26  ;;  %v17738_v26 = vld [vmem:[%s25030_s7 + $0x528] sm:$0xff] }
0x2433   :  { %12728 = vmatpush1.bf16.msra.mxu0 %v17783_v57  ;;  %v17778_v35 = vcombine.high %v17738_v26, %v17746_v55  ;;  %v17777_v16 = vcombine.low %v17738_v26, %v17746_v55  ;;  %v20402_v26 = vld [vmem:[%s25032_s9 + $0x14c0] sm:$0xff]  }
0x2434   :  { %12729 = vmatprep.subr.bf16.mxu0 %v17768_v36  ;;  %v17756_v36 = vld [vmem:[%s25030_s7 + $0x5b8] sm:$0xff]  ;;  %v20403_v55 = vld [vmem:[%s25032_s9 + $0x1400] sm:$0xff]  }
0x2435   :  { %v17798_v43 = vcombine.high %v17756_v36, %v17764_v20 }
0x2437   :  { %12730 = vmatpush1.bf16.msra.mxu0 %v17767_v30  ;;  %v17775_v30 = vcombine.low %v17737_v53, %v17745_v61  ;;  %v20400_v53 = vld [vmem:[%s25032_s9 + $0x1488] sm:$0xff]   ;;  %v20401_v61 = vld [vmem:[%s25032_s9 + $0x1440] sm:$0xff]  }
0x2438   :  { %12813 = vmatprep.subr.bf16.mxu0 %v17788_v52  ;;  %v17740_v52 = vld [vmem:[%s25030_s7 + $0x538] sm:$0xff] }
0x24b7   :  { %v12393_v17 = vpop.xlane.xlu0 %12392 }
0x24b8   :  { %v12397_v24 = vmul.f32 0.03125, %v12393_v17 }
0x24ba   :  { %v12399_v33 = vsub.f32 %v12385_v63, %v12397_v24  ;;  %v17772_v24 = vcombine.high %v17735_v51, %v17743_v50 }
0x24bb   :  { %v12396_v32 = vpop.xlane.xlu1 %12395 }
0x24bc   :  { %v12398_v19 = vmul.f32 0.03125, %v12396_v32  ;;  %v12401_v28 = vmul.f32 %v12399_v33, %v12399_v33  ;;  %v17753_v32 = vld [vmem:[%s25030_s7 + $0x5a0] sm:$0xff] }
0x24be   :  { %v12400_v40 = vsub.f32 %v12386_v23, %v12398_v19  ;;  %v12403_v54 = vsel %vm112_vm1, %v12401_v28, 0.0  ;;  %v17761_v19 = vld [vmem:[%s25030_s7 + $0x5e0] sm:$0xff]  ;;  %v17754_v28 = vld [vmem:[%s25030_s7 + $0x5a8] sm:$0xff] }
0x24bf   :  { %12404 = vadd.xlane.f32.xlu0 %v12403_v54  ;;  %v17771_v54 = vcombine.low %v17735_v51, %v17743_v50  ;;  %v17791_v57 = vcombine.low %v17753_v32, %v17761_v19  ;;  %v20385_v51 = vld [vmem:[%s25032_s9 + $0x1460] sm:$0xff]  }
0x24c0   :  { %v12402_v10 = vmul.f32 %v12400_v40, %v12400_v40  ;;  %v20386_v50 = vld [vmem:[%s25032_s9 + $0x14e0] sm:$0xff]  }
0x24c2   :  { %v12406_v0 = vsel %vm112_vm1, %v12402_v10, 0.0  ;;  %v17773_v10 = vcombine.low %v17736_v5, %v17744_v42 }
0x24c3   :  { %12407 = vadd.xlane.f32.xlu1 %v12406_v0  ;;  %v17792_v0 = vcombine.high %v17753_v32, %v17761_v19  ;;  %v20392_v32 = vld [vmem:[%s25032_s9 + $0x1498] sm:$0xff]   ;;  %v20393_v19 = vld [vmem:[%s25032_s9 + $0x1450] sm:$0xff]  }
0x2548   :  { %v12405_v25 = vpop.xlane.xlu0 %12404 }
0x2549   :  { %v12409_v48 = vmul.f32 0.03125, %v12405_v25  ;;  %v17782_v25 = vcombine.high %v17740_v52, %v17748_v34 }
0x254b   :  { %v12411_v56 = vadd.f32 1e-05, %v12409_v48  ;;  %v17779_v48 = vcombine.low %v17739_v7, %v17747_v27 }
0x254c   :  { %v12408_v12 = vpop.xlane.xlu1 %12407 }
0x254d   :  { %20645 = vrsqrt.f32 %v12411_v56  ;;  %v12410_v38 = vmul.f32 0.03125, %v12408_v12  ;;  %v17781_v56 = vcombine.low %v17740_v52, %v17748_v34  ;;  %v20373_v12 = vld [vmem:[%s25032_s9 + $0x1478] sm:$0xff]  }
0x254f   :  { %v12412_v3 = vadd.f32 1e-05, %v12410_v38  ;;  %v20374_v38 = vld [vmem:[%s25032_s9 + $0x14f8] sm:$0xff]  }
0x2551   :  { %20647 = vrsqrt.f32 %v12412_v3  ;;  %v20375_v3 = vld [vmem:[%s25032_s9 + $0x1438] sm:$0xff]  }
0x255a   :  { %v20646_v8 = vpop.eup %20645 }
0x255b   :  { %v12415_v29 = vmul.f32 %v20646_v8, %v12399_v33  ;;  %v17774_v33 = vcombine.high %v17736_v5, %v17744_v42  ;;  %v20376_v8 = vld [vmem:[%s25032_s9 + $0x14b8] sm:$0xff]   ;;  %v20387_v5 = vld [vmem:[%s25032_s9 + $0x1420] sm:$0xff]  }
0x255c   :  { %v20388_v42 = vld [vmem:[%s25032_s9 + $0x14a0] sm:$0xff]  }
0x255d   :  { %v12423_v31 = vmul.f32 %v17731_v18, %v12415_v29  ;;  %v20377_v29 = vld [vmem:[%s25032_s9 + $0x1470] sm:$0xff]  }
0x255e   :  { %v20648_v15 = vpop.eup %20647 }
0x255f   :  { %v12416_v41 = vmul.f32 %v20648_v15, %v12400_v40  ;;  %v24284_v23 = vadd.f32 %v17732_v45, %v12423_v31  ;;  %v17762_v40 = vld [vmem:[%s25030_s7 + $0x5e8] sm:$0xff]  ;;  %v20380_v15 = vld [vmem:[%s25032_s9 + $0x14b0] sm:$0xff]  }
0x2560   :  { %v17794_v44 = vcombine.high %v17754_v28, %v17762_v40  ;;  %v17793_v39 = vcombine.low %v17754_v28, %v17762_v40  ;;  %v20381_v31 = vld [vmem:[%s25032_s9 + $0x1468] sm:$0xff]   ;;  %v20394_v28 = vld [vmem:[%s25032_s9 + $0x14d0] sm:$0xff]  }
0x2561   :  { %v12424_v63 = vmul.f32 %v17731_v18, %v12416_v41  ;;  %v20379_v18 = vld [vmem:[%s25032_s9 + $0x1430] sm:$0xff]   ;;  %v20382_v41 = vld [vmem:[%s25032_s9 + $0x14e8] sm:$0xff]  }
0x2562   :  { %v20395_v40 = vld [vmem:[%s25032_s9 + $0x1410] sm:$0xff]  }
0x2563   :  { %v24286_v47 = vadd.f32 %v17732_v45, %v12424_v63  ;;  %v20383_v45 = vld [vmem:[%s25032_s9 + $0x1428] sm:$0xff]  }
0x2564   :  { %v20384_v63 = vld [vmem:[%s25032_s9 + $0x14a8] sm:$0xff]  }
0x2565   :  { %v24290_v17 = vpack.c.bf16 %v24286_v47, %v24284_v23 }
0x2567   :  { %17799 = vmatmul.mubr.msk.bf16.vlgmr.msra.gmra.mxu0 %vm112_vm1, %v24290_v17  ;;  %17800 = vmatmul.mubr.msk.bf16.vlgmr.msra.gmra.mxu1 %vm112_vm1, %v24290_v17 }
0x2568   :  { %12814 = vmatpush1.bf16.msra.mxu0 %v17787_v59  ;;  %12857 = vmatpush1.bf16.msra.mxu1 %v17789_v1  ;;  %v17795_v59 = vcombine.low %v17755_v11, %v17763_v46  ;;  %v17797_v1 = vcombine.low %v17756_v36, %v17764_v20 }
0x2569   :  { %12815 = vmatprep.subr.bf16.mxu0 %v17772_v24  ;;  %12858 = vmatprep.subr.bf16.mxu1 %v17774_v33  ;;  %v20390_v24 = vld [vmem:[%s25032_s9 + $0x14d8] sm:$0xff]  }
0x256a   :  { %12833 = vmatprep.mubr.bf16.mxu0 %v20678_v2  ;;  %12876 = vmatprep.mubr.bf16.mxu1 %v20678_v2  ;;  %v20391_v33 = vld [vmem:[%s25032_s9 + $0x1418] sm:$0xff]  }
0x256c   :  { %12816 = vmatpush1.bf16.msra.mxu0 %v17771_v54  ;;  %12859 = vmatpush1.bf16.msra.mxu1 %v17773_v10  ;;  %v20396_v54 = vld [vmem:[%s25032_s9 + $0x1490] sm:$0xff]   ;;  %v20397_v10 = vld [vmem:[%s25032_s9 + $0x1448] sm:$0xff]  }
0x256d   :  { %12899 = vmatprep.subr.bf16.mxu0 %v17792_v0  ;;  %12942 = vmatprep.subr.bf16.mxu1 %v17794_v44  ;;  %v20398_v0 = vld [vmem:[%s25032_s9 + $0x14c8] sm:$0xff]  }
0x256e   :  { %v20399_v44 = vld [vmem:[%s25032_s9 + $0x1408] sm:$0xff]  }
0x256f   :  { %17801 = vmatmul.mubr.msk.bf16.vlgmr.msra.gmra.mxu0 %vm112_vm1, %v24290_v17  ;;  %17802 = vmatmul.mubr.msk.bf16.vlgmr.msra.gmra.mxu1 %vm112_vm1, %v24290_v17 }
0x2570   :  { %12900 = vmatpush1.bf16.msra.mxu0 %v17791_v57  ;;  %12943 = vmatpush1.bf16.msra.mxu1 %v17793_v39  ;;  %v20404_v57 = vld [vmem:[%s25032_s9 + $0x1480] sm:$0xff]   ;;  %v20405_v39 = vld [vmem:[%s25032_s9 + $0x1578] sm:$0xff]  }
0x2571   :  { %12901 = vmatprep.subr.bf16.mxu0 %v17776_v60  ;;  %12944 = vmatprep.subr.bf16.mxu1 %v17778_v35  ;;  %v20406_v60 = vld [vmem:[%s25032_s9 + $0x15f8] sm:$0xff]   ;;  %v24467_v35 = vld [vmem:[%s25031_s8 + $0x50] sm:$0xff] }
0x2572   :  { %12919 = vmatprep.mubr.bf16.mxu0 %v20678_v2  ;;  %12962 = vmatprep.mubr.bf16.mxu1 %v20678_v2  ;;  %v12479_v36 = vrot.slane %v24467_v35, %v20803_v14  ;;  %v12487_v20 = vrot.slane %v24467_v35, %v21080_v49 }
0x2574   :  { %12902 = vmatpush1.bf16.msra.mxu0 %v17775_v30  ;;  %12945 = vmatpush1.bf16.msra.mxu1 %v17777_v16  ;;  %v12475_v30 = vrot.slane %v24467_v35, %v20800_v13  ;;  %v12483_v16 = vrot.slane %v24467_v35, %v20822_v58 }
0x2575   :  { %12985 = vmatprep.subr.bf16.mxu0 %v17796_v37  ;;  %13028 = vmatprep.subr.bf16.mxu1 %v17798_v43 }
0x2577   :  { %17803 = vmatmul.mubr.msk.bf16.vlgmr.msra.gmra.mxu0 %vm112_vm1, %v24290_v17  ;;  %17804 = vmatmul.mubr.msk.bf16.vlgmr.msra.gmra.mxu1 %vm112_vm1, %v24290_v17 }
0x2578   :  { %12986 = vmatpush1.bf16.msra.mxu0 %v17795_v59  ;;  %13029 = vmatpush1.bf16.msra.mxu1 %v17797_v1 }
0x2579   :  { %12987 = vmatprep.subr.bf16.mxu0 %v17780_v4  ;;  %13030 = vmatprep.subr.bf16.mxu1 %v17782_v25 }
0x257a   :  { %13005 = vmatprep.mubr.bf16.mxu0 %v20678_v2  ;;  %13048 = vmatprep.mubr.bf16.mxu1 %v20678_v2  ;;  %v20378_v2 = vld [vmem:[%s25032_s9 + $0x14f0] sm:$0xff]  }
0x257c   :  { %12988 = vmatpush1.bf16.msra.mxu0 %v17779_v48  ;;  %13031 = vmatpush1.bf16.msra.mxu1 %v17781_v56 }
0x257d   :  { %19221 = vmatprep.subr.bf16.mxu0 %v20373_v12  ;;  %19243 = vmatprep.subr.bf16.mxu1 %v20374_v38 }
0x257f   :  { %17805 = vmatmul.mubr.msk.bf16.vlgmr.msra.gmra.mxu0 %vm112_vm1, %v24290_v17  ;;  %17806 = vmatmul.mubr.msk.bf16.vlgmr.msra.gmra.mxu1 %vm112_vm1, %v24290_v17  ;;  %v20389_v17 = vld [vmem:[%s25032_s9 + $0x1458] sm:$0xff]  }
0x2580   :  { %19222 = vmatpush3.bf16.msra.mxu0 %v20375_v3  ;;  %19244 = vmatpush3.bf16.msra.mxu1 %v20376_v8 }
0x2581   :  { %19223 = vmatprep.subr.bf16.mxu0 %v20377_v29  ;;  %19245 = vmatprep.subr.bf16.mxu1 %v20378_v2 }
0x2584   :  { %19224 = vmatpush3.bf16.msra.mxu0 %v20379_v18  ;;  %19246 = vmatpush3.bf16.msra.mxu1 %v20380_v15  ;;  %v12495_v18 = vrot.slane %v24467_v35, %v21096_v62  ;;  %v12503_v15 = vrot.slane %v24467_v35, %v21099_v9 }
0x2585   :  { %19225 = vmatprep.subr.bf16.mxu0 %v20381_v31  ;;  %19247 = vmatprep.subr.bf16.mxu1 %v20382_v41 }
0x2588   :  { %19226 = vmatpush3.bf16.msra.mxu0 %v20383_v45  ;;  %19248 = vmatpush3.bf16.msra.mxu1 %v20384_v63 }
0x2589   :  { %19227 = vmatprep.subr.bf16.mxu0 %v20385_v51  ;;  %19249 = vmatprep.subr.bf16.mxu1 %v20386_v50 }
0x258c   :  { %19228 = vmatpush3.bf16.msra.mxu0 %v20387_v5  ;;  %19250 = vmatpush3.bf16.msra.mxu1 %v20388_v42 }
0x258d   :  { %19229 = vmatprep.subr.bf16.mxu0 %v20389_v17  ;;  %19251 = vmatprep.subr.bf16.mxu1 %v20390_v24 }
0x2590   :  { %19230 = vmatpush3.bf16.msra.mxu0 %v20391_v33  ;;  %19252 = vmatpush3.bf16.msra.mxu1 %v20392_v32  ;;  %v20407_v33 = vld [vmem:[%s25032_s9 + $0x1538] sm:$0xff]  }
0x2591   :  { %19231 = vmatprep.subr.bf16.mxu0 %v20393_v19  ;;  %19253 = vmatprep.subr.bf16.mxu1 %v20394_v28  ;;  %v20408_v32 = vld [vmem:[%s25032_s9 + $0x15b8] sm:$0xff]  }
0x2594   :  { %19232 = vmatpush3.bf16.msra.mxu0 %v20395_v40  ;;  %19254 = vmatpush3.bf16.msra.mxu1 %v20396_v54 }
0x2595   :  { %19233 = vmatprep.subr.bf16.mxu0 %v20397_v10  ;;  %19255 = vmatprep.subr.bf16.mxu1 %v20398_v0  ;;  %v20409_v10 = vld [vmem:[%s25032_s9 + $0x1570] sm:$0xff]  }
0x2596   :  { %v20410_v0 = vld [vmem:[%s25032_s9 + $0x15f0] sm:$0xff]  }
0x2598   :  { %19234 = vmatpush3.bf16.msra.mxu0 %v20399_v44  ;;  %19256 = vmatpush3.bf16.msra.mxu1 %v20400_v53 }
0x2599   :  { %19235 = vmatprep.subr.bf16.mxu0 %v20401_v61  ;;  %19257 = vmatprep.subr.bf16.mxu1 %v20402_v26 }
0x259c   :  { %19236 = vmatpush3.bf16.msra.mxu0 %v20403_v55  ;;  %19258 = vmatpush3.bf16.msra.mxu1 %v20404_v57 }
0x259d   :  { %19265 = vmatprep.subr.bf16.mxu0 %v20405_v39  ;;  %19287 = vmatprep.subr.bf16.mxu1 %v20406_v60  ;;  %v20411_v39 = vld [vmem:[%s25032_s9 + $0x1530] sm:$0xff]  }
0x259e   :  { %v20412_v60 = vld [vmem:[%s25032_s9 + $0x15b0] sm:$0xff]  }
0x2627   :  { %v12749_v11 = vpop.f32.mrf.mxu0  ;;  %v12792_v46 = vpop.f32.mrf.mxu1 }
0x2628   :  { %v12750_v4 = vadd.f32 %v12749_v11, %v12475_v30  ;;  %v12793_v25 = vadd.f32 %v12792_v46, %v12483_v16  ;;  %v20413_v11 = vld [vmem:[%s25032_s9 + $0x1568] sm:$0xff]  }
0x2629   :  { %v12751_v37 = vpop.f32.mrf.mxu0  ;;  %v12794_v43 = vpop.f32.mrf.mxu1 }
0x262a   :  { %v12752_v52 = vadd.f32 %v12751_v37, %v12479_v36  ;;  %v12795_v34 = vadd.f32 %v12794_v43, %v12487_v20  ;;  %v13059_v51 = vmax.f32 %v12750_v4, 0.0  ;;  %v13061_v50 = vmax.f32 %v12793_v25, 0.0  ;;  %v20420_v25 = vld [vmem:[%s25032_s9 + $0x15a0] sm:$0xff]  }
0x262b   :  { %v12753_v7 = vpop.f32.mrf.mxu0  ;;  %v12796_v27 = vpop.f32.mrf.mxu1 }
0x262c   :  { %v12754_v59 = vadd.f32 %v12753_v7, %v12475_v30  ;;  %v12797_v1 = vadd.f32 %v12796_v27, %v12483_v16  ;;  %v13060_v31 = vmax.f32 %v12752_v52, 0.0  ;;  %v13062_v41 = vmax.f32 %v12795_v34, 0.0  ;;  %v20414_v16 = vld [vmem:[%s25032_s9 + $0x15e8] sm:$0xff]   ;;  %v20417_v52 = vld [vmem:[%s25032_s9 + $0x1560] sm:$0xff]  }
0x262d   :  { %v12755_v48 = vpop.f32.mrf.mxu0  ;;  %v12798_v56 = vpop.f32.mrf.mxu1  ;;  %v20415_v7 = vld [vmem:[%s25032_s9 + $0x1528] sm:$0xff]   ;;  %v20418_v34 = vld [vmem:[%s25032_s9 + $0x15e0] sm:$0xff]  }
0x262e   :  { %v12756_v12 = vadd.f32 %v12755_v48, %v12479_v36  ;;  %v12799_v38 = vadd.f32 %v12798_v56, %v12487_v20  ;;  %v13075_v3 = vmax.f32 %v12754_v59, 0.0  ;;  %v13077_v8 = vmax.f32 %v12797_v1, 0.0  ;;  %v20416_v27 = vld [vmem:[%s25032_s9 + $0x15a8] sm:$0xff]   ;;  %v20419_v1 = vld [vmem:[%s25032_s9 + $0x1520] sm:$0xff]   ;;  %v20421_v48 = vld [vmem:[%s25032_s9 + $0x1558] sm:$0xff]  }
0x262f   :  { %v24477_v29 = vpop.f32.mrf.mxu0  ;;  %v24479_v2 = vpop.f32.mrf.mxu1  ;;  %v20422_v56 = vld [vmem:[%s25032_s9 + $0x15d8] sm:$0xff]  }
0x2630   :  { %v13076_v45 = vmax.f32 %v12756_v12, 0.0  ;;  %v13078_v63 = vmax.f32 %v12799_v38, 0.0  ;;  %v13348_v19 = vpack.c.bf16 %v13075_v3, %v13059_v51  ;;  %v13350_v28 = vpack.c.bf16 %v13077_v8, %v13061_v50  ;;  %v20423_v38 = vld [vmem:[%s25032_s9 + $0x1518] sm:$0xff]   ;;  %v20429_v51 = vld [vmem:[%s25032_s9 + $0x1548] sm:$0xff]  }
0x2631   :  { %v12837_v5 = vpop.f32.mrf.mxu0  ;;  %v12880_v42 = vpop.f32.mrf.mxu1  ;;  %v20424_v8 = vld [vmem:[%s25032_s9 + $0x1598] sm:$0xff]   ;;  %v20430_v50 = vld [vmem:[%s25032_s9 + $0x15c8] sm:$0xff]  }
0x2632   :  { %v13349_v17 = vpack.c.bf16 %v13076_v45, %v13060_v31  ;;  %v13351_v24 = vpack.c.bf16 %v13078_v63, %v13062_v41  ;;  %v12838_v44 = vadd.f32 %v12837_v5, %v12495_v18  ;;  %v12881_v53 = vadd.f32 %v12880_v42, %v12503_v15  ;;  %v20427_v41 = vld [vmem:[%s25032_s9 + $0x1510] sm:$0xff]  }
0x2633   :  { %v24491_v40 = vpop.f32.mrf.mxu0  ;;  %v24493_v54 = vpop.f32.mrf.mxu1  ;;  %v20428_v63 = vld [vmem:[%s25032_s9 + $0x1590] sm:$0xff]   ;;  %v12491_v5 = vrot.slane %v24467_v35, %v21178_v21  ;;  %v12499_v42 = vrot.slane %v24467_v35, %v21181_v22  ;;  %v20432_v35 = vld [vmem:[%s25032_s9 + $0x1588] sm:$0xff]  }
0x2634   :  { %14172 = vmatprep.mubr.bf16.mxu0 %v13349_v17  ;;  %14213 = vmatprep.mubr.bf16.mxu1 %v13351_v24  ;;  %v13064_v46 = vmax.f32 %v12838_v44, 0.0  ;;  %v13066_v36 = vmax.f32 %v12881_v53, 0.0  ;;  %v24576_v17 = vld [vmem:[%s25031_s8 + $0x58] sm:$0xff] }
0x2635   :  { %v12841_v61 = vpop.f32.mrf.mxu0  ;;  %v12884_v26 = vpop.f32.mrf.mxu1  ;;  %14173 = vmatmul.mubr.bf16.vlgmr.msra.gmra.mxu0 %v13348_v19  ;;  %14214 = vmatmul.mubr.bf16.vlgmr.msra.gmra.mxu1 %v13350_v28  ;;  %v12511_v19 = vrot.slane %v24576_v17, %v20803_v14  ;;  %v12519_v44 = vrot.slane %v24576_v17, %v21080_v49  ;;  %v20434_v14 = vld [vmem:[%s25032_s9 + $0x15c0] sm:$0xff]  }
0x2636   :  { %v12842_v55 = vadd.f32 %v12841_v61, %v12495_v18  ;;  %v12885_v57 = vadd.f32 %v12884_v26, %v12503_v15  ;;  %19266 = vmatpush3.bf16.msra.mxu0 %v20407_v33  ;;  %19288 = vmatpush3.bf16.msra.mxu1 %v20408_v32  ;;  %v20425_v18 = vld [vmem:[%s25032_s9 + $0x1550] sm:$0xff]   ;;  %v20431_v33 = vld [vmem:[%s25032_s9 + $0x1508] sm:$0xff]   ;;  %v12840_v32 = vadd.f32 %v24491_v40, %v12491_v5  ;;  %v20436_v49 = vld [vmem:[%s25032_s9 + $0x1580] sm:$0xff]  }
0x2637   :  { %19267 = vmatprep.subr.bf16.mxu0 %v20409_v10  ;;  %19289 = vmatprep.subr.bf16.mxu1 %v20410_v0  ;;  %v24525_v59 = vpop.f32.mrf.mxu0  ;;  %v24530_v4 = vpop.f32.mrf.mxu1  ;;  %v20426_v15 = vld [vmem:[%s25032_s9 + $0x15d0] sm:$0xff]   ;;  %v20433_v10 = vld [vmem:[%s25032_s9 + $0x1540] sm:$0xff]   ;;  %v12883_v0 = vadd.f32 %v24493_v54, %v12499_v42  ;;  %v12836_v40 = vadd.f32 %v24477_v29, %v12491_v5  ;;  %v12879_v61 = vadd.f32 %v24479_v2, %v12499_v42  ;;  %v20437_v29 = vld [vmem:[%s25032_s9 + $0x1678] sm:$0xff]  }
0x2638   :  { %v13080_v20 = vmax.f32 %v12842_v55, 0.0  ;;  %v13082_v30 = vmax.f32 %v12885_v57, 0.0  ;;  %v20435_v55 = vld [vmem:[%s25032_s9 + $0x1500] sm:$0xff]   ;;  %v13079_v54 = vmax.f32 %v12840_v32, 0.0  ;;  %v20453_v5 = vld [vmem:[%s25032_s9 + $0x1658] sm:$0xff]  }
0x2639   :  { %v12923_v12 = vpop.f32.mrf.mxu0  ;;  %v12966_v3 = vpop.f32.mrf.mxu1  ;;  %v20454_v42 = vld [vmem:[%s25032_s9 + $0x16d8] sm:$0xff]  }
0x263a   :  { %v13353_v37 = vpack.c.bf16 %v13080_v20, %v13064_v46  ;;  %v13355_v43 = vpack.c.bf16 %v13082_v30, %v13066_v36  ;;  %19268 = vmatpush3.bf16.msra.mxu0 %v20411_v39  ;;  %19290 = vmatpush3.bf16.msra.mxu1 %v20412_v60  ;;  %v12924_v57 = vadd.f32 %v12923_v12, %v12511_v19  ;;  %v13081_v39 = vmax.f32 %v12883_v0, 0.0  ;;  %v20438_v60 = vld [vmem:[%s25032_s9 + $0x16f8] sm:$0xff]   ;;  %v20445_v12 = vld [vmem:[%s25032_s9 + $0x1668] sm:$0xff]   ;;  %v20459_v0 = vld [vmem:[%s25032_s9 + $0x1610] sm:$0xff]  }
0x263b   :  { %19269 = vmatprep.subr.bf16.mxu0 %v20413_v11  ;;  %19291 = vmatprep.subr.bf16.mxu1 %v20414_v16  ;;  %v24553_v31 = vpop.f32.mrf.mxu0  ;;  %v24558_v45 = vpop.f32.mrf.mxu1  ;;  %v12967_v2 = vadd.f32 %v12966_v3, %v12519_v44  ;;  %v13063_v11 = vmax.f32 %v12836_v40, 0.0  ;;  %v13065_v36 = vmax.f32 %v12879_v61, 0.0  ;;  %v20439_v30 = vld [vmem:[%s25032_s9 + $0x1638] sm:$0xff]   ;;  %v20447_v3 = vld [vmem:[%s25032_s9 + $0x1628] sm:$0xff]   ;;  %v12507_v61 = vrot.slane %v24576_v17, %v20800_v13 }
0x263c   :  { %14254 = vmatprep.mubr.bf16.mxu0 %v13353_v37  ;;  %14295 = vmatprep.mubr.bf16.mxu1 %v13355_v43  ;;  %v13068_v37 = vmax.f32 %v12924_v57, 0.0  ;;  %v20440_v43 = vld [vmem:[%s25032_s9 + $0x16b8] sm:$0xff]   ;;  %v20461_v40 = vld [vmem:[%s25032_s9 + $0x1648] sm:$0xff]  }
0x263d   :  { %v12927_v24 = vpop.f32.mrf.mxu0  ;;  %v12970_v28 = vpop.f32.mrf.mxu1  ;;  %v13352_v16 = vpack.c.bf16 %v13079_v54, %v13063_v11  ;;  %v20463_v54 = vld [vmem:[%s25032_s9 + $0x1608] sm:$0xff]   ;;  %v12926_v57 = vadd.f32 %v24553_v31, %v12507_v61  ;;  %v12922_v31 = vadd.f32 %v24525_v59, %v12507_v61  ;;  %v20469_v59 = vld [vmem:[%s25032_s9 + $0x1778] sm:$0xff]   ;;  %v20491_v61 = vld [vmem:[%s25032_s9 + $0x1710] sm:$0xff]  }
0x263e   :  { %19270 = vmatpush3.bf16.msra.mxu0 %v20415_v7  ;;  %19292 = vmatpush3.bf16.msra.mxu1 %v20416_v27  ;;  %v12928_v53 = vadd.f32 %v12927_v24, %v12511_v19  ;;  %v12971_v26 = vadd.f32 %v12970_v28, %v12519_v44  ;;  %v13354_v7 = vpack.c.bf16 %v13081_v39, %v13065_v36  ;;  %v13070_v27 = vmax.f32 %v12967_v2, 0.0  ;;  %v20456_v19 = vld [vmem:[%s25032_s9 + $0x1698] sm:$0xff]   ;;  %v20457_v28 = vld [vmem:[%s25032_s9 + $0x1650] sm:$0xff]   ;;  %v20464_v13 = vld [vmem:[%s25032_s9 + $0x1688] sm:$0xff]  }
0x263f   :  { %19271 = vmatprep.subr.bf16.mxu0 %v20417_v52  ;;  %19293 = vmatprep.subr.bf16.mxu1 %v20418_v34  ;;  %v20441_v52 = vld [vmem:[%s25032_s9 + $0x1670] sm:$0xff]   ;;  %v12535_v2 = vrot.slane %v24576_v17, %v21099_v9  ;;  %v20467_v36 = vld [vmem:[%s25032_s9 + $0x1600] sm:$0xff]  }
0x2640   :  { %v13084_v46 = vmax.f32 %v12928_v53, 0.0  ;;  %v13086_v20 = vmax.f32 %v12971_v26, 0.0  ;;  %v20462_v53 = vld [vmem:[%s25032_s9 + $0x16c8] sm:$0xff]   ;;  %v12515_v26 = vrot.slane %v24576_v17, %v20822_v58  ;;  %v20465_v58 = vld [vmem:[%s25032_s9 + $0x1640] sm:$0xff]  }
0x2641   :  { %v20468_v9 = vld [vmem:[%s25032_s9 + $0x1680] sm:$0xff]  }
0x2642   :  { %19272 = vmatpush3.bf16.msra.mxu0 %v20419_v1  ;;  %19294 = vmatpush3.bf16.msra.mxu1 %v20420_v25  ;;  %v13357_v34 = vpack.c.bf16 %v13084_v46, %v13068_v37  ;;  %v20442_v1 = vld [vmem:[%s25032_s9 + $0x16f0] sm:$0xff]   ;;  %v13359_v25 = vpack.c.bf16 %v13086_v20, %v13070_v27  ;;  %v12969_v39 = vadd.f32 %v24558_v45, %v12515_v26  ;;  %v13083_v45 = vmax.f32 %v12926_v57, 0.0 }
0x2643   :  { %19273 = vmatprep.subr.bf16.mxu0 %v20421_v48  ;;  %19295 = vmatprep.subr.bf16.mxu1 %v20422_v56  ;;  %v20443_v48 = vld [vmem:[%s25032_s9 + $0x1630] sm:$0xff]   ;;  %v12965_v11 = vadd.f32 %v24530_v4, %v12515_v26  ;;  %v13067_v37 = vmax.f32 %v12922_v31, 0.0  ;;  %v12523_v57 = vrot.slane %v24576_v17, %v21178_v21  ;;  %v20497_v21 = vld [vmem:[%s25032_s9 + $0x1740] sm:$0xff]  }
0x2644   :  { %v20444_v56 = vld [vmem:[%s25032_s9 + $0x16b0] sm:$0xff]  }
0x2645   :  { %v20492_v26 = vld [vmem:[%s25032_s9 + $0x1790] sm:$0xff]  }
0x2646   :  { %19274 = vmatpush3.bf16.msra.mxu0 %v20423_v38  ;;  %19296 = vmatpush3.bf16.msra.mxu1 %v20424_v8  ;;  %v20446_v38 = vld [vmem:[%s25032_s9 + $0x16e8] sm:$0xff]  }
0x2647   :  { %19275 = vmatprep.subr.bf16.mxu0 %v20425_v18  ;;  %19297 = vmatprep.subr.bf16.mxu1 %v20426_v15  ;;  %v20448_v8 = vld [vmem:[%s25032_s9 + $0x16a8] sm:$0xff]   ;;  %v20449_v18 = vld [vmem:[%s25032_s9 + $0x1660] sm:$0xff]  }
0x2648   :  { %v20450_v15 = vld [vmem:[%s25032_s9 + $0x16e0] sm:$0xff]  }
0x264a   :  { %19276 = vmatpush3.bf16.msra.mxu0 %v20427_v41  ;;  %19298 = vmatpush3.bf16.msra.mxu1 %v20428_v63  ;;  %v24646_v41 = vpop.f32.mrf.mxu0  ;;  %v20451_v63 = vld [vmem:[%s25032_s9 + $0x1620] sm:$0xff]  }
0x264b   :  { %19277 = vmatprep.subr.bf16.mxu0 %v20429_v51  ;;  %19299 = vmatprep.subr.bf16.mxu1 %v20430_v50  ;;  %v24651_v51 = vpop.f32.mrf.mxu1  ;;  %v20452_v50 = vld [vmem:[%s25032_s9 + $0x16a0] sm:$0xff]  }
0x264c   :  { %v13009_v24 = vpop.f32.mrf.mxu0 }
0x264d   :  { %v13052_v32 = vpop.f32.mrf.mxu1 }
0x264e   :  { %19278 = vmatpush3.bf16.msra.mxu0 %v20431_v33  ;;  %19300 = vmatpush3.bf16.msra.mxu1 %v20432_v35  ;;  %v20455_v33 = vld [vmem:[%s25032_s9 + $0x1618] sm:$0xff]   ;;  %v20458_v35 = vld [vmem:[%s25032_s9 + $0x16d0] sm:$0xff]   ;;  %v13053_v4 = vadd.f32 %v13052_v32, %v12535_v2  ;;  %v20483_v32 = vld [vmem:[%s25032_s9 + $0x1720] sm:$0xff]  }
0x264f   :  { %19279 = vmatprep.subr.bf16.mxu0 %v20433_v10  ;;  %19301 = vmatprep.subr.bf16.mxu1 %v20434_v14  ;;  %v24674_v10 = vpop.f32.mrf.mxu0  ;;  %v24679_v44 = vpop.f32.mrf.mxu1  ;;  %v20460_v14 = vld [vmem:[%s25032_s9 + $0x1690] sm:$0xff]  }
0x2652   :  { %19280 = vmatpush3.bf16.msra.mxu0 %v20435_v55  ;;  %19302 = vmatpush3.bf16.msra.mxu1 %v20436_v49  ;;  %v13013_v55 = vpop.f32.mrf.mxu0  ;;  %v12527_v49 = vrot.slane %v24576_v17, %v21096_v62  ;;  %v20466_v62 = vld [vmem:[%s25032_s9 + $0x16c0] sm:$0xff]  }
0x2653   :  { %19309 = vmatprep.subr.bf16.mxu0 %v20437_v29  ;;  %19331 = vmatprep.subr.bf16.mxu1 %v20438_v60  ;;  %v13056_v29 = vpop.f32.mrf.mxu1 }
0x2654   :  { %v13014_v60 = vadd.f32 %v13013_v55, %v12527_v49  ;;  %v13057_v46 = vadd.f32 %v13056_v29, %v12535_v2  ;;  %v13010_v20 = vadd.f32 %v13009_v24, %v12527_v49  ;;  %v20481_v24 = vld [vmem:[%s25032_s9 + $0x1760] sm:$0xff]   ;;  %v20493_v55 = vld [vmem:[%s25032_s9 + $0x1748] sm:$0xff]   ;;  %v12531_v49 = vrot.slane %v24576_v17, %v21181_v22 }
0x2655   :  { %14255 = vmatmul.mubr.bf16.vlgmr.msra.gmra.mxu0 %v13352_v16  ;;  %14296 = vmatmul.mubr.bf16.vlgmr.msra.gmra.mxu1 %v13354_v7  ;;  %v20470_v16 = vld [vmem:[%s25032_s9 + $0x17f8] sm:$0xff]   ;;  %v13069_v7 = vmax.f32 %v12965_v11, 0.0  ;;  %v20495_v29 = vld [vmem:[%s25032_s9 + $0x1708] sm:$0xff]   ;;  %v20498_v22 = vld [vmem:[%s25032_s9 + $0x17c0] sm:$0xff]   ;;  %v13008_v17 = vadd.f32 %v24646_v41, %v12523_v57 }
0x2656   :  { %19310 = vmatpush3.bf16.msra.mxu0 %v20439_v30  ;;  %14336 = vmatprep.mubr.bf16.mxu0 %v13357_v34  ;;  %v13085_v30 = vmax.f32 %v12969_v39, 0.0  ;;  %v13090_v27 = vmax.f32 %v13057_v46, 0.0  ;;  %v13356_v34 = vpack.c.bf16 %v13083_v45, %v13067_v37  ;;  %v13055_v39 = vadd.f32 %v24679_v44, %v12531_v49  ;;  %v20499_v2 = vld [vmem:[%s25032_s9 + $0x1700] sm:$0xff]  }
0x2657   :  { %19332 = vmatpush3.bf16.msra.mxu1 %v20440_v43  ;;  %14377 = vmatprep.mubr.bf16.mxu1 %v13359_v25  ;;  %v13088_v43 = vmax.f32 %v13014_v60, 0.0  ;;  %v20472_v25 = vld [vmem:[%s25032_s9 + $0x17b8] sm:$0xff]   ;;  %v20500_v44 = vld [vmem:[%s25032_s9 + $0x1780] sm:$0xff]   ;;  %v13071_v60 = vmax.f32 %v13008_v17, 0.0 }
0x2658   :  { %19311 = vmatprep.subr.bf16.mxu0 %v20441_v52  ;;  %19333 = vmatprep.subr.bf16.mxu1 %v20442_v1  ;;  %v20471_v52 = vld [vmem:[%s25032_s9 + $0x1738] sm:$0xff]   ;;  %v13072_v1 = vmax.f32 %v13010_v20, 0.0  ;;  %v13089_v31 = vmax.f32 %v13055_v39, 0.0 }
0x265a   :  { %19312 = vmatpush3.bf16.msra.mxu0 %v20443_v48  ;;  %v13358_v48 = vpack.c.bf16 %v13085_v30, %v13069_v7 }
0x265b   :  { %19334 = vmatpush3.bf16.msra.mxu1 %v20444_v56  ;;  %19313 = vmatprep.subr.bf16.mxu0 %v20445_v12  ;;  %v13074_v56 = vmax.f32 %v13053_v4, 0.0  ;;  %v20473_v12 = vld [vmem:[%s25032_s9 + $0x1770] sm:$0xff]  }
0x265c   :  { %19335 = vmatprep.subr.bf16.mxu1 %v20446_v38  ;;  %v13361_v38 = vpack.c.bf16 %v13088_v43, %v13072_v1 }
0x265e   :  { %19314 = vmatpush3.bf16.msra.mxu0 %v20447_v3  ;;  %v20474_v3 = vld [vmem:[%s25032_s9 + $0x17f0] sm:$0xff]  }
0x265f   :  { %19336 = vmatpush3.bf16.msra.mxu1 %v20448_v8  ;;  %19315 = vmatprep.subr.bf16.mxu0 %v20449_v18  ;;  %v13363_v8 = vpack.c.bf16 %v13090_v27, %v13074_v56  ;;  %v20475_v18 = vld [vmem:[%s25032_s9 + $0x1730] sm:$0xff]  }
0x2660   :  { %19337 = vmatprep.subr.bf16.mxu1 %v20450_v15  ;;  %v20476_v15 = vld [vmem:[%s25032_s9 + $0x17b0] sm:$0xff]  }
0x2662   :  { %19316 = vmatpush3.bf16.msra.mxu0 %v20451_v63  ;;  %v20477_v63 = vld [vmem:[%s25032_s9 + $0x1768] sm:$0xff]  }
0x2663   :  { %19338 = vmatpush3.bf16.msra.mxu1 %v20452_v50  ;;  %19317 = vmatprep.subr.bf16.mxu0 %v20453_v5  ;;  %v20478_v50 = vld [vmem:[%s25032_s9 + $0x17e8] sm:$0xff]  }
0x2664   :  { %19339 = vmatprep.subr.bf16.mxu1 %v20454_v42  ;;  %v20479_v5 = vld [vmem:[%s25032_s9 + $0x1728] sm:$0xff]  }
0x2665   :  { %v20480_v42 = vld [vmem:[%s25032_s9 + $0x17a8] sm:$0xff]  }
0x2666   :  { %19318 = vmatpush3.bf16.msra.mxu0 %v20455_v33  ;;  %v20482_v33 = vld [vmem:[%s25032_s9 + $0x17e0] sm:$0xff]  }
0x2667   :  { %19340 = vmatpush3.bf16.msra.mxu1 %v20456_v19  ;;  %19319 = vmatprep.subr.bf16.mxu0 %v20457_v28  ;;  %v20484_v19 = vld [vmem:[%s25032_s9 + $0x17a0] sm:$0xff]   ;;  %v20485_v28 = vld [vmem:[%s25032_s9 + $0x1758] sm:$0xff]  }
0x2668   :  { %19341 = vmatprep.subr.bf16.mxu1 %v20458_v35  ;;  %v20486_v35 = vld [vmem:[%s25032_s9 + $0x17d8] sm:$0xff]  }
0x266a   :  { %19320 = vmatpush3.bf16.msra.mxu0 %v20459_v0  ;;  %v20487_v0 = vld [vmem:[%s25032_s9 + $0x1718] sm:$0xff]  }
0x266b   :  { %19342 = vmatpush3.bf16.msra.mxu1 %v20460_v14  ;;  %19321 = vmatprep.subr.bf16.mxu0 %v20461_v40  ;;  %v20488_v14 = vld [vmem:[%s25032_s9 + $0x1798] sm:$0xff]   ;;  %v20489_v40 = vld [vmem:[%s25032_s9 + $0x1750] sm:$0xff]  }
0x266c   :  { %19343 = vmatprep.subr.bf16.mxu1 %v20462_v53  ;;  %v20490_v53 = vld [vmem:[%s25032_s9 + $0x17d0] sm:$0xff]  }
0x266e   :  { %19322 = vmatpush3.bf16.msra.mxu0 %v20463_v54  ;;  %v20494_v54 = vld [vmem:[%s25032_s9 + $0x17c8] sm:$0xff]  }
0x266f   :  { %19344 = vmatpush3.bf16.msra.mxu1 %v20464_v13  ;;  %19323 = vmatprep.subr.bf16.mxu0 %v20465_v58  ;;  %v13012_v13 = vadd.f32 %v24674_v10, %v12523_v57  ;;  %v20496_v58 = vld [vmem:[%s25032_s9 + $0x1788] sm:$0xff]   ;;  %v13051_v10 = vadd.f32 %v24651_v51, %v12531_v49 }
0x2670   :  { %19345 = vmatprep.subr.bf16.mxu1 %v20466_v62 }
0x2671   :  { %v13087_v62 = vmax.f32 %v13012_v13, 0.0  ;;  %v13073_v11 = vmax.f32 %v13051_v10, 0.0 }
0x2672   :  { %19324 = vmatpush3.bf16.msra.mxu0 %v20467_v36 }
0x2673   :  { %19346 = vmatpush3.bf16.msra.mxu1 %v20468_v9  ;;  %19353 = vmatprep.subr.bf16.mxu0 %v20469_v59  ;;  %v13360_v41 = vpack.c.bf16 %v13087_v62, %v13071_v60  ;;  %v13362_v51 = vpack.c.bf16 %v13089_v31, %v13073_v11 }
0x2674   :  { %19375 = vmatprep.subr.bf16.mxu1 %v20470_v16 }
0x2675   :  { %14337 = vmatmul.mubr.bf16.vlgmr.msra.gmra.mxu0 %v13356_v34 }
0x2676   :  { %14378 = vmatmul.mubr.bf16.vlgmr.msra.gmra.mxu1 %v13358_v48  ;;  %19354 = vmatpush3.bf16.msra.mxu0 %v20471_v52 }
0x2677   :  { %14418 = vmatprep.mubr.bf16.mxu0 %v13361_v38  ;;  %19376 = vmatpush3.bf16.msra.mxu1 %v20472_v25  ;;  %v18064_v25 = vld [vmem:[%s25033_s10 + $0x5] ss:$0 sm:$0xff] }
0x2678   :  { %14459 = vmatprep.mubr.bf16.mxu1 %v13363_v8  ;;  %19355 = vmatprep.subr.bf16.mxu0 %v20473_v12 }
0x2679   :  { %19377 = vmatprep.subr.bf16.mxu1 %v20474_v3 }
0x267a   :  { %19356 = vmatpush3.bf16.msra.mxu0 %v20475_v18 }
0x267b   :  { %19378 = vmatpush3.bf16.msra.mxu1 %v20476_v15  ;;  %19357 = vmatprep.subr.bf16.mxu0 %v20477_v63 }
0x267c   :  { %19379 = vmatprep.subr.bf16.mxu1 %v20478_v50 }
0x267e   :  { %19358 = vmatpush3.bf16.msra.mxu0 %v20479_v5 }
0x267f   :  { %19380 = vmatpush3.bf16.msra.mxu1 %v20480_v42  ;;  %19359 = vmatprep.subr.bf16.mxu0 %v20481_v24 }
0x2680   :  { %19381 = vmatprep.subr.bf16.mxu1 %v20482_v33 }
0x2682   :  { %19360 = vmatpush3.bf16.msra.mxu0 %v20483_v32 }
0x2683   :  { %19382 = vmatpush3.bf16.msra.mxu1 %v20484_v19  ;;  %19361 = vmatprep.subr.bf16.mxu0 %v20485_v28 }
0x2684   :  { %19383 = vmatprep.subr.bf16.mxu1 %v20486_v35 }
0x2686   :  { %19362 = vmatpush3.bf16.msra.mxu0 %v20487_v0 }
0x2687   :  { %19384 = vmatpush3.bf16.msra.mxu1 %v20488_v14  ;;  %19363 = vmatprep.subr.bf16.mxu0 %v20489_v40 }
0x2688   :  { %19385 = vmatprep.subr.bf16.mxu1 %v20490_v53 }
0x268a   :  { %19364 = vmatpush3.bf16.msra.mxu0 %v20491_v61 }
0x268b   :  { %19386 = vmatpush3.bf16.msra.mxu1 %v20492_v26  ;;  %19365 = vmatprep.subr.bf16.mxu0 %v20493_v55 }
0x268c   :  { %19387 = vmatprep.subr.bf16.mxu1 %v20494_v54 }
0x268e   :  { %19366 = vmatpush3.bf16.msra.mxu0 %v20495_v29 }
0x268f   :  { %19388 = vmatpush3.bf16.msra.mxu1 %v20496_v58  ;;  %19367 = vmatprep.subr.bf16.mxu0 %v20497_v21 }
0x2690   :  { %19389 = vmatprep.subr.bf16.mxu1 %v20498_v22 }
0x2692   :  { %19368 = vmatpush3.bf16.msra.mxu0 %v20499_v2 }
0x2693   :  { %19390 = vmatpush3.bf16.msra.mxu1 %v20500_v44  ;;  %19541 = vmatprep.subr.bf16.mxu0 %v20679_v6 }
0x2694   :  { %19549 = vmatprep.subr.bf16.mxu1 %v20679_v6 }
0x2695   :  { %14419 = vmatmul.mubr.bf16.vlgmr.msra.gmra.mxu0 %v13360_v41 }
0x2696   :  { %14460 = vmatmul.mubr.bf16.vlgmr.msra.gmra.mxu1 %v13362_v51  ;;  %19545 = vmatprep.mubr.msk.bf16.mxu0 %vm20680_vm0, %v20679_v6 }
0x2697   :  { %19553 = vmatprep.mubr.msk.bf16.mxu1 %vm20680_vm0, %v20679_v6 }
0x26f5   :  { %v19237_v46 = vpop.f32.mrf.mxu0  ;;  %v19259_v36 = vpop.f32.mrf.mxu1 }
0x26f7   :  { %v19238_v45 = vpop.f32.mrf.mxu0  ;;  %v19260_v20 = vpop.f32.mrf.mxu1 }
0x26f8   :  { %v19239_v1 = vadd.f32 %v19238_v45, %v19237_v46  ;;  %v19261_v18 = vadd.f32 %v19260_v20, %v19259_v36 }
0x26f9   :  { %v19240_v9 = vpop.f32.mrf.mxu0  ;;  %v19262_v59 = vpop.f32.mrf.mxu1 }
0x26fa   :  { %v14175_v12 = vadd.f32 %v19239_v1, %v18064_v25 }
0x26fb   :  { %v19241_v30 = vpop.f32.mrf.mxu0  ;;  %v19263_v16 = vpop.f32.mrf.mxu1 }
0x26fc   :  { %v19242_v38 = vadd.f32 %v19241_v30, %v19240_v9  ;;  %v14216_v63 = vadd.f32 %v19261_v18, %v14175_v12  ;;  %v19264_v24 = vadd.f32 %v19263_v16, %v19262_v59  ;;  %v20504_v12 = vld [vmem:[%s25036_s13 + $0x10] sm:$0xff]  }
0x26fe   :  { %v14178_v50 = vadd.f32 %v19242_v38, %v18064_v25 }
0x2700   :  { %v14219_v19 = vadd.f32 %v19264_v24, %v14178_v50  ;;  %v18196_v24 = vld [vmem:[%s25035_s12 + $0x5] ss:$0 sm:$0xff] }
0x2715   :  { %v19281_v4 = vpop.f32.mrf.mxu0  ;;  %v19303_v37 = vpop.f32.mrf.mxu1 }
0x2717   :  { %v19282_v43 = vpop.f32.mrf.mxu0  ;;  %v19304_v7 = vpop.f32.mrf.mxu1 }
0x2718   :  { %v19283_v15 = vadd.f32 %v19282_v43, %v19281_v4  ;;  %v19305_v28 = vadd.f32 %v19304_v7, %v19303_v37 }
0x2719   :  { %v19284_v27 = vpop.f32.mrf.mxu0  ;;  %v19306_v52 = vpop.f32.mrf.mxu1 }
0x271a   :  { %v14257_v33 = vadd.f32 %v19283_v15, %v14216_v63 }
0x271b   :  { %v19285_v34 = vpop.f32.mrf.mxu0  ;;  %v19307_v56 = vpop.f32.mrf.mxu1 }
0x271c   :  { %v19286_v32 = vadd.f32 %v19285_v34, %v19284_v27  ;;  %v14298_v40 = vadd.f32 %v19305_v28, %v14257_v33  ;;  %v19308_v61 = vadd.f32 %v19307_v56, %v19306_v52  ;;  %v20503_v56 = vld [vmem:[%s25036_s13] sm:$0xff]  }
0x271e   :  { %v14260_v53 = vadd.f32 %v19286_v32, %v14219_v19 }
0x2720   :  { %v14301_v49 = vadd.f32 %v19308_v61, %v14260_v53  ;;  %v20506_v61 = vld [vmem:[%s25036_s13 + $0x38] sm:$0xff]  }
0x2735   :  { %v19325_v48 = vpop.f32.mrf.mxu0 }
0x2736   :  { %v19347_v3 = vpop.f32.mrf.mxu1 }
0x2737   :  { %v19326_v8 = vpop.f32.mrf.mxu0 }
0x2738   :  { %v19348_v5 = vpop.f32.mrf.mxu1  ;;  %v19327_v35 = vadd.f32 %v19326_v8, %v19325_v48  ;;  %v20502_v48 = vld [vmem:[%s25036_s13 + $0x18] sm:$0xff]  }
0x2739   :  { %v19328_v42 = vpop.f32.mrf.mxu0  ;;  %v19349_v29 = vadd.f32 %v19348_v5, %v19347_v3  ;;  %19550 = vmatpush3.bf16.msra.mxu1 %v20502_v48  ;;  %v18195_v5 = vld [vmem:[%s25034_s11 + $0x5] ss:$0 sm:$0xff] }
0x273a   :  { %v19350_v0 = vpop.f32.mrf.mxu1  ;;  %v14339_v26 = vadd.f32 %v19327_v35, %v14298_v40  ;;  %19551 = vmatprep.subr.bf16.mxu1 %v20679_v6 }
0x273b   :  { %v19329_v14 = vpop.f32.mrf.mxu0 }
0x273c   :  { %v19330_v55 = vadd.f32 %v19329_v14, %v19328_v42  ;;  %v19351_v54 = vpop.f32.mrf.mxu1  ;;  %v14380_v21 = vadd.f32 %v19349_v29, %v14339_v26  ;;  %v20505_v14 = vld [vmem:[%s25036_s13 + $0x28] sm:$0xff]  }
0x273d   :  { %v19352_v2 = vadd.f32 %v19351_v54, %v19350_v0  ;;  %19552 = vmatpush3.bf16.msra.mxu1 %v20504_v12  ;;  %v20507_v54 = vld [vmem:[%s25036_s13 + $0x20] sm:$0xff]  }
0x273e   :  { %v14342_v39 = vadd.f32 %v19330_v55, %v14301_v49  ;;  %19565 = vmatprep.subr.bf16.mxu1 %v20679_v6  ;;  %v20527_v12 = vld [vmem:[%s25036_s13 + $0xc0] sm:$0xff]  }
0x2740   :  { %v14383_v11 = vadd.f32 %v19352_v2, %v14342_v39 }
0x2755   :  { %v19369_v57 = vpop.f32.mrf.mxu0 }
0x2756   :  { %v19391_v13 = vpop.f32.mrf.mxu1 }
0x2757   :  { %v19370_v58 = vpop.f32.mrf.mxu0 }
0x2758   :  { %v19371_v22 = vadd.f32 %v19370_v58, %v19369_v57  ;;  %v19392_v17 = vpop.f32.mrf.mxu1  ;;  %v20508_v57 = vld [vmem:[%s25036_s13 + $0x30] sm:$0xff]   ;;  %v20510_v58 = vld [vmem:[%s25036_s13 + $0x58] sm:$0xff]  }
0x2759   :  { %v19372_v10 = vpop.f32.mrf.mxu0  ;;  %v19393_v44 = vadd.f32 %v19392_v17, %v19391_v13  ;;  %v20509_v13 = vld [vmem:[%s25036_s13 + $0x48] sm:$0xff]   ;;  %v20512_v17 = vld [vmem:[%s25036_s13 + $0x50] sm:$0xff]  }
0x275a   :  { %v14421_v62 = vadd.f32 %v19371_v22, %v14380_v21  ;;  %v19394_v31 = vpop.f32.mrf.mxu1  ;;  %v20511_v22 = vld [vmem:[%s25036_s13 + $0x40] sm:$0xff]  }
0x275b   :  { %v19373_v60 = vpop.f32.mrf.mxu0 }
0x275c   :  { %v14462_v41 = vadd.f32 %v19393_v44, %v14421_v62  ;;  %v19374_v51 = vadd.f32 %v19373_v60, %v19372_v10  ;;  %v19395_v46 = vpop.f32.mrf.mxu1  ;;  %v20513_v62 = vld [vmem:[%s25036_s13 + $0x68] sm:$0xff]   ;;  %v20514_v44 = vld [vmem:[%s25036_s13 + $0x78] sm:$0xff]  }
0x275d   :  { %v19396_v45 = vadd.f32 %v19395_v46, %v19394_v31 }
0x275e   :  { %v14424_v36 = vadd.f32 %v19374_v51, %v14383_v11  ;;  %v14468_v20 = vadd.f32 %v14462_v41, %v24284_v23  ;;  %v20515_v11 = vld [vmem:[%s25036_s13 + $0x60] sm:$0xff]   ;;  %v20516_v41 = vld [vmem:[%s25036_s13 + $0x70] sm:$0xff]  }
0x2760   :  { %v14465_v9 = vadd.f32 %v19396_v45, %v14424_v36  ;;  %v14474_v59 = vsel %vm112_vm1, %v14468_v20, 0.0  ;;  %v20517_v36 = vld [vmem:[%s25036_s13 + $0x88] sm:$0xff]   ;;  %v20518_v45 = vld [vmem:[%s25036_s13 + $0x98] sm:$0xff]  }
0x2761   :  { %14475 = vadd.xlane.f32.xlu0 %v14474_v59  ;;  %v20519_v59 = vld [vmem:[%s25036_s13 + $0x80] sm:$0xff]  }
0x2762   :  { %v14469_v30 = vadd.f32 %v14465_v9, %v24286_v47  ;;  %v20501_v47 = vld [vmem:[%s25036_s13 + $0x8] sm:$0xff]  }
0x2763   :  { %19542 = vmatpush3.bf16.msra.mxu0 %v20501_v47  ;;  %v20526_v47 = vld [vmem:[%s25036_s13 + $0xd8] sm:$0xff]  }
0x2764   :  { %v14477_v4 = vsel %vm112_vm1, %v14469_v30, 0.0  ;;  %19543 = vmatprep.subr.bf16.mxu0 %v20679_v6 }
0x2765   :  { %14478 = vadd.xlane.f32.xlu1 %v14477_v4 }
0x2767   :  { %19544 = vmatpush3.bf16.msra.mxu0 %v20503_v56 }
0x2768   :  { %19557 = vmatprep.subr.bf16.mxu0 %v20679_v6 }
0x27ea   :  { %v14476_v16 = vpop.xlane.xlu0 %14475 }
0x27eb   :  { %v14480_v37 = vmul.f32 0.03125, %v14476_v16 }
0x27ed   :  { %v14482_v43 = vsub.f32 %v14468_v20, %v14480_v37  ;;  %v20521_v37 = vld [vmem:[%s25036_s13 + $0xa8] sm:$0xff]  }
0x27ee   :  { %v14479_v7 = vpop.xlane.xlu1 %14478 }
0x27ef   :  { %v14481_v27 = vmul.f32 0.03125, %v14479_v7  ;;  %v14484_v52 = vmul.f32 %v14482_v43, %v14482_v43 }
0x27f1   :  { %v14483_v34 = vsub.f32 %v14469_v30, %v14481_v27  ;;  %v14486_v1 = vsel %vm112_vm1, %v14484_v52, 0.0  ;;  %v20520_v30 = vld [vmem:[%s25036_s13 + $0x90] sm:$0xff]   ;;  %v20523_v52 = vld [vmem:[%s25036_s13 + $0xa0] sm:$0xff]  }
0x27f2   :  { %14487 = vadd.xlane.f32.xlu0 %v14486_v1 }
0x27f3   :  { %v14485_v23 = vmul.f32 %v14483_v34, %v14483_v34 }
0x27f5   :  { %v14489_v25 = vsel %vm112_vm1, %v14485_v23, 0.0 }
0x27f6   :  { %14490 = vadd.xlane.f32.xlu1 %v14489_v25  ;;  %v20525_v25 = vld [vmem:[%s25036_s13 + $0xc8] sm:$0xff]  }
0x287b   :  { %v14488_v38 = vpop.xlane.xlu0 %14487 }
0x287c   :  { %v14492_v3 = vmul.f32 0.03125, %v14488_v38  ;;  %v20528_v38 = vld [vmem:[%s25036_s13 + $0xd0] sm:$0xff]  }
0x287e   :  { %v14494_v8 = vadd.f32 1e-05, %v14492_v3 }
0x287f   :  { %v14491_v18 = vpop.xlane.xlu1 %14490 }
0x2880   :  { %20649 = vrsqrt.f32 %v14494_v8  ;;  %v14493_v15 = vmul.f32 0.03125, %v14491_v18  ;;  %v20529_v18 = vld [vmem:[%s25036_s13 + $0xe8] sm:$0xff]  }
0x2882   :  { %v14495_v63 = vadd.f32 1e-05, %v14493_v15  ;;  %v20530_v15 = vld [vmem:[%s25036_s13 + $0xf8] sm:$0xff]  }
0x2884   :  { %20651 = vrsqrt.f32 %v14495_v63 }
0x288d   :  { %v20650_v50 = vpop.eup %20649 }
0x288e   :  { %v14498_v42 = vmul.f32 %v20650_v50, %v14482_v43  ;;  %v20522_v43 = vld [vmem:[%s25036_s13 + $0xb8] sm:$0xff]  }
0x2890   :  { %v14506_v33 = vmul.f32 %v18195_v5, %v14498_v42  ;;  %v20532_v42 = vld [vmem:[%s25036_s13 + $0xf0] sm:$0xff]  }
0x2891   :  { %v20652_v32 = vpop.eup %20651 }
0x2892   :  { %v14514_v19 = vadd.f32 %v18196_v24, %v14506_v33  ;;  %v14499_v28 = vmul.f32 %v20652_v32, %v14483_v34  ;;  %v20524_v34 = vld [vmem:[%s25036_s13 + $0xb0] sm:$0xff]  }
0x2894   :  { %14516 = vst.msk [vmem:[#allocation2] sm:$0xff] %vm112_vm1, %v14514_v19  ;;  %v14507_v35 = vmul.f32 %v18195_v5, %v14499_v28  ;;  %v20531_v5 = vld [vmem:[%s25036_s13 + $0xe0] sm:$0xff]  }
0x2896   :  { %v14515_v0 = vadd.f32 %v18196_v24, %v14507_v35 }
0x2898   :  { %14517 = vst.msk [vmem:[#allocation2 + $0x8] sm:$0xff] %vm112_vm1, %v14515_v0 }
0x289b   :  { %v14519_v40 = vld [vmem:[#allocation2] sm:$0x1]  ;;  %v14581_v53 = vld [vmem:[#allocation2 + $0x1] sm:$0x1]  ;;  %v14644_v49 = vld [vmem:[#allocation2 + $0x2] sm:$0x1] }
0x289c   :  { %v14524_v26 = vpack.c.bf16 %v14519_v40, %v14519_v40  ;;  %v14587_v55 = vpack.c.bf16 %v14581_v53, %v14581_v53  ;;  %v14707_v29 = vld [vmem:[#allocation2 + $0x3] sm:$0x1]  ;;  %v14650_v21 = vpack.c.bf16 %v14644_v49, %v14644_v49  ;;  %v14770_v10 = vld [vmem:[#allocation2 + $0x4] sm:$0x1]  ;;  %v14833_v2 = vld [vmem:[#allocation2 + $0x5] sm:$0x1] }
0x289d   :  { %v14713_v39 = vpack.c.bf16 %v14707_v29, %v14707_v29  ;;  %v14776_v31 = vpack.c.bf16 %v14770_v10, %v14770_v10  ;;  %v14839_v60 = vpack.c.bf16 %v14833_v2, %v14833_v2  ;;  %v14896_v51 = vld [vmem:[#allocation2 + $0x6] sm:$0x1]  ;;  %v14959_v46 = vld [vmem:[#allocation2 + $0x7] sm:$0x1]  ;;  %v14518_v49 = vld [vmem:[%s25037_s14] sm:$0x1] }
0x289e   :  { %19546 = vmatmul.mubr.msk.bf16.vlgmr.msra.gmra.mxu0 %vm112_vm1, %v14524_v26  ;;  %19554 = vmatmul.mubr.msk.bf16.vlgmr.msra.gmra.mxu1 %vm112_vm1, %v14587_v55  ;;  %v14902_v20 = vpack.c.bf16 %v14896_v51, %v14896_v51  ;;  %v14965_v9 = vpack.c.bf16 %v14959_v46, %v14959_v46  ;;  %s20681_s14 = smov [#allocation4]  }
0x289f   :  { %19558 = vmatpush3.bf16.msra.mxu0 %v20505_v14  ;;  %19566 = vmatpush3.bf16.msra.mxu1 %v20506_v61  ;;  %v15022_v4 = vld [vmem:[#allocation2 + $0x8] sm:$0x1]  ;;  %v15085_v16 = vld [vmem:[#allocation2 + $0x9] sm:$0x1]  ;;  %v15148_v1 = vld [vmem:[#allocation2 + $0xa] sm:$0x1] }
0x28a0   :  { %19559 = vmatprep.subr.bf16.mxu0 %v20679_v6  ;;  %19567 = vmatprep.subr.bf16.mxu1 %v20679_v6  ;;  %v15028_v7 = vpack.c.bf16 %v15022_v4, %v15022_v4  ;;  %v15091_v27 = vpack.c.bf16 %v15085_v16, %v15085_v16  ;;  %v15211_v23 = vld [vmem:[#allocation2 + $0xb] sm:$0x1]  ;;  %v15154_v48 = vpack.c.bf16 %v15148_v1, %v15148_v1  ;;  %v15274_v3 = vld [vmem:[#allocation2 + $0xc] sm:$0x1]  ;;  %v15337_v8 = vld [vmem:[#allocation2 + $0xd] sm:$0x1] }
0x28a1   :  { %19561 = vmatprep.mubr.msk.bf16.mxu0 %vm20680_vm0, %v20679_v6  ;;  %19569 = vmatprep.mubr.msk.bf16.mxu1 %vm20680_vm0, %v20679_v6  ;;  %v15217_v56 = vpack.c.bf16 %v15211_v23, %v15211_v23  ;;  %v15280_v63 = vpack.c.bf16 %v15274_v3, %v15274_v3  ;;  %v15343_v50 = vpack.c.bf16 %v15337_v8, %v15337_v8  ;;  %v15400_v24 = vld [vmem:[#allocation2 + $0xe] sm:$0x1]  ;;  %v15463_v33 = vld [vmem:[#allocation2 + $0xf] sm:$0x1]  ;;  %s15534_s6 = sshll.u32 %s20681_s14, 4  ;;  %s15535_s6 = int_to_ptr.vmem [resolvable:$true] %s15534_s6 }
0x28a2   :  { %v15406_v32 = vpack.c.bf16 %v15400_v24, %v15400_v24  ;;  %v15469_v19 = vpack.c.bf16 %v15463_v33, %v15463_v33  ;;  %s20656_s11 = scalar_lea.vmem %s15535_s6, 16  ;;  %s20660_s20 = scalar_lea.vmem %s15535_s6, 32 }
0x28a3   :  { %19560 = vmatpush3.bf16.msra.mxu0 %v20507_v54  ;;  %19568 = vmatpush3.bf16.msra.mxu1 %v20508_v57  ;;  %p20657_p0 = scmp.ne.s32.totalorder %s15535_s6, %s20656_s11  ;;  %p20661_p1 = scmp.lt.s32.totalorder %s15535_s6, %s15535_s6 }
0x28a4   :  { %19573 = vmatprep.subr.bf16.mxu0 %v20679_v6  ;;  %19581 = vmatprep.subr.bf16.mxu1 %v20679_v6  ;;  %p20662_p2 = scmp.lt.s32.totalorder %s20660_s20, %s20656_s11 }
0x28a6   :  { %19562 = vmatmul.mubr.msk.bf16.vlgmr.msra.gmra.mxu0 %vm112_vm1, %v14650_v21  ;;  %19570 = vmatmul.mubr.msk.bf16.vlgmr.msra.gmra.mxu1 %vm112_vm1, %v14713_v39  ;;  %p20663_p3 = por %p20662_p2, %p20661_p1 }
0x28a7   :  { %19574 = vmatpush3.bf16.msra.mxu0 %v20509_v13  ;;  %19582 = vmatpush3.bf16.msra.mxu1 %v20510_v58 }
0x28a8   :  { %19575 = vmatprep.subr.bf16.mxu0 %v20679_v6  ;;  %19583 = vmatprep.subr.bf16.mxu1 %v20679_v6  ;;  %p20664_p4 = pnand %p20663_p3, %p20657_p0 }
0x28a9   :  { %19577 = vmatprep.mubr.msk.bf16.mxu0 %vm20680_vm0, %v20679_v6  ;;  %19585 = vmatprep.mubr.msk.bf16.mxu1 %vm20680_vm0, %v20679_v6 }
0x28ab   :  { %19576 = vmatpush3.bf16.msra.mxu0 %v20511_v22  ;;  %19584 = vmatpush3.bf16.msra.mxu1 %v20512_v17 }
0x28ac   :  { %19589 = vmatprep.subr.bf16.mxu0 %v20679_v6  ;;  %19597 = vmatprep.subr.bf16.mxu1 %v20679_v6 }
0x28ae   :  { %19578 = vmatmul.mubr.msk.bf16.vlgmr.msra.gmra.mxu0 %vm112_vm1, %v14776_v31  ;;  %19586 = vmatmul.mubr.msk.bf16.vlgmr.msra.gmra.mxu1 %vm112_vm1, %v14839_v60 }
0x28af   :  { %19590 = vmatpush3.bf16.msra.mxu0 %v20513_v62  ;;  %19598 = vmatpush3.bf16.msra.mxu1 %v20514_v44 }
0x28b0   :  { %19591 = vmatprep.subr.bf16.mxu0 %v20679_v6  ;;  %19599 = vmatprep.subr.bf16.mxu1 %v20679_v6 }
0x28b1   :  { %19593 = vmatprep.mubr.msk.bf16.mxu0 %vm20680_vm0, %v20679_v6  ;;  %19601 = vmatprep.mubr.msk.bf16.mxu1 %vm20680_vm0, %v20679_v6 }
0x28b3   :  { %19592 = vmatpush3.bf16.msra.mxu0 %v20515_v11  ;;  %19600 = vmatpush3.bf16.msra.mxu1 %v20516_v41 }
0x28b4   :  { %19605 = vmatprep.subr.bf16.mxu0 %v20679_v6  ;;  %19613 = vmatprep.subr.bf16.mxu1 %v20679_v6 }
0x28b6   :  { %19594 = vmatmul.mubr.msk.bf16.vlgmr.msra.gmra.mxu0 %vm112_vm1, %v14902_v20  ;;  %19602 = vmatmul.mubr.msk.bf16.vlgmr.msra.gmra.mxu1 %vm112_vm1, %v14965_v9 }
0x28b7   :  { %19606 = vmatpush3.bf16.msra.mxu0 %v20517_v36  ;;  %19614 = vmatpush3.bf16.msra.mxu1 %v20518_v45 }
0x28b8   :  { %19607 = vmatprep.subr.bf16.mxu0 %v20679_v6  ;;  %19615 = vmatprep.subr.bf16.mxu1 %v20679_v6 }
0x28b9   :  { %19609 = vmatprep.mubr.msk.bf16.mxu0 %vm20680_vm0, %v20679_v6  ;;  %19617 = vmatprep.mubr.msk.bf16.mxu1 %vm20680_vm0, %v20679_v6 }
0x28bb   :  { %19608 = vmatpush3.bf16.msra.mxu0 %v20519_v59  ;;  %19616 = vmatpush3.bf16.msra.mxu1 %v20520_v30 }
0x28bc   :  { %19621 = vmatprep.subr.bf16.mxu0 %v20679_v6  ;;  %19629 = vmatprep.subr.bf16.mxu1 %v20679_v6 }
0x28be   :  { %19610 = vmatmul.mubr.msk.bf16.vlgmr.msra.gmra.mxu0 %vm112_vm1, %v15028_v7  ;;  %19618 = vmatmul.mubr.msk.bf16.vlgmr.msra.gmra.mxu1 %vm112_vm1, %v15091_v27 }
0x28bf   :  { %19622 = vmatpush3.bf16.msra.mxu0 %v20521_v37  ;;  %19630 = vmatpush3.bf16.msra.mxu1 %v20522_v43 }
0x28c0   :  { %19623 = vmatprep.subr.bf16.mxu0 %v20679_v6  ;;  %19631 = vmatprep.subr.bf16.mxu1 %v20679_v6 }
0x28c1   :  { %19625 = vmatprep.mubr.msk.bf16.mxu0 %vm20680_vm0, %v20679_v6  ;;  %19633 = vmatprep.mubr.msk.bf16.mxu1 %vm20680_vm0, %v20679_v6 }
0x28c3   :  { %19624 = vmatpush3.bf16.msra.mxu0 %v20523_v52  ;;  %19632 = vmatpush3.bf16.msra.mxu1 %v20524_v34 }
0x28c4   :  { %19637 = vmatprep.subr.bf16.mxu0 %v20679_v6  ;;  %19645 = vmatprep.subr.bf16.mxu1 %v20679_v6 }
0x28c6   :  { %19626 = vmatmul.mubr.msk.bf16.vlgmr.msra.gmra.mxu0 %vm112_vm1, %v15154_v48  ;;  %19634 = vmatmul.mubr.msk.bf16.vlgmr.msra.gmra.mxu1 %vm112_vm1, %v15217_v56 }
0x28c7   :  { %19638 = vmatpush3.bf16.msra.mxu0 %v20525_v25  ;;  %19646 = vmatpush3.bf16.msra.mxu1 %v20526_v47 }
0x28c8   :  { %19639 = vmatprep.subr.bf16.mxu0 %v20679_v6  ;;  %19647 = vmatprep.subr.bf16.mxu1 %v20679_v6 }
0x28c9   :  { %19641 = vmatprep.mubr.msk.bf16.mxu0 %vm20680_vm0, %v20679_v6  ;;  %19649 = vmatprep.mubr.msk.bf16.mxu1 %vm20680_vm0, %v20679_v6 }
0x28cb   :  { %19640 = vmatpush3.bf16.msra.mxu0 %v20527_v12  ;;  %19648 = vmatpush3.bf16.msra.mxu1 %v20528_v38 }
0x28cc   :  { %19653 = vmatprep.subr.bf16.mxu0 %v20679_v6  ;;  %19661 = vmatprep.subr.bf16.mxu1 %v20679_v6 }
0x28ce   :  { %19642 = vmatmul.mubr.msk.bf16.vlgmr.msra.gmra.mxu0 %vm112_vm1, %v15280_v63  ;;  %19650 = vmatmul.mubr.msk.bf16.vlgmr.msra.gmra.mxu1 %vm112_vm1, %v15343_v50 }
0x28cf   :  { %19654 = vmatpush3.bf16.msra.mxu0 %v20529_v18  ;;  %19662 = vmatpush3.bf16.msra.mxu1 %v20530_v15 }
0x28d0   :  { %19655 = vmatprep.subr.bf16.mxu0 %v20679_v6  ;;  %19663 = vmatprep.subr.bf16.mxu1 %v20679_v6 }
0x28d1   :  { %19657 = vmatprep.mubr.msk.bf16.mxu0 %vm20680_vm0, %v20679_v6  ;;  %19665 = vmatprep.mubr.msk.bf16.mxu1 %vm20680_vm0, %v20679_v6 }
0x28d3   :  { %19656 = vmatpush3.bf16.msra.mxu0 %v20531_v5  ;;  %19664 = vmatpush3.bf16.msra.mxu1 %v20532_v42 }
0x28d6   :  { %19658 = vmatmul.mubr.msk.bf16.vlgmr.msra.gmra.mxu0 %vm112_vm1, %v15406_v32  ;;  %19666 = vmatmul.mubr.msk.bf16.vlgmr.msra.gmra.mxu1 %vm112_vm1, %v15469_v19 }
0x295e   :  { %v14574_v28 = vpop.f32.mrf.mxu0  ;;  %v14637_v35 = vpop.f32.mrf.mxu1 }
0x295f   :  { %v14580_v39 = vadd.f32 %v14574_v28, %v14518_v49 }
0x2960   :  { %v19547_v0 = vpop.f32.mrf.mxu0  ;;  %v19555_v14 = vpop.f32.mrf.mxu1 }
0x2961   :  { %v14643_v62 = vadd.f32 %v14637_v35, %v14580_v39 }
0x2962   :  { %v14577_v40 = vpop.f32.mrf.mxu0  ;;  %v14640_v53 = vpop.f32.mrf.mxu1 }
0x2964   :  { %v19548_v61 = vpop.f32.mrf.mxu0  ;;  %v19556_v26 = vpop.f32.mrf.mxu1 }
0x2966   :  { %v14700_v55 = vpop.f32.mrf.mxu0  ;;  %v14763_v6 = vpop.f32.mrf.mxu1 }
0x2967   :  { %v14706_v60 = vadd.f32 %v14700_v55, %v14643_v62 }
0x2968   :  { %v19563_v54 = vpop.f32.mrf.mxu0  ;;  %v19571_v57 = vpop.f32.mrf.mxu1 }
0x2969   :  { %v14769_v36 = vadd.f32 %v14763_v6, %v14706_v60 }
0x296a   :  { %v14703_v29 = vpop.f32.mrf.mxu0  ;;  %v14766_v13 = vpop.f32.mrf.mxu1 }
0x296c   :  { %v19564_v58 = vpop.f32.mrf.mxu0  ;;  %v19572_v21 = vpop.f32.mrf.mxu1 }
0x296e   :  { %v14826_v22 = vpop.f32.mrf.mxu0  ;;  %v14889_v17 = vpop.f32.mrf.mxu1 }
0x296f   :  { %v14832_v9 = vadd.f32 %v14826_v22, %v14769_v36 }
0x2970   :  { %v19579_v10 = vpop.f32.mrf.mxu0  ;;  %v19587_v2 = vpop.f32.mrf.mxu1 }
0x2971   :  { %v14895_v37 = vadd.f32 %v14889_v17, %v14832_v9 }
0x2972   :  { %v14829_v44 = vpop.f32.mrf.mxu0  ;;  %v14892_v31 = vpop.f32.mrf.mxu1 }
0x2974   :  { %v19580_v11 = vpop.f32.mrf.mxu0  ;;  %v19588_v41 = vpop.f32.mrf.mxu1 }
0x2976   :  { %v14952_v51 = vpop.f32.mrf.mxu0  ;;  %v15015_v46 = vpop.f32.mrf.mxu1 }
0x2977   :  { %v14958_v27 = vadd.f32 %v14952_v51, %v14895_v37 }
0x2978   :  { %v19595_v45 = vpop.f32.mrf.mxu0  ;;  %v19603_v20 = vpop.f32.mrf.mxu1 }
0x2979   :  { %v15021_v25 = vadd.f32 %v15015_v46, %v14958_v27 }
0x297a   :  { %v14955_v59 = vpop.f32.mrf.mxu0  ;;  %v15018_v30 = vpop.f32.mrf.mxu1 }
0x297c   :  { %v19596_v4 = vpop.f32.mrf.mxu0  ;;  %v19604_v16 = vpop.f32.mrf.mxu1 }
0x297e   :  { %v15078_v43 = vpop.f32.mrf.mxu0  ;;  %v15141_v7 = vpop.f32.mrf.mxu1 }
0x297f   :  { %v15084_v56 = vadd.f32 %v15078_v43, %v15021_v25 }
0x2980   :  { %v19611_v52 = vpop.f32.mrf.mxu0  ;;  %v19619_v34 = vpop.f32.mrf.mxu1 }
0x2981   :  { %v15147_v18 = vadd.f32 %v15141_v7, %v15084_v56 }
0x2982   :  { %v15081_v1 = vpop.f32.mrf.mxu0  ;;  %v15144_v23 = vpop.f32.mrf.mxu1 }
0x2984   :  { %v19612_v47 = vpop.f32.mrf.mxu0  ;;  %v19620_v48 = vpop.f32.mrf.mxu1 }
0x2986   :  { %v15204_v12 = vpop.f32.mrf.mxu0  ;;  %v15267_v38 = vpop.f32.mrf.mxu1 }
0x2987   :  { %v15210_v50 = vadd.f32 %v15204_v12, %v15147_v18 }
0x2988   :  { %v19627_v3 = vpop.f32.mrf.mxu0  ;;  %v19635_v8 = vpop.f32.mrf.mxu1 }
0x2989   :  { %v15273_v32 = vadd.f32 %v15267_v38, %v15210_v50 }
0x298a   :  { %v15207_v15 = vpop.f32.mrf.mxu0  ;;  %v15270_v63 = vpop.f32.mrf.mxu1 }
0x298c   :  { %v19628_v5 = vpop.f32.mrf.mxu0  ;;  %v19636_v42 = vpop.f32.mrf.mxu1 }
0x298e   :  { %v15330_v24 = vpop.f32.mrf.mxu0  ;;  %v15393_v33 = vpop.f32.mrf.mxu1 }
0x298f   :  { %v15336_v35 = vadd.f32 %v15330_v24, %v15273_v32 }
0x2990   :  { %v19643_v19 = vpop.f32.mrf.mxu0  ;;  %v19651_v28 = vpop.f32.mrf.mxu1 }
0x2991   :  { %v15399_v61 = vadd.f32 %v15393_v33, %v15336_v35 }
0x2992   :  { %v15333_v0 = vpop.f32.mrf.mxu0  ;;  %v15396_v14 = vpop.f32.mrf.mxu1 }
0x2994   :  { %v19644_v40 = vpop.f32.mrf.mxu0  ;;  %v19652_v53 = vpop.f32.mrf.mxu1 }
0x2996   :  { %v15456_v26 = vpop.f32.mrf.mxu0  ;;  %v15519_v55 = vpop.f32.mrf.mxu1 }
0x2997   :  { %v15462_v6 = vadd.f32 %v15456_v26, %v15399_v61 }
0x2998   :  { %v19659_v54 = vpop.f32.mrf.mxu0  ;;  %v19667_v57 = vpop.f32.mrf.mxu1 }
0x2999   :  { %v15525_v49 = vadd.f32 %v15519_v55, %v15462_v6 }
0x299a   :  { %v15459_v29 = vpop.f32.mrf.mxu0  ;;  %v15522_v13 = vpop.f32.mrf.mxu1 }
0x299b   :  { %15527 = vst.msk [vmem:[#allocation4] sm:$0x1] %vm15526_vm2, %v15525_v49 }
0x299c   :  { %v19660_v58 = vpop.f32.mrf.mxu0  ;;  %v19668_v21 = vpop.f32.mrf.mxu1 }
0x299d   :  { %20667 = shalt.err (!%p20664_p4)
}
0x299e   :  { %15537 = dma.vmem_to_hbm [thread:$0]  %s15535_s6, 16, %s25038_s15, [#allocation5]  }
0x299f   :  { %20676 = dma.done.wait [#allocation5], 16  }
0x29a0   :  { %20677 = vsyncadd [#allocation5], 4294967280 }
0x29a1   :  { %15541 = vsyncpa [#allocation5], 1 }

</bundles_post_ra>
